<compile_context>
chip_gen: v6e
topology: v6e:2x2x1
jax: 0.10.0
libtpu: 0.0.40
codegen_flags: <defaults>
</compile_context>

<pallas_src>
import jax
import jax.numpy as jnp
from jax import lax
from jax.experimental import pallas as pl
from jax.experimental.pallas import tpu as pltpu

# ---------------- static voxelizer config (DynamicVoxelizer.__init__) -------
VOXEL_SIZE = (0.5, 0.5, 6.0)                       # (vx, vy, vz)
PC_RANGE = (0.0, -10.0, -3.0, 20.0, 10.0, 3.0)     # (xmin, ymin, zmin, xmax, ymax, zmax)

NX = int(round((PC_RANGE[3] - PC_RANGE[0]) / VOXEL_SIZE[0]))   # 40
NY = int(round((PC_RANGE[4] - PC_RANGE[1]) / VOXEL_SIZE[1]))   # 40
NZ = int(round((PC_RANGE[5] - PC_RANGE[2]) / VOXEL_SIZE[2]))   # 1
SENTINEL = NX * NY * NZ            # pillar id larger than any valid id (1600)

MAX_PILLARS = 128                  # static cap on pillars per sample
MAX_POINTS = 16                    # static cap on points per pillar
C_PT = 4                           # point channels (x, y, z, intensity)

TILE = 1024                        # rank kernel: i-tile (lanes) == j-chunk (sublanes)
SUB_J = 256                        # in-kernel j sub-chunk (keeps intermediates ~1 MiB)
PAD_MULT = TILE                    # points padded to a multiple of this


# ---------------------------------------------------------------------------
# Kernel 1: per-point voxelization.  Lane-dense layout: points come in as
# (C, VT) (channel on sublanes, point index on lanes); output is a single
# int32 pillar id per point, written as a (1, VT) lane-dense row.
# ---------------------------------------------------------------------------
def _voxelize_kernel(pts_ref, vid_ref):
    pts = pts_ref[0]                       # (C_PT, VT) f32
    x = pts[0:1, :]                        # (1, VT)
    y = pts[1:2, :]
    z = pts[2:3, :]
    # NOTE: exact division kept on purpose (1/6.0 reciprocal would be inexact
    # and could flip floor() at the z-range boundary).
    cx = jnp.floor((x - PC_RANGE[0]) / VOXEL_SIZE[0]).astype(jnp.int32)
    cy = jnp.floor((y - PC_RANGE[1]) / VOXEL_SIZE[1]).astype(jnp.int32)
    cz = jnp.floor((z - PC_RANGE[2]) / VOXEL_SIZE[2]).astype(jnp.int32)
    valid = ((cx >= 0) & (cx < NX) &
             (cy >= 0) & (cy < NY) &
             (cz >= 0) & (cz < NZ))
    vid_ref[0] = jnp.where(valid, cy * NX + cx, SENTINEL)     # (1, VT)


# ---------------------------------------------------------------------------
# Kernel 2: within-pillar rank — rank[i] = #{ j < i : vid[j] == vid[i] }.
# The reduction grid is triangular: a single flattened step axis enumerates
# only the (ki, kj) pairs with kj <= ki (SMEM tables from scalar prefetch map
# step -> ki / kj and drive the index_maps).  Chunks with kj < ki are strictly
# below the diagonal and use an unmasked compare+sum; only kj == ki needs the
# local j < i mask.  Contributions accumulate directly into the output block,
# which stays VMEM-resident across all steps sharing the same ki.
# ---------------------------------------------------------------------------
def _rank_kernel(ki_tbl, kj_tbl, vid_i_ref, vid_j_ref, rank_ref):
    step = pl.program_id(1)
    ki = ki_tbl[step]
    kj = kj_tbl[step]

    @pl.when(kj == 0)
    def _init():
        rank_ref[0] = jnp.zeros((1, TILE), jnp.int32)

    vid_i = vid_i_ref[0]                               # (1, TILE) i32

    def _contrib(masked):
        # Process the 1024-point j-chunk in SUB_J-row sub-chunks so the
        # (SUB_J, TILE) intermediates stay small (~1 MiB) and vreg-friendly.
        if masked:
            ii = lax.broadcasted_iota(jnp.int32, (SUB_J, TILE), 1)
            jj = lax.broadcasted_iota(jnp.int32, (SUB_J, TILE), 0)
        acc = jnp.zeros((1, TILE), jnp.int32)
        for s in range(TILE // SUB_J):
            vj = vid_j_ref[0, s * SUB_J:(s + 1) * SUB_J, :]     # (SUB_J, 1)
            eq = vj == vid_i                                    # (SUB_J, TILE)
            if masked:
                # kj == ki -> global offsets cancel; local j < i is exact.
                eq = eq & ((jj + s * SUB_J) < ii)
            acc = acc + jnp.sum(eq.astype(jnp.int32), axis=0, keepdims=True)
        return acc

    @pl.when(kj == ki)          # diagonal-straddling chunk: masked path
    def _diag():
        rank_ref[0] = rank_ref[0] + _contrib(True)

    @pl.when(kj != ki)          # strictly below diagonal: unmasked path
    def _below():
        rank_ref[0] = rank_ref[0] + _contrib(False)


# ---------------------------------------------------------------------------
# Plain-JAX compaction: dense 1600-bin histogram + exclusive cumsum gives the
# same (id-sorted) pillar slot assignment as torch-style unique, without a
# sort.  Runs per sample under vmap.
# TODO(synk): the reference torch DynamicVoxelizer has no pillar cap; here any
# pillars beyond MAX_PILLARS (largest ids) and points beyond MAX_POINTS per
# pillar are silently dropped to keep shapes static.
# ---------------------------------------------------------------------------
def _compact_sample(pts, vid, rank, batch_idx):
    n, c = pts.shape
    valid = vid < SENTINEL

    # histogram over pillar bins (invalid points have vid == SENTINEL -> OOB -> dropped)
    counts_bins = jnp.zeros((SENTINEL,), jnp.int32).at[vid].add(1, mode="drop")
    occupied = counts_bins > 0
    occ_i = occupied.astype(jnp.int32)
    slot_of_bin = jnp.cumsum(occ_i) - occ_i                      # exclusive cumsum
    num_occ = jnp.sum(occ_i)

    # per-point slot / rank scatter into the padded pillar tensor
    slot_pt = jnp.take(slot_of_bin, jnp.clip(vid, 0, SENTINEL - 1))
    point_ok = valid & (slot_pt < MAX_PILLARS) & (rank < MAX_POINTS)
    s = jnp.where(point_ok, slot_pt, MAX_PILLARS)                # OOB -> dropped
    r = jnp.where(point_ok, rank, MAX_POINTS)
    pillars = jnp.zeros((MAX_PILLARS, MAX_POINTS, c), pts.dtype)
    pillars = pillars.at[s, r].set(pts, mode="drop")

    # per-pillar metadata (scatter occupied bins into their slots)
    bin_ids = jnp.arange(SENTINEL, dtype=jnp.int32)
    slot_tgt = jnp.where(occupied & (slot_of_bin < MAX_PILLARS),
                         slot_of_bin, MAX_PILLARS)
    pillar_vid = jnp.zeros((MAX_PILLARS,), jnp.int32).at[slot_tgt].set(
        bin_ids, mode="drop")
    npts = jnp.zeros((MAX_PILLARS,), jnp.int32).at[slot_tgt].set(
        jnp.minimum(counts_bins, MAX_POINTS).astype(jnp.int32), mode="drop")

    pillar_ok = jnp.arange(MAX_PILLARS) < jnp.minimum(num_occ, MAX_PILLARS)
    py = pillar_vid // NX
    px = pillar_vid % NX
    coors = jnp.stack([jnp.full_like(py, batch_idx),
                       jnp.zeros_like(py), py, px], axis=1)
    coors = jnp.where(pillar_ok[:, None], coors, -1).astype(jnp.int32)
    npts = jnp.where(pillar_ok, npts, 0).astype(jnp.int32)
    return pillars, coors, npts


def _pick_vox_tile(n):
    # largest lane-dense tile (multiple of TILE) that evenly divides n
    for t in (8192, 4096, 2048):
        if n % t == 0:
            return t
    return TILE


# ---------------------------------------------------------------------------
# Batched wrapper — single jit compile for the whole (padded) batch.
# ---------------------------------------------------------------------------
@jax.jit
def _voxelize_batch(pts_b):
    """pts_b: (B, N, C_PT) float32, padded with far out-of-range points."""
    bsz, n, c = pts_b.shape
    pts_t = jnp.transpose(pts_b, (0, 2, 1))        # (B, C, N): lane-dense points

    vt = _pick_vox_tile(n)
    vid = pl.pallas_call(
        _voxelize_kernel,
        out_shape=jax.ShapeDtypeStruct((bsz, 1, n), jnp.int32),
        grid=(bsz, n // vt),
        in_specs=[pl.BlockSpec((1, c, vt), lambda b, i: (b, 0, i))],
        out_specs=pl.BlockSpec((1, 1, vt), lambda b, i: (b, 0, i)),
        compiler_params=pltpu.CompilerParams(
            dimension_semantics=("parallel", "parallel")),
    )(pts_t)                                       # (B, 1, N)

    # Sublane-layout copy of the pillar ids for the j-operand of the rank
    # kernel (see TODO(synk) at the top about eliminating this relayout).
    vid_col = vid.reshape(bsz, n, 1)

    # Flattened lower-triangular (ki, kj) step tables (static, from the shape).
    n_tiles = n // TILE
    tri = [(ki, kj) for ki in range(n_tiles) for kj in range(ki + 1)]
    ki_tbl = jnp.array([t[0] for t in tri], dtype=jnp.int32)
    kj_tbl = jnp.array([t[1] for t in tri], dtype=jnp.int32)
    n_steps = len(tri)

    rank = pl.pallas_call(
        _rank_kernel,
        out_shape=jax.ShapeDtypeStruct((bsz, 1, n), jnp.int32),
        grid_spec=pltpu.PrefetchScalarGridSpec(
            num_scalar_prefetch=2,
            grid=(bsz, n_steps),
            in_specs=[pl.BlockSpec((1, 1, TILE),
                                   lambda b, s, kit, kjt: (b, 0, kit[s])),
                      pl.BlockSpec((1, TILE, 1),
                                   lambda b, s, kit, kjt: (b, kjt[s], 0))],
            out_specs=pl.BlockSpec((1, 1, TILE),
                                   lambda b, s, kit, kjt: (b, 0, kit[s]))),
        compiler_params=pltpu.CompilerParams(
            dimension_semantics=("parallel", "arbitrary"),
            vmem_limit_bytes=32 * 1024 * 1024),
    )(ki_tbl, kj_tbl, vid, vid_col)                # (B, 1, N)

    vid_flat = vid.reshape(bsz, n)
    rank_flat = rank.reshape(bsz, n)
    batch_ids = jnp.arange(bsz, dtype=jnp.int32)
    pillars, coors, npts = jax.vmap(_compact_sample)(
        pts_b, vid_flat, rank_flat, batch_ids)

    return (pillars.reshape(bsz * MAX_PILLARS, MAX_POINTS, c),
            coors.reshape(bsz * MAX_PILLARS, 4),
            npts.reshape(bsz * MAX_PILLARS))


def _pad_points(pts, n_pad):
    n = pts.shape[0]
    if n_pad == n:
        return pts
    # padding points are far outside the range -> always invalid (vid=SENTINEL)
    pad = jnp.full((n_pad - n, pts.shape[1]), PC_RANGE[0] - 1.0e4, pts.dtype)
    return jnp.concatenate([pts, pad], axis=0)


def dynamic_voxelizer(batched_pts):
    """batched_pts: list of (Ni, 4) float32 arrays."""
    n_max = max(int(p.shape[0]) for p in batched_pts)
    n_pad = max(PAD_MULT, ((n_max + PAD_MULT - 1) // PAD_MULT) * PAD_MULT)
    padded = jnp.stack([_pad_points(p, n_pad) for p in batched_pts], axis=0)
    return _voxelize_batch(padded)


# ---------------------------------------------------------------------------
if __name__ == "__main__":
    key = jax.random.PRNGKey(0)
    k1, k2 = jax.random.split(key)

    def make_pts(k, n):
        kx, ky, kz, kr = jax.random.split(k, 4)
        x = jax.random.uniform(kx, (n, 1), minval=-2.0, maxval=22.0)
        y = jax.random.uniform(ky, (n, 1), minval=-12.0, maxval=12.0)
        z = jax.random.uniform(kz, (n, 1), minval=-4.0, maxval=4.0)
        r = jax.random.uniform(kr, (n, 1), minval=0.0, maxval=1.0)
        return jnp.concatenate([x, y, z, r], axis=1).astype(jnp.float32)

    batched_pts = [make_pts(k1, 256), make_pts(k2, 200)]

    pillars, coors_batch, num_points_per_pillar = dynamic_voxelizer(batched_pts)
    jax.block_until_ready((pillars, coors_batch, num_points_per_pillar))

    assert pillars.shape == (2 * MAX_PILLARS, MAX_POINTS, C_PT)
    assert pillars.dtype == jnp.float32
    assert coors_batch.shape == (2 * MAX_PILLARS, 4)
    assert coors_batch.dtype == jnp.int32
    assert num_points_per_pillar.shape == (2 * MAX_PILLARS,)
    assert num_points_per_pillar.dtype == jnp.int32
    # sanity: some pillars are populated and all coords are in-range or -1
    assert int(jnp.sum(num_points_per_pillar)) > 0
    valid_coors = coors_batch[num_points_per_pillar > 0]
    assert bool(jnp.all(valid_coors[:, 2] >= 0)) and bool(jnp.all(valid_coors[:, 2] < NY))
    assert bool(jnp.all(valid_coors[:, 3] >= 0)) and bool(jnp.all(valid_coors[:, 3] < NX))

    print("KERNEL_OK")
</pallas_src>

<mosaic_0001>
module attributes {stable_mosaic.version = 11 : i64} {
  func.func private @main(%arg0: i32) attributes {dimension_semantics = [#tpu.dimension_semantics<core_parallel>], iteration_bounds = array<i64: 2>, tpu.core_type = #tpu.core_type<sc_scalar_subcore>, window_params = []} {
    return
  }
}

module attributes {stable_mosaic.version = 11 : i64} {
  func.func private @main(%arg0: i32) attributes {dimension_semantics = [#tpu.dimension_semantics<core_parallel>], iteration_bounds = array<i64: 2>, tpu.core_type = #tpu.core_type<sc_scalar_subcore>, window_params = []} {
    return
  }
}

module attributes {stable_mosaic.version = 11 : i64} {
  func.func @_voxelize_kernel(%arg0: i32, %arg1: i32, %arg2: memref<1x4x1024xf32, #tpu.memory_space<vmem>>, %arg3: memref<1x1x1024xi32, #tpu.memory_space<vmem>>) attributes {dimension_semantics = [#tpu.dimension_semantics<parallel>, #tpu.dimension_semantics<parallel>], iteration_bounds = array<i64: 2, 1>, scalar_prefetch = 0 : i64, scratch_operands = 0 : i64, tpu.core_type = #tpu.core_type<tc>, window_params = [{transform_indices = @transform_0, window_bounds = array<i64: 1, 4, 1024>}, {transform_indices = @transform_1, window_bounds = array<i64: 1, 1, 1024>}]} {
    %c0 = arith.constant 0 : index
    %c0_0 = arith.constant 0 : index
    %c0_1 = arith.constant 0 : index
    %0 = vector.load %arg2[%c0, %c0_0, %c0_1] : memref<1x4x1024xf32, #tpu.memory_space<vmem>>, vector<1x4x1024xf32>
    %1 = vector.shape_cast %0 : vector<1x4x1024xf32> to vector<4x1024xf32>
    %2 = vector.extract_strided_slice %1 {offsets = [0, 0], sizes = [1, 1024], strides = [1, 1]} : vector<4x1024xf32> to vector<1x1024xf32>
    %3 = vector.extract_strided_slice %1 {offsets = [1, 0], sizes = [1, 1024], strides = [1, 1]} : vector<4x1024xf32> to vector<1x1024xf32>
    %4 = vector.extract_strided_slice %1 {offsets = [2, 0], sizes = [1, 1024], strides = [1, 1]} : vector<4x1024xf32> to vector<1x1024xf32>
    %cst = arith.constant 0.000000e+00 : f32
    %5 = vector.broadcast %cst : f32 to vector<1x1024xf32>
    %6 = arith.subf %2, %5 : vector<1x1024xf32>
    %cst_2 = arith.constant 5.000000e-01 : f32
    %7 = vector.broadcast %cst_2 : f32 to vector<1x1024xf32>
    %8 = arith.divf %6, %7 : vector<1x1024xf32>
    %9 = math.floor %8 : vector<1x1024xf32>
    %10 = arith.fptosi %9 : vector<1x1024xf32> to vector<1x1024xi32>
    %cst_3 = arith.constant -1.000000e+01 : f32
    %11 = vector.broadcast %cst_3 : f32 to vector<1x1024xf32>
    %12 = arith.subf %3, %11 : vector<1x1024xf32>
    %cst_4 = arith.constant 5.000000e-01 : f32
    %13 = vector.broadcast %cst_4 : f32 to vector<1x1024xf32>
    %14 = arith.divf %12, %13 : vector<1x1024xf32>
    %15 = math.floor %14 : vector<1x1024xf32>
    %16 = arith.fptosi %15 : vector<1x1024xf32> to vector<1x1024xi32>
    %cst_5 = arith.constant -3.000000e+00 : f32
    %17 = vector.broadcast %cst_5 : f32 to vector<1x1024xf32>
    %18 = arith.subf %4, %17 : vector<1x1024xf32>
    %cst_6 = arith.constant 6.000000e+00 : f32
    %19 = vector.broadcast %cst_6 : f32 to vector<1x1024xf32>
    %20 = arith.divf %18, %19 : vector<1x1024xf32>
    %21 = math.floor %20 : vector<1x1024xf32>
    %22 = arith.fptosi %21 : vector<1x1024xf32> to vector<1x1024xi32>
    %c0_i32 = arith.constant 0 : i32
    %23 = vector.broadcast %c0_i32 : i32 to vector<1x1024xi32>
    %24 = arith.cmpi sge, %10, %23 : vector<1x1024xi32>
    %c40_i32 = arith.constant 40 : i32
    %25 = vector.broadcast %c40_i32 : i32 to vector<1x1024xi32>
    %26 = arith.cmpi slt, %10, %25 : vector<1x1024xi32>
    %27 = arith.andi %24, %26 : vector<1x1024xi1>
    %c0_i32_7 = arith.constant 0 : i32
    %28 = vector.broadcast %c0_i32_7 : i32 to vector<1x1024xi32>
    %29 = arith.cmpi sge, %16, %28 : vector<1x1024xi32>
    %30 = arith.andi %27, %29 : vector<1x1024xi1>
    %c40_i32_8 = arith.constant 40 : i32
    %31 = vector.broadcast %c40_i32_8 : i32 to vector<1x1024xi32>
    %32 = arith.cmpi slt, %16, %31 : vector<1x1024xi32>
    %33 = arith.andi %30, %32 : vector<1x1024xi1>
    %c0_i32_9 = arith.constant 0 : i32
    %34 = vector.broadcast %c0_i32_9 : i32 to vector<1x1024xi32>
    %35 = arith.cmpi sge, %22, %34 : vector<1x1024xi32>
    %36 = arith.andi %33, %35 : vector<1x1024xi1>
    %c1_i32 = arith.constant 1 : i32
    %37 = vector.broadcast %c1_i32 : i32 to vector<1x1024xi32>
    %38 = arith.cmpi slt, %22, %37 : vector<1x1024xi32>
    %39 = arith.andi %36, %38 : vector<1x1024xi1>
    %c40_i32_10 = arith.constant 40 : i32
    %40 = vector.broadcast %c40_i32_10 : i32 to vector<1x1024xi32>
    %41 = arith.muli %16, %40 : vector<1x1024xi32>
    %42 = arith.addi %41, %10 : vector<1x1024xi32>
    %c1600_i32 = arith.constant 1600 : i32
    %43 = vector.broadcast %c1600_i32 : i32 to vector<1x1024xi32>
    %44 = arith.select %39, %42, %43 : vector<1x1024xi1>, vector<1x1024xi32>
    %c0_11 = arith.constant 0 : index
    %c0_12 = arith.constant 0 : index
    %c0_13 = arith.constant 0 : index
    %45 = vector.load %arg3[%c0_11, %c0_12, %c0_13] : memref<1x1x1024xi32, #tpu.memory_space<vmem>>, vector<1x1x1024xi32>
    %46 = vector.shape_cast %45 : vector<1x1x1024xi32> to vector<1x1024xi32>
    %47 = vector.shape_cast %44 : vector<1x1024xi32> to vector<1x1x1024xi32>
    tpu.vector_store %arg3[%c0_11, %c0_12, %c0_13], %47 {strides = array<i32>} : memref<1x1x1024xi32, #tpu.memory_space<vmem>>, vector<1x1x1024xi32>,
    return
  }
  func.func @transform_0(%arg0: i32, %arg1: i32) -> (i32, i32, i32) {
    %c0_i32 = arith.constant 0 : i32
    %c0_i32_0 = arith.constant 0 : i32
    return %arg0, %c0_i32, %arg1 : i32, i32, i32
  }
  func.func @transform_1(%arg0: i32, %arg1: i32) -> (i32, i32, i32) {
    %c0_i32 = arith.constant 0 : i32
    %c0_i32_0 = arith.constant 0 : i32
    return %arg0, %c0_i32, %arg1 : i32, i32, i32
  }
}

module attributes {stable_mosaic.version = 11 : i64} {
  func.func @_rank_kernel(%arg0: i32, %arg1: i32, %arg2: memref<1xi32, #tpu.memory_space<smem>>, %arg3: memref<1xi32, #tpu.memory_space<smem>>, %arg4: memref<1x1x1024xi32, #tpu.memory_space<vmem>>, %arg5: memref<1x1024x1xi32, #tpu.memory_space<vmem>>, %arg6: memref<1x1x1024xi32, #tpu.memory_space<vmem>>) attributes {dimension_semantics = [#tpu.dimension_semantics<parallel>, #tpu.dimension_semantics<arbitrary>], iteration_bounds = array<i64: 2, 1>, scalar_prefetch = 2 : i64, scratch_operands = 0 : i64, tpu.core_type = #tpu.core_type<tc>, window_params = [{transform_indices = @transform_0, window_bounds = array<i64: 1, 1, 1024>}, {transform_indices = @transform_1, window_bounds = array<i64: 1, 1024, 1>}, {transform_indices = @transform_2, window_bounds = array<i64: 1, 1, 1024>}]} {
    %0 = arith.index_cast %arg1 : i32 to index
    %1 = memref.load %arg2[%0] : memref<1xi32, #tpu.memory_space<smem>>
    %2 = arith.index_cast %arg1 : i32 to index
    %3 = memref.load %arg3[%2] : memref<1xi32, #tpu.memory_space<smem>>
    %c0_i32 = arith.constant 0 : i32
    %4 = arith.cmpi eq, %3, %c0_i32 : i32
    %5 = arith.extui %4 : i1 to i32
    %c0_i32_0 = arith.constant 0 : i32
    %6 = arith.cmpi ne, %5, %c0_i32_0 : i32
    scf.if %6 {
      %c0_i32_5 = arith.constant 0 : i32
      %15 = vector.broadcast %c0_i32_5 : i32 to vector<1x1024xi32>
      %c0_6 = arith.constant 0 : index
      %c0_7 = arith.constant 0 : index
      %c0_8 = arith.constant 0 : index
      %16 = vector.load %arg6[%c0_6, %c0_7, %c0_8] : memref<1x1x1024xi32, #tpu.memory_space<vmem>>, vector<1x1x1024xi32>
      %17 = vector.shape_cast %16 : vector<1x1x1024xi32> to vector<1x1024xi32>
      %18 = vector.shape_cast %15 : vector<1x1024xi32> to vector<1x1x1024xi32>
      tpu.vector_store %arg6[%c0_6, %c0_7, %c0_8], %18 {strides = array<i32>} : memref<1x1x1024xi32, #tpu.memory_space<vmem>>, vector<1x1x1024xi32>,
    } else {
    }
    %c0 = arith.constant 0 : index
    %c0_1 = arith.constant 0 : index
    %c0_2 = arith.constant 0 : index
    %7 = vector.load %arg4[%c0, %c0_1, %c0_2] : memref<1x1x1024xi32, #tpu.memory_space<vmem>>, vector<1x1x1024xi32>
    %8 = vector.shape_cast %7 : vector<1x1x1024xi32> to vector<1x1024xi32>
    %9 = arith.cmpi eq, %3, %1 : i32
    %10 = arith.extui %9 : i1 to i32
    %c0_i32_3 = arith.constant 0 : i32
    %11 = arith.cmpi ne, %10, %c0_i32_3 : i32
    scf.if %11 {
      %c0_5 = arith.constant 0 : index
      %c0_6 = arith.constant 0 : index
      %c0_7 = arith.constant 0 : index
      %15 = vector.load %arg6[%c0_5, %c0_6, %c0_7] : memref<1x1x1024xi32, #tpu.memory_space<vmem>>, vector<1x1x1024xi32>
      %16 = vector.shape_cast %15 : vector<1x1x1024xi32> to vector<1x1024xi32>
      %17 = tpu.iota {dimensions = array<i32: 1>} : vector<256x1024xi32>
      %18 = tpu.iota {dimensions = array<i32: 0>} : vector<256x1024xi32>
      %c0_i32_8 = arith.constant 0 : i32
      %19 = vector.broadcast %c0_i32_8 : i32 to vector<1x1024xi32>
      %c0_9 = arith.constant 0 : index
      %c0_10 = arith.constant 0 : index
      %c0_11 = arith.constant 0 : index
      %20 = vector.load %arg5[%c0_9, %c0_10, %c0_11] : memref<1x1024x1xi32, #tpu.memory_space<vmem>>, vector<1x256x1xi32>
      %21 = vector.shape_cast %20 : vector<1x256x1xi32> to vector<256x1xi32>
      %22 = vector.broadcast %21 : vector<256x1xi32> to vector<256x1024xi32>
      %23 = vector.broadcast %8 : vector<1x1024xi32> to vector<256x1024xi32>
      %24 = arith.cmpi eq, %22, %23 : vector<256x1024xi32>
      %c0_i32_12 = arith.constant 0 : i32
      %25 = vector.broadcast %c0_i32_12 : i32 to vector<256x1024xi32>
      %26 = arith.addi %18, %25 : vector<256x1024xi32>
      %27 = arith.cmpi slt, %26, %17 : vector<256x1024xi32>
      %28 = arith.andi %24, %27 : vector<256x1024xi1>
      %29 = arith.extui %28 : vector<256x1024xi1> to vector<256x1024xi32>
      %cst = arith.constant dense<0> : vector<1024xi32>
      %30 = vector.multi_reduction <add>, %29, %cst [0] : vector<256x1024xi32> to vector<1024xi32>
      %31 = vector.shape_cast %30 : vector<1024xi32> to vector<1x1024xi32>
      %32 = arith.addi %19, %31 : vector<1x1024xi32>
      %c0_13 = arith.constant 0 : index
      %c256 = arith.constant 256 : index
      %c0_14 = arith.constant 0 : index
      %33 = vector.load %arg5[%c0_13, %c256, %c0_14] : memref<1x1024x1xi32, #tpu.memory_space<vmem>>, vector<1x256x1xi32>
      %34 = vector.shape_cast %33 : vector<1x256x1xi32> to vector<256x1xi32>
      %35 = vector.broadcast %34 : vector<256x1xi32> to vector<256x1024xi32>
      %36 = vector.broadcast %8 : vector<1x1024xi32> to vector<256x1024xi32>
      %37 = arith.cmpi eq, %35, %36 : vector<256x1024xi32>
      %c256_i32 = arith.constant 256 : i32
      %38 = vector.broadcast %c256_i32 : i32 to vector<256x1024xi32>
      %39 = arith.addi %18, %38 : vector<256x1024xi32>
      %40 = arith.cmpi slt, %39, %17 : vector<256x1024xi32>
      %41 = arith.andi %37, %40 : vector<256x1024xi1>
      %42 = arith.extui %41 : vector<256x1024xi1> to vector<256x1024xi32>
      %cst_15 = arith.constant dense<0> : vector<1024xi32>
      %43 = vector.multi_reduction <add>, %42, %cst_15 [0] : vector<256x1024xi32> to vector<1024xi32>
      %44 = vector.shape_cast %43 : vector<1024xi32> to vector<1x1024xi32>
      %45 = arith.addi %32, %44 : vector<1x1024xi32>
      %c0_16 = arith.constant 0 : index
      %c512 = arith.constant 512 : index
      %c0_17 = arith.constant 0 : index
      %46 = vector.load %arg5[%c0_16, %c512, %c0_17] : memref<1x1024x1xi32, #tpu.memory_space<vmem>>, vector<1x256x1xi32>
      %47 = vector.shape_cast %46 : vector<1x256x1xi32> to vector<256x1xi32>
      %48 = vector.broadcast %47 : vector<256x1xi32> to vector<256x1024xi32>
      %49 = vector.broadcast %8 : vector<1x1024xi32> to vector<256x1024xi32>
      %50 = arith.cmpi eq, %48, %49 : vector<256x1024xi32>
      %c512_i32 = arith.constant 512 : i32
      %51 = vector.broadcast %c512_i32 : i32 to vector<256x1024xi32>
      %52 = arith.addi %18, %51 : vector<256x1024xi32>
      %53 = arith.cmpi slt, %52, %17 : vector<256x1024xi32>
      %54 = arith.andi %50, %53 : vector<256x1024xi1>
      %55 = arith.extui %54 : vector<256x1024xi1> to vector<256x1024xi32>
      %cst_18 = arith.constant dense<0> : vector<1024xi32>
      %56 = vector.multi_reduction <add>, %55, %cst_18 [0] : vector<256x1024xi32> to vector<1024xi32>
      %57 = vector.shape_cast %56 : vector<1024xi32> to vector<1x1024xi32>
      %58 = arith.addi %45, %57 : vector<1x1024xi32>
      %c0_19 = arith.constant 0 : index
      %c768 = arith.constant 768 : index
      %c0_20 = arith.constant 0 : index
      %59 = vector.load %arg5[%c0_19, %c768, %c0_20] : memref<1x1024x1xi32, #tpu.memory_space<vmem>>, vector<1x256x1xi32>
      %60 = vector.shape_cast %59 : vector<1x256x1xi32> to vector<256x1xi32>
      %61 = vector.broadcast %60 : vector<256x1xi32> to vector<256x1024xi32>
      %62 = vector.broadcast %8 : vector<1x1024xi32> to vector<256x1024xi32>
      %63 = arith.cmpi eq, %61, %62 : vector<256x1024xi32>
      %c768_i32 = arith.constant 768 : i32
      %64 = vector.broadcast %c768_i32 : i32 to vector<256x1024xi32>
      %65 = arith.addi %18, %64 : vector<256x1024xi32>
      %66 = arith.cmpi slt, %65, %17 : vector<256x1024xi32>
      %67 = arith.andi %63, %66 : vector<256x1024xi1>
      %68 = arith.extui %67 : vector<256x1024xi1> to vector<256x1024xi32>
      %cst_21 = arith.constant dense<0> : vector<1024xi32>
      %69 = vector.multi_reduction <add>, %68, %cst_21 [0] : vector<256x1024xi32> to vector<1024xi32>
      %70 = vector.shape_cast %69 : vector<1024xi32> to vector<1x1024xi32>
      %71 = arith.addi %58, %70 : vector<1x1024xi32>
      %72 = arith.addi %16, %71 : vector<1x1024xi32>
      %c0_22 = arith.constant 0 : index
      %c0_23 = arith.constant 0 : index
      %c0_24 = arith.constant 0 : index
      %73 = vector.load %arg6[%c0_22, %c0_23, %c0_24] : memref<1x1x1024xi32, #tpu.memory_space<vmem>>, vector<1x1x1024xi32>
      %74 = vector.shape_cast %73 : vector<1x1x1024xi32> to vector<1x1024xi32>
      %75 = vector.shape_cast %72 : vector<1x1024xi32> to vector<1x1x1024xi32>
      tpu.vector_store %arg6[%c0_22, %c0_23, %c0_24], %75 {strides = array<i32>} : memref<1x1x1024xi32, #tpu.memory_space<vmem>>, vector<1x1x1024xi32>,
    } else {
    }
    %12 = arith.cmpi ne, %3, %1 : i32
    %13 = arith.extui %12 : i1 to i32
    %c0_i32_4 = arith.constant 0 : i32
    %14 = arith.cmpi ne, %13, %c0_i32_4 : i32
    scf.if %14 {
      %c0_5 = arith.constant 0 : index
      %c0_6 = arith.constant 0 : index
      %c0_7 = arith.constant 0 : index
      %15 = vector.load %arg6[%c0_5, %c0_6, %c0_7] : memref<1x1x1024xi32, #tpu.memory_space<vmem>>, vector<1x1x1024xi32>
      %16 = vector.shape_cast %15 : vector<1x1x1024xi32> to vector<1x1024xi32>
      %c0_i32_8 = arith.constant 0 : i32
      %17 = vector.broadcast %c0_i32_8 : i32 to vector<1x1024xi32>
      %c0_9 = arith.constant 0 : index
      %c0_10 = arith.constant 0 : index
      %c0_11 = arith.constant 0 : index
      %18 = vector.load %arg5[%c0_9, %c0_10, %c0_11] : memref<1x1024x1xi32, #tpu.memory_space<vmem>>, vector<1x256x1xi32>
      %19 = vector.shape_cast %18 : vector<1x256x1xi32> to vector<256x1xi32>
      %20 = vector.broadcast %19 : vector<256x1xi32> to vector<256x1024xi32>
      %21 = vector.broadcast %8 : vector<1x1024xi32> to vector<256x1024xi32>
      %22 = arith.cmpi eq, %20, %21 : vector<256x1024xi32>
      %23 = arith.extui %22 : vector<256x1024xi1> to vector<256x1024xi32>
      %cst = arith.constant dense<0> : vector<1024xi32>
      %24 = vector.multi_reduction <add>, %23, %cst [0] : vector<256x1024xi32> to vector<1024xi32>
      %25 = vector.shape_cast %24 : vector<1024xi32> to vector<1x1024xi32>
      %26 = arith.addi %17, %25 : vector<1x1024xi32>
      %c0_12 = arith.constant 0 : index
      %c256 = arith.constant 256 : index
      %c0_13 = arith.constant 0 : index
      %27 = vector.load %arg5[%c0_12, %c256, %c0_13] : memref<1x1024x1xi32, #tpu.memory_space<vmem>>, vector<1x256x1xi32>
      %28 = vector.shape_cast %27 : vector<1x256x1xi32> to vector<256x1xi32>
      %29 = vector.broadcast %28 : vector<256x1xi32> to vector<256x1024xi32>
      %30 = vector.broadcast %8 : vector<1x1024xi32> to vector<256x1024xi32>
      %31 = arith.cmpi eq, %29, %30 : vector<256x1024xi32>
      %32 = arith.extui %31 : vector<256x1024xi1> to vector<256x1024xi32>
      %cst_14 = arith.constant dense<0> : vector<1024xi32>
      %33 = vector.multi_reduction <add>, %32, %cst_14 [0] : vector<256x1024xi32> to vector<1024xi32>
      %34 = vector.shape_cast %33 : vector<1024xi32> to vector<1x1024xi32>
      %35 = arith.addi %26, %34 : vector<1x1024xi32>
      %c0_15 = arith.constant 0 : index
      %c512 = arith.constant 512 : index
      %c0_16 = arith.constant 0 : index
      %36 = vector.load %arg5[%c0_15, %c512, %c0_16] : memref<1x1024x1xi32, #tpu.memory_space<vmem>>, vector<1x256x1xi32>
      %37 = vector.shape_cast %36 : vector<1x256x1xi32> to vector<256x1xi32>
      %38 = vector.broadcast %37 : vector<256x1xi32> to vector<256x1024xi32>
      %39 = vector.broadcast %8 : vector<1x1024xi32> to vector<256x1024xi32>
      %40 = arith.cmpi eq, %38, %39 : vector<256x1024xi32>
      %41 = arith.extui %40 : vector<256x1024xi1> to vector<256x1024xi32>
      %cst_17 = arith.constant dense<0> : vector<1024xi32>
      %42 = vector.multi_reduction <add>, %41, %cst_17 [0] : vector<256x1024xi32> to vector<1024xi32>
      %43 = vector.shape_cast %42 : vector<1024xi32> to vector<1x1024xi32>
      %44 = arith.addi %35, %43 : vector<1x1024xi32>
      %c0_18 = arith.constant 0 : index
      %c768 = arith.constant 768 : index
      %c0_19 = arith.constant 0 : index
      %45 = vector.load %arg5[%c0_18, %c768, %c0_19] : memref<1x1024x1xi32, #tpu.memory_space<vmem>>, vector<1x256x1xi32>
      %46 = vector.shape_cast %45 : vector<1x256x1xi32> to vector<256x1xi32>
      %47 = vector.broadcast %46 : vector<256x1xi32> to vector<256x1024xi32>
      %48 = vector.broadcast %8 : vector<1x1024xi32> to vector<256x1024xi32>
      %49 = arith.cmpi eq, %47, %48 : vector<256x1024xi32>
      %50 = arith.extui %49 : vector<256x1024xi1> to vector<256x1024xi32>
      %cst_20 = arith.constant dense<0> : vector<1024xi32>
      %51 = vector.multi_reduction <add>, %50, %cst_20 [0] : vector<256x1024xi32> to vector<1024xi32>
      %52 = vector.shape_cast %51 : vector<1024xi32> to vector<1x1024xi32>
      %53 = arith.addi %44, %52 : vector<1x1024xi32>
      %54 = arith.addi %16, %53 : vector<1x1024xi32>
      %c0_21 = arith.constant 0 : index
      %c0_22 = arith.constant 0 : index
      %c0_23 = arith.constant 0 : index
      %55 = vector.load %arg6[%c0_21, %c0_22, %c0_23] : memref<1x1x1024xi32, #tpu.memory_space<vmem>>, vector<1x1x1024xi32>
      %56 = vector.shape_cast %55 : vector<1x1x1024xi32> to vector<1x1024xi32>
      %57 = vector.shape_cast %54 : vector<1x1024xi32> to vector<1x1x1024xi32>
      tpu.vector_store %arg6[%c0_21, %c0_22, %c0_23], %57 {strides = array<i32>} : memref<1x1x1024xi32, #tpu.memory_space<vmem>>, vector<1x1x1024xi32>,
    } else {
    }
    return
  }
  func.func @transform_0(%arg0: i32, %arg1: i32, %arg2: memref<1xi32, #tpu.memory_space<smem>>, %arg3: memref<1xi32, #tpu.memory_space<smem>>) -> (i32, i32, i32) {
    %0 = arith.index_cast %arg1 : i32 to index
    %1 = memref.load %arg2[%0] : memref<1xi32, #tpu.memory_space<smem>>
    %c0_i32 = arith.constant 0 : i32
    %c0_i32_0 = arith.constant 0 : i32
    return %arg0, %c0_i32, %1 : i32, i32, i32
  }
  func.func @transform_1(%arg0: i32, %arg1: i32, %arg2: memref<1xi32, #tpu.memory_space<smem>>, %arg3: memref<1xi32, #tpu.memory_space<smem>>) -> (i32, i32, i32) {
    %0 = arith.index_cast %arg1 : i32 to index
    %1 = memref.load %arg3[%0] : memref<1xi32, #tpu.memory_space<smem>>
    %c0_i32 = arith.constant 0 : i32
    %c0_i32_0 = arith.constant 0 : i32
    return %arg0, %1, %c0_i32 : i32, i32, i32
  }
  func.func @transform_2(%arg0: i32, %arg1: i32, %arg2: memref<1xi32, #tpu.memory_space<smem>>, %arg3: memref<1xi32, #tpu.memory_space<smem>>) -> (i32, i32, i32) {
    %0 = arith.index_cast %arg1 : i32 to index
    %1 = memref.load %arg2[%0] : memref<1xi32, #tpu.memory_space<smem>>
    %c0_i32 = arith.constant 0 : i32
    %c0_i32_0 = arith.constant 0 : i32
    return %arg0, %c0_i32, %1 : i32, i32, i32
  }
}

</mosaic_0001>

<bundles_post_ra>
// kernel: _voxelize_batch.2
= control target key start
LH: loop header
LB: loop body
LE: loop exit
PB: predicated region body
PF: predicated region fallthrough
CT: control target
= control target key end

     0   :  { %6 = vsyncpa [#allocation3], 0  ;;  %s1033_s0 = inlined_call_operand.hbm [shape: f32[2,4,1024], index: 0, kind: input, shape index: {}]   ;;  %s1034_s1 = inlined_call_operand.vmem [shape: s32[2,1,1024], index: 1, kind: output, shape index: {}]  }
   0x1   :  { %8 = vsyncpa [#allocation3 + $0x1], 0  ;;  %s693_s6 = smov 0   ;;  %s695_s7 = smov 0  }
   0x2   :  { %s697_s8 = smov 0   ;;  %s699_s9 = smov 0  }
   0x3   :  { %s701_s10 = smov 0   ;;  %s703_s11 = smov 0  }
   0x4 LB: > { %s478_s12 = sadd.s32 4294967295, %s678_s11   ;;  %s26_s13 = sadd.s32 1, %s674_s10  ;;  %s678_s11 = sphi %s703_s11, %s14_s11   ;;  %s674_s10 = sphi %s701_s10, %s1096_s10   ;;  %s670_s9 = sphi %s699_s9, %s1095_s9   ;;  %s666_s8 = sphi %s697_s8, %s1094_s8   ;;  %s662_s7 = sphi %s695_s7, %s1093_s7   ;;  %s658_s6 = sphi %s693_s6, %s1092_s6  }
   0x5   : > { %p28_p0 = scmp.ge.s32.totalorder %s26_s13, 2  ;;  %s35_s14 = sadd.s32 1, %s666_s8 }
   0x6   : > { %p42_p1 = scmp.ne.s32.totalorder %s666_s8, %s662_s7  ;;  %p43_p2 = scmp.eq.s32.totalorder %s678_s11, 0 }
   0x7   : > { %s1098_s13 = smov (%p28_p0, %s26_s13), 0  ;;  %p48_p4 = scmp.ne.s32.totalorder %s662_s7, %s658_s6 }
   0x8   : > { %p729_p3 = por %p43_p2, %p42_p1  ;;  %s30_s16 = ssub.s32 %s674_s10, %s1098_s13 }
   0x9   : > { %p49_p5 = scmp.eq.s32.totalorder %s478_s12, 0  ;;  %p33_p6 = scmp.eq.s32.totalorder %s30_s16, 0 }
   0xa   : > { %p549_p8 = scmp.lt.s32.totalorder %s678_s11, 2  ;;  %s100_s19 = sand.u32 1, %s666_s8  }
   0xb   : > { %p736_p7 = por %p49_p5, %p48_p4  ;;  %s518_s20 = sshll.u32 %s674_s10, 9 }
   0xc   : > { %s742_s18 = scalar_select %p33_p6, %s666_s8, %s35_s14  }
   0xd   : > { %s482_s21 = sshll.u32 %s100_s19, 5  ;;  %s112_s24 = scalar_lea.hbm %s1033_s0, %s518_s20 }
   0xe   : > { %s104_s25 = scalar_lea.vmem [#allocation2], %s482_s21  ;;  %p751_p9 = pnand %p549_p8, %p729_p3 }
   0xf   : > { %s114_s26 = sshll.u32 %s104_s25, 4  ;;  %p485_p10 = scmp.ge.s32.totalorder %s678_s11, 1  ;;  %s115_s26 = int_to_ptr.vmem [resolvable:$true] %s114_s26 }
  0x10   : > { %p119_p11 = scmp.lt.s32.totalorder %s678_s11, 3  ;;  %s101_s28 = scalar_lea.sflag [#allocation3], %s100_s19 }
  0x11   : > { %p602_p12 = pneg %p751_p9  ;;  %s613_s29 = scalar_lea.vmem %s115_s26, 512 }
  0x12   : > { %p614_p13 = scmp.ne.s32.totalorder %s115_s26, %s613_s29  ;;  %s680_s30 = smov [#allocation2]  }
  0x13   : > { %s618_s2 = sshll.u32 %s680_s30, 4  ;;  %s619_s2 = int_to_ptr.vmem [resolvable:$false] %s618_s2 }
  0x14   : > { %p616_p0 = pnand %p614_p13, %p602_p12  ;;  %s620_s3 = scalar_lea.vmem %s619_s2, 1024 }
  0x15   : > { %p621_p2 = scmp.lt.s32.totalorder %s115_s26, %s619_s2  ;;  %p622_p3 = scmp.lt.s32.totalorder %s620_s3, %s613_s29 }
  0x16   : > { %p617_p1 = pneg %p616_p0 }
  0x17   : > { %p623_p4 = por %p622_p3, %p621_p2 }
  0x19   : > { %p624_p5 = pnand %p623_p4, %p617_p1 }
  0x1b   : > { %627 = shalt.err (!%p624_p5)
}
  0x1c   : > { %548 = dma.hbm_to_vmem [thread:$0]  (!%p751_p9), %s112_s24, 512, %s115_s26, %s101_s28  }
  0x1d   : > { %p120_p6 = pnand %p485_p10, %p119_p11 }
  0x1e   : > { %s125_s4 = sand.u32 (!%p120_p6), 1, %s662_s7  }
  0x1f   : > { %123 = sbr.rel (%p120_p6) target bundleno = 93 (0x5d), region = 24  ;;  %s486_s5 = sshll.u32 (!%p120_p6), %s125_s4, 5 }
  0x20   : > { %s126_s6 = scalar_lea.sflag (!%p120_p6), [#allocation3], %s125_s4  ;;  %s129_s12 = scalar_lea.vmem (!%p120_p6), [#allocation2], %s486_s5 }
  0x24   : > { %653 = dma.done.wait (%p736_p7), %s126_s6, 512  }
  0x25   : > { %655 = vsyncadd (%p736_p7), %s126_s6, 4294966784  ;;  %v346_v0 = vlaneseq  ;;  %v161_v1 = vld [vmem:[%s129_s12] sm:$0xff]  ;;  %v162_v2 = vld [vmem:[%s129_s12 + $0x8] sm:$0xff]  ;;  %v681_v4 = vmov 1966171168   ;;  %p153_p7 = scmp.lt.s32.totalorder %s670_s9, 1 }
  0x26   : > { %v163_v3 = vld [vmem:[%s129_s12 + $0x10] sm:$0xff]  ;;  %v770_v5 = vunpack.c.l.s4 %v681_v4  ;;  %v164_v7 = vld [vmem:[%s129_s12 + $0x18] sm:$0xff]  ;;  %v166_v8 = vmul.f32 2.0, %v161_v1  ;;  %v167_v9 = vmul.f32 2.0, %v162_v2  ;;  %v488_v11 = vadd.f32 10.0, %v161_v1 }
  0x27   : > { %v772_v6 = vshrl.u32 %v346_v0, 7  ;;  %v168_v10 = vmul.f32 2.0, %v163_v3  ;;  %v169_v12 = vmul.f32 2.0, %v164_v7  ;;  %v489_v13 = vadd.f32 10.0, %v162_v2  ;;  %s1100_s9 = smov (!%p153_p7, %s670_s9), 1 }
  0x28   : > { %v490_v14 = vadd.f32 10.0, %v163_v3  ;;  %v491_v15 = vadd.f32 10.0, %v164_v7  ;;  %v170_v16 = vfloor.f32 %v166_v8  ;;  %v171_v17 = vfloor.f32 %v167_v9  ;;  %s487_s14 = sshll.u32 %s1100_s9, 3 }
  0x29   : > { %v172_v18 = vfloor.f32 %v168_v10  ;;  %v182_v19 = vmul.f32 2.0, %v488_v11  ;;  %v173_v20 = vfloor.f32 %v169_v12  ;;  %v183_v21 = vmul.f32 2.0, %v489_v13  ;;  %s159_s17 = scalar_lea.vmem %s1034_s1, %s487_s14 }
  0x2a   : > { %v184_v22 = vmul.f32 2.0, %v490_v14  ;;  %v185_v23 = vmul.f32 2.0, %v491_v15  ;;  %v519_v24 = vtrunc.f32 %v170_v16  ;;  %v521_v25 = vtrunc.f32 %v171_v17 }
  0x2b   : > { %v523_v26 = vtrunc.f32 %v172_v18  ;;  %v186_v27 = vfloor.f32 %v182_v19  ;;  %v525_v28 = vtrunc.f32 %v173_v20  ;;  %v187_v29 = vfloor.f32 %v183_v21 }
  0x2c   : > { %v188_v30 = vfloor.f32 %v184_v22  ;;  %v189_v31 = vfloor.f32 %v185_v23  ;;  %v774_v32 = vcvt.f32.s32 %v519_v24  ;;  %v776_v33 = vcvt.f32.s32 %v521_v25 }
  0x2d   : > { %v527_v34 = vtrunc.f32 %v186_v27  ;;  %v345_v35 = vunpack.c.0.s8 %v770_v5  ;;  %v779_v36 = vcvt.f32.s32 %v523_v26  ;;  %v529_v37 = vtrunc.f32 %v187_v29 }
  0x2e   : > { %v531_v38 = vtrunc.f32 %v188_v30  ;;  %v533_v39 = vtrunc.f32 %v189_v31  ;;  %v781_v40 = vcvt.f32.s32 %v525_v28  ;;  %v492_v41 = vadd.f32 3.0, %v161_v1 }
  0x2f   : > { %v493_v42 = vadd.f32 3.0, %v162_v2  ;;  %v494_v43 = vadd.f32 3.0, %v163_v3  ;;  %v783_v44 = vcvt.f32.s32 %v527_v34  ;;  %v785_v45 = vcvt.f32.s32 %v529_v37 }
  0x30   : > { %v787_v46 = vcvt.f32.s32 %v531_v38  ;;  %v495_v47 = vadd.f32 3.0, %v164_v7  ;;  %v789_v48 = vcvt.f32.s32 %v533_v39  ;;  %v199_v49 = vmul.f32 0.16666667, %v492_v41 }
  0x31   : > { %v200_v50 = vmul.f32 0.16666667, %v493_v42  ;;  %v201_v51 = vmul.f32 0.16666667, %v494_v43  ;;  %vm211_vm0 = vcmp.ge.s32.totalorder %v774_v32, 0  ;;  %vm212_vm1 = vcmp.ge.s32.totalorder %v776_v33, 0 }
  0x32   : > { %v202_v52 = vmul.f32 0.16666667, %v495_v47  ;;  %vm213_vm2 = vcmp.ge.s32.totalorder %v779_v36, 0  ;;  %v203_v53 = vfloor.f32 %v199_v49  ;;  %vm214_vm3 = vcmp.ge.s32.totalorder %v781_v40, 0 }
  0x33   : > { %v204_v54 = vfloor.f32 %v200_v50  ;;  %v205_v55 = vfloor.f32 %v201_v51  ;;  %vm215_vm4 = vcmp.lt.s32.totalorder %v774_v32, 40  ;;  %vm216_vm5 = vcmp.lt.s32.totalorder %v776_v33, 40 }
  0x34   : > { %v206_v56 = vfloor.f32 %v202_v52  ;;  %vm217_vm6 = vcmp.lt.s32.totalorder %v779_v36, 40  ;;  %v798_v57 = vtrunc.f32 %v203_v53  ;;  %vm218_vm7 = vcmp.lt.s32.totalorder %v781_v40, 40  ;;  %vm822_vm12 = vmand %vm211_vm0, %vm215_vm4 }
  0x35   : > { %v800_v58 = vtrunc.f32 %v204_v54  ;;  %v802_v59 = vtrunc.f32 %v205_v55  ;;  %vm223_vm8 = vcmp.ge.s32.totalorder %v783_v44, 0  ;;  %vm224_vm9 = vcmp.ge.s32.totalorder %v785_v45, 0  ;;  %vm831_vm13 = vmand %vm212_vm1, %vm216_vm5 }
  0x36   : > { %v805_v60 = vtrunc.f32 %v206_v56  ;;  %vm225_vm10 = vcmp.ge.s32.totalorder %v787_v46, 0  ;;  %v536_v61 = vcvt.f32.s32 %v798_v57  ;;  %vm226_vm11 = vcmp.ge.s32.totalorder %v789_v48, 0  ;;  %vm842_vm4 = vmand %vm213_vm2, %vm217_vm6 }
  0x37   : > { %v538_v62 = vcvt.f32.s32 %v800_v58  ;;  %v540_v63 = vcvt.f32.s32 %v802_v59  ;;  %v682_v1 = vmov 0   ;;  %vm247_vm14 = vcmp.lt.s32.totalorder %v783_v44, 40  ;;  %vm863_vm2 = vmand %vm214_vm3, %vm218_vm7 }
  0x38   : > { %v542_v0 = vcvt.f32.s32 %v805_v60  ;;  %v227_v2 = vsel %vm223_vm8, 1, %v682_v1  ;;  %v228_v3 = vsel %vm224_vm9, 1, %v682_v1  ;;  %v229_v4 = vsel %vm225_vm10, 1, %v682_v1 }
  0x39   : > { %v230_v8 = vsel %vm226_vm11, 1, %v682_v1  ;;  %v496_v9 = vrot.slane %v227_v2, 9  ;;  %v497_v10 = vrot.slane %v228_v3, 9  ;;  %v498_v11 = vrot.slane %v229_v4, 9 }
  0x3a   : > { %v499_v13 = vrot.slane %v230_v8, 9  ;;  %vm248_vm15 = vcmp.lt.s32.totalorder %v785_v45, 40  ;;  %vm249_vm0 = vcmp.lt.s32.totalorder %v787_v46, 40  ;;  %v1048_v14 = vmov 0 }
  0x3b   : > { %v1049_v14 = vsel %vm842_vm4, 4294967295, %v1048_v14  ;;  %vm846_vm8 = vcmp.ne.s32.totalorder %v496_v9, 0  ;;  %v1050_v15 = vmov 0  ;;  %vm850_vm1 = vcmp.ne.s32.totalorder %v497_v10, 0 }
  0x3c   : > { %v1051_v15 = vsel %vm846_vm8, 4294967295, %v1050_v15  ;;  %v1052_v16 = vmov 0  ;;  %vm854_vm5 = vcmp.ne.s32.totalorder %v498_v11, 0  ;;  %v1054_v17 = vmov 0 }
  0x3d   : > { %v1053_v16 = vsel %vm850_vm1, 4294967295, %v1052_v16  ;;  %v1055_v17 = vsel %vm854_vm5, 4294967295, %v1054_v17  ;;  %vm250_vm9 = vcmp.lt.s32.totalorder %v789_v48, 40  ;;  %vm867_vm6 = vcmp.ne.s32.totalorder %v499_v13, 0 }
  0x3e   : > { %v251_v20 = vsel %vm247_vm14, 1, %v682_v1  ;;  %v252_v21 = vsel %vm248_vm15, 1, %v682_v1  ;;  %v253_v22 = vsel %vm249_vm0, 1, %v682_v1  ;;  %v254_v23 = vsel %vm250_vm9, 1, %v682_v1 }
  0x3f   : > { %v500_v24 = vrot.slane %v251_v20, 9  ;;  %v501_v25 = vrot.slane %v252_v21, 9  ;;  %v502_v26 = vrot.slane %v253_v22, 9  ;;  %v503_v27 = vrot.slane %v254_v23, 9 }
  0x40   : > { %vm271_vm7 = vcmp.ge.s32.totalorder %v536_v61, 0  ;;  %vm272_vm11 = vcmp.ge.s32.totalorder %v538_v62, 0  ;;  %vm273_vm14 = vcmp.ge.s32.totalorder %v540_v63, 0  ;;  %vm274_vm8 = vcmp.ge.s32.totalorder %v542_v0, 0 }
  0x41   : > { %vm263_vm0 = vcmp.ne.s32.totalorder %v500_v24, 0  ;;  %vm264_vm10 = vcmp.ne.s32.totalorder %v501_v25, 0  ;;  %vm887_vm9 = vcmp.ne.s32.totalorder %v502_v26, 0  ;;  %vm895_vm1 = vcmp.ne.s32.totalorder %v503_v27, 0 }
  0x42   : > { %v275_v30 = vsel %vm271_vm7, 1, %v682_v1  ;;  %v276_v31 = vsel %vm272_vm11, 1, %v682_v1  ;;  %v277_v34 = vsel %vm273_vm14, 1, %v682_v1  ;;  %vm1064_vm15 = vnez %v1051_v15 }
  0x43   : > { %vm1065_vm5 = vmand %vm822_vm12, %vm1064_vm15  ;;  %v1066_v37 = vmov 0  ;;  %v278_v38 = vsel %vm274_vm8, 1, %v682_v1  ;;  %v504_v39 = vrot.slane %v275_v30, 10  ;;  %v505_v41 = vrot.slane %v276_v31, 10 }
  0x44   : > { %vm907_vm4 = vmand %vm1065_vm5, %vm263_vm0  ;;  %v506_v42 = vrot.slane %v277_v34, 10  ;;  %vm1068_vm7 = vnez %v1053_v16  ;;  %v507_v47 = vrot.slane %v278_v38, 10  ;;  %vm295_vm12 = vcmp.lt.s32.totalorder %v536_v61, 1 }
  0x45   : > { %v1067_v37 = vsel %vm907_vm4, 4294967295, %v1066_v37  ;;  %vm1069_vm11 = vmand %vm831_vm13, %vm1068_vm7  ;;  %vm296_vm5 = vcmp.lt.s32.totalorder %v538_v62, 1  ;;  %vm297_vm15 = vcmp.lt.s32.totalorder %v540_v63, 1  ;;  %vm1072_vm8 = vnez %v1049_v14 }
  0x46   : > { %vm917_vm14 = vmand %vm1069_vm11, %vm264_vm10  ;;  %vm1073_vm0 = vnez %v1055_v17  ;;  %v1075_v49 = vmov 0  ;;  %vm932_vm13 = vcmp.ne.s32.totalorder %v504_v39, 0  ;;  %vm936_vm10 = vcmp.ne.s32.totalorder %v505_v41, 0 }
  0x47   : > { %vm1074_vm3 = vmand %vm1072_vm8, %vm1073_vm0  ;;  %vm940_vm7 = vcmp.ne.s32.totalorder %v506_v42, 0  ;;  %vm298_vm11 = vcmp.lt.s32.totalorder %v542_v0, 1  ;;  %vm955_vm8 = vcmp.ne.s32.totalorder %v507_v47, 0  ;;  %v299_v55 = vsel %vm295_vm12, 1, %v682_v1 }
  0x48   : > { %vm928_vm4 = vmand %vm1074_vm3, %vm887_vm9  ;;  %v300_v56 = vsel %vm296_vm5, 1, %v682_v1  ;;  %v301_v57 = vsel %vm297_vm15, 1, %v682_v1  ;;  %vm1088_vm0 = vnez %v1067_v37  ;;  %v302_v58 = vsel %vm298_vm11, 1, %v682_v1 }
  0x49   : > { %v1076_v49 = vsel %vm928_vm4, 4294967295, %v1075_v49  ;;  %vm1083_vm3 = vmand %vm863_vm2, %vm867_vm6  ;;  %v508_v59 = vrot.slane %v299_v55, 10  ;;  %v509_v60 = vrot.slane %v300_v56, 10  ;;  %v510_v61 = vrot.slane %v301_v57, 10 }
  0x4a   : > { %vm951_vm9 = vmand %vm1083_vm3, %vm895_vm1  ;;  %v511_v62 = vrot.slane %v302_v58, 10  ;;  %v319_v63 = vmul.u32 40, %v783_v44  ;;  %v320_v0 = vmul.u32 40, %v785_v45  ;;  %v323_v2 = vrot.slane %v774_v32, 7 }
  0x4b   : > { %vm291_vm4 = vmand %vm1088_vm0, %vm932_vm13  ;;  %vm1089_vm2 = vnez %v1076_v49  ;;  %vm311_vm12 = vcmp.ne.s32.totalorder %v508_v59, 0  ;;  %vm312_vm5 = vcmp.ne.s32.totalorder %v509_v60, 0  ;;  %v321_v1 = vmul.u32 40, %v787_v46 }
  0x4c   : > { %vm292_vm1 = vmand %vm917_vm14, %vm936_vm10  ;;  %vm313_vm11 = vcmp.ne.s32.totalorder %v510_v61, 0  ;;  %v322_v44 = vmul.u32 40, %v789_v48  ;;  %v324_v45 = vrot.slane %v776_v33, 7  ;;  %v325_v32 = vrot.slane %v779_v36, 7 }
  0x4d   : > { %vm314_vm3 = vcmp.ne.s32.totalorder %v511_v62, 0  ;;  %vm315_vm6 = vmand %vm291_vm4, %vm311_vm12  ;;  %v326_v46 = vrot.slane %v781_v40, 7  ;;  %v327_v3 = vadd.s32 %v323_v2, %v319_v63  ;;  %v348_v48 = vsub.s32 %v345_v35, %v772_v6 }
  0x4e   : > { %vm316_vm15 = vmand %vm292_vm1, %vm312_vm5  ;;  %v328_v33 = vadd.s32 %v324_v45, %v320_v0  ;;  %v329_v36 = vadd.s32 %v325_v32, %v321_v1 }
  0x4f   : > { %vm1090_vm4 = vmand %vm1089_vm2, %vm940_vm7  ;;  %v330_v40 = vadd.s32 %v326_v46, %v322_v44  ;;  %v512_v4 = vrot.slane %v327_v3, 9 }
  0x50   : > { %vm317_vm13 = vmand %vm1090_vm4, %vm313_vm11  ;;  %v513_v7 = vrot.slane %v328_v33, 9  ;;  %v514_v8 = vrot.slane %v329_v36, 9 }
  0x51   : > { %vm1091_vm14 = vmand %vm951_vm9, %vm955_vm8  ;;  %v515_v9 = vrot.slane %v330_v40, 9  ;;  %v339_v10 = vsel %vm315_vm6, %v512_v4, 1600 }
  0x52   : > { %vm318_vm10 = vmand %vm1091_vm14, %vm314_vm3  ;;  %v340_v5 = vsel %vm316_vm15, %v513_v7, 1600  ;;  %v341_v6 = vsel %vm317_vm13, %v514_v8, 1600  ;;  %v349_v35 = vrot.slane %v339_v10, %v348_v48 }
  0x53   : > { %v342_v11 = vsel %vm318_vm10, %v515_v9, 1600  ;;  %v356_v12 = vrot.slane %v340_v5, %v348_v48  ;;  %v363_v13 = vrot.slane %v341_v6, %v348_v48 }
  0x54   : > { %v370_v14 = vrot.slane %v342_v11, %v348_v48 }
  0x55   : > { %v371_v15 = vcombine.low %v349_v35, %v356_v12 }
  0x56   : > { %v372_v16 = vcombine.low %v363_v13, %v370_v14 }
  0x57   : > { %v379_v17 = vrot.slane %v371_v15, %v348_v48 }
  0x58   : > { %v386_v18 = vrot.slane %v372_v16, %v348_v48 }
  0x5a   : > { %v387_v19 = vcombine.low %v379_v17, %v386_v18 }
  0x5c   : > { %388 = vst [vmem:[%s159_s17] sm:$0xff] %v387_v19 }
  0x5d PF: > { %s14_s11 = sadd.s32 1, %s678_s11   ;;  %s1092_s6 = smov %s662_s7 }
  0x5e   : > { %p11_p8 = scmp.ge.s32.totalorder %s14_s11, 4   ;;  %s1093_s7 = smov %s666_s8 }
  0x5f   : > { %s1094_s8 = smov %s742_s18  ;;  %s1095_s9 = smov %s674_s10 }
  0x60   : > { %s1096_s10 = smov %s1098_s13  ;;  %13 = sbr.rel (!%p11_p8) target bundleno = 4 (0x4), region = 64 }
  0x65   :  { %417 = vsyncpa [#allocation3], 1 }
  0x66   :  { %419 = vsyncpa [#allocation3 + $0x1], 1 }

// kernel: _voxelize_batch.3
= control target key start
LH: loop header
LB: loop body
LE: loop exit
PB: predicated region body
PF: predicated region fallthrough
CT: control target
= control target key end

     0   :  { %s10352_s19 = smov 0   ;;  %s10354_s20 = smov 0   ;;  %s17327_s0 = inlined_call_operand.<no memory space> [shape: s32[1], index: 0, kind: input, shape index: {}, may-alias: {0,1}]   ;;  %s17328_s1 = inlined_call_operand.<no memory space> [shape: s32[1], index: 1, kind: input, shape index: {}, may-alias: {0,1}]   ;;  %s17329_s2 = inlined_call_operand.vmem [shape: s32[2,1,1024], index: 2, kind: input, shape index: {}]   ;;  %s17330_s3 = inlined_call_operand.vmem [shape: s32[2,1024,1], index: 3, kind: input, shape index: {}]   ;;  %s17331_s4 = inlined_call_operand.vmem [shape: s32[2,1,1024], index: 4, kind: output, shape index: {}]  }
   0x1   :  { %9 = sst [smem:[#allocation3]] %s17327_s0  ;;  %s10356_s21 = smov 0  }
   0x2   :  { %10 = sst [smem:[#allocation4]] %s17328_s1 }
   0x3 LB: > { %s28_s0 = sadd.s32 1, %s10310_s20  ;;  %p10246_p0 = scmp.ge.s32.totalorder %s10314_s21, 1  ;;  %s10314_s21 = sphi %s10356_s21, %s16_s21   ;;  %s10310_s20 = sphi %s10354_s20, %s17620_s20   ;;  %s10306_s19 = sphi %s10352_s19, %s17619_s19  }
   0x4   : > { %p30_p1 = scmp.ge.s32.totalorder %s28_s0, 2  ;;  %p163_p2 = scmp.lt.s32.totalorder %s10314_s21, 3 }
   0x6   : > { %s17622_s0 = smov (%p30_p1, %s28_s0), 0  ;;  %p164_p3 = pnand %p10246_p0, %p163_p2 }
   0x8   : > { %167 = sbr.rel (%p164_p3) target bundleno = 1682 (0x692), region = 28 }
   0xd   : > { %s10370_s1 = sld [smem:[#allocation3]]  ;;  %p205_p4 = scmp.lt.s32.totalorder %s10306_s19, 1 }
   0xe   : > { %s10372_s22 = sld [smem:[#allocation4]] }
   0xf   : > { %s17624_s19 = smov (!%p205_p4, %s10306_s19), 1 }
  0x10   : > { %s10248_s24 = sshll.u32 %s17624_s19, 3  ;;  %s10250_s26 = sshll.u32 %s17624_s19, 7 }
  0x13   : > { %s10247_s23 = sshll.u32 %s10370_s1, 3 }
  0x14   : > { %p207_p5 = scmp.lt.s32.totalorder %s10247_s23, 7  ;;  %s10249_s25 = sshll.u32 %s10372_s22, 7 }
  0x15   : > { %p218_p6 = scmp.lt.s32.totalorder %s10249_s25, 127  ;;  %p10254_p7 = scmp.ne.s32.totalorder %s10372_s22, 0 }
  0x16   : > { %s17626_s23 = smov (!%p207_p5, %s10247_s23), 7 }
  0x17   : > { %s17628_s25 = smov (!%p218_p6, %s10249_s25), 127  ;;  %s210_s27 = sadd.s32 %s10248_s24, %s17626_s23 }
  0x18   : > { %s211_s30 = scalar_lea.vmem %s17329_s2, %s210_s27  ;;  %s221_s5 = sadd.s32 %s10250_s26, %s17628_s25 }
  0x19   : > { %s10251_s6 = sshll.u32 %s221_s5, 3  ;;  %s10382_s9 = scalar_lea.vmem %s17331_s4, %s210_s27 }
  0x1a   : > { %s10387_s12 = scalar_lea.vmem %s17330_s3, %s10251_s6  ;;  %242 = sbr.rel (%p10254_p7) target bundleno = 33 (0x21), region = 32 }
  0x1f   : > { %v10316_v0 = vmov 0  }
  0x20   : > { %243 = vst [vmem:[%s10382_s9] sm:$0xff] %v10316_v0 }
  0x21 PF: > { %v10391_v1 = vld [vmem:[%s211_s30] sm:$0xff]  ;;  %p10255_p8 = scmp.ne.s32.totalorder %s10372_s22, %s10370_s1 }
  0x22   : > { %17418 = vst [vmem:[#allocation5_spill] sm:$0xff] %v10391_v1 }
  0x23   : > { %248 = sbr.rel (%p10255_p8) target bundleno = 718 (0x2ce), region = 36 }
  0x28   : > { %v294_v2 = vld [vmem:[%s10387_s12 + $0x10] sm:$0xff]  ;;  %v292_v3 = vld [vmem:[%s10387_s12] sm:$0xff]  ;;  %v17338_v4 = vmov 0   ;;  %v295_v5 = vld [vmem:[%s10387_s12 + $0x18] sm:$0xff] }
  0x29   : > { %10289 = vset.pattern.permute.xlu1 %v17338_v4  ;;  %10288 = vset.pattern.permute.xlu0 %v17338_v4  ;;  %v293_v6 = vld [vmem:[%s10387_s12 + $0x8] sm:$0xff]  ;;  %v296_v8 = vld [vmem:[%s10387_s12 + $0x20] sm:$0xff]  ;;  %v299_v9 = vld [vmem:[%s10387_s12 + $0x38] sm:$0xff] }
  0x2a   : > { %331 = vperm.xlu1 %10289, %v294_v2   ;;  %325 = vperm.xlu0 %10288, %v292_v3   ;;  %v297_v7 = vld [vmem:[%s10387_s12 + $0x28] sm:$0xff]  ;;  %v298_v10 = vld [vmem:[%s10387_s12 + $0x30] sm:$0xff]  ;;  %v300_v12 = vld [vmem:[%s10387_s12 + $0x40] sm:$0xff] }
  0x2b   : > { %v301_v11 = vld [vmem:[%s10387_s12 + $0x48] sm:$0xff]  ;;  %v303_v13 = vld [vmem:[%s10387_s12 + $0x58] sm:$0xff]  ;;  %v302_v14 = vld [vmem:[%s10387_s12 + $0x50] sm:$0xff] }
  0x2c   : > { %v305_v15 = vld [vmem:[%s10387_s12 + $0x68] sm:$0xff]  ;;  %v304_v16 = vld [vmem:[%s10387_s12 + $0x60] sm:$0xff]  ;;  %v307_v17 = vld [vmem:[%s10387_s12 + $0x78] sm:$0xff] }
  0x2d   : > { %v306_v18 = vld [vmem:[%s10387_s12 + $0x70] sm:$0xff]  ;;  %v309_v19 = vld [vmem:[%s10387_s12 + $0x88] sm:$0xff]  ;;  %v308_v20 = vld [vmem:[%s10387_s12 + $0x80] sm:$0xff] }
  0x2e   : > { %334 = vperm.xlu1 %10289, %v295_v5   ;;  %328 = vperm.xlu0 %10288, %v293_v6   ;;  %v311_v21 = vld [vmem:[%s10387_s12 + $0x98] sm:$0xff]  ;;  %v310_v22 = vld [vmem:[%s10387_s12 + $0x90] sm:$0xff]  ;;  %v313_v23 = vld [vmem:[%s10387_s12 + $0xa8] sm:$0xff] }
  0x2f   : > { %v312_v24 = vld [vmem:[%s10387_s12 + $0xa0] sm:$0xff]  ;;  %v315_v25 = vld [vmem:[%s10387_s12 + $0xb8] sm:$0xff]  ;;  %v314_v26 = vld [vmem:[%s10387_s12 + $0xb0] sm:$0xff] }
  0x30   : > { %v317_v27 = vld [vmem:[%s10387_s12 + $0xc8] sm:$0xff]  ;;  %v316_v28 = vld [vmem:[%s10387_s12 + $0xc0] sm:$0xff]  ;;  %v319_v29 = vld [vmem:[%s10387_s12 + $0xd8] sm:$0xff] }
  0x31   : > { %v318_v30 = vld [vmem:[%s10387_s12 + $0xd0] sm:$0xff]  ;;  %v321_v31 = vld [vmem:[%s10387_s12 + $0xe8] sm:$0xff]  ;;  %v320_v32 = vld [vmem:[%s10387_s12 + $0xe0] sm:$0xff] }
  0x32   : > { %340 = vperm.xlu1 %10289, %v297_v7   ;;  %337 = vperm.xlu0 %10288, %v296_v8   ;;  %v323_v33 = vld [vmem:[%s10387_s12 + $0xf8] sm:$0xff]  ;;  %v322_v34 = vld [vmem:[%s10387_s12 + $0xf0] sm:$0xff]  ;;  %v1773_v35 = vld [vmem:[%s10387_s12 + $0x108] sm:$0xff]  ;;  %v250_v7 = vlaneseq }
  0x33   : > { %v1772_v36 = vld [vmem:[%s10387_s12 + $0x100] sm:$0xff]  ;;  %v1775_v37 = vld [vmem:[%s10387_s12 + $0x118] sm:$0xff]  ;;  %v1774_v38 = vld [vmem:[%s10387_s12 + $0x110] sm:$0xff] }
  0x34   : > { %v1777_v39 = vld [vmem:[%s10387_s12 + $0x128] sm:$0xff]  ;;  %v1776_v40 = vld [vmem:[%s10387_s12 + $0x120] sm:$0xff]  ;;  %v1779_v41 = vld [vmem:[%s10387_s12 + $0x138] sm:$0xff] }
  0x35   : > { %v1778_v42 = vld [vmem:[%s10387_s12 + $0x130] sm:$0xff]  ;;  %v1781_v43 = vld [vmem:[%s10387_s12 + $0x148] sm:$0xff]  ;;  %v1780_v44 = vld [vmem:[%s10387_s12 + $0x140] sm:$0xff] }
  0x36   : > { %346 = vperm.xlu1 %10289, %v299_v9   ;;  %343 = vperm.xlu0 %10288, %v298_v10   ;;  %v1783_v45 = vld [vmem:[%s10387_s12 + $0x158] sm:$0xff]  ;;  %v1782_v46 = vld [vmem:[%s10387_s12 + $0x150] sm:$0xff]  ;;  %v1785_v47 = vld [vmem:[%s10387_s12 + $0x168] sm:$0xff]  ;;  %v10465_v10 = vshrl.u32 %v250_v7, 7 }
  0x37   : > { %v1784_v48 = vld [vmem:[%s10387_s12 + $0x160] sm:$0xff]  ;;  %v1787_v49 = vld [vmem:[%s10387_s12 + $0x178] sm:$0xff]  ;;  %v1786_v50 = vld [vmem:[%s10387_s12 + $0x170] sm:$0xff] }
  0x38   : > { %v1789_v51 = vld [vmem:[%s10387_s12 + $0x188] sm:$0xff]  ;;  %v1788_v52 = vld [vmem:[%s10387_s12 + $0x180] sm:$0xff]  ;;  %v1791_v53 = vld [vmem:[%s10387_s12 + $0x198] sm:$0xff]  ;;  %17419 = vst [vmem:[#allocation6_spill] sm:$0xff] %v10465_v10 }
  0x39   : > { %v1790_v54 = vld [vmem:[%s10387_s12 + $0x190] sm:$0xff]  ;;  %v1793_v55 = vld [vmem:[%s10387_s12 + $0x1a8] sm:$0xff]  ;;  %v1792_v56 = vld [vmem:[%s10387_s12 + $0x1a0] sm:$0xff] }
  0x3a   : > { %352 = vperm.xlu1 %10289, %v301_v11   ;;  %349 = vperm.xlu0 %10288, %v300_v12   ;;  %v1795_v57 = vld [vmem:[%s10387_s12 + $0x1b8] sm:$0xff]  ;;  %v1794_v58 = vld [vmem:[%s10387_s12 + $0x1b0] sm:$0xff]  ;;  %v1797_v59 = vld [vmem:[%s10387_s12 + $0x1c8] sm:$0xff] }
  0x3b   : > { %v1796_v60 = vld [vmem:[%s10387_s12 + $0x1c0] sm:$0xff]  ;;  %v1799_v61 = vld [vmem:[%s10387_s12 + $0x1d8] sm:$0xff]  ;;  %v1798_v62 = vld [vmem:[%s10387_s12 + $0x1d0] sm:$0xff] }
  0x3c   : > { %v1801_v63 = vld [vmem:[%s10387_s12 + $0x1e8] sm:$0xff]  ;;  %v1800_v0 = vld [vmem:[%s10387_s12 + $0x1e0] sm:$0xff]  ;;  %v1803_v2 = vld [vmem:[%s10387_s12 + $0x1f8] sm:$0xff] }
  0x3d   : > { %v1802_v3 = vld [vmem:[%s10387_s12 + $0x1f0] sm:$0xff]  ;;  %v3261_v5 = vld [vmem:[%s10387_s12 + $0x208] sm:$0xff]  ;;  %v3260_v6 = vld [vmem:[%s10387_s12 + $0x200] sm:$0xff] }
  0x3e   : > { %358 = vperm.xlu1 %10289, %v303_v13   ;;  %355 = vperm.xlu0 %10288, %v302_v14   ;;  %v3263_v8 = vld [vmem:[%s10387_s12 + $0x218] sm:$0xff]  ;;  %v3262_v9 = vld [vmem:[%s10387_s12 + $0x210] sm:$0xff]  ;;  %v3265_v11 = vld [vmem:[%s10387_s12 + $0x228] sm:$0xff]  ;;  %v422_v13 = vsub.s32 0, %v10465_v10  ;;  %v426_v14 = vsub.s32 1, %v10465_v10 }
  0x3f   : > { %v3264_v12 = vld [vmem:[%s10387_s12 + $0x220] sm:$0xff] }
  0x42   : > { %364 = vperm.xlu1 %10289, %v305_v15   ;;  %361 = vperm.xlu0 %10288, %v304_v16   ;;  %v430_v15 = vsub.s32 2, %v10465_v10  ;;  %v434_v16 = vsub.s32 3, %v10465_v10 }
  0x46   : > { %370 = vperm.xlu1 %10289, %v307_v17   ;;  %367 = vperm.xlu0 %10288, %v306_v18   ;;  %v10473_v17 = vand.u32 127, %v250_v7  ;;  %v3267_v18 = vld [vmem:[%s10387_s12 + $0x238] sm:$0xff] }
  0x48   : > { %vm708_vm0 = vcmp.lt.s32.totalorder %v10465_v10, %v10473_v17 }
  0x4a   : > { %376 = vperm.xlu1 %10289, %v309_v19   ;;  %373 = vperm.xlu0 %10288, %v308_v20   ;;  %v438_v19 = vsub.s32 4, %v10465_v10  ;;  %v442_v20 = vsub.s32 5, %v10465_v10 }
  0x4e   : > { %382 = vperm.xlu1 %10289, %v311_v21   ;;  %379 = vperm.xlu0 %10288, %v310_v22   ;;  %v446_v21 = vsub.s32 6, %v10465_v10  ;;  %v450_v22 = vsub.s32 7, %v10465_v10 }
  0x52   : > { %388 = vperm.xlu1 %10289, %v313_v23   ;;  %385 = vperm.xlu0 %10288, %v312_v24   ;;  %v3266_v23 = vld [vmem:[%s10387_s12 + $0x230] sm:$0xff]  ;;  %v10482_v24 = vrot.slane %v10391_v1, %v422_v13 }
  0x56   : > { %394 = vperm.xlu1 %10289, %v315_v25   ;;  %391 = vperm.xlu0 %10288, %v314_v26   ;;  %v10485_v26 = vrot.slane %v10391_v1, %v426_v14 }
  0x5a   : > { %400 = vperm.xlu1 %10289, %v317_v27   ;;  %397 = vperm.xlu0 %10288, %v316_v28   ;;  %v10488_v27 = vrot.slane %v10391_v1, %v430_v15  ;;  %v10491_v28 = vrot.slane %v10391_v1, %v434_v16 }
  0x5e   : > { %406 = vperm.xlu1 %10289, %v319_v29   ;;  %403 = vperm.xlu0 %10288, %v318_v30   ;;  %v3269_v29 = vld [vmem:[%s10387_s12 + $0x248] sm:$0xff] }
  0x62   : > { %412 = vperm.xlu1 %10289, %v321_v31   ;;  %409 = vperm.xlu0 %10288, %v320_v32   ;;  %v10499_v31 = vrot.slane %v10391_v1, %v438_v19  ;;  %v10502_v32 = vrot.slane %v10391_v1, %v442_v20 }
  0x66   : > { %418 = vperm.xlu1 %10289, %v323_v33   ;;  %415 = vperm.xlu0 %10288, %v322_v34   ;;  %v10505_v33 = vrot.slane %v10391_v1, %v446_v21  ;;  %v10508_v34 = vrot.slane %v10391_v1, %v450_v22 }
  0x6a   : > { %1808 = vperm.xlu1 %10289, %v1773_v35   ;;  %1805 = vperm.xlu0 %10288, %v1772_v36   ;;  %v3268_v35 = vld [vmem:[%s10387_s12 + $0x240] sm:$0xff]  ;;  %v3271_v36 = vld [vmem:[%s10387_s12 + $0x258] sm:$0xff] }
  0x6e   : > { %1814 = vperm.xlu1 %10289, %v1775_v37   ;;  %1811 = vperm.xlu0 %10288, %v1774_v38   ;;  %v10528_v37 = vadd.s32 8, %v10465_v10 }
  0x70   : > { %17420 = vst [vmem:[#allocation7_spill] sm:$0xff] %v10528_v37 }
  0x72   : > { %1820 = vperm.xlu1 %10289, %v1777_v39   ;;  %1817 = vperm.xlu0 %10288, %v1776_v40  }
  0x76   : > { %1826 = vperm.xlu1 %10289, %v1779_v41   ;;  %1823 = vperm.xlu0 %10288, %v1778_v42   ;;  %v3270_v41 = vld [vmem:[%s10387_s12 + $0x250] sm:$0xff] }
  0x7a   : > { %1832 = vperm.xlu1 %10289, %v1781_v43   ;;  %1829 = vperm.xlu0 %10288, %v1780_v44  }
  0x7e   : > { %1838 = vperm.xlu1 %10289, %v1783_v45   ;;  %1835 = vperm.xlu0 %10288, %v1782_v46  }
  0x82   : > { %1844 = vperm.xlu1 %10289, %v1785_v47   ;;  %1841 = vperm.xlu0 %10288, %v1784_v48  }
  0x86   : > { %1850 = vperm.xlu1 %10289, %v1787_v49   ;;  %1847 = vperm.xlu0 %10288, %v1786_v50   ;;  %v3273_v50 = vld [vmem:[%s10387_s12 + $0x268] sm:$0xff] }
  0x8a   : > { %1856 = vperm.xlu1 %10289, %v1789_v51   ;;  %1853 = vperm.xlu0 %10288, %v1788_v52  }
  0x8e   : > { %1862 = vperm.xlu1 %10289, %v1791_v53   ;;  %1859 = vperm.xlu0 %10288, %v1790_v54   ;;  %v3272_v53 = vld [vmem:[%s10387_s12 + $0x260] sm:$0xff] }
  0x92   : > { %1868 = vperm.xlu1 %10289, %v1793_v55   ;;  %1865 = vperm.xlu0 %10288, %v1792_v56  }
  0x96   : > { %1874 = vperm.xlu1 %10289, %v1795_v57   ;;  %1871 = vperm.xlu0 %10288, %v1794_v58  }
  0x9a   : > { %1880 = vperm.xlu1 %10289, %v1797_v59   ;;  %1877 = vperm.xlu0 %10288, %v1796_v60   ;;  %v3275_v60 = vld [vmem:[%s10387_s12 + $0x278] sm:$0xff] }
  0x9e   : > { %1886 = vperm.xlu1 %10289, %v1799_v61   ;;  %1883 = vperm.xlu0 %10288, %v1798_v62   ;;  %v3274_v62 = vld [vmem:[%s10387_s12 + $0x270] sm:$0xff] }
  0xa2   : > { %1892 = vperm.xlu1 %10289, %v1801_v63   ;;  %1889 = vperm.xlu0 %10288, %v1800_v0  }
  0xa5   : > { %v326_v25 = vpop.permute.xlu0 %325  ;;  %v10496_v30 = vpop.permute.xlu1 %331 }
  0xa6   : > { %1898 = vperm.xlu1 %10289, %v1803_v2   ;;  %1895 = vperm.xlu0 %10288, %v1802_v3   ;;  %vm469_vm1 = vcmp.eq.s32.totalorder %v10496_v30, %v10485_v26  ;;  %vm470_vm2 = vcmp.eq.s32.totalorder %v10496_v30, %v10488_v27  ;;  %vm471_vm3 = vcmp.eq.s32.totalorder %v10496_v30, %v10491_v28 }
  0xa7   : > { %vm452_vm4 = vcmp.eq.s32.totalorder %v326_v25, %v10482_v24  ;;  %vm472_vm5 = vcmp.eq.s32.totalorder %v10496_v30, %v10499_v31  ;;  %vm473_vm6 = vcmp.eq.s32.totalorder %v10496_v30, %v10502_v32  ;;  %vm474_vm7 = vcmp.eq.s32.totalorder %v10496_v30, %v10505_v33 }
  0xa8   : > { %vm475_vm8 = vcmp.eq.s32.totalorder %v10496_v30, %v10508_v34  ;;  %v10531_v38 = vsel %vm469_vm1, 1, %v17338_v4  ;;  %v10534_v39 = vsel %vm470_vm2, 1, %v17338_v4  ;;  %v10537_v40 = vsel %vm471_vm3, 1, %v17338_v4  ;;  %vm964_vm10 = vmand %vm452_vm4, %vm708_vm0 }
  0xa9   : > { %vm453_vm9 = vcmp.eq.s32.totalorder %v326_v25, %v10485_v26  ;;  %v10545_v42 = vsel %vm472_vm5, 1, %v17338_v4  ;;  %v10548_v43 = vsel %vm473_vm6, 1, %v17338_v4  ;;  %vm454_vm11 = vcmp.eq.s32.totalorder %v326_v25, %v10488_v27  ;;  %v10552_v44 = vpop.permute.xlu0 %328  ;;  %v10576_v49 = vpop.permute.xlu1 %334 }
  0xaa   : > { %3296 = vperm.xlu1 %10289, %v3261_v5   ;;  %3293 = vperm.xlu0 %10288, %v3260_v6   ;;  %vm455_vm12 = vcmp.eq.s32.totalorder %v326_v25, %v10491_v28  ;;  %v10558_v45 = vsel %vm474_vm7, 1, %v17338_v4  ;;  %vm456_vm13 = vcmp.eq.s32.totalorder %v326_v25, %v10499_v31  ;;  %vm457_vm14 = vcmp.eq.s32.totalorder %v326_v25, %v10502_v32 }
  0xab   : > { %vm458_vm15 = vcmp.eq.s32.totalorder %v326_v25, %v10505_v33  ;;  %v10567_v46 = vsel %vm475_vm8, 1, %v17338_v4  ;;  %vm459_vm0 = vcmp.eq.s32.totalorder %v326_v25, %v10508_v34  ;;  %v10571_v47 = vsel %vm964_vm10, 1, %v17338_v4 }
  0xac   : > { %v1221_v48 = vsel %vm453_vm9, 1, %v17338_v4  ;;  %v1222_v51 = vsel %vm454_vm11, 1, %v17338_v4  ;;  %v1223_v52 = vsel %vm455_vm12, 1, %v17338_v4  ;;  %vm461_vm1 = vcmp.eq.s32.totalorder %v10552_v44, %v10485_v26 }
  0xad   : > { %vm462_vm2 = vcmp.eq.s32.totalorder %v10552_v44, %v10488_v27  ;;  %v1224_v54 = vsel %vm456_vm13, 1, %v17338_v4  ;;  %v1225_v55 = vsel %vm457_vm14, 1, %v17338_v4  ;;  %v1226_v56 = vsel %vm458_vm15, 1, %v17338_v4 }
  0xae   : > { %3302 = vperm.xlu1 %10289, %v3263_v8   ;;  %3299 = vperm.xlu0 %10288, %v3262_v9   ;;  %vm463_vm3 = vcmp.eq.s32.totalorder %v10552_v44, %v10491_v28  ;;  %v1227_v57 = vsel %vm459_vm0, 1, %v17338_v4  ;;  %vm477_vm4 = vcmp.eq.s32.totalorder %v10576_v49, %v10485_v26  ;;  %vm464_vm5 = vcmp.eq.s32.totalorder %v10552_v44, %v10499_v31 }
  0xaf   : > { %vm465_vm6 = vcmp.eq.s32.totalorder %v10552_v44, %v10502_v32  ;;  %vm466_vm7 = vcmp.eq.s32.totalorder %v10552_v44, %v10505_v33  ;;  %vm467_vm8 = vcmp.eq.s32.totalorder %v10552_v44, %v10508_v34  ;;  %v1229_v58 = vsel %vm461_vm1, 1, %v17338_v4 }
  0xb0   : > { %v1230_v59 = vsel %vm462_vm2, 1, %v17338_v4  ;;  %vm478_vm9 = vcmp.eq.s32.totalorder %v10576_v49, %v10488_v27  ;;  %vm479_vm10 = vcmp.eq.s32.totalorder %v10576_v49, %v10491_v28  ;;  %vm480_vm11 = vcmp.eq.s32.totalorder %v10576_v49, %v10499_v31 }
  0xb1   : > { %v1231_v61 = vsel %vm463_vm3, 1, %v17338_v4  ;;  %vm481_vm12 = vcmp.eq.s32.totalorder %v10576_v49, %v10502_v32  ;;  %vm482_vm13 = vcmp.eq.s32.totalorder %v10576_v49, %v10505_v33  ;;  %v1232_v63 = vsel %vm464_vm5, 1, %v17338_v4 }
  0xb2   : > { %3308 = vperm.xlu1 %10289, %v3265_v11   ;;  %3305 = vperm.xlu0 %10288, %v3264_v12   ;;  %v1233_v0 = vsel %vm465_vm6, 1, %v17338_v4  ;;  %v1234_v2 = vsel %vm466_vm7, 1, %v17338_v4  ;;  %v1235_v3 = vsel %vm467_vm8, 1, %v17338_v4  ;;  %v1513_v5 = vadd.s32 %v1229_v58, %v1221_v48  ;;  %v10643_v11 = vpop.permute.xlu1 %340  ;;  %v3277_v12 = vld [vmem:[%s10387_s12 + $0x288] sm:$0xff] }
  0xb3   : > { %v1550_v6 = vadd.s32 %v1230_v59, %v1222_v51  ;;  %vm483_vm14 = vcmp.eq.s32.totalorder %v10576_v49, %v10508_v34  ;;  %v1245_v7 = vsel %vm477_vm4, 1, %v17338_v4  ;;  %v1246_v8 = vsel %vm478_vm9, 1, %v17338_v4 }
  0xb4   : > { %v1587_v9 = vadd.s32 %v1231_v61, %v1223_v52  ;;  %v1247_v13 = vsel %vm479_vm10, 1, %v17338_v4  ;;  %v1248_v14 = vsel %vm480_vm11, 1, %v17338_v4  ;;  %v1624_v15 = vadd.s32 %v1232_v63, %v1224_v54 }
  0xb5   : > { %v1661_v16 = vadd.s32 %v1233_v0, %v1225_v55  ;;  %v1249_v19 = vsel %vm481_vm12, 1, %v17338_v4  ;;  %v1250_v20 = vsel %vm482_vm13, 1, %v17338_v4  ;;  %v1698_v21 = vadd.s32 %v1234_v2, %v1226_v56  ;;  %v3280_v56 = vld [vmem:[%s10387_s12 + $0x2a0] sm:$0xff] }
  0xb6   : > { %3314 = vperm.xlu1 %10289, %v3267_v18   ;;  %3311 = vperm.xlu0 %10288, %v3266_v23   ;;  %v3276_v18 = vld [vmem:[%s10387_s12 + $0x280] sm:$0xff]  ;;  %v1735_v22 = vadd.s32 %v1235_v3, %v1227_v57  ;;  %v1251_v23 = vsel %vm483_vm14, 1, %v17338_v4  ;;  %v1514_v25 = vadd.s32 %v1513_v5, %v10531_v38  ;;  %vm493_vm15 = vcmp.eq.s32.totalorder %v10643_v11, %v10485_v26  ;;  %v3279_v38 = vld [vmem:[%s10387_s12 + $0x298] sm:$0xff]  ;;  %v10735_v63 = vpop.permute.xlu1 %346 }
  0xb7   : > { %vm494_vm0 = vcmp.eq.s32.totalorder %v10643_v11, %v10488_v27  ;;  %vm495_vm1 = vcmp.eq.s32.totalorder %v10643_v11, %v10491_v28  ;;  %vm496_vm2 = vcmp.eq.s32.totalorder %v10643_v11, %v10499_v31  ;;  %vm497_vm3 = vcmp.eq.s32.totalorder %v10643_v11, %v10502_v32 }
  0xb8   : > { %vm498_vm4 = vcmp.eq.s32.totalorder %v10643_v11, %v10505_v33  ;;  %v1699_v48 = vadd.s32 %v1698_v21, %v10558_v45  ;;  %vm499_vm5 = vcmp.eq.s32.totalorder %v10643_v11, %v10508_v34  ;;  %v10702_v51 = vsel %vm495_vm1, 1, %v17338_v4  ;;  %v3285_v21 = vld [vmem:[%s10387_s12 + $0x2c8] sm:$0xff] }
  0xb9   : > { %v10705_v45 = vsel %vm496_vm2, 1, %v17338_v4  ;;  %v10713_v52 = vsel %vm498_vm4, 1, %v17338_v4  ;;  %v10721_v54 = vsel %vm499_vm5, 1, %v17338_v4  ;;  %v1515_v55 = vadd.s32 %v1514_v25, %v1245_v7 }
  0xba   : > { %3320 = vperm.xlu1 %10289, %v3269_v29   ;;  %3317 = vperm.xlu0 %10288, %v3268_v35   ;;  %v1551_v29 = vadd.s32 %v1550_v6, %v10534_v39  ;;  %v1588_v35 = vadd.s32 %v1587_v9, %v10537_v40  ;;  %v1625_v39 = vadd.s32 %v1624_v15, %v10545_v42  ;;  %v3278_v40 = vld [vmem:[%s10387_s12 + $0x290] sm:$0xff]  ;;  %v10696_v42 = vsel %vm493_vm15, 1, %v17338_v4  ;;  %v3283_v6 = vld [vmem:[%s10387_s12 + $0x2b8] sm:$0xff] }
  0xbb   : > { %v1700_v5 = vadd.s32 %v1699_v48, %v1250_v20  ;;  %vm509_vm13 = vcmp.eq.s32.totalorder %v10735_v63, %v10485_v26  ;;  %vm510_vm14 = vcmp.eq.s32.totalorder %v10735_v63, %v10488_v27  ;;  %vm511_vm15 = vcmp.eq.s32.totalorder %v10735_v63, %v10491_v28 }
  0xbc   : > { %v1552_v58 = vadd.s32 %v1551_v29, %v1246_v8  ;;  %v1589_v61 = vadd.s32 %v1588_v35, %v1247_v13  ;;  %v3282_v13 = vld [vmem:[%s10387_s12 + $0x2b0] sm:$0xff]  ;;  %vm513_vm1 = vcmp.eq.s32.totalorder %v10735_v63, %v10502_v32  ;;  %vm514_vm2 = vcmp.eq.s32.totalorder %v10735_v63, %v10505_v33  ;;  %v3284_v35 = vld [vmem:[%s10387_s12 + $0x2c0] sm:$0xff] }
  0xbd   : > { %v10776_v25 = vsel %vm510_vm14, 1, %v17338_v4  ;;  %v10782_v29 = vsel %vm511_vm15, 1, %v17338_v4 }
  0xbe   : > { %3326 = vperm.xlu1 %10289, %v3271_v36   ;;  %3323 = vperm.xlu0 %10288, %v3270_v41   ;;  %v10678_v36 = vpop.permute.xlu0 %337  ;;  %v1662_v41 = vadd.s32 %v1661_v16, %v10548_v43  ;;  %v10699_v43 = vsel %vm494_vm0, 1, %v17338_v4  ;;  %vm512_vm0 = vcmp.eq.s32.totalorder %v10735_v63, %v10499_v31 }
  0xbf   : > { %vm485_vm6 = vcmp.eq.s32.totalorder %v10678_v36, %v10485_v26  ;;  %vm486_vm7 = vcmp.eq.s32.totalorder %v10678_v36, %v10488_v27  ;;  %vm487_vm8 = vcmp.eq.s32.totalorder %v10678_v36, %v10491_v28  ;;  %vm488_vm9 = vcmp.eq.s32.totalorder %v10678_v36, %v10499_v31 }
  0xc0   : > { %vm489_vm10 = vcmp.eq.s32.totalorder %v10678_v36, %v10502_v32  ;;  %vm490_vm11 = vcmp.eq.s32.totalorder %v10678_v36, %v10505_v33  ;;  %vm491_vm12 = vcmp.eq.s32.totalorder %v10678_v36, %v10508_v34  ;;  %v1253_v57 = vsel %vm485_vm6, 1, %v17338_v4 }
  0xc1   : > { %v1254_v59 = vsel %vm486_vm7, 1, %v17338_v4  ;;  %v1256_v0 = vsel %vm488_vm9, 1, %v17338_v4  ;;  %v1257_v2 = vsel %vm489_vm10, 1, %v17338_v4  ;;  %v1663_v3 = vadd.s32 %v1662_v41, %v1249_v19 }
  0xc2   : > { %3332 = vperm.xlu1 %10289, %v3273_v50   ;;  %3329 = vperm.xlu0 %10288, %v3272_v53   ;;  %v1736_v50 = vadd.s32 %v1735_v22, %v10567_v46  ;;  %v10710_v46 = vsel %vm497_vm3, 1, %v17338_v4  ;;  %v3281_v53 = vld [vmem:[%s10387_s12 + $0x2a8] sm:$0xff]  ;;  %v1258_v7 = vsel %vm490_vm11, 1, %v17338_v4  ;;  %v1259_v8 = vsel %vm491_vm12, 1, %v17338_v4 }
  0xc3   : > { %v1516_v9 = vadd.s32 %v1515_v55, %v1253_v57  ;;  %v1664_v19 = vadd.s32 %v1663_v3, %v1257_v2  ;;  %v1701_v20 = vadd.s32 %v1700_v5, %v1258_v7  ;;  %vm515_vm3 = vcmp.eq.s32.totalorder %v10735_v63, %v10508_v34  ;;  %v4751_v5 = vld [vmem:[%s10387_s12 + $0x318] sm:$0xff] }
  0xc4   : > { %v10796_v41 = vsel %vm514_vm2, 1, %v17338_v4 }
  0xc5   : > { %v1517_v48 = vadd.s32 %v1516_v9, %v10696_v42 }
  0xc6   : > { %3338 = vperm.xlu1 %10289, %v3275_v60   ;;  %3335 = vperm.xlu0 %10288, %v3274_v62   ;;  %v1255_v60 = vsel %vm487_vm8, 1, %v17338_v4  ;;  %v1626_v62 = vadd.s32 %v1625_v39, %v1248_v14  ;;  %v1553_v14 = vadd.s32 %v1552_v58, %v1254_v59  ;;  %v10789_v39 = vsel %vm513_vm1, 1, %v17338_v4  ;;  %v10817_v58 = vpop.permute.xlu1 %352  ;;  %v4748_v59 = vld [vmem:[%s10387_s12 + $0x300] sm:$0xff] }
  0xc7   : > { %v1590_v15 = vadd.s32 %v1589_v61, %v1255_v60  ;;  %v1665_v61 = vadd.s32 %v1664_v19, %v10710_v46  ;;  %vm525_vm11 = vcmp.eq.s32.totalorder %v10817_v58, %v10485_v26  ;;  %vm526_vm12 = vcmp.eq.s32.totalorder %v10817_v58, %v10488_v27  ;;  %v4753_v19 = vld [vmem:[%s10387_s12 + $0x328] sm:$0xff] }
  0xc8   : > { %v1627_v16 = vadd.s32 %v1626_v62, %v1256_v0  ;;  %v1702_v0 = vadd.s32 %v1701_v20, %v10713_v52  ;;  %vm528_vm14 = vcmp.eq.s32.totalorder %v10817_v58, %v10499_v31  ;;  %vm529_vm15 = vcmp.eq.s32.totalorder %v10817_v58, %v10502_v32 }
  0xc9   : > { %v1591_v57 = vadd.s32 %v1590_v15, %v10702_v51  ;;  %vm531_vm1 = vcmp.eq.s32.totalorder %v10817_v58, %v10508_v34  ;;  %v10872_v20 = vsel %vm529_vm15, 1, %v17338_v4 }
  0xca   : > { %3344 = vperm.xlu1 %10289, %v3277_v12   ;;  %3341 = vperm.xlu0 %10288, %v3276_v18   ;;  %v1737_v12 = vadd.s32 %v1736_v50, %v1251_v23  ;;  %v10759_v18 = vpop.permute.xlu0 %343  ;;  %v10770_v23 = vsel %vm509_vm13, 1, %v17338_v4  ;;  %v1554_v50 = vadd.s32 %v1553_v14, %v10699_v43  ;;  %v1628_v43 = vadd.s32 %v1627_v16, %v10705_v45 }
  0xcb   : > { %vm501_vm4 = vcmp.eq.s32.totalorder %v10759_v18, %v10485_v26  ;;  %vm502_vm5 = vcmp.eq.s32.totalorder %v10759_v18, %v10488_v27  ;;  %vm503_vm6 = vcmp.eq.s32.totalorder %v10759_v18, %v10491_v28  ;;  %vm504_vm7 = vcmp.eq.s32.totalorder %v10759_v18, %v10499_v31 }
  0xcc   : > { %v1738_v22 = vadd.s32 %v1737_v12, %v1259_v8  ;;  %vm505_vm8 = vcmp.eq.s32.totalorder %v10759_v18, %v10502_v32  ;;  %vm506_vm9 = vcmp.eq.s32.totalorder %v10759_v18, %v10505_v33  ;;  %vm507_vm10 = vcmp.eq.s32.totalorder %v10759_v18, %v10508_v34 }
  0xcd   : > { %v1269_v55 = vsel %vm501_vm4, 1, %v17338_v4  ;;  %v1271_v60 = vsel %vm503_vm6, 1, %v17338_v4  ;;  %v1272_v42 = vsel %vm504_vm7, 1, %v17338_v4  ;;  %v1273_v62 = vsel %vm505_vm8, 1, %v17338_v4 }
  0xce   : > { %3350 = vperm.xlu1 %10289, %v3279_v38   ;;  %3347 = vperm.xlu0 %10288, %v3278_v40   ;;  %v10786_v38 = vsel %vm512_vm0, 1, %v17338_v4  ;;  %v10799_v40 = vsel %vm515_vm3, 1, %v17338_v4  ;;  %v1274_v51 = vsel %vm506_vm9, 1, %v17338_v4  ;;  %v1739_v2 = vadd.s32 %v1738_v22, %v10721_v54  ;;  %v10844_v52 = vpop.permute.xlu0 %349  ;;  %v4750_v54 = vld [vmem:[%s10387_s12 + $0x310] sm:$0xff]  ;;  %v4752_v22 = vld [vmem:[%s10387_s12 + $0x320] sm:$0xff] }
  0xcf   : > { %v1275_v45 = vsel %vm507_vm10, 1, %v17338_v4  ;;  %v1518_v3 = vadd.s32 %v1517_v48, %v1269_v55  ;;  %vm527_vm13 = vcmp.eq.s32.totalorder %v10817_v58, %v10491_v28  ;;  %v1629_v7 = vadd.s32 %v1628_v43, %v1272_v42 }
  0xd0   : > { %v1666_v8 = vadd.s32 %v1665_v61, %v1273_v62  ;;  %vm530_vm0 = vcmp.eq.s32.totalorder %v10817_v58, %v10505_v33  ;;  %v1703_v9 = vadd.s32 %v1702_v0, %v1274_v51  ;;  %v1740_v12 = vadd.s32 %v1739_v2, %v1275_v45  ;;  %v4754_v62 = vld [vmem:[%s10387_s12 + $0x330] sm:$0xff] }
  0xd1   : > { %v10860_v14 = vsel %vm526_vm12, 1, %v17338_v4  ;;  %v10863_v15 = vsel %vm527_vm13, 1, %v17338_v4  ;;  %v10866_v16 = vsel %vm528_vm14, 1, %v17338_v4  ;;  %vm517_vm2 = vcmp.eq.s32.totalorder %v10844_v52, %v10485_v26 }
  0xd2   : > { %3356 = vperm.xlu1 %10289, %v3281_v53   ;;  %3353 = vperm.xlu0 %10288, %v3280_v56   ;;  %v4749_v53 = vld [vmem:[%s10387_s12 + $0x308] sm:$0xff]  ;;  %v1270_v56 = vsel %vm502_vm5, 1, %v17338_v4  ;;  %vm518_vm3 = vcmp.eq.s32.totalorder %v10844_v52, %v10488_v27  ;;  %vm519_vm4 = vcmp.eq.s32.totalorder %v10844_v52, %v10491_v28  ;;  %vm520_vm5 = vcmp.eq.s32.totalorder %v10844_v52, %v10499_v31 }
  0xd3   : > { %v1555_v46 = vadd.s32 %v1554_v50, %v1270_v56  ;;  %vm521_vm6 = vcmp.eq.s32.totalorder %v10844_v52, %v10502_v32  ;;  %v1519_v48 = vadd.s32 %v1518_v3, %v10770_v23  ;;  %vm522_vm7 = vcmp.eq.s32.totalorder %v10844_v52, %v10505_v33 }
  0xd4   : > { %vm523_vm8 = vcmp.eq.s32.totalorder %v10844_v52, %v10508_v34  ;;  %v1285_v50 = vsel %vm517_vm2, 1, %v17338_v4  ;;  %v1286_v55 = vsel %vm518_vm3, 1, %v17338_v4  ;;  %v1287_v56 = vsel %vm519_vm4, 1, %v17338_v4 }
  0xd5   : > { %v1630_v23 = vadd.s32 %v1629_v7, %v10786_v38  ;;  %v1288_v42 = vsel %vm520_vm5, 1, %v17338_v4  ;;  %v1289_v43 = vsel %vm521_vm6, 1, %v17338_v4  ;;  %v1667_v61 = vadd.s32 %v1666_v8, %v10789_v39 }
  0xd6   : > { %3362 = vperm.xlu1 %10289, %v3283_v6   ;;  %3359 = vperm.xlu0 %10288, %v3282_v13   ;;  %v1592_v6 = vadd.s32 %v1591_v57, %v1271_v60  ;;  %v10857_v13 = vsel %vm525_vm11, 1, %v17338_v4  ;;  %v4755_v60 = vld [vmem:[%s10387_s12 + $0x338] sm:$0xff]  ;;  %v1291_v38 = vsel %vm523_vm8, 1, %v17338_v4  ;;  %v1520_v51 = vadd.s32 %v1519_v48, %v1285_v50 }
  0xd7   : > { %v1741_v0 = vadd.s32 %v1740_v12, %v10799_v40  ;;  %v10927_v40 = vpop.permute.xlu0 %355  ;;  %v1668_v45 = vadd.s32 %v1667_v61, %v1289_v43 }
  0xd8   : > { %v1593_v57 = vadd.s32 %v1592_v6, %v10782_v29  ;;  %v1290_v29 = vsel %vm522_vm7, 1, %v17338_v4  ;;  %vm535_vm2 = vcmp.eq.s32.totalorder %v10927_v40, %v10491_v28  ;;  %vm536_vm3 = vcmp.eq.s32.totalorder %v10927_v40, %v10499_v31 }
  0xd9   : > { %v1742_v6 = vadd.s32 %v1741_v0, %v1291_v38  ;;  %vm537_vm4 = vcmp.eq.s32.totalorder %v10927_v40, %v10502_v32  ;;  %vm538_vm5 = vcmp.eq.s32.totalorder %v10927_v40, %v10505_v33  ;;  %v1521_v48 = vadd.s32 %v1520_v51, %v10857_v13 }
  0xda   : > { %3368 = vperm.xlu1 %10289, %v3285_v21   ;;  %3365 = vperm.xlu0 %10288, %v3284_v35   ;;  %v10875_v21 = vsel %vm530_vm0, 1, %v17338_v4  ;;  %v10883_v35 = vsel %vm531_vm1, 1, %v17338_v4  ;;  %v1594_v39 = vadd.s32 %v1593_v57, %v1287_v56  ;;  %vm533_vm0 = vcmp.eq.s32.totalorder %v10927_v40, %v10485_v26 }
  0xdb   : > { %vm534_vm1 = vcmp.eq.s32.totalorder %v10927_v40, %v10488_v27  ;;  %vm539_vm6 = vcmp.eq.s32.totalorder %v10927_v40, %v10508_v34  ;;  %v1305_v43 = vsel %vm537_vm4, 1, %v17338_v4  ;;  %v1306_v61 = vsel %vm538_vm5, 1, %v17338_v4 }
  0xdc   : > { %v1595_v56 = vadd.s32 %v1594_v39, %v10863_v15  ;;  %v1307_v15 = vsel %vm539_vm6, 1, %v17338_v4 }
  0xde   : > { %4784 = vperm.xlu1 %10289, %v4749_v53   ;;  %4781 = vperm.xlu0 %10288, %v4748_v59   ;;  %v1556_v53 = vadd.s32 %v1555_v46, %v10776_v25  ;;  %v10900_v59 = vpop.permute.xlu1 %358  ;;  %v1704_v25 = vadd.s32 %v1703_v9, %v10796_v41  ;;  %v1631_v41 = vadd.s32 %v1630_v23, %v1288_v42  ;;  %v4757_v46 = vld [vmem:[%s10387_s12 + $0x348] sm:$0xff]  ;;  %v1303_v23 = vsel %vm535_vm2, 1, %v17338_v4 }
  0xdf   : > { %vm541_vm9 = vcmp.eq.s32.totalorder %v10900_v59, %v10485_v26  ;;  %vm542_vm10 = vcmp.eq.s32.totalorder %v10900_v59, %v10488_v27  ;;  %vm543_vm11 = vcmp.eq.s32.totalorder %v10900_v59, %v10491_v28  ;;  %vm544_vm12 = vcmp.eq.s32.totalorder %v10900_v59, %v10499_v31 }
  0xe0   : > { %v1557_v2 = vadd.s32 %v1556_v53, %v1286_v55  ;;  %vm545_vm13 = vcmp.eq.s32.totalorder %v10900_v59, %v10502_v32  ;;  %v1705_v3 = vadd.s32 %v1704_v25, %v1290_v29  ;;  %vm546_vm14 = vcmp.eq.s32.totalorder %v10900_v59, %v10505_v33 }
  0xe1   : > { %vm547_vm15 = vcmp.eq.s32.totalorder %v10900_v59, %v10508_v34  ;;  %v1310_v7 = vsel %vm542_vm10, 1, %v17338_v4  ;;  %v1311_v8 = vsel %vm543_vm11, 1, %v17338_v4  ;;  %v1312_v9 = vsel %vm544_vm12, 1, %v17338_v4 }
  0xe2   : > { %4790 = vperm.xlu1 %10289, %v4751_v5   ;;  %4787 = vperm.xlu0 %10288, %v4750_v54   ;;  %v4756_v5 = vld [vmem:[%s10387_s12 + $0x340] sm:$0xff]  ;;  %v1309_v54 = vsel %vm541_vm9, 1, %v17338_v4  ;;  %v1313_v12 = vsel %vm545_vm13, 1, %v17338_v4  ;;  %v1558_v50 = vadd.s32 %v1557_v2, %v10860_v14  ;;  %v1301_v53 = vsel %vm533_vm0, 1, %v17338_v4  ;;  %v10970_v57 = vpop.permute.xlu1 %364 }
  0xe3   : > { %v1302_v55 = vsel %vm534_vm1, 1, %v17338_v4  ;;  %v1669_v42 = vadd.s32 %v1668_v45, %v10872_v20  ;;  %v1706_v13 = vadd.s32 %v1705_v3, %v10875_v21  ;;  %v1304_v14 = vsel %vm536_vm3, 1, %v17338_v4  ;;  %v10989_v20 = vpop.permute.xlu0 %361  ;;  %v4759_v45 = vld [vmem:[%s10387_s12 + $0x358] sm:$0xff]  ;;  %v4758_v3 = vld [vmem:[%s10387_s12 + $0x350] sm:$0xff] }
  0xe4   : > { %v1743_v25 = vadd.s32 %v1742_v6, %v10883_v35  ;;  %v1559_v29 = vadd.s32 %v1558_v50, %v1302_v55  ;;  %vm557_vm7 = vcmp.eq.s32.totalorder %v10970_v57, %v10485_v26  ;;  %vm558_vm8 = vcmp.eq.s32.totalorder %v10970_v57, %v10488_v27 }
  0xe5   : > { %vm559_vm9 = vcmp.eq.s32.totalorder %v10970_v57, %v10491_v28  ;;  %vm560_vm10 = vcmp.eq.s32.totalorder %v10970_v57, %v10499_v31  ;;  %v1670_v35 = vadd.s32 %v1669_v42, %v1305_v43  ;;  %v1707_v38 = vadd.s32 %v1706_v13, %v1306_v61 }
  0xe6   : > { %4796 = vperm.xlu1 %10289, %v4753_v19   ;;  %4793 = vperm.xlu0 %10288, %v4752_v22   ;;  %v1314_v19 = vsel %vm546_vm14, 1, %v17338_v4  ;;  %v1315_v22 = vsel %vm547_vm15, 1, %v17338_v4  ;;  %vm561_vm11 = vcmp.eq.s32.totalorder %v10970_v57, %v10502_v32  ;;  %v1744_v51 = vadd.s32 %v1743_v25, %v1307_v15  ;;  %v11036_v42 = vpop.permute.xlu1 %370 }
  0xe7   : > { %vm562_vm12 = vcmp.eq.s32.totalorder %v10970_v57, %v10505_v33  ;;  %vm563_vm13 = vcmp.eq.s32.totalorder %v10970_v57, %v10508_v34  ;;  %v10998_v0 = vsel %vm557_vm7, 1, %v17338_v4  ;;  %v11001_v2 = vsel %vm558_vm8, 1, %v17338_v4 }
  0xe8   : > { %v11004_v39 = vsel %vm559_vm9, 1, %v17338_v4  ;;  %vm549_vm14 = vcmp.eq.s32.totalorder %v10989_v20, %v10485_v26  ;;  %vm550_vm15 = vcmp.eq.s32.totalorder %v10989_v20, %v10488_v27  ;;  %vm551_vm0 = vcmp.eq.s32.totalorder %v10989_v20, %v10491_v28 }
  0xe9   : > { %vm552_vm1 = vcmp.eq.s32.totalorder %v10989_v20, %v10499_v31  ;;  %vm553_vm2 = vcmp.eq.s32.totalorder %v10989_v20, %v10502_v32  ;;  %vm554_vm3 = vcmp.eq.s32.totalorder %v10989_v20, %v10505_v33  ;;  %vm555_vm4 = vcmp.eq.s32.totalorder %v10989_v20, %v10508_v34 }
  0xea   : > { %4802 = vperm.xlu1 %10289, %v4755_v60   ;;  %4799 = vperm.xlu0 %10288, %v4754_v62   ;;  %v1632_v60 = vadd.s32 %v1631_v41, %v10866_v16  ;;  %v1522_v62 = vadd.s32 %v1521_v48, %v1301_v53  ;;  %v1596_v16 = vadd.s32 %v1595_v56, %v1303_v23  ;;  %v11007_v41 = vsel %vm560_vm10, 1, %v17338_v4 }
  0xeb   : > { %v1560_v6 = vadd.s32 %v1559_v29, %v1310_v7  ;;  %v1671_v53 = vadd.s32 %v1670_v35, %v1313_v12  ;;  %v1330_v55 = vsel %vm562_vm12, 1, %v17338_v4  ;;  %v1331_v56 = vsel %vm563_vm13, 1, %v17338_v4  ;;  %v11054_v12 = vpop.permute.xlu0 %367 }
  0xec   : > { %v1633_v21 = vadd.s32 %v1632_v60, %v1304_v14  ;;  %v1597_v48 = vadd.s32 %v1596_v16, %v1311_v8  ;;  %v1708_v23 = vadd.s32 %v1707_v38, %v1314_v19  ;;  %v1745_v60 = vadd.s32 %v1744_v51, %v1315_v22  ;;  %v11088_v16 = vpop.permute.xlu1 %376 }
  0xed   : > { %v1318_v7 = vsel %vm550_vm15, 1, %v17338_v4  ;;  %v1319_v8 = vsel %vm551_vm0, 1, %v17338_v4  ;;  %v1321_v19 = vsel %vm553_vm2, 1, %v17338_v4  ;;  %v1322_v22 = vsel %vm554_vm3, 1, %v17338_v4 }
  0xee   : > { %4808 = vperm.xlu1 %10289, %v4757_v46   ;;  %4805 = vperm.xlu0 %10288, %v4756_v5   ;;  %v11014_v46 = vsel %vm561_vm11, 1, %v17338_v4  ;;  %v1523_v5 = vadd.s32 %v1522_v62, %v1309_v54  ;;  %v1634_v50 = vadd.s32 %v1633_v21, %v1312_v9  ;;  %v1317_v54 = vsel %vm549_vm14, 1, %v17338_v4 }
  0xef   : > { %v1320_v9 = vsel %vm552_vm1, 1, %v17338_v4  ;;  %v1323_v13 = vsel %vm555_vm4, 1, %v17338_v4  ;;  %v1561_v43 = vadd.s32 %v1560_v6, %v1318_v7  ;;  %v1598_v61 = vadd.s32 %v1597_v48, %v1319_v8  ;;  %v4760_v6 = vld [vmem:[%s10387_s12 + $0x360] sm:$0xff]  ;;  %v11114_v48 = vpop.permute.xlu0 %373 }
  0xf0   : > { %v1524_v14 = vadd.s32 %v1523_v5, %v1317_v54  ;;  %v1635_v25 = vadd.s32 %v1634_v50, %v1320_v9  ;;  %v1672_v15 = vadd.s32 %v1671_v53, %v1321_v19  ;;  %v1709_v62 = vadd.s32 %v1708_v23, %v1322_v22  ;;  %v4761_v5 = vld [vmem:[%s10387_s12 + $0x368] sm:$0xff] }
  0xf1   : > { %v1746_v29 = vadd.s32 %v1745_v60, %v1323_v13  ;;  %vm566_vm5 = vcmp.eq.s32.totalorder %v11054_v12, %v10488_v27  ;;  %vm567_vm6 = vcmp.eq.s32.totalorder %v11054_v12, %v10491_v28  ;;  %vm568_vm7 = vcmp.eq.s32.totalorder %v11054_v12, %v10499_v31 }
  0xf2   : > { %4814 = vperm.xlu1 %10289, %v4759_v45   ;;  %4811 = vperm.xlu0 %10288, %v4758_v3   ;;  %vm569_vm8 = vcmp.eq.s32.totalorder %v11054_v12, %v10502_v32  ;;  %vm570_vm9 = vcmp.eq.s32.totalorder %v11054_v12, %v10505_v33  ;;  %vm571_vm10 = vcmp.eq.s32.totalorder %v11054_v12, %v10508_v34  ;;  %v1334_v21 = vsel %vm566_vm5, 1, %v17338_v4 }
  0xf3   : > { %vm574_vm11 = vcmp.eq.s32.totalorder %v11036_v42, %v10488_v27  ;;  %vm575_vm12 = vcmp.eq.s32.totalorder %v11036_v42, %v10491_v28  ;;  %vm576_vm13 = vcmp.eq.s32.totalorder %v11036_v42, %v10499_v31  ;;  %vm577_vm14 = vcmp.eq.s32.totalorder %v11036_v42, %v10502_v32 }
  0xf4   : > { %vm578_vm15 = vcmp.eq.s32.totalorder %v11036_v42, %v10505_v33  ;;  %vm579_vm0 = vcmp.eq.s32.totalorder %v11036_v42, %v10508_v34  ;;  %v1335_v35 = vsel %vm567_vm6, 1, %v17338_v4  ;;  %v1336_v38 = vsel %vm568_vm7, 1, %v17338_v4 }
  0xf5   : > { %v1337_v51 = vsel %vm569_vm8, 1, %v17338_v4  ;;  %v1338_v45 = vsel %vm570_vm9, 1, %v17338_v4  ;;  %v1339_v3 = vsel %vm571_vm10, 1, %v17338_v4  ;;  %vm590_vm1 = vcmp.eq.s32.totalorder %v11088_v16, %v10488_v27 }
  0xf6   : > { %vm591_vm2 = vcmp.eq.s32.totalorder %v11088_v16, %v10491_v28  ;;  %vm592_vm3 = vcmp.eq.s32.totalorder %v11088_v16, %v10499_v31  ;;  %vm593_vm4 = vcmp.eq.s32.totalorder %v11088_v16, %v10502_v32  ;;  %4820 = vperm.xlu1 %10289, %v4761_v5   ;;  %vm594_vm5 = vcmp.eq.s32.totalorder %v11088_v16, %v10505_v33 }
  0xf7   : > { %vm595_vm6 = vcmp.eq.s32.totalorder %v11088_v16, %v10508_v34  ;;  %v1562_v50 = vadd.s32 %v1561_v43, %v11001_v2  ;;  %v1599_v53 = vadd.s32 %v1598_v61, %v11004_v39  ;;  %4817 = vperm.xlu0 %10288, %v4760_v6   ;;  %v11119_v23 = vadd.s32 %v1524_v14, %v10998_v0 }
  0xf8   : > { %v1636_v60 = vadd.s32 %v1635_v25, %v11007_v41  ;;  %v1673_v54 = vadd.s32 %v1672_v15, %v11014_v46  ;;  %v1710_v7 = vadd.s32 %v1709_v62, %v1330_v55  ;;  %v11124_v8 = vsel %vm590_vm1, 1, %v17338_v4 }
  0xf9   : > { %v11127_v9 = vsel %vm591_vm2, 1, %v17338_v4  ;;  %v11130_v19 = vsel %vm592_vm3, 1, %v17338_v4  ;;  %v1747_v2 = vadd.s32 %v1746_v29, %v1331_v56  ;;  %v11136_v0 = vsel %vm593_vm4, 1, %v17338_v4 }
  0xfa   : > { %v11139_v39 = vsel %vm594_vm5, 1, %v17338_v4  ;;  %v11142_v41 = vsel %vm595_vm6, 1, %v17338_v4  ;;  %vm582_vm7 = vcmp.eq.s32.totalorder %v11114_v48, %v10488_v27  ;;  %vm583_vm8 = vcmp.eq.s32.totalorder %v11114_v48, %v10491_v28 }
  0xfb   : > { %vm584_vm9 = vcmp.eq.s32.totalorder %v11114_v48, %v10499_v31  ;;  %v1563_v46 = vadd.s32 %v1562_v50, %v1334_v21  ;;  %v1600_v55 = vadd.s32 %v1599_v53, %v1335_v35  ;;  %vm585_vm10 = vcmp.eq.s32.totalorder %v11114_v48, %v10502_v32 }
  0xfc   : > { %v1637_v56 = vadd.s32 %v1636_v60, %v1336_v38  ;;  %v1674_v22 = vadd.s32 %v1673_v54, %v1337_v51  ;;  %v1711_v13 = vadd.s32 %v1710_v7, %v1338_v45  ;;  %vm586_vm1 = vcmp.eq.s32.totalorder %v11114_v48, %v10505_v33  ;;  %v11184_v51 = vpop.permute.xlu1 %382  ;;  %v4763_v7 = vld [vmem:[%s10387_s12 + $0x378] sm:$0xff] }
  0xfd   : > { %vm587_vm2 = vcmp.eq.s32.totalorder %v11114_v48, %v10508_v34  ;;  %v1342_v14 = vsel %vm574_vm11, 1, %v17338_v4  ;;  %v1748_v43 = vadd.s32 %v1747_v2, %v1339_v3  ;;  %v1343_v61 = vsel %vm575_vm12, 1, %v17338_v4  ;;  %v4762_v2 = vld [vmem:[%s10387_s12 + $0x370] sm:$0xff]  ;;  %4826 = vperm.xlu1 %10289, %v4763_v7  }
  0xfe   : > { %v1344_v25 = vsel %vm576_vm13, 1, %v17338_v4  ;;  %v1345_v15 = vsel %vm577_vm14, 1, %v17338_v4  ;;  %v1346_v62 = vsel %vm578_vm15, 1, %v17338_v4  ;;  %v1347_v29 = vsel %vm579_vm0, 1, %v17338_v4  ;;  %4823 = vperm.xlu0 %10288, %v4762_v2  }
  0xff   : > { %v1350_v21 = vsel %vm582_vm7, 1, %v17338_v4  ;;  %v1564_v35 = vadd.s32 %v1563_v46, %v1342_v14  ;;  %v1601_v38 = vadd.s32 %v1600_v55, %v1343_v61  ;;  %v1351_v45 = vsel %vm583_vm8, 1, %v17338_v4  ;;  %v11214_v55 = vpop.permute.xlu0 %379 }
 0x100   : > { %v1638_v3 = vadd.s32 %v1637_v56, %v1344_v25  ;;  %v1675_v5 = vadd.s32 %v1674_v22, %v1345_v15  ;;  %v1712_v6 = vadd.s32 %v1711_v13, %v1346_v62  ;;  %v1352_v50 = vsel %vm584_vm9, 1, %v17338_v4 }
 0x101   : > { %v1353_v53 = vsel %vm585_vm10, 1, %v17338_v4  ;;  %v1354_v60 = vsel %vm586_vm1, 1, %v17338_v4  ;;  %v1749_v54 = vadd.s32 %v1748_v43, %v1347_v29  ;;  %v1355_v46 = vsel %vm587_vm2, 1, %v17338_v4 }
 0x102   : > { %vm606_vm11 = vcmp.eq.s32.totalorder %v11184_v51, %v10488_v27  ;;  %vm607_vm12 = vcmp.eq.s32.totalorder %v11184_v51, %v10491_v28  ;;  %vm608_vm13 = vcmp.eq.s32.totalorder %v11184_v51, %v10499_v31  ;;  %v1565_v56 = vadd.s32 %v1564_v35, %v1350_v21 }
 0x103   : > { %v1602_v22 = vadd.s32 %v1601_v38, %v1351_v45  ;;  %vm609_vm14 = vcmp.eq.s32.totalorder %v11184_v51, %v10502_v32  ;;  %vm610_vm15 = vcmp.eq.s32.totalorder %v11184_v51, %v10505_v33  ;;  %v1639_v13 = vadd.s32 %v1638_v3, %v1352_v50 }
 0x104   : > { %v1676_v14 = vadd.s32 %v1675_v5, %v1353_v53  ;;  %v1713_v43 = vadd.s32 %v1712_v6, %v1354_v60  ;;  %vm611_vm0 = vcmp.eq.s32.totalorder %v11184_v51, %v10508_v34  ;;  %v1750_v61 = vadd.s32 %v1749_v54, %v1355_v46  ;;  %v11249_v5 = vpop.permute.xlu1 %388 }
 0x105   : > { %v1374_v25 = vsel %vm606_vm11, 1, %v17338_v4  ;;  %vm598_vm3 = vcmp.eq.s32.totalorder %v11214_v55, %v10488_v27  ;;  %vm599_vm4 = vcmp.eq.s32.totalorder %v11214_v55, %v10491_v28  ;;  %v1375_v15 = vsel %vm607_vm12, 1, %v17338_v4  ;;  %17421 = vst [vmem:[#allocation8_spill] sm:$0xff] %v11249_v5 }
 0x106   : > { %v1376_v62 = vsel %vm608_vm13, 1, %v17338_v4  ;;  %v1377_v29 = vsel %vm609_vm14, 1, %v17338_v4  ;;  %v1378_v21 = vsel %vm610_vm15, 1, %v17338_v4  ;;  %v1379_v35 = vsel %vm611_vm0, 1, %v17338_v4 }
 0x107   : > { %vm600_vm5 = vcmp.eq.s32.totalorder %v11214_v55, %v10499_v31  ;;  %vm601_vm6 = vcmp.eq.s32.totalorder %v11214_v55, %v10502_v32  ;;  %vm602_vm7 = vcmp.eq.s32.totalorder %v11214_v55, %v10505_v33  ;;  %vm603_vm8 = vcmp.eq.s32.totalorder %v11214_v55, %v10508_v34 }
 0x108   : > { %v1366_v38 = vsel %vm598_vm3, 1, %v17338_v4  ;;  %v1367_v45 = vsel %vm599_vm4, 1, %v17338_v4  ;;  %v1566_v3 = vadd.s32 %v1565_v56, %v11124_v8  ;;  %v1603_v6 = vadd.s32 %v1602_v22, %v11127_v9  ;;  %v4765_v22 = vld [vmem:[%s10387_s12 + $0x388] sm:$0xff] }
 0x109   : > { %v1640_v50 = vadd.s32 %v1639_v13, %v11130_v19  ;;  %v1677_v53 = vadd.s32 %v1676_v14, %v11136_v0  ;;  %v1714_v60 = vadd.s32 %v1713_v43, %v11139_v39  ;;  %v1368_v54 = vsel %vm600_vm5, 1, %v17338_v4  ;;  %v11272_v19 = vpop.permute.xlu0 %385  ;;  %v4764_v13 = vld [vmem:[%s10387_s12 + $0x380] sm:$0xff]  ;;  %4832 = vperm.xlu1 %10289, %v4765_v22  }
 0x10a   : > { %v1369_v7 = vsel %vm601_vm6, 1, %v17338_v4  ;;  %v1370_v2 = vsel %vm602_vm7, 1, %v17338_v4  ;;  %v1751_v8 = vadd.s32 %v1750_v61, %v11142_v41  ;;  %v1371_v46 = vsel %vm603_vm8, 1, %v17338_v4  ;;  %17422 = vst [vmem:[#allocation9_spill] sm:$0xff] %v11272_v19  ;;  %4829 = vperm.xlu0 %10288, %v4764_v13  }
 0x10b   : > { %vm622_vm9 = vcmp.eq.s32.totalorder %v11249_v5, %v10488_v27  ;;  %vm623_vm10 = vcmp.eq.s32.totalorder %v11249_v5, %v10491_v28  ;;  %vm624_vm1 = vcmp.eq.s32.totalorder %v11249_v5, %v10499_v31  ;;  %v1567_v9 = vadd.s32 %v1566_v3, %v1366_v38 }
 0x10c   : > { %vm625_vm2 = vcmp.eq.s32.totalorder %v11249_v5, %v10502_v32  ;;  %vm626_vm11 = vcmp.eq.s32.totalorder %v11249_v5, %v10505_v33  ;;  %vm627_vm12 = vcmp.eq.s32.totalorder %v11249_v5, %v10508_v34  ;;  %v1604_v0 = vadd.s32 %v1603_v6, %v1367_v45 }
 0x10d   : > { %v1641_v39 = vadd.s32 %v1640_v50, %v1368_v54  ;;  %v1678_v41 = vadd.s32 %v1677_v53, %v1369_v7  ;;  %v1715_v56 = vadd.s32 %v1714_v60, %v1370_v2  ;;  %v1752_v14 = vadd.s32 %v1751_v8, %v1371_v46  ;;  %v11303_v54 = vpop.permute.xlu1 %394 }
 0x10e   : > { %v1390_v43 = vsel %vm622_vm9, 1, %v17338_v4  ;;  %v1391_v61 = vsel %vm623_vm10, 1, %v17338_v4  ;;  %v1392_v38 = vsel %vm624_vm1, 1, %v17338_v4  ;;  %v1393_v3 = vsel %vm625_vm2, 1, %v17338_v4 }
 0x10f   : > { %v1394_v45 = vsel %vm626_vm11, 1, %v17338_v4  ;;  %v1395_v6 = vsel %vm627_vm12, 1, %v17338_v4  ;;  %vm614_vm13 = vcmp.eq.s32.totalorder %v11272_v19, %v10488_v27  ;;  %vm615_vm14 = vcmp.eq.s32.totalorder %v11272_v19, %v10491_v28 }
 0x110   : > { %vm616_vm15 = vcmp.eq.s32.totalorder %v11272_v19, %v10499_v31  ;;  %vm617_vm0 = vcmp.eq.s32.totalorder %v11272_v19, %v10502_v32  ;;  %vm618_vm3 = vcmp.eq.s32.totalorder %v11272_v19, %v10505_v33  ;;  %vm619_vm4 = vcmp.eq.s32.totalorder %v11272_v19, %v10508_v34 }
 0x111   : > { %v1568_v50 = vadd.s32 %v1567_v9, %v1374_v25  ;;  %v1605_v53 = vadd.s32 %v1604_v0, %v1375_v15  ;;  %v1642_v60 = vadd.s32 %v1641_v39, %v1376_v62  ;;  %v1382_v7 = vsel %vm614_vm13, 1, %v17338_v4 }
 0x112   : > { %v1679_v2 = vadd.s32 %v1678_v41, %v1377_v29  ;;  %v1716_v8 = vadd.s32 %v1715_v56, %v1378_v21  ;;  %v1753_v46 = vadd.s32 %v1752_v14, %v1379_v35  ;;  %v1383_v22 = vsel %vm615_vm14, 1, %v17338_v4  ;;  %v11319_v29 = vpop.permute.xlu0 %391 }
 0x113   : > { %v1384_v13 = vsel %vm616_vm15, 1, %v17338_v4  ;;  %v1385_v1 = vsel %vm617_vm0, 1, %v17338_v4  ;;  %v1386_v5 = vsel %vm618_vm3, 1, %v17338_v4  ;;  %v1387_v19 = vsel %vm619_vm4, 1, %v17338_v4  ;;  %17423 = vst [vmem:[#allocation10_spill] sm:$0xff] %v11319_v29 }
 0x114   : > { %vm638_vm5 = vcmp.eq.s32.totalorder %v11303_v54, %v10488_v27  ;;  %vm639_vm6 = vcmp.eq.s32.totalorder %v11303_v54, %v10491_v28  ;;  %vm640_vm7 = vcmp.eq.s32.totalorder %v11303_v54, %v10499_v31  ;;  %v1569_v25 = vadd.s32 %v1568_v50, %v1382_v7 }
 0x115   : > { %v1606_v15 = vadd.s32 %v1605_v53, %v1383_v22  ;;  %v1643_v62 = vadd.s32 %v1642_v60, %v1384_v13  ;;  %vm641_vm8 = vcmp.eq.s32.totalorder %v11303_v54, %v10502_v32  ;;  %v1680_v21 = vadd.s32 %v1679_v2, %v1385_v1  ;;  %v11341_v53 = vpop.permute.xlu1 %400 }
 0x116   : > { %v1717_v35 = vadd.s32 %v1716_v8, %v1386_v5  ;;  %v1754_v9 = vadd.s32 %v1753_v46, %v1387_v19  ;;  %vm642_vm9 = vcmp.eq.s32.totalorder %v11303_v54, %v10505_v33  ;;  %vm643_vm10 = vcmp.eq.s32.totalorder %v11303_v54, %v10508_v34  ;;  %17424 = vst [vmem:[#allocation11_spill] sm:$0xff] %v11341_v53  ;;  %v11361_v22 = vpop.permute.xlu0 %397 }
 0x117   : > { %v1406_v0 = vsel %vm638_vm5, 1, %v17338_v4  ;;  %v1407_v39 = vsel %vm639_vm6, 1, %v17338_v4  ;;  %v1408_v41 = vsel %vm640_vm7, 1, %v17338_v4  ;;  %v1409_v56 = vsel %vm641_vm8, 1, %v17338_v4  ;;  %17425 = vst [vmem:[#allocation12_spill] sm:$0xff] %v11361_v22 }
 0x118   : > { %vm630_vm1 = vcmp.eq.s32.totalorder %v11319_v29, %v10488_v27  ;;  %vm631_vm2 = vcmp.eq.s32.totalorder %v11319_v29, %v10491_v28  ;;  %vm632_vm11 = vcmp.eq.s32.totalorder %v11319_v29, %v10499_v31  ;;  %vm633_vm12 = vcmp.eq.s32.totalorder %v11319_v29, %v10502_v32 }
 0x119   : > { %vm634_vm13 = vcmp.eq.s32.totalorder %v11319_v29, %v10505_v33  ;;  %vm635_vm14 = vcmp.eq.s32.totalorder %v11319_v29, %v10508_v34  ;;  %v1570_v1 = vadd.s32 %v1569_v25, %v1390_v43  ;;  %v1607_v5 = vadd.s32 %v1606_v15, %v1391_v61 }
 0x11a   : > { %v1644_v19 = vadd.s32 %v1643_v62, %v1392_v38  ;;  %v1681_v14 = vadd.s32 %v1680_v21, %v1393_v3  ;;  %v1718_v50 = vadd.s32 %v1717_v35, %v1394_v45  ;;  %v1410_v60 = vsel %vm642_vm9, 1, %v17338_v4 }
 0x11b   : > { %v1411_v7 = vsel %vm643_vm10, 1, %v17338_v4  ;;  %v1398_v2 = vsel %vm630_vm1, 1, %v17338_v4  ;;  %v1755_v8 = vadd.s32 %v1754_v9, %v1395_v6  ;;  %v1399_v43 = vsel %vm631_vm2, 1, %v17338_v4 }
 0x11c   : > { %v1400_v61 = vsel %vm632_vm11, 1, %v17338_v4  ;;  %v1401_v38 = vsel %vm633_vm12, 1, %v17338_v4  ;;  %v1402_v3 = vsel %vm634_vm13, 1, %v17338_v4  ;;  %v1403_v45 = vsel %vm635_vm14, 1, %v17338_v4 }
 0x11d   : > { %v1571_v46 = vadd.s32 %v1570_v1, %v1398_v2  ;;  %vm654_vm15 = vcmp.eq.s32.totalorder %v11341_v53, %v10488_v27  ;;  %vm655_vm0 = vcmp.eq.s32.totalorder %v11341_v53, %v10491_v28  ;;  %v1608_v6 = vadd.s32 %v1607_v5, %v1399_v43 }
 0x11e   : > { %v1645_v13 = vadd.s32 %v1644_v19, %v1400_v61  ;;  %v1682_v25 = vadd.s32 %v1681_v14, %v1401_v38  ;;  %v1719_v15 = vadd.s32 %v1718_v50, %v1402_v3  ;;  %v1756_v62 = vadd.s32 %v1755_v8, %v1403_v45  ;;  %v11386_v8 = vpop.permute.xlu1 %406  ;;  %v11420_v38 = vpop.permute.xlu0 %403 }
 0x11f   : > { %vm656_vm3 = vcmp.eq.s32.totalorder %v11341_v53, %v10499_v31  ;;  %vm657_vm4 = vcmp.eq.s32.totalorder %v11341_v53, %v10502_v32  ;;  %vm658_vm5 = vcmp.eq.s32.totalorder %v11341_v53, %v10505_v33  ;;  %vm659_vm6 = vcmp.eq.s32.totalorder %v11341_v53, %v10508_v34  ;;  %17426 = vst [vmem:[#allocation13_spill] sm:$0xff] %v11386_v8 }
 0x120   : > { %v1422_v21 = vsel %vm654_vm15, 1, %v17338_v4  ;;  %v1423_v35 = vsel %vm655_vm0, 1, %v17338_v4  ;;  %vm646_vm7 = vcmp.eq.s32.totalorder %v11361_v22, %v10488_v27  ;;  %vm647_vm8 = vcmp.eq.s32.totalorder %v11361_v22, %v10491_v28  ;;  %17427 = vst [vmem:[#allocation14_spill] sm:$0xff] %v11420_v38 }
 0x121   : > { %vm648_vm9 = vcmp.eq.s32.totalorder %v11361_v22, %v10499_v31  ;;  %vm649_vm10 = vcmp.eq.s32.totalorder %v11361_v22, %v10502_v32  ;;  %vm650_vm1 = vcmp.eq.s32.totalorder %v11361_v22, %v10505_v33  ;;  %vm651_vm2 = vcmp.eq.s32.totalorder %v11361_v22, %v10508_v34 }
 0x122   : > { %v1572_v9 = vadd.s32 %v1571_v46, %v1406_v0  ;;  %v1609_v1 = vadd.s32 %v1608_v6, %v1407_v39  ;;  %v1646_v5 = vadd.s32 %v1645_v13, %v1408_v41  ;;  %v1424_v19 = vsel %vm656_vm3, 1, %v17338_v4 }
 0x123   : > { %v1683_v14 = vadd.s32 %v1682_v25, %v1409_v56  ;;  %v1720_v50 = vadd.s32 %v1719_v15, %v1410_v60  ;;  %v1757_v2 = vadd.s32 %v1756_v62, %v1411_v7  ;;  %v1425_v43 = vsel %vm657_vm4, 1, %v17338_v4 }
 0x124   : > { %v1426_v61 = vsel %vm658_vm5, 1, %v17338_v4  ;;  %v1414_v0 = vsel %vm646_vm7, 1, %v17338_v4  ;;  %v1415_v39 = vsel %vm647_vm8, 1, %v17338_v4  ;;  %v1416_v41 = vsel %vm648_vm9, 1, %v17338_v4 }
 0x125   : > { %v1417_v56 = vsel %vm649_vm10, 1, %v17338_v4  ;;  %v1418_v60 = vsel %vm650_vm1, 1, %v17338_v4  ;;  %v1419_v7 = vsel %vm651_vm2, 1, %v17338_v4  ;;  %v1573_v3 = vadd.s32 %v1572_v9, %v1414_v0  ;;  %v11449_v0 = vpop.permute.xlu0 %409 }
 0x126   : > { %v1610_v45 = vadd.s32 %v1609_v1, %v1415_v39  ;;  %v1647_v46 = vadd.s32 %v1646_v5, %v1416_v41  ;;  %vm670_vm11 = vcmp.eq.s32.totalorder %v11386_v8, %v10488_v27  ;;  %v1427_v6 = vsel %vm659_vm6, 1, %v17338_v4  ;;  %17428 = vst [vmem:[#allocation15_spill] sm:$0xff] %v11449_v0 }
 0x127   : > { %v1684_v13 = vadd.s32 %v1683_v14, %v1417_v56  ;;  %v1721_v25 = vadd.s32 %v1720_v50, %v1418_v60  ;;  %v1758_v15 = vadd.s32 %v1757_v2, %v1419_v7  ;;  %vm671_vm12 = vcmp.eq.s32.totalorder %v11386_v8, %v10491_v28  ;;  %v4766_v60 = vld [vmem:[%s10387_s12 + $0x390] sm:$0xff] }
 0x128   : > { %vm672_vm13 = vcmp.eq.s32.totalorder %v11386_v8, %v10499_v31  ;;  %vm673_vm14 = vcmp.eq.s32.totalorder %v11386_v8, %v10502_v32  ;;  %vm674_vm15 = vcmp.eq.s32.totalorder %v11386_v8, %v10505_v33  ;;  %vm675_vm0 = vcmp.eq.s32.totalorder %v11386_v8, %v10508_v34  ;;  %4835 = vperm.xlu0 %10288, %v4766_v60  }
 0x129   : > { %v1438_v62 = vsel %vm670_vm11, 1, %v17338_v4  ;;  %vm662_vm3 = vcmp.eq.s32.totalorder %v11420_v38, %v10488_v27  ;;  %vm663_vm4 = vcmp.eq.s32.totalorder %v11420_v38, %v10491_v28  ;;  %vm664_vm5 = vcmp.eq.s32.totalorder %v11420_v38, %v10499_v31 }
 0x12a   : > { %v1574_v9 = vadd.s32 %v1573_v3, %v1422_v21  ;;  %v1611_v1 = vadd.s32 %v1610_v45, %v1423_v35  ;;  %v1648_v5 = vadd.s32 %v1647_v46, %v1424_v19  ;;  %v1439_v14 = vsel %vm671_vm12, 1, %v17338_v4  ;;  %v11456_v35 = vpop.permute.xlu1 %412 }
 0x12b   : > { %v1440_v50 = vsel %vm672_vm13, 1, %v17338_v4  ;;  %vm665_vm6 = vcmp.eq.s32.totalorder %v11420_v38, %v10502_v32  ;;  %v1685_v2 = vadd.s32 %v1684_v13, %v1425_v43  ;;  %v1441_v39 = vsel %vm673_vm14, 1, %v17338_v4  ;;  %17429 = vst [vmem:[#allocation16_spill] sm:$0xff] %v11456_v35 }
 0x12c   : > { %vm666_vm7 = vcmp.eq.s32.totalorder %v11420_v38, %v10505_v33  ;;  %vm667_vm8 = vcmp.eq.s32.totalorder %v11420_v38, %v10508_v34  ;;  %v1722_v21 = vadd.s32 %v1721_v25, %v1426_v61  ;;  %v1430_v19 = vsel %vm662_vm3, 1, %v17338_v4  ;;  %v4767_v61 = vld [vmem:[%s10387_s12 + $0x398] sm:$0xff] }
 0x12d   : > { %v1431_v43 = vsel %vm663_vm4, 1, %v17338_v4  ;;  %v1432_v41 = vsel %vm664_vm5, 1, %v17338_v4  ;;  %v1759_v56 = vadd.s32 %v1758_v15, %v1427_v6  ;;  %v1433_v7 = vsel %vm665_vm6, 1, %v17338_v4  ;;  %4838 = vperm.xlu1 %10289, %v4767_v61  }
 0x12e   : > { %v1575_v3 = vadd.s32 %v1574_v9, %v1430_v19  ;;  %v1612_v45 = vadd.s32 %v1611_v1, %v1431_v43  ;;  %v1649_v46 = vadd.s32 %v1648_v5, %v1432_v41  ;;  %v1442_v13 = vsel %vm674_vm15, 1, %v17338_v4  ;;  %v4769_v9 = vld [vmem:[%s10387_s12 + $0x3a8] sm:$0xff]  ;;  %v4768_v19 = vld [vmem:[%s10387_s12 + $0x3a0] sm:$0xff] }
 0x12f   : > { %v1443_v25 = vsel %vm675_vm0, 1, %v17338_v4  ;;  %v1434_v6 = vsel %vm666_vm7, 1, %v17338_v4  ;;  %v1686_v15 = vadd.s32 %v1685_v2, %v1433_v7  ;;  %v1435_v1 = vsel %vm667_vm8, 1, %v17338_v4  ;;  %v11501_v2 = vpop.permute.xlu0 %415  ;;  %4841 = vperm.xlu0 %10288, %v4768_v19  }
 0x130   : > { %v1723_v5 = vadd.s32 %v1722_v21, %v1434_v6  ;;  %vm686_vm9 = vcmp.eq.s32.totalorder %v11456_v35, %v10488_v27  ;;  %vm678_vm10 = vcmp.eq.s32.totalorder %v11449_v0, %v10488_v27  ;;  %v1760_v43 = vadd.s32 %v1759_v56, %v1435_v1  ;;  %17430 = vst [vmem:[#allocation17_spill] sm:$0xff] %v11501_v2  ;;  %v11505_v21 = vpop.permute.xlu1 %418 }
 0x131   : > { %vm687_vm1 = vcmp.eq.s32.totalorder %v11456_v35, %v10491_v28  ;;  %vm679_vm2 = vcmp.eq.s32.totalorder %v11449_v0, %v10491_v28  ;;  %vm680_vm11 = vcmp.eq.s32.totalorder %v11449_v0, %v10499_v31  ;;  %vm688_vm12 = vcmp.eq.s32.totalorder %v11456_v35, %v10499_v31  ;;  %17431 = vst [vmem:[#allocation18_spill] sm:$0xff] %v11505_v21 }
 0x132   : > { %v1576_v41 = vadd.s32 %v1575_v3, %v1438_v62  ;;  %v1613_v56 = vadd.s32 %v1612_v45, %v1439_v14  ;;  %v1650_v61 = vadd.s32 %v1649_v46, %v1440_v50  ;;  %4844 = vperm.xlu1 %10289, %v4769_v9   ;;  %vm689_vm13 = vcmp.eq.s32.totalorder %v11456_v35, %v10502_v32  ;;  %v4771_v50 = vld [vmem:[%s10387_s12 + $0x3b8] sm:$0xff]  ;;  %v4770_v3 = vld [vmem:[%s10387_s12 + $0x3b0] sm:$0xff] }
 0x133   : > { %vm681_vm14 = vcmp.eq.s32.totalorder %v11449_v0, %v10502_v32  ;;  %v1446_v60 = vsel %vm678_vm10, 1, %v17338_v4  ;;  %v1687_v7 = vadd.s32 %v1686_v15, %v1441_v39  ;;  %vm565_vm15 = vcmp.eq.s32.totalorder %v11054_v12, %v10485_v26  ;;  %4847 = vperm.xlu0 %10288, %v4770_v3  }
 0x134   : > { %v1447_v6 = vsel %vm679_vm2, 1, %v17338_v4  ;;  %v1448_v62 = vsel %vm680_vm11, 1, %v17338_v4  ;;  %vm694_vm0 = vcmp.eq.s32.totalorder %v11501_v2, %v10488_v27  ;;  %v1577_v14 = vadd.s32 %v1576_v41, %v1446_v60 }
 0x135   : > { %vm702_vm3 = vcmp.eq.s32.totalorder %v11505_v21, %v10488_v27  ;;  %v1454_v39 = vsel %vm686_vm9, 1, %v17338_v4  ;;  %v1614_v45 = vadd.s32 %v1613_v56, %v1447_v6  ;;  %v1651_v46 = vadd.s32 %v1650_v61, %v1448_v62 }
 0x136   : > { %vm460_vm4 = vcmp.eq.s32.totalorder %v10552_v44, %v10482_v24  ;;  %vm690_vm5 = vcmp.eq.s32.totalorder %v11456_v35, %v10505_v33  ;;  %vm682_vm6 = vcmp.eq.s32.totalorder %v11449_v0, %v10505_v33  ;;  %v1449_v15 = vsel %vm681_vm14, 1, %v17338_v4  ;;  %4850 = vperm.xlu1 %10289, %v4771_v50  }
 0x137   : > { %v1578_v9 = vadd.s32 %v1577_v14, %v1454_v39  ;;  %vm716_vm7 = vcmp.lt.s32.totalorder %v10528_v37, %v10473_v17  ;;  %vm683_vm8 = vcmp.eq.s32.totalorder %v11449_v0, %v10508_v34  ;;  %v1462_v1 = vsel %vm694_vm0, 1, %v17338_v4 }
 0x138   : > { %v1688_v19 = vadd.s32 %v1687_v7, %v1449_v15  ;;  %v1724_v41 = vadd.s32 %v1723_v5, %v1442_v13  ;;  %v1470_v56 = vsel %vm702_vm3, 1, %v17338_v4  ;;  %v1455_v61 = vsel %vm687_vm1, 1, %v17338_v4 }
 0x139   : > { %v1456_v60 = vsel %vm688_vm12, 1, %v17338_v4  ;;  %v1579_v6 = vadd.s32 %v1578_v9, %v1462_v1  ;;  %vm695_vm9 = vcmp.eq.s32.totalorder %v11501_v2, %v10491_v28  ;;  %vm696_vm10 = vcmp.eq.s32.totalorder %v11501_v2, %v10499_v31 }
 0x13a   : > { %v1615_v13 = vadd.s32 %v1614_v45, %v1455_v61  ;;  %v1652_v5 = vadd.s32 %v1651_v46, %v1456_v60  ;;  %v1450_v7 = vsel %vm682_vm6, 1, %v17338_v4  ;;  %v1457_v62 = vsel %vm689_vm13, 1, %v17338_v4  ;;  %v4772_v61 = vld [vmem:[%s10387_s12 + $0x3c0] sm:$0xff] }
 0x13b   : > { %v1580_v14 = vadd.s32 %v1579_v6, %v1470_v56  ;;  %v1761_v50 = vadd.s32 %v1760_v43, %v1443_v25  ;;  %vm691_vm1 = vcmp.eq.s32.totalorder %v11456_v35, %v10508_v34  ;;  %vm697_vm2 = vcmp.eq.s32.totalorder %v11501_v2, %v10502_v32  ;;  %v3286_v56 = vld [vmem:[%s10387_s12 + $0x2d0] sm:$0xff]  ;;  %4853 = vperm.xlu0 %10288, %v4772_v61  }
 0x13c   : > { %v1689_v3 = vadd.s32 %v1688_v19, %v1457_v62  ;;  %v1725_v39 = vadd.s32 %v1724_v41, %v1450_v7  ;;  %v1451_v45 = vsel %vm683_vm8, 1, %v17338_v4  ;;  %vm703_vm11 = vcmp.eq.s32.totalorder %v11505_v21, %v10491_v28  ;;  %3371 = vperm.xlu1 %10289, %v3286_v56  }
 0x13d   : > { %v1463_v25 = vsel %vm695_vm9, 1, %v17338_v4  ;;  %v1464_v43 = vsel %vm696_vm10, 1, %v17338_v4  ;;  %vm704_vm12 = vcmp.eq.s32.totalorder %v11505_v21, %v10499_v31  ;;  %vm705_vm13 = vcmp.eq.s32.totalorder %v11505_v21, %v10502_v32 }
 0x13e   : > { %v1616_v46 = vadd.s32 %v1615_v13, %v1463_v25  ;;  %v1653_v15 = vadd.s32 %v1652_v5, %v1464_v43  ;;  %v1458_v9 = vsel %vm690_vm5, 1, %v17338_v4  ;;  %v1465_v1 = vsel %vm697_vm2, 1, %v17338_v4 }
 0x13f   : > { %v1581_v19 = vrot.slane %v1580_v14, 4  ;;  %v1762_v41 = vadd.s32 %v1761_v50, %v1451_v45  ;;  %v1333_v60 = vsel %vm565_vm15, 1, %v17338_v4  ;;  %vm698_vm14 = vcmp.eq.s32.totalorder %v11501_v2, %v10505_v33  ;;  %vm972_vm15 = vmand %vm460_vm4, %vm716_vm7 }
 0x140   : > { %v1690_v6 = vadd.s32 %v1689_v3, %v1465_v1  ;;  %v1726_v13 = vadd.s32 %v1725_v39, %v1458_v9  ;;  %vm573_vm0 = vcmp.eq.s32.totalorder %v11036_v42, %v10485_v26  ;;  %v1526_v5 = vadd.s32 %v11119_v23, %v1333_v60  ;;  %v1809_v9 = vpop.permute.xlu1 %1808 }
 0x141   : > { %v1471_v7 = vsel %vm703_vm11, 1, %v17338_v4  ;;  %v1472_v62 = vsel %vm704_vm12, 1, %v17338_v4  ;;  %v1473_v50 = vsel %vm705_vm13, 1, %v17338_v4  ;;  %v1459_v23 = vsel %vm691_vm1, 1, %v17338_v4 }
 0x142   : > { %v1617_v3 = vadd.s32 %v1616_v46, %v1471_v7  ;;  %v1654_v39 = vadd.s32 %v1653_v15, %v1472_v62  ;;  %vm699_vm3 = vcmp.eq.s32.totalorder %v11501_v2, %v10508_v34  ;;  %v1466_v45 = vsel %vm698_vm14, 1, %v17338_v4 }
 0x143   : > { %v1582_v25 = vadd.s32 %v1581_v19, %v1580_v14  ;;  %v1763_v43 = vadd.s32 %v1762_v41, %v1459_v23  ;;  %vm706_vm5 = vcmp.eq.s32.totalorder %v11505_v21, %v10505_v33  ;;  %vm707_vm6 = vcmp.eq.s32.totalorder %v11505_v21, %v10508_v34 }
 0x144   : > { %v1691_v46 = vadd.s32 %v1690_v6, %v1473_v50  ;;  %v1727_v15 = vadd.s32 %v1726_v13, %v1466_v45  ;;  %v1341_v44 = vsel %vm573_vm0, 1, %v17338_v4  ;;  %v11634_v1 = vadd.s32 256, %v10473_v17  ;;  %v1815_v21 = vpop.permute.xlu1 %1814 }
 0x145   : > { %v1228_v14 = vsel %vm972_vm15, 1, %v17338_v4  ;;  %v2157_v19 = vadd.s32 256, %v10528_v37  ;;  %v11638_v41 = vadd.s32 %v1526_v5, %v1341_v44  ;;  %v1467_v56 = vsel %vm699_vm3, 1, %v17338_v4  ;;  %v1806_v5 = vpop.permute.xlu0 %1805 }
 0x146   : > { %v1618_v61 = vrot.slane %v1617_v3, 4  ;;  %v1655_v60 = vrot.slane %v1654_v39, 4  ;;  %v1474_v6 = vsel %vm706_vm5, 1, %v17338_v4  ;;  %v1475_v13 = vsel %vm707_vm6, 1, %v17338_v4 }
 0x147   : > { %v1583_v7 = vrot.slane %v1582_v25, 2  ;;  %v1764_v62 = vadd.s32 %v1763_v43, %v1467_v56  ;;  %v1692_v50 = vrot.slane %v1691_v46, 4  ;;  %v11643_v23 = vadd.s32 %v1727_v15, %v1474_v6  ;;  %v3287_v43 = vld [vmem:[%s10387_s12 + $0x2d8] sm:$0xff] }
 0x148   : > { %v11646_v45 = vadd.s32 %v1228_v14, %v10571_v47  ;;  %vm1910_vm4 = vcmp.eq.s32.totalorder %v1809_v9, %v10488_v27  ;;  %vm1911_vm7 = vcmp.eq.s32.totalorder %v1809_v9, %v10491_v28  ;;  %vm1912_vm8 = vcmp.eq.s32.totalorder %v1809_v9, %v10499_v31  ;;  %v4773_v47 = vld [vmem:[%s10387_s12 + $0x3c8] sm:$0xff]  ;;  %3374 = vperm.xlu1 %10289, %v3287_v43  }
 0x149   : > { %17432 = vst [vmem:[#allocation19_spill] sm:$0xff] %v11643_v23  ;;  %vm2198_vm9 = vcmp.lt.s32.totalorder %v2157_v19, %v11634_v1  ;;  %v2156_v44 = vadd.s32 256, %v10465_v10  ;;  %v1619_v4 = vadd.s32 %v1618_v61, %v1617_v3  ;;  %v1656_v37 = vadd.s32 %v1655_v60, %v1654_v39  ;;  %4856 = vperm.xlu0 %10288, %v4773_v47  }
 0x14a   : > { %vm1913_vm10 = vcmp.eq.s32.totalorder %v1809_v9, %v10502_v32  ;;  %vm1914_vm1 = vcmp.eq.s32.totalorder %v1809_v9, %v10505_v33  ;;  %v1584_v15 = vadd.s32 %v1583_v7, %v1582_v25  ;;  %v11657_v14 = vadd.s32 %v1764_v62, %v1475_v13  ;;  %vm2454_vm12 = vmand %vm1910_vm4, %vm2198_vm9 }
 0x14b   : > { %vm1915_vm2 = vcmp.eq.s32.totalorder %v1809_v9, %v10508_v34  ;;  %vm476_vm11 = vcmp.eq.s32.totalorder %v10576_v49, %v10482_v24  ;;  %v11662_v56 = vadd.s32 %v1692_v50, %v1691_v46  ;;  %v17435_v39 = vmov 0  }
 0x14c   : > { %17433 = vst [vmem:[#allocation20_spill] sm:$0xff] %v11657_v14  ;;  %v2711_v25 = vsel %vm1911_vm7, 1, %v17435_v39  ;;  %vm1903_vm13 = vcmp.eq.s32.totalorder %v1806_v5, %v10491_v28  ;;  %vm1902_vm14 = vcmp.eq.s32.totalorder %v1806_v5, %v10488_v27  ;;  %vm1904_vm0 = vcmp.eq.s32.totalorder %v1806_v5, %v10499_v31 }
 0x14d   : > { %17434 = vst [vmem:[#allocation21_spill] sm:$0xff] %v11662_v56  ;;  %vm1905_vm15 = vcmp.eq.s32.totalorder %v1806_v5, %v10502_v32  ;;  %vm2190_vm3 = vcmp.lt.s32.totalorder %v2156_v44, %v11634_v1  ;;  %vm468_vm5 = vcmp.eq.s32.totalorder %v10496_v30, %v10482_v24  ;;  %v1620_v46 = vrot.slane %v1619_v4, 2 }
 0x14e   : > { %v1657_v19 = vrot.slane %v1656_v37, 2  ;;  %vm1906_vm6 = vcmp.eq.s32.totalorder %v1806_v5, %v10505_v33  ;;  %vm1907_vm4 = vcmp.eq.s32.totalorder %v1806_v5, %v10508_v34  ;;  %v1585_v61 = vrot.slane %v1584_v15, 1  ;;  %vm2446_vm7 = vmand %vm1902_vm14, %vm2190_vm3 }
 0x14f   : > { %v2710_v60 = vsel %vm2454_vm12, 1, %v17435_v39  ;;  %v2712_v6 = vsel %vm1912_vm8, 1, %v17435_v39  ;;  %v2703_v13 = vsel %vm1903_vm13, 1, %v17435_v39  ;;  %v2713_v7 = vsel %vm1913_vm10, 1, %v17435_v39 }
 0x150   : > { %v2704_v62 = vsel %vm1904_vm0, 1, %v17435_v39  ;;  %v2705_v50 = vsel %vm1905_vm15, 1, %v17435_v39  ;;  %v11692_v5 = vadd.s32 24, %v10465_v10  ;;  %v2714_v44 = vsel %vm1914_vm1, 1, %v17435_v39 }
 0x151   : > { %v2715_v43 = vsel %vm1915_vm2, 1, %v17435_v39  ;;  %v2706_v47 = vsel %vm1906_vm6, 1, %v17435_v39  ;;  %v2707_v3 = vsel %vm1907_vm4, 1, %v17435_v39  ;;  %v11702_v23 = vadd.s32 %v1620_v46, %v1619_v4  ;;  %v1812_v4 = vpop.permute.xlu0 %1811  ;;  %v4774_v46 = vld [vmem:[%s10387_s12 + $0x3d0] sm:$0xff] }
 0x152   : > { %17436 = vst [vmem:[#allocation22_spill] sm:$0xff] %v11692_v5  ;;  %v11704_v56 = vadd.s32 %v1657_v19, %v1656_v37  ;;  %v3067_v2 = vadd.s32 %v2711_v25, %v2703_v13  ;;  %v11707_v0 = vadd.s32 16, %v10465_v10  ;;  %v11709_v35 = vadd.s32 %v1585_v61, %v1584_v15  ;;  %v3288_v25 = vld [vmem:[%s10387_s12 + $0x2e0] sm:$0xff]  ;;  %4859 = vperm.xlu0 %10288, %v4774_v46  }
 0x153   : > { %17437 = vst [vmem:[#allocation23_spill] sm:$0xff] %v11702_v23  ;;  %v2702_v9 = vsel %vm2446_vm7, 1, %v17435_v39  ;;  %v3104_v38 = vadd.s32 %v2712_v6, %v2704_v62  ;;  %v11712_v8 = vadd.s32 %v2713_v7, %v2705_v50  ;;  %v11714_v22 = vadd.s32 %v2714_v44, %v2706_v47  ;;  %3377 = vperm.xlu1 %10289, %v3288_v25   ;;  %v1821_v44 = vpop.permute.xlu1 %1820 }
 0x154   : > { %17438 = vst [vmem:[#allocation24_spill] sm:$0xff] %v11704_v56  ;;  %17439 = vst [vmem:[#allocation25_spill] sm:$0xff] %v11707_v0  ;;  %v11716_v53 = vadd.s32 %v2715_v43, %v2707_v3  ;;  %vm732_vm8 = vcmp.lt.s32.totalorder %v11692_v5, %v10473_v17  ;;  %v2158_v37 = vadd.s32 256, %v11707_v0  ;;  %vm1927_vm10 = vcmp.eq.s32.totalorder %v1815_v21, %v10491_v28 }
 0x155   : > { %vm1928_vm1 = vcmp.eq.s32.totalorder %v1815_v21, %v10499_v31  ;;  %v3030_v3 = vadd.s32 %v2710_v60, %v2702_v9  ;;  %vm1929_vm12 = vcmp.eq.s32.totalorder %v1815_v21, %v10502_v32  ;;  %v2159_v19 = vadd.s32 256, %v11692_v5  ;;  %vm988_vm14 = vmand %vm476_vm11, %vm732_vm8 }
 0x156   : > { %vm724_vm13 = vcmp.lt.s32.totalorder %v11707_v0, %v10473_v17  ;;  %vm1930_vm0 = vcmp.eq.s32.totalorder %v1815_v21, %v10505_v33  ;;  %vm1931_vm15 = vcmp.eq.s32.totalorder %v1815_v21, %v10508_v34  ;;  %vm1919_vm3 = vcmp.eq.s32.totalorder %v1812_v4, %v10491_v28 }
 0x157   : > { %vm1920_vm6 = vcmp.eq.s32.totalorder %v1812_v4, %v10499_v31  ;;  %v11744_v61 = vsel %vm1927_vm10, 1, %v17435_v39  ;;  %v11747_v60 = vsel %vm1928_vm1, 1, %v17435_v39  ;;  %vm1918_vm4 = vcmp.eq.s32.totalorder %v1812_v4, %v10488_v27  ;;  %vm980_vm8 = vmand %vm468_vm5, %vm724_vm13 }
 0x158   : > { %vm2206_vm7 = vcmp.lt.s32.totalorder %v2158_v37, %v11634_v1  ;;  %vm484_vm11 = vcmp.eq.s32.totalorder %v10678_v36, %v10482_v24  ;;  %vm1921_vm2 = vcmp.eq.s32.totalorder %v1812_v4, %v10502_v32  ;;  %vm1922_vm9 = vcmp.eq.s32.totalorder %v1812_v4, %v10505_v33 }
 0x159   : > { %vm1923_vm10 = vcmp.eq.s32.totalorder %v1812_v4, %v10508_v34  ;;  %v11760_v49 = vadd.s32 40, %v10465_v10  ;;  %v1244_v6 = vsel %vm988_vm14, 1, %v17435_v39  ;;  %vm2214_vm1 = vcmp.lt.s32.totalorder %v2159_v19, %v11634_v1  ;;  %vm2462_vm5 = vmand %vm1918_vm4, %vm2206_vm7 }
 0x15a   : > { %v2719_v13 = vsel %vm1919_vm3, 1, %v17435_v39  ;;  %v2720_v7 = vsel %vm1920_vm6, 1, %v17435_v39  ;;  %v11769_v30 = vsel %vm1929_vm12, 1, %v17435_v39  ;;  %v11774_v62 = vsel %vm1930_vm0, 1, %v17435_v39 }
 0x15b   : > { %17440 = vst [vmem:[#allocation26_spill] sm:$0xff] %v11760_v49  ;;  %v11779_v50 = vsel %vm1931_vm15, 1, %v17435_v39  ;;  %v2161_v43 = vadd.s32 256, %v11760_v49  ;;  %v1236_v47 = vsel %vm980_vm8, 1, %v17435_v39  ;;  %v2721_v9 = vsel %vm1921_vm2, 1, %v17435_v39 }
 0x15c   : > { %v2722_v37 = vsel %vm1922_vm9, 1, %v17435_v39  ;;  %v2723_v25 = vsel %vm1923_vm10, 1, %v17435_v39  ;;  %vm17441_vm12 = vcmp.eq.s32.totalorder %v1815_v21, %v10488_v27  ;;  %v1477_v4 = vadd.s32 %v11646_v45, %v1236_v47  ;;  %v3289_v21 = vld [vmem:[%s10387_s12 + $0x2e8] sm:$0xff]  ;;  %v4775_v45 = vld [vmem:[%s10387_s12 + $0x3d8] sm:$0xff] }
 0x15d   : > { %vm11790_vm13 = vmand %vm17441_vm12, %vm2214_vm1  ;;  %v3068_v19 = vadd.s32 %v3067_v2, %v2719_v13  ;;  %v3105_v15 = vadd.s32 %v3104_v38, %v2720_v7  ;;  %v11796_v14 = vadd.s32 32, %v10465_v10  ;;  %v2718_v0 = vsel %vm2462_vm5, 1, %v17435_v39  ;;  %v1818_v2 = vpop.permute.xlu0 %1817  ;;  %3380 = vperm.xlu1 %10289, %v3289_v21   ;;  %4862 = vperm.xlu0 %10288, %v4775_v45   ;;  %v1827_v21 = vpop.permute.xlu1 %1826 }
 0x15e   : > { %vm748_vm9 = vcmp.lt.s32.totalorder %v11760_v49, %v10473_v17  ;;  %vm1942_vm2 = vcmp.eq.s32.totalorder %v1821_v44, %v10488_v27  ;;  %vm1943_vm14 = vcmp.eq.s32.totalorder %v1821_v44, %v10491_v28  ;;  %vm1944_vm0 = vcmp.eq.s32.totalorder %v1821_v44, %v10499_v31 }
 0x15f   : > { %17444 = vst [vmem:[#allocation27_spill] sm:$0xff] %v11796_v14  ;;  %vm1945_vm15 = vcmp.eq.s32.totalorder %v1821_v44, %v10502_v32  ;;  %vm2230_vm3 = vcmp.lt.s32.totalorder %v2161_v43, %v11634_v1  ;;  %v2160_v38 = vadd.s32 256, %v11796_v14  ;;  %vm508_vm6 = vcmp.eq.s32.totalorder %v10735_v63, %v10482_v24 }
 0x160   : > { %v2726_v13 = vsel %vm11790_vm13, 1, %v17435_v39  ;;  %v3142_v7 = vadd.s32 %v11712_v8, %v2721_v9  ;;  %v3179_v47 = vadd.s32 %v11714_v22, %v2722_v37  ;;  %v3216_v5 = vadd.s32 %v11716_v53, %v2723_v25  ;;  %vm11835_vm5 = vmand %vm1942_vm2, %vm2230_vm3 }
 0x161   : > { %v3031_v56 = vadd.s32 %v3030_v3, %v2718_v0  ;;  %vm17445_vm4 = vcmp.eq.s32.totalorder %v10643_v11, %v10482_v24  ;;  %vm1946_vm8 = vcmp.eq.s32.totalorder %v1821_v44, %v10505_v33  ;;  %vm1947_vm10 = vcmp.eq.s32.totalorder %v1821_v44, %v10508_v34 }
 0x162   : > { %vm11823_vm7 = vmand %vm17445_vm4, %vm748_vm9  ;;  %vm740_vm1 = vcmp.lt.s32.totalorder %v11796_v14, %v10473_v17  ;;  %v11842_v11 = vsel %vm1943_vm14, 1, %v17435_v39  ;;  %v11847_v22 = vsel %vm1944_vm0, 1, %v17435_v39  ;;  %v11852_v8 = vsel %vm1945_vm15, 1, %v17435_v39 }
 0x163   : > { %vm1934_vm12 = vcmp.eq.s32.totalorder %v1818_v2, %v10488_v27  ;;  %vm1935_vm13 = vcmp.eq.s32.totalorder %v1818_v2, %v10491_v28  ;;  %vm1936_vm9 = vcmp.eq.s32.totalorder %v1818_v2, %v10499_v31  ;;  %vm1937_vm2 = vcmp.eq.s32.totalorder %v1818_v2, %v10502_v32  ;;  %vm996_vm0 = vmand %vm484_vm11, %vm740_vm1 }
 0x164   : > { %vm2222_vm14 = vcmp.lt.s32.totalorder %v2160_v38, %v11634_v1  ;;  %v11860_v0 = vsel %vm1946_vm8, 1, %v17435_v39  ;;  %v11863_v3 = vsel %vm1947_vm10, 1, %v17435_v39  ;;  %vm1938_vm15 = vcmp.eq.s32.totalorder %v1818_v2, %v10505_v33 }
 0x165   : > { %v11870_v44 = vadd.s32 56, %v10465_v10  ;;  %vm500_vm3 = vcmp.eq.s32.totalorder %v10759_v18, %v10482_v24  ;;  %v11877_v43 = vsel %vm11823_vm7, 1, %v17435_v39  ;;  %v11882_v9 = vsel %vm11835_vm5, 1, %v17435_v39  ;;  %vm2478_vm4 = vmand %vm1934_vm12, %vm2222_vm14 }
 0x166   : > { %v1478_v36 = vadd.s32 %v1477_v4, %v1244_v6  ;;  %vm1939_vm11 = vcmp.eq.s32.totalorder %v1818_v2, %v10508_v34  ;;  %v2735_v37 = vsel %vm1935_vm13, 1, %v17435_v39  ;;  %v2736_v25 = vsel %vm1936_vm9, 1, %v17435_v39 }
 0x167   : > { %v2737_v23 = vsel %vm1937_vm2, 1, %v17435_v39  ;;  %v3069_v46 = vadd.s32 %v3068_v19, %v11744_v61  ;;  %v1252_v38 = vsel %vm996_vm0, 1, %v17435_v39  ;;  %v2738_v6 = vsel %vm1938_vm15, 1, %v17435_v39 }
 0x168   : > { %v3032_v4 = vadd.s32 %v3031_v56, %v2726_v13  ;;  %v2163_v45 = vadd.s32 256, %v11870_v44  ;;  %v3106_v53 = vadd.s32 %v3105_v15, %v11747_v60  ;;  %v3143_v14 = vadd.s32 %v3142_v7, %v11769_v30  ;;  %v3290_v13 = vld [vmem:[%s10387_s12 + $0x2f0] sm:$0xff]  ;;  %v4776_v15 = vld [vmem:[%s10387_s12 + $0x3e0] sm:$0xff] }
 0x169   : > { %v3180_v49 = vadd.s32 %v3179_v47, %v11774_v62  ;;  %vm764_vm7 = vcmp.lt.s32.totalorder %v11870_v44, %v10473_v17  ;;  %v2734_v29 = vsel %vm2478_vm4, 1, %v17435_v39  ;;  %v2739_v61 = vsel %vm1939_vm11, 1, %v17435_v39  ;;  %3383 = vperm.xlu1 %10289, %v3290_v13   ;;  %4865 = vperm.xlu0 %10288, %v4776_v15   ;;  %v1824_v47 = vpop.permute.xlu0 %1823  ;;  %v1833_v15 = vpop.permute.xlu1 %1832 }
 0x16a   : > { %v3217_v56 = vadd.s32 %v3216_v5, %v11779_v50  ;;  %v11907_v19 = vadd.s32 48, %v10465_v10  ;;  %v1479_v60 = vadd.s32 %v1478_v36, %v1252_v38  ;;  %v3070_v30 = vadd.s32 %v3069_v46, %v2735_v37  ;;  %vm11916_vm1 = vmand %vm508_vm6, %vm764_vm7 }
 0x16b   : > { %vm1958_vm8 = vcmp.eq.s32.totalorder %v1827_v21, %v10488_v27  ;;  %vm1959_vm10 = vcmp.eq.s32.totalorder %v1827_v21, %v10491_v28  ;;  %vm1960_vm5 = vcmp.eq.s32.totalorder %v1827_v21, %v10499_v31  ;;  %vm1961_vm12 = vcmp.eq.s32.totalorder %v1827_v21, %v10502_v32 }
 0x16c   : > { %17450 = vst [vmem:[#allocation28_spill] sm:$0xff] %v11907_v19  ;;  %vm2246_vm13 = vcmp.lt.s32.totalorder %v2163_v45, %v11634_v1  ;;  %v2162_v5 = vadd.s32 256, %v11907_v19  ;;  %vm524_vm9 = vcmp.eq.s32.totalorder %v10817_v58, %v10482_v24  ;;  %v3033_v50 = vadd.s32 %v3032_v4, %v2734_v29 }
 0x16d   : > { %v3107_v2 = vadd.s32 %v3106_v53, %v2736_v25  ;;  %v3144_v7 = vadd.s32 %v3143_v14, %v2737_v23  ;;  %v3181_v63 = vadd.s32 %v3180_v49, %v2738_v6  ;;  %v3218_v36 = vadd.s32 %v3217_v56, %v2739_v61  ;;  %vm2502_vm0 = vmand %vm1958_vm8, %vm2246_vm13 }
 0x16e   : > { %vm1962_vm6 = vcmp.eq.s32.totalorder %v1827_v21, %v10505_v33  ;;  %vm1963_vm2 = vcmp.eq.s32.totalorder %v1827_v21, %v10508_v34  ;;  %vm756_vm14 = vcmp.lt.s32.totalorder %v11907_v19, %v10473_v17  ;;  %v11933_v37 = vsel %vm11916_vm1, 1, %v17435_v39 }
 0x16f   : > { %v11940_v29 = vsel %vm1959_vm10, 1, %v17435_v39  ;;  %v11945_v14 = vsel %vm1960_vm5, 1, %v17435_v39  ;;  %v11950_v49 = vsel %vm1961_vm12, 1, %v17435_v39  ;;  %vm1950_vm15 = vcmp.eq.s32.totalorder %v1824_v47, %v10488_v27  ;;  %vm1012_vm8 = vmand %vm500_vm3, %vm756_vm14 }
 0x170   : > { %vm1951_vm11 = vcmp.eq.s32.totalorder %v1824_v47, %v10491_v28  ;;  %vm1952_vm4 = vcmp.eq.s32.totalorder %v1824_v47, %v10499_v31  ;;  %vm2238_vm7 = vcmp.lt.s32.totalorder %v2162_v5, %v11634_v1  ;;  %vm1953_vm10 = vcmp.eq.s32.totalorder %v1824_v47, %v10502_v32 }
 0x171   : > { %vm1954_vm1 = vcmp.eq.s32.totalorder %v1824_v47, %v10505_v33  ;;  %vm1955_vm5 = vcmp.eq.s32.totalorder %v1824_v47, %v10508_v34  ;;  %v11963_v25 = vadd.s32 72, %v10465_v10  ;;  %vm516_vm12 = vcmp.eq.s32.totalorder %v10844_v52, %v10482_v24  ;;  %vm2494_vm3 = vmand %vm1950_vm15, %vm2238_vm7 }
 0x172   : > { %v11968_v23 = vsel %vm2502_vm0, 1, %v17435_v39  ;;  %v11973_v18 = vsel %vm1962_vm6, 1, %v17435_v39  ;;  %v11978_v46 = vsel %vm1963_vm2, 1, %v17435_v39  ;;  %v1480_v38 = vadd.s32 %v1479_v60, %v11877_v43 }
 0x173   : > { %17453 = vst [vmem:[#allocation29_spill] sm:$0xff] %v11963_v25  ;;  %v2751_v6 = vsel %vm1951_vm11, 1, %v17435_v39  ;;  %v2752_v4 = vsel %vm1952_vm4, 1, %v17435_v39  ;;  %v3071_v45 = vadd.s32 %v3070_v30, %v11842_v11  ;;  %v3108_v53 = vadd.s32 %v3107_v2, %v11847_v22 }
 0x174   : > { %v1268_v61 = vsel %vm1012_vm8, 1, %v17435_v39  ;;  %v2753_v56 = vsel %vm1953_vm10, 1, %v17435_v39  ;;  %v2754_v13 = vsel %vm1954_vm1, 1, %v17435_v39  ;;  %v2755_v21 = vsel %vm1955_vm5, 1, %v17435_v39 }
 0x175   : > { %v3034_v43 = vadd.s32 %v3033_v50, %v11882_v9  ;;  %v3145_v60 = vadd.s32 %v3144_v7, %v11852_v8  ;;  %vm780_vm13 = vcmp.lt.s32.totalorder %v11963_v25, %v10473_v17  ;;  %v2165_v11 = vadd.s32 256, %v11963_v25  ;;  %v1830_v9 = vpop.permute.xlu0 %1829 }
 0x176   : > { %v2750_v22 = vsel %vm2494_vm3, 1, %v17435_v39  ;;  %v3182_v30 = vadd.s32 %v3181_v63, %v11860_v0  ;;  %v3219_v62 = vadd.s32 %v3218_v36, %v11863_v3  ;;  %v11998_v5 = vadd.s32 64, %v10465_v10  ;;  %vm1036_vm2 = vmand %vm524_vm9, %vm780_vm13 }
 0x177   : > { %v1481_v2 = vadd.s32 %v1480_v38, %v1268_v61  ;;  %v3072_v47 = vadd.s32 %v3071_v45, %v2751_v6  ;;  %v3109_v19 = vadd.s32 %v3108_v53, %v2752_v4  ;;  %vm1974_vm6 = vcmp.eq.s32.totalorder %v1833_v15, %v10488_v27 }
 0x178   : > { %vm1975_vm14 = vcmp.eq.s32.totalorder %v1833_v15, %v10491_v28  ;;  %vm1976_vm0 = vcmp.eq.s32.totalorder %v1833_v15, %v10499_v31  ;;  %vm1977_vm15 = vcmp.eq.s32.totalorder %v1833_v15, %v10502_v32  ;;  %v2164_v8 = vadd.s32 256, %v11998_v5 }
 0x179   : > { %vm540_vm11 = vcmp.eq.s32.totalorder %v10900_v59, %v10482_v24  ;;  %v3035_v0 = vadd.s32 %v3034_v43, %v2750_v22  ;;  %v3146_v3 = vadd.s32 %v3145_v60, %v2753_v56  ;;  %vm1978_vm4 = vcmp.eq.s32.totalorder %v1833_v15, %v10505_v33  ;;  %v1839_v60 = vpop.permute.xlu1 %1838 }
 0x17a   : > { %vm2262_vm7 = vcmp.lt.s32.totalorder %v2165_v11, %v11634_v1  ;;  %v3183_v58 = vadd.s32 %v3182_v30, %v2754_v13  ;;  %v3220_v50 = vadd.s32 %v3219_v62, %v2755_v21  ;;  %vm1979_vm9 = vcmp.eq.s32.totalorder %v1833_v15, %v10508_v34 }
 0x17b   : > { %vm772_vm8 = vcmp.lt.s32.totalorder %v11998_v5, %v10473_v17  ;;  %v12016_v7 = vsel %vm1036_vm2, 1, %v17435_v39  ;;  %v12019_v63 = vsel %vm1975_vm14, 1, %v17435_v39  ;;  %v12022_v36 = vsel %vm1976_vm0, 1, %v17435_v39  ;;  %vm2518_vm10 = vmand %vm1974_vm6, %vm2262_vm7 }
 0x17c   : > { %v12025_v38 = vsel %vm1977_vm15, 1, %v17435_v39  ;;  %v12030_v6 = vsel %vm1978_vm4, 1, %v17435_v39  ;;  %vm1966_vm1 = vcmp.eq.s32.totalorder %v1830_v9, %v10488_v27  ;;  %vm1967_vm5 = vcmp.eq.s32.totalorder %v1830_v9, %v10491_v28  ;;  %vm1028_vm2 = vmand %vm516_vm12, %vm772_vm8 }
 0x17d   : > { %vm2254_vm3 = vcmp.lt.s32.totalorder %v2164_v8, %v11634_v1  ;;  %vm532_vm13 = vcmp.eq.s32.totalorder %v10927_v40, %v10482_v24  ;;  %v12038_v4 = vsel %vm1979_vm9, 1, %v17435_v39  ;;  %vm1968_vm6 = vcmp.eq.s32.totalorder %v1830_v9, %v10499_v31 }
 0x17e   : > { %vm1969_vm14 = vcmp.eq.s32.totalorder %v1830_v9, %v10502_v32  ;;  %v12046_v45 = vadd.s32 88, %v10465_v10  ;;  %v1482_v53 = vadd.s32 %v1481_v2, %v11933_v37  ;;  %vm1970_vm0 = vcmp.eq.s32.totalorder %v1830_v9, %v10505_v33  ;;  %vm2510_vm4 = vmand %vm1966_vm1, %vm2254_vm3 }
 0x17f   : > { %vm1971_vm15 = vcmp.eq.s32.totalorder %v1830_v9, %v10508_v34  ;;  %v12052_v61 = vadd.s32 80, %v10465_v10  ;;  %v2774_v56 = vsel %vm2518_vm10, 1, %v17435_v39  ;;  %v2767_v52 = vsel %vm1967_vm5, 1, %v17435_v39 }
 0x180   : > { %v3073_v13 = vadd.s32 %v3072_v47, %v11940_v29  ;;  %v3110_v21 = vadd.s32 %v3109_v19, %v11945_v14  ;;  %v1284_v15 = vsel %vm1028_vm2, 1, %v17435_v39  ;;  %v2768_v37 = vsel %vm1968_vm6, 1, %v17435_v39  ;;  %v12067_v29 = vpop.permute.xlu0 %1835 }
 0x181   : > { %v2769_v43 = vsel %vm1969_vm14, 1, %v17435_v39  ;;  %v2166_v11 = vadd.s32 256, %v12052_v61  ;;  %v2770_v22 = vsel %vm1970_vm0, 1, %v17435_v39  ;;  %v2771_v30 = vsel %vm1971_vm15, 1, %v17435_v39 }
 0x182   : > { %v3036_v62 = vadd.s32 %v3035_v0, %v11968_v23  ;;  %vm796_vm12 = vcmp.lt.s32.totalorder %v12046_v45, %v10473_v17  ;;  %v1483_v19 = vadd.s32 %v1482_v53, %v1284_v15  ;;  %v2766_v14 = vsel %vm2510_vm4, 1, %v17435_v39 }
 0x183   : > { %v3147_v2 = vadd.s32 %v3146_v3, %v11950_v49  ;;  %v3184_v47 = vadd.s32 %v3183_v58, %v11973_v18  ;;  %v3074_v8 = vadd.s32 %v3073_v13, %v2767_v52  ;;  %v3111_v9 = vadd.s32 %v3110_v21, %v2768_v37  ;;  %vm1052_vm9 = vmand %vm540_vm11, %vm796_vm12 }
 0x184   : > { %v3221_v25 = vadd.s32 %v3220_v50, %v11978_v46  ;;  %vm1991_vm7 = vcmp.eq.s32.totalorder %v1839_v60, %v10491_v28  ;;  %vm1992_vm8 = vcmp.eq.s32.totalorder %v1839_v60, %v10499_v31  ;;  %v2167_v23 = vadd.s32 256, %v12046_v45  ;;  %v12125_v15 = vpop.permute.xlu0 %1841 }
 0x185   : > { %vm1982_vm10 = vcmp.eq.s32.totalorder %v12067_v29, %v10488_v27  ;;  %vm2270_vm1 = vcmp.lt.s32.totalorder %v2166_v11, %v11634_v1  ;;  %v3037_v49 = vadd.s32 %v3036_v62, %v2766_v14  ;;  %vm1993_vm5 = vcmp.eq.s32.totalorder %v1839_v60, %v10502_v32  ;;  %v12147_v11 = vpop.permute.xlu1 %1844  ;;  %v4777_v62 = vld [vmem:[%s10387_s12 + $0x3e8] sm:$0xff] }
 0x186   : > { %vm1994_vm3 = vcmp.eq.s32.totalorder %v1839_v60, %v10505_v33  ;;  %vm788_vm2 = vcmp.lt.s32.totalorder %v12052_v61, %v10473_v17  ;;  %vm548_vm11 = vcmp.eq.s32.totalorder %v10989_v20, %v10482_v24  ;;  %v3148_v59 = vadd.s32 %v3147_v2, %v2769_v43  ;;  %vm2526_vm0 = vmand %vm1982_vm10, %vm2270_vm1  ;;  %4868 = vperm.xlu0 %10288, %v4777_v62  }
 0x187   : > { %v3185_v18 = vadd.s32 %v3184_v47, %v2770_v22  ;;  %vm1990_vm6 = vcmp.eq.s32.totalorder %v1839_v60, %v10488_v27  ;;  %vm1995_vm14 = vcmp.eq.s32.totalorder %v1839_v60, %v10508_v34  ;;  %v3222_v46 = vadd.s32 %v3221_v25, %v2771_v30  ;;  %vm1044_vm4 = vmand %vm532_vm13, %vm788_vm2  ;;  %v3291_v30 = vld [vmem:[%s10387_s12 + $0x2f8] sm:$0xff] }
 0x188   : > { %v1308_v0 = vsel %vm1052_vm9, 1, %v17435_v39  ;;  %v12094_v3 = vsel %vm1991_vm7, 1, %v17435_v39  ;;  %v12099_v58 = vsel %vm1992_vm8, 1, %v17435_v39  ;;  %vm2278_vm15 = vcmp.lt.s32.totalorder %v2167_v23, %v11634_v1  ;;  %3386 = vperm.xlu1 %10289, %v3291_v30   ;;  %v4778_v23 = vld [vmem:[%s10387_s12 + $0x3f0] sm:$0xff] }
 0x189   : > { %v12106_v25 = vsel %vm1993_vm5, 1, %v17435_v39  ;;  %v12109_v50 = vsel %vm1994_vm3, 1, %v17435_v39  ;;  %v12115_v53 = vadd.s32 96, %v10465_v10  ;;  %vm556_vm12 = vcmp.eq.s32.totalorder %v10970_v57, %v10482_v24  ;;  %vm12137_vm8 = vmand %vm1990_vm6, %vm2278_vm15 }
 0x18a   : > { %v12120_v52 = vsel %vm1995_vm14, 1, %v17435_v39  ;;  %v1484_v13 = vadd.s32 %v1483_v19, %v12016_v7  ;;  %vm1983_vm7 = vcmp.eq.s32.totalorder %v12067_v29, %v10491_v28  ;;  %v3038_v21 = vadd.s32 %v3037_v49, %v2774_v56  ;;  %4871 = vperm.xlu0 %10288, %v4778_v23  }
 0x18b   : > { %17454 = vst [vmem:[#allocation30_spill] sm:$0xff] %v12115_v53  ;;  %vm1984_vm13 = vcmp.eq.s32.totalorder %v12067_v29, %v10499_v31  ;;  %vm1985_vm9 = vcmp.eq.s32.totalorder %v12067_v29, %v10502_v32  ;;  %v2782_v40 = vsel %vm2526_vm0, 1, %v17435_v39  ;;  %v2168_v37 = vadd.s32 256, %v12115_v53 }
 0x18c   : > { %v1300_v56 = vsel %vm1044_vm4, 1, %v17435_v39  ;;  %vm1986_vm10 = vcmp.eq.s32.totalorder %v12067_v29, %v10505_v33  ;;  %vm1987_vm1 = vcmp.eq.s32.totalorder %v12067_v29, %v10508_v34  ;;  %v3075_v43 = vadd.s32 %v3074_v8, %v12019_v63 }
 0x18d   : > { %v3112_v22 = vadd.s32 %v3111_v9, %v12022_v36  ;;  %v12151_v60 = vadd.s32 104, %v10465_v10  ;;  %vm1998_vm5 = vcmp.eq.s32.totalorder %v12125_v15, %v10488_v27  ;;  %vm2286_vm3 = vcmp.lt.s32.totalorder %v2168_v37, %v11634_v1  ;;  %v4779_v9 = vld [vmem:[%s10387_s12 + $0x3f8] sm:$0xff] }
 0x18e   : > { %vm564_vm2 = vcmp.eq.s32.totalorder %v11054_v12, %v10482_v24  ;;  %v1485_v63 = vadd.s32 %v1484_v13, %v1300_v56  ;;  %v2783_v36 = vsel %vm1983_vm7, 1, %v17435_v39  ;;  %v2784_v19 = vsel %vm1984_vm13, 1, %v17435_v39  ;;  %vm12194_vm14 = vmand %vm1998_vm5, %vm2286_vm3  ;;  %4874 = vperm.xlu1 %10289, %v4779_v9  }
 0x18f   : > { %v3039_v14 = vadd.s32 %v3038_v21, %v2782_v40  ;;  %v2790_v2 = vsel %vm12137_vm8, 1, %v17435_v39  ;;  %v3149_v47 = vadd.s32 %v3148_v59, %v12025_v38  ;;  %v2169_v8 = vadd.s32 256, %v12151_v60 }
 0x190   : > { %vm804_vm6 = vcmp.lt.s32.totalorder %v12115_v53, %v10473_v17  ;;  %v2785_v49 = vsel %vm1985_vm9, 1, %v17435_v39  ;;  %v2786_v13 = vsel %vm1986_vm10, 1, %v17435_v39  ;;  %v2787_v38 = vsel %vm1987_vm1, 1, %v17435_v39  ;;  %v12214_v53 = vpop.permute.xlu1 %1850 }
 0x191   : > { %v12199_v21 = vadd.s32 120, %v10465_v10  ;;  %v3076_v40 = vadd.s32 %v3075_v43, %v2783_v36  ;;  %v12201_v7 = vadd.s32 %v3112_v22, %v2784_v19  ;;  %v3186_v56 = vadd.s32 %v3185_v18, %v12030_v6  ;;  %vm12210_vm15 = vmand %vm548_vm11, %vm804_vm6 }
 0x192   : > { %v3223_v29 = vadd.s32 %v3222_v46, %v12038_v4  ;;  %vm812_vm0 = vcmp.lt.s32.totalorder %v12151_v60, %v10473_v17  ;;  %v1486_v30 = vadd.s32 %v1485_v63, %v1308_v0  ;;  %v3040_v62 = vadd.s32 %v3039_v14, %v2790_v2  ;;  %v12231_v4 = vpop.permute.xlu0 %1847 }
 0x193   : > { %v2171_v43 = vadd.s32 256, %v12199_v21  ;;  %vm572_vm4 = vcmp.eq.s32.totalorder %v11036_v42, %v10482_v24  ;;  %v3150_v6 = vadd.s32 %v3149_v47, %v2785_v49  ;;  %vm2006_vm7 = vcmp.eq.s32.totalorder %v12147_v11, %v10488_v27  ;;  %vm1068_vm10 = vmand %vm556_vm12, %vm812_vm0 }
 0x194   : > { %vm2294_vm11 = vcmp.lt.s32.totalorder %v2169_v8, %v11634_v1  ;;  %v2798_v20 = vsel %vm12194_vm14, 1, %v17435_v39  ;;  %vm2007_vm13 = vcmp.eq.s32.totalorder %v12147_v11, %v10491_v28  ;;  %vm2008_vm9 = vcmp.eq.s32.totalorder %v12147_v11, %v10499_v31 }
 0x195   : > { %vm2009_vm8 = vcmp.eq.s32.totalorder %v12147_v11, %v10502_v32  ;;  %v12234_v18 = vadd.s32 112, %v10465_v10  ;;  %vm2010_vm1 = vcmp.eq.s32.totalorder %v12147_v11, %v10505_v33  ;;  %v1316_v46 = vsel %vm12210_vm15, 1, %v17435_v39  ;;  %vm2550_vm14 = vmand %vm2006_vm7, %vm2294_vm11 }
 0x196   : > { %vm2022_vm5 = vcmp.eq.s32.totalorder %v12214_v53, %v10488_v27  ;;  %vm2310_vm3 = vcmp.lt.s32.totalorder %v2171_v43, %v11634_v1  ;;  %vm2011_vm6 = vcmp.eq.s32.totalorder %v12147_v11, %v10508_v34  ;;  %v1487_v0 = vadd.s32 %v1486_v30, %v1316_v46 }
 0x197   : > { %v3041_v22 = vadd.s32 %v3040_v62, %v2798_v20  ;;  %vm820_vm12 = vcmp.lt.s32.totalorder %v12234_v18, %v10473_v17  ;;  %v3187_v57 = vadd.s32 %v3186_v56, %v2786_v13  ;;  %v3224_v63 = vadd.s32 %v3223_v29, %v2787_v38  ;;  %vm12279_vm15 = vmand %vm2022_vm5, %vm2310_vm3 }
 0x198   : > { %vm2014_vm0 = vcmp.eq.s32.totalorder %v12231_v4, %v10488_v27  ;;  %v2170_v36 = vadd.s32 256, %v12234_v18  ;;  %v1324_v19 = vsel %vm1068_vm10, 1, %v17435_v39  ;;  %v12262_v14 = vsel %vm2007_vm13, 1, %v17435_v39  ;;  %vm12299_vm7 = vmand %vm564_vm2, %vm820_vm12 }
 0x199   : > { %v12268_v2 = vsel %vm2008_vm9, 1, %v17435_v39  ;;  %v12274_v47 = vsel %vm2009_vm8, 1, %v17435_v39  ;;  %v2806_v9 = vsel %vm2550_vm14, 1, %v17435_v39  ;;  %v12288_v23 = vsel %vm2010_vm1, 1, %v17435_v39 }
 0x19a   : > { %v12294_v49 = vsel %vm2011_vm6, 1, %v17435_v39  ;;  %vm2302_vm11 = vcmp.lt.s32.totalorder %v2170_v36, %v11634_v1  ;;  %vm1999_vm13 = vcmp.eq.s32.totalorder %v12125_v15, %v10491_v28  ;;  %vm2000_vm9 = vcmp.eq.s32.totalorder %v12125_v15, %v10499_v31 }
 0x19b   : > { %v1488_v38 = vadd.s32 %v1487_v0, %v1324_v19  ;;  %vm2558_vm8 = vmand %vm2014_vm0, %vm2302_vm11  ;;  %v3042_v11 = vadd.s32 %v3041_v22, %v2806_v9  ;;  %vm2001_vm2 = vcmp.eq.s32.totalorder %v12125_v15, %v10502_v32  ;;  %vm2002_vm10 = vcmp.eq.s32.totalorder %v12125_v15, %v10505_v33 }
 0x19c   : > { %vm828_vm1 = vcmp.lt.s32.totalorder %v12199_v21, %v10473_v17  ;;  %v2814_v12 = vsel %vm2558_vm8, 1, %v17435_v39  ;;  %vm2003_vm5 = vcmp.eq.s32.totalorder %v12125_v15, %v10508_v34  ;;  %v3077_v1 = vadd.s32 %v3076_v40, %v12094_v3 }
 0x19d   : > { %v2987_v27 = vrot.slane %v17435_v39, 4  ;;  %v3043_v59 = vadd.s32 %v3042_v11, %v2814_v12  ;;  %v2799_v56 = vsel %vm1999_vm13, 1, %v17435_v39  ;;  %v2800_v29 = vsel %vm2000_vm9, 1, %v17435_v39  ;;  %vm1084_vm3 = vmand %vm572_vm4, %vm828_vm1 }
 0x19e   : > { %v2822_v37 = vsel %vm12279_vm15, 1, %v17435_v39  ;;  %v1332_v30 = vsel %vm12299_vm7, 1, %v17435_v39  ;;  %v2801_v62 = vsel %vm2001_vm2, 1, %v17435_v39  ;;  %v2802_v43 = vsel %vm2002_vm10, 1, %v17435_v39 }
 0x19f   : > { %v1489_v3 = vadd.s32 %v1488_v38, %v1332_v30  ;;  %v3044_v40 = vadd.s32 %v3043_v59, %v2822_v37  ;;  %v3114_v20 = vadd.s32 %v12201_v7, %v12099_v58  ;;  %v3151_v46 = vadd.s32 %v3150_v6, %v12106_v25 }
 0x1a0   : > { %v3188_v0 = vadd.s32 %v3187_v57, %v12109_v50  ;;  %v3225_v22 = vadd.s32 %v3224_v63, %v12120_v52  ;;  %v2803_v36 = vsel %vm2003_vm5, 1, %v17435_v39  ;;  %v3078_v19 = vadd.s32 %v3077_v1, %v2799_v56 }
 0x1a1   : > { %v2989_v8 = vrot.slane %v2987_v27, 2  ;;  %v3061_v24 = vrot.slane %v3044_v40, 4  ;;  %v1340_v42 = vsel %vm1084_vm3, 1, %v17435_v39  ;;  %vm2023_vm4 = vcmp.eq.s32.totalorder %v12214_v53, %v10491_v28 }
 0x1a2   : > { %vm2024_vm6 = vcmp.eq.s32.totalorder %v12214_v53, %v10499_v31  ;;  %vm2025_vm14 = vcmp.eq.s32.totalorder %v12214_v53, %v10502_v32  ;;  %vm2026_vm12 = vcmp.eq.s32.totalorder %v12214_v53, %v10505_v33  ;;  %vm2027_vm0 = vcmp.eq.s32.totalorder %v12214_v53, %v10508_v34 }
 0x1a3   : > { %v1490_v58 = vadd.s32 %v1489_v3, %v1340_v42  ;;  %v3062_v25 = vadd.s32 %v3061_v24, %v3044_v40  ;;  %vm589_vm15 = vcmp.eq.s32.totalorder %v11088_v16, %v10485_v26  ;;  %v3115_v50 = vadd.s32 %v3114_v20, %v2800_v29 }
 0x1a4   : > { %v3152_v52 = vadd.s32 %v3151_v46, %v2801_v62  ;;  %v3189_v15 = vadd.s32 %v3188_v0, %v2802_v43  ;;  %v3226_v7 = vadd.s32 %v3225_v22, %v2803_v36  ;;  %v12358_v6 = vsel %vm2023_vm4, 1, %v17435_v39  ;;  %v1857_v0 = vpop.permute.xlu1 %1856 }
 0x1a5   : > { %v12361_v57 = vsel %vm2024_vm6, 1, %v17435_v39  ;;  %v2990_v63 = vadd.s32 %v2989_v8, %v2987_v27  ;;  %vm2015_vm7 = vcmp.eq.s32.totalorder %v12231_v4, %v10491_v28  ;;  %v12366_v53 = vsel %vm2025_vm14, 1, %v17435_v39 }
 0x1a6   : > { %v12369_v9 = vsel %vm2026_vm12, 1, %v17435_v39  ;;  %v12372_v13 = vsel %vm2027_vm0, 1, %v17435_v39  ;;  %vm2016_vm11 = vcmp.eq.s32.totalorder %v12231_v4, %v10499_v31  ;;  %vm581_vm13 = vcmp.eq.s32.totalorder %v11114_v48, %v10485_v26 }
 0x1a7   : > { %v1507_v38 = vrot.slane %v1490_v58, 4  ;;  %vm2017_vm9 = vcmp.eq.s32.totalorder %v12231_v4, %v10502_v32  ;;  %vm2018_vm8 = vcmp.eq.s32.totalorder %v12231_v4, %v10505_v33  ;;  %v3063_v11 = vrot.slane %v3062_v25, 2 }
 0x1a8   : > { %vm2019_vm2 = vcmp.eq.s32.totalorder %v12231_v4, %v10508_v34  ;;  %v2815_v12 = vsel %vm2015_vm7, 1, %v17435_v39  ;;  %v12386_v1 = vadd.s32 128, %v10473_v17  ;;  %v12389_v27 = vadd.s32 136, %v10465_v10  ;;  %v1854_v4 = vpop.permute.xlu0 %1853 }
 0x1a9   : > { %v2991_v59 = vrot.slane %v2990_v63, 1  ;;  %v2816_v56 = vsel %vm2016_vm11, 1, %v17435_v39  ;;  %v3079_v29 = vadd.s32 %v3078_v19, %v12262_v14  ;;  %v3116_v37 = vadd.s32 %v3115_v50, %v12268_v2 }
 0x1aa   : > { %v2817_v30 = vsel %vm2017_vm9, 1, %v17435_v39  ;;  %v3153_v62 = vadd.s32 %v3152_v52, %v12274_v47  ;;  %v12397_v43 = vadd.s32 384, %v10473_v17  ;;  %v2173_v3 = vadd.s32 256, %v12389_v27 }
 0x1ab   : > { %v1508_v40 = vadd.s32 %v1507_v38, %v1490_v58  ;;  %v3064_v20 = vadd.s32 %v3063_v11, %v3062_v25  ;;  %v3190_v46 = vadd.s32 %v3189_v15, %v12288_v23  ;;  %v12402_v22 = vadd.s32 128, %v10465_v10 }
 0x1ac   : > { %v2818_v14 = vsel %vm2018_vm8, 1, %v17435_v39  ;;  %v2819_v2 = vsel %vm2019_vm2, 1, %v17435_v39  ;;  %v3227_v47 = vadd.s32 %v3226_v7, %v12294_v49  ;;  %vm845_vm10 = vcmp.lt.s32.totalorder %v12389_v27, %v12386_v1 }
 0x1ad   : > { %v12415_v23 = vadd.s32 %v2991_v59, %v2990_v63  ;;  %v3080_v36 = vadd.s32 %v3079_v29, %v2815_v12  ;;  %v3117_v19 = vadd.s32 %v3116_v37, %v2816_v56  ;;  %v2172_v8 = vadd.s32 256, %v12402_v22  ;;  %vm1101_vm6 = vmand %vm589_vm15, %vm845_vm10  ;;  %v1863_v37 = vpop.permute.xlu1 %1862 }
 0x1ae   : > { %vm605_vm1 = vcmp.eq.s32.totalorder %v11184_v51, %v10485_v26  ;;  %v3154_v24 = vadd.s32 %v3153_v62, %v2817_v30  ;;  %vm2039_vm5 = vcmp.eq.s32.totalorder %v1857_v0, %v10491_v28  ;;  %vm2040_vm3 = vcmp.eq.s32.totalorder %v1857_v0, %v10499_v31  ;;  %v1860_v51 = vpop.permute.xlu0 %1859 }
 0x1af   : > { %17465 = vst [vmem:[#allocation31_spill] sm:$0xff] %v12415_v23  ;;  %vm2327_vm4 = vcmp.lt.s32.totalorder %v2173_v3, %v12397_v43  ;;  %v1509_v49 = vrot.slane %v1508_v40, 2  ;;  %v3065_v42 = vrot.slane %v3064_v20, 1  ;;  %v3191_v58 = vadd.s32 %v3190_v46, %v2818_v14 }
 0x1b0   : > { %vm837_vm14 = vcmp.lt.s32.totalorder %v12402_v22, %v12386_v1  ;;  %v3228_v25 = vadd.s32 %v3227_v47, %v2819_v2  ;;  %vm2041_vm12 = vcmp.eq.s32.totalorder %v1857_v0, %v10502_v32  ;;  %vm2042_vm0 = vcmp.eq.s32.totalorder %v1857_v0, %v10505_v33  ;;  %vm2583_vm11 = vmand %vm2039_vm5, %vm2327_vm4 }
 0x1b1   : > { %vm2043_vm7 = vcmp.eq.s32.totalorder %v1857_v0, %v10508_v34  ;;  %v12432_v50 = vsel %vm2040_vm3, 1, %v17435_v39  ;;  %vm2031_vm9 = vcmp.eq.s32.totalorder %v1854_v4, %v10491_v28  ;;  %vm2032_vm8 = vcmp.eq.s32.totalorder %v1854_v4, %v10499_v31  ;;  %vm1093_vm10 = vmand %vm581_vm13, %vm837_vm14 }
 0x1b2   : > { %vm2319_vm15 = vcmp.lt.s32.totalorder %v2172_v8, %v12397_v43  ;;  %vm597_vm2 = vcmp.eq.s32.totalorder %v11214_v55, %v10485_v26  ;;  %v12440_v16 = vsel %vm1101_vm6, 1, %v17435_v39  ;;  %vm2033_vm5 = vcmp.eq.s32.totalorder %v1854_v4, %v10502_v32 }
 0x1b3   : > { %vm2034_vm3 = vcmp.eq.s32.totalorder %v1854_v4, %v10505_v33  ;;  %v12448_v52 = vadd.s32 152, %v10465_v10  ;;  %v12450_v15 = vadd.s32 %v1509_v49, %v1508_v40  ;;  %v3066_v7 = vadd.s32 %v3065_v42, %v3064_v20  ;;  %vm2575_vm4 = vmand %vm2031_vm9, %vm2319_vm15  ;;  %v17470_v42 = vld [vmem:[#allocation9_spill] sm:$0xff] }
 0x1b4   : > { %v12455_v63 = vsel %vm2041_vm12, 1, %v17435_v39  ;;  %v12460_v48 = vsel %vm2042_vm0, 1, %v17435_v39  ;;  %v12463_v38 = vsel %vm2583_vm11, 1, %v17435_v39  ;;  %v12468_v11 = vsel %vm2043_vm7, 1, %v17435_v39 }
 0x1b5   : > { %17466 = vst [vmem:[#allocation32_spill] sm:$0xff] %v12450_v15  ;;  %vm2035_vm13 = vcmp.eq.s32.totalorder %v1854_v4, %v10508_v34  ;;  %v2832_v12 = vsel %vm2032_vm8, 1, %v17435_v39  ;;  %v1349_v59 = vsel %vm1093_vm10, 1, %v17435_v39  ;;  %v2833_v56 = vsel %vm2033_vm5, 1, %v17435_v39 }
 0x1b6   : > { %v2834_v29 = vsel %vm2034_vm3, 1, %v17435_v39  ;;  %v2175_v30 = vadd.s32 256, %v12448_v52  ;;  %v3081_v62 = vadd.s32 %v3080_v36, %v12358_v6  ;;  %v3118_v3 = vadd.s32 %v3117_v19, %v12361_v57 }
 0x1b7   : > { %vm861_vm6 = vcmp.lt.s32.totalorder %v12448_v52, %v12386_v1  ;;  %v12485_v40 = vadd.s32 144, %v10465_v10  ;;  %v3254_v20 = vadd.s32 %v3066_v7, %v11709_v35  ;;  %v2831_v46 = vsel %vm2575_vm4, 1, %v17435_v39 }
 0x1b8   : > { %v3155_v0 = vadd.s32 %v3154_v24, %v12366_v53  ;;  %v3192_v14 = vadd.s32 %v3191_v58, %v12369_v9  ;;  %v1528_v2 = vadd.s32 %v11638_v41, %v1349_v59  ;;  %v2835_v6 = vsel %vm2035_vm13, 1, %v17435_v39  ;;  %vm12500_vm12 = vmand %vm605_vm1, %vm861_vm6  ;;  %v17469_v53 = vld [vmem:[#allocation8_spill] sm:$0xff] }
 0x1b9   : > { %v3229_v57 = vadd.s32 %v3228_v25, %v12372_v13  ;;  %vm2055_vm14 = vcmp.eq.s32.totalorder %v1863_v37, %v10491_v28  ;;  %vm2056_vm0 = vcmp.eq.s32.totalorder %v1863_v37, %v10499_v31  ;;  %vm2057_vm7 = vcmp.eq.s32.totalorder %v1863_v37, %v10502_v32 }
 0x1ba   : > { %vm2343_vm11 = vcmp.lt.s32.totalorder %v2175_v30, %v12397_v43  ;;  %v2174_v41 = vadd.s32 256, %v12485_v40  ;;  %vm621_vm9 = vcmp.eq.s32.totalorder %v17469_v53, %v10485_v26  ;;  %v3082_v9 = vadd.s32 %v3081_v62, %v2831_v46 }
 0x1bb   : > { %v3119_v13 = vadd.s32 %v3118_v3, %v2832_v12  ;;  %vm2058_vm8 = vcmp.eq.s32.totalorder %v1863_v37, %v10505_v33  ;;  %vm853_vm1 = vcmp.lt.s32.totalorder %v12485_v40, %v12386_v1  ;;  %v4742_v47 = vadd.s32 %v3254_v20, %v12415_v23  ;;  %vm2599_vm10 = vmand %vm2055_vm14, %vm2343_vm11 }
 0x1bc   : > { %v3156_v36 = vadd.s32 %v3155_v0, %v2833_v56  ;;  %v3193_v19 = vadd.s32 %v3192_v14, %v2834_v29  ;;  %vm2059_vm15 = vcmp.eq.s32.totalorder %v1863_v37, %v10508_v34  ;;  %v3230_v8 = vadd.s32 %v3229_v57, %v2835_v6  ;;  %vm1109_vm3 = vmand %vm597_vm2, %vm853_vm1  ;;  %v1869_v56 = vpop.permute.xlu1 %1868 }
 0x1bd   : > { %v12518_v24 = vsel %vm12500_vm12, 1, %v17435_v39  ;;  %v12525_v4 = vsel %vm2056_vm0, 1, %v17435_v39  ;;  %v12530_v49 = vsel %vm2057_vm7, 1, %v17435_v39  ;;  %vm613_vm5 = vcmp.eq.s32.totalorder %v17470_v42, %v10485_v26 }
 0x1be   : > { %v12535_v58 = vsel %vm2058_vm8, 1, %v17435_v39  ;;  %vm2047_vm13 = vcmp.eq.s32.totalorder %v1860_v51, %v10491_v28  ;;  %vm2048_vm4 = vcmp.eq.s32.totalorder %v1860_v51, %v10499_v31  ;;  %vm2335_vm6 = vcmp.lt.s32.totalorder %v2174_v41, %v12397_v43 }
 0x1bf   : > { %v12544_v25 = vsel %vm2059_vm15, 1, %v17435_v39  ;;  %vm2049_vm14 = vcmp.eq.s32.totalorder %v1860_v51, %v10502_v32  ;;  %vm2050_vm12 = vcmp.eq.s32.totalorder %v1860_v51, %v10505_v33  ;;  %v12549_v7 = vadd.s32 168, %v10465_v10  ;;  %vm2591_vm0 = vmand %vm2047_vm13, %vm2335_vm6 }
 0x1c0   : > { %v12552_v12 = vadd.s32 %v4742_v47, %v12415_v23  ;;  %v12555_v55 = vsel %vm2599_vm10, 1, %v17435_v39  ;;  %v1529_v59 = vadd.s32 %v1528_v2, %v12440_v16  ;;  %vm2051_vm2 = vcmp.eq.s32.totalorder %v1860_v51, %v10508_v34  ;;  %v12591_v35 = vpop.permute.xlu1 %1874  ;;  %v17472_v51 = vld [vmem:[#allocation10_spill] sm:$0xff] }
 0x1c1   : > { %v1365_v29 = vsel %vm1109_vm3, 1, %v17435_v39  ;;  %v2848_v37 = vsel %vm2048_vm4, 1, %v17435_v39  ;;  %v3120_v30 = vadd.s32 %v3119_v13, %v12432_v50  ;;  %v2177_v62 = vadd.s32 256, %v12549_v7 }
 0x1c2   : > { %17471 = vst [vmem:[#allocation8_spill] sm:$0xff] %v12552_v12  ;;  %v2849_v3 = vsel %vm2049_vm14, 1, %v17435_v39  ;;  %v2850_v20 = vsel %vm2050_vm12, 1, %v17435_v39  ;;  %v3157_v46 = vadd.s32 %v3156_v36, %v12455_v63  ;;  %v12567_v16 = vadd.s32 160, %v10465_v10 }
 0x1c3   : > { %v3083_v0 = vadd.s32 %v3082_v9, %v12463_v38  ;;  %v3194_v14 = vadd.s32 %v3193_v19, %v12460_v48  ;;  %v3231_v2 = vadd.s32 %v3230_v8, %v12468_v11  ;;  %vm877_vm7 = vcmp.lt.s32.totalorder %v12549_v7, %v12386_v1  ;;  %v1866_v48 = vpop.permute.xlu0 %1865 }
 0x1c4   : > { %v1530_v50 = vadd.s32 %v1529_v59, %v1365_v29  ;;  %v2847_v6 = vsel %vm2591_vm0, 1, %v17435_v39  ;;  %v2851_v57 = vsel %vm2051_vm2, 1, %v17435_v39  ;;  %v2176_v63 = vadd.s32 256, %v12567_v16  ;;  %vm1133_vm10 = vmand %vm621_vm9, %vm877_vm7 }
 0x1c5   : > { %vm637_vm11 = vcmp.eq.s32.totalorder %v11303_v54, %v10485_v26  ;;  %v3121_v38 = vadd.s32 %v3120_v30, %v2848_v37  ;;  %vm2071_vm8 = vcmp.eq.s32.totalorder %v1869_v56, %v10491_v28  ;;  %vm2072_vm1 = vcmp.eq.s32.totalorder %v1869_v56, %v10499_v31  ;;  %v17476_v54 = vld [vmem:[#allocation12_spill] sm:$0xff] }
 0x1c6   : > { %vm2359_vm15 = vcmp.lt.s32.totalorder %v2177_v62, %v12397_v43  ;;  %v3158_v11 = vadd.s32 %v3157_v46, %v2849_v3  ;;  %vm2073_vm3 = vcmp.eq.s32.totalorder %v1869_v56, %v10502_v32  ;;  %vm2074_vm13 = vcmp.eq.s32.totalorder %v1869_v56, %v10505_v33  ;;  %v12640_v46 = vpop.permute.xlu1 %1880 }
 0x1c7   : > { %vm869_vm4 = vcmp.lt.s32.totalorder %v12567_v16, %v12386_v1  ;;  %v3084_v41 = vadd.s32 %v3083_v0, %v2847_v6  ;;  %v3195_v9 = vadd.s32 %v3194_v14, %v2850_v20  ;;  %v3232_v13 = vadd.s32 %v3231_v2, %v2851_v57  ;;  %vm2615_vm9 = vmand %vm2071_vm8, %vm2359_vm15  ;;  %v12632_v30 = vpop.permute.xlu0 %1871  ;;  %v17475_v57 = vld [vmem:[#allocation11_spill] sm:$0xff] }
 0x1c8   : > { %vm2075_vm6 = vcmp.eq.s32.totalorder %v1869_v56, %v10508_v34  ;;  %vm629_vm14 = vcmp.eq.s32.totalorder %v17472_v51, %v10485_v26  ;;  %v12601_v53 = vsel %vm2072_vm1, 1, %v17435_v39  ;;  %vm2063_vm12 = vcmp.eq.s32.totalorder %v1866_v48, %v10491_v28  ;;  %vm1125_vm7 = vmand %vm613_vm5, %vm869_vm4 }
 0x1c9   : > { %vm2064_vm2 = vcmp.eq.s32.totalorder %v1866_v48, %v10499_v31  ;;  %vm2351_vm0 = vcmp.lt.s32.totalorder %v2176_v63, %v12397_v43  ;;  %v1389_v47 = vsel %vm1133_vm10, 1, %v17435_v39  ;;  %v12608_v36 = vsel %vm2073_vm3, 1, %v17435_v39 }
 0x1ca   : > { %v12611_v19 = vsel %vm2074_vm13, 1, %v17435_v39  ;;  %v12620_v8 = vadd.s32 184, %v10465_v10  ;;  %v12623_v59 = vsel %vm2075_vm6, 1, %v17435_v39  ;;  %v1531_v56 = vadd.s32 %v1530_v50, %v12518_v24  ;;  %vm2607_vm10 = vmand %vm2063_vm12, %vm2351_vm0 }
 0x1cb   : > { %vm2065_vm8 = vcmp.eq.s32.totalorder %v1866_v48, %v10502_v32  ;;  %vm2066_vm1 = vcmp.eq.s32.totalorder %v1866_v48, %v10505_v33  ;;  %v2871_v29 = vsel %vm2615_vm9, 1, %v17435_v39  ;;  %vm2067_vm15 = vcmp.eq.s32.totalorder %v1866_v48, %v10508_v34 }
 0x1cc   : > { %17473 = vst [vmem:[#allocation9_spill] sm:$0xff] %v12620_v8  ;;  %v2864_v42 = vsel %vm2064_vm2, 1, %v17435_v39  ;;  %v2179_v37 = vadd.s32 256, %v12620_v8  ;;  %v1381_v62 = vsel %vm1125_vm7, 1, %v17435_v39  ;;  %v3122_v3 = vadd.s32 %v3121_v38, %v12525_v4 }
 0x1cd   : > { %v3159_v24 = vadd.s32 %v3158_v11, %v12530_v49  ;;  %v12638_v20 = vadd.s32 176, %v10465_v10  ;;  %v2865_v0 = vsel %vm2065_vm8, 1, %v17435_v39  ;;  %v2866_v14 = vsel %vm2066_vm1, 1, %v17435_v39 }
 0x1ce   : > { %v3085_v2 = vadd.s32 %v3084_v41, %v12555_v55  ;;  %vm893_vm5 = vcmp.lt.s32.totalorder %v12620_v8, %v12386_v1  ;;  %v2863_v50 = vsel %vm2607_vm10, 1, %v17435_v39  ;;  %v3196_v4 = vadd.s32 %v3195_v9, %v12535_v58  ;;  %v12682_v9 = vpop.permute.xlu1 %1886 }
 0x1cf   : > { %17474 = vst [vmem:[#allocation10_spill] sm:$0xff] %v12638_v20  ;;  %v3233_v49 = vadd.s32 %v3232_v13, %v12544_v25  ;;  %v2178_v6 = vadd.s32 256, %v12638_v20  ;;  %vm653_vm3 = vcmp.eq.s32.totalorder %v17475_v57, %v10485_v26  ;;  %v1532_v63 = vadd.s32 %v1531_v56, %v1381_v62  ;;  %vm1149_vm6 = vmand %vm637_vm11, %vm893_vm5  ;;  %v12672_v25 = vpop.permute.xlu0 %1877  ;;  %v17480_v57 = vld [vmem:[#allocation14_spill] sm:$0xff] }
 0x1d0   : > { %v2867_v38 = vsel %vm2067_vm15, 1, %v17435_v39  ;;  %vm2087_vm13 = vcmp.eq.s32.totalorder %v12591_v35, %v10491_v28  ;;  %vm2375_vm4 = vcmp.lt.s32.totalorder %v2179_v37, %v12397_v43  ;;  %v3123_v55 = vadd.s32 %v3122_v3, %v2864_v42 }
 0x1d1   : > { %v3160_v11 = vadd.s32 %v3159_v24, %v2865_v0  ;;  %vm2088_vm9 = vcmp.eq.s32.totalorder %v12591_v35, %v10499_v31  ;;  %vm885_vm12 = vcmp.lt.s32.totalorder %v12638_v20, %v12386_v1  ;;  %v3086_v58 = vadd.s32 %v3085_v2, %v2863_v50  ;;  %vm2631_vm8 = vmand %vm2087_vm13, %vm2375_vm4 }
 0x1d2   : > { %vm2089_vm2 = vcmp.eq.s32.totalorder %v12591_v35, %v10502_v32  ;;  %vm2090_vm0 = vcmp.eq.s32.totalorder %v12591_v35, %v10505_v33  ;;  %vm2091_vm7 = vcmp.eq.s32.totalorder %v12591_v35, %v10508_v34  ;;  %vm645_vm11 = vcmp.eq.s32.totalorder %v17476_v54, %v10485_v26  ;;  %vm1141_vm10 = vmand %vm629_vm14, %vm885_vm12 }
 0x1d3   : > { %v3197_v48 = vadd.s32 %v3196_v4, %v2866_v14  ;;  %v3234_v41 = vadd.s32 %v3233_v49, %v2867_v38  ;;  %vm2079_vm1 = vcmp.eq.s32.totalorder %v12632_v30, %v10491_v28  ;;  %vm2367_vm15 = vcmp.lt.s32.totalorder %v2178_v6, %v12397_v43  ;;  %v12739_v49 = vpop.permute.xlu0 %1883 }
 0x1d4   : > { %v1405_v13 = vsel %vm1149_vm6, 1, %v17435_v39  ;;  %v12686_v56 = vsel %vm2088_vm9, 1, %v17435_v39  ;;  %vm2080_vm5 = vcmp.eq.s32.totalorder %v12632_v30, %v10499_v31  ;;  %v12697_v42 = vadd.s32 200, %v10465_v10  ;;  %vm2623_vm6 = vmand %vm2079_vm1, %vm2367_vm15 }
 0x1d5   : > { %v2889_v37 = vsel %vm2089_vm2, 1, %v17435_v39  ;;  %v12707_v62 = vsel %vm2090_vm0, 1, %v17435_v39  ;;  %v12713_v51 = vsel %vm2091_vm7, 1, %v17435_v39  ;;  %v1533_v3 = vadd.s32 %v1532_v63, %v1389_v47 }
 0x1d6   : > { %17477 = vst [vmem:[#allocation11_spill] sm:$0xff] %v12697_v42  ;;  %v12716_v24 = vsel %vm2631_vm8, 1, %v17435_v39  ;;  %vm2081_vm14 = vcmp.eq.s32.totalorder %v12632_v30, %v10502_v32  ;;  %vm2082_vm13 = vcmp.eq.s32.totalorder %v12632_v30, %v10505_v33  ;;  %vm2083_vm4 = vcmp.eq.s32.totalorder %v12632_v30, %v10508_v34 }
 0x1d7   : > { %v1397_v35 = vsel %vm1141_vm10, 1, %v17435_v39  ;;  %v2880_v47 = vsel %vm2080_vm5, 1, %v17435_v39  ;;  %v3087_v0 = vadd.s32 %v3086_v58, %v2871_v29  ;;  %v12732_v14 = vadd.s32 192, %v10465_v10  ;;  %v12745_v58 = vpop.permute.xlu1 %1892 }
 0x1d8   : > { %v3124_v2 = vadd.s32 %v3123_v55, %v12601_v53  ;;  %v3161_v50 = vadd.s32 %v3160_v11, %v12608_v36  ;;  %vm909_vm9 = vcmp.lt.s32.totalorder %v12697_v42, %v12386_v1  ;;  %v2181_v4 = vadd.s32 256, %v12697_v42 }
 0x1d9   : > { %17478 = vst [vmem:[#allocation12_spill] sm:$0xff] %v12732_v14  ;;  %v2879_v6 = vsel %vm2623_vm6, 1, %v17435_v39  ;;  %v2881_v63 = vsel %vm2081_vm14, 1, %v17435_v39  ;;  %v3198_v29 = vadd.s32 %v3197_v48, %v12611_v19  ;;  %v3235_v38 = vadd.s32 %v3234_v41, %v12623_v59  ;;  %v17479_v19 = vld [vmem:[#allocation13_spill] sm:$0xff]  ;;  %vm1165_vm0 = vmand %vm653_vm3, %vm909_vm9 }
 0x1da   : > { %v1534_v53 = vadd.s32 %v1533_v3, %v1397_v35  ;;  %v2882_v36 = vsel %vm2082_vm13, 1, %v17435_v39  ;;  %v2883_v55 = vsel %vm2083_vm4, 1, %v17435_v39  ;;  %vm2103_vm12 = vcmp.eq.s32.totalorder %v12640_v46, %v10491_v28 }
 0x1db   : > { %vm669_vm2 = vcmp.eq.s32.totalorder %v17479_v19, %v10485_v26  ;;  %vm2104_vm7 = vcmp.eq.s32.totalorder %v12640_v46, %v10499_v31  ;;  %vm2105_vm8 = vcmp.eq.s32.totalorder %v12640_v46, %v10502_v32  ;;  %vm901_vm1 = vcmp.lt.s32.totalorder %v12732_v14, %v12386_v1 }
 0x1dc   : > { %v2180_v59 = vadd.s32 256, %v12732_v14  ;;  %v3088_v30 = vadd.s32 %v3087_v0, %v2879_v6  ;;  %v3125_v11 = vadd.s32 %v3124_v2, %v2880_v47  ;;  %v3162_v48 = vadd.s32 %v3161_v50, %v2881_v63  ;;  %vm1157_vm14 = vmand %vm645_vm11, %vm901_vm1  ;;  %v12788_v0 = vpop.permute.xlu0 %1889  ;;  %v12801_v2 = vpop.permute.xlu1 %1898 }
 0x1dd   : > { %vm2391_vm15 = vcmp.lt.s32.totalorder %v2181_v4, %v12397_v43  ;;  %v3199_v41 = vadd.s32 %v3198_v29, %v2882_v36  ;;  %v3236_v3 = vadd.s32 %v3235_v38, %v2883_v55  ;;  %vm2106_vm3 = vcmp.eq.s32.totalorder %v12640_v46, %v10505_v33 }
 0x1de   : > { %vm2107_vm10 = vcmp.eq.s32.totalorder %v12640_v46, %v10508_v34  ;;  %vm661_vm5 = vcmp.eq.s32.totalorder %v17480_v57, %v10485_v26  ;;  %v1421_v35 = vsel %vm1165_vm0, 1, %v17435_v39  ;;  %v12778_v12 = vsel %vm2104_vm7, 1, %v17435_v39  ;;  %vm2647_vm4 = vmand %vm2103_vm12, %vm2391_vm15 }
 0x1df   : > { %v12781_v47 = vsel %vm2105_vm8, 1, %v17435_v39  ;;  %vm2095_vm13 = vcmp.eq.s32.totalorder %v12672_v25, %v10491_v28  ;;  %vm2096_vm6 = vcmp.eq.s32.totalorder %v12672_v25, %v10499_v31  ;;  %vm2097_vm9 = vcmp.eq.s32.totalorder %v12672_v25, %v10502_v32 }
 0x1e0   : > { %vm2383_vm0 = vcmp.lt.s32.totalorder %v2180_v59, %v12397_v43  ;;  %v12799_v54 = vadd.s32 216, %v10465_v10  ;;  %v12804_v50 = vsel %vm2106_vm3, 1, %v17435_v39  ;;  %v1535_v4 = vadd.s32 %v1534_v53, %v1405_v13  ;;  %v12839_v15 = vpop.permute.xlu0 %1895  ;;  %v12843_v8 = vpop.permute.xlu1 %3296 }
 0x1e1   : > { %vm2098_vm11 = vcmp.eq.s32.totalorder %v12672_v25, %v10505_v33  ;;  %vm2099_vm12 = vcmp.eq.s32.totalorder %v12672_v25, %v10508_v34  ;;  %v1413_v6 = vsel %vm1157_vm14, 1, %v17435_v39  ;;  %v3126_v63 = vadd.s32 %v3125_v11, %v12686_v56  ;;  %vm2639_vm7 = vmand %vm2095_vm13, %vm2383_vm0 }
 0x1e2   : > { %17481 = vst [vmem:[#allocation13_spill] sm:$0xff] %v12799_v54  ;;  %v3163_v29 = vadd.s32 %v3162_v48, %v2889_v37  ;;  %v12813_v38 = vadd.s32 208, %v10465_v10  ;;  %v2903_v36 = vsel %vm2647_vm4, 1, %v17435_v39  ;;  %v2907_v13 = vsel %vm2107_vm10, 1, %v17435_v39 }
 0x1e3   : > { %v2896_v56 = vsel %vm2096_vm6, 1, %v17435_v39  ;;  %v2897_v37 = vsel %vm2097_vm9, 1, %v17435_v39  ;;  %v2898_v53 = vsel %vm2098_vm11, 1, %v17435_v39  ;;  %v2899_v55 = vsel %vm2099_vm12, 1, %v17435_v39 }
 0x1e4   : > { %17482 = vst [vmem:[#allocation14_spill] sm:$0xff] %v12813_v38  ;;  %vm925_vm8 = vcmp.lt.s32.totalorder %v12799_v54, %v12386_v1  ;;  %v2182_v46 = vadd.s32 256, %v12813_v38  ;;  %v1536_v59 = vadd.s32 %v1535_v4, %v1413_v6  ;;  %v3089_v11 = vadd.s32 %v3088_v30, %v12716_v24 }
 0x1e5   : > { %v3200_v48 = vadd.s32 %v3199_v41, %v12707_v62  ;;  %v3237_v23 = vadd.s32 %v3236_v3, %v12713_v51  ;;  %v2895_v25 = vsel %vm2639_vm7, 1, %v17435_v39  ;;  %v3127_v14 = vadd.s32 %v3126_v63, %v2896_v56  ;;  %vm1181_vm1 = vmand %vm669_vm2, %vm925_vm8  ;;  %v17483_v62 = vld [vmem:[#allocation16_spill] sm:$0xff]  ;;  %v17484_v51 = vld [vmem:[#allocation15_spill] sm:$0xff]  ;;  %v12906_v56 = vpop.permute.xlu1 %3302 }
 0x1e6   : > { %v3164_v42 = vadd.s32 %v3163_v29, %v2897_v37  ;;  %v2183_v20 = vadd.s32 256, %v12799_v54  ;;  %vm2119_vm15 = vcmp.eq.s32.totalorder %v12682_v9, %v10491_v28  ;;  %vm2120_vm3 = vcmp.eq.s32.totalorder %v12682_v9, %v10499_v31  ;;  %v12896_v29 = vpop.permute.xlu0 %3293 }
 0x1e7   : > { %vm2121_vm10 = vcmp.eq.s32.totalorder %v12682_v9, %v10502_v32  ;;  %vm917_vm14 = vcmp.lt.s32.totalorder %v12813_v38, %v12386_v1  ;;  %vm685_vm13 = vcmp.eq.s32.totalorder %v17483_v62, %v10485_v26  ;;  %vm2122_vm4 = vcmp.eq.s32.totalorder %v12682_v9, %v10505_v33 }
 0x1e8   : > { %vm2123_vm2 = vcmp.eq.s32.totalorder %v12682_v9, %v10508_v34  ;;  %vm2111_vm6 = vcmp.eq.s32.totalorder %v12739_v49, %v10491_v28  ;;  %vm2399_vm9 = vcmp.lt.s32.totalorder %v2182_v46, %v12397_v43  ;;  %vm677_vm0 = vcmp.eq.s32.totalorder %v17484_v51, %v10485_v26  ;;  %vm1173_vm7 = vmand %vm661_vm5, %vm917_vm14 }
 0x1e9   : > { %v3090_v24 = vadd.s32 %v3089_v11, %v2895_v25  ;;  %v3201_v19 = vadd.s32 %v3200_v48, %v2898_v53  ;;  %v3238_v30 = vadd.s32 %v3237_v23, %v2899_v55  ;;  %vm2112_vm11 = vcmp.eq.s32.totalorder %v12739_v49, %v10499_v31  ;;  %v12944_v54 = vpop.permute.xlu1 %3308 }
 0x1ea   : > { %v1437_v41 = vsel %vm1181_vm1, 1, %v17435_v39  ;;  %vm2407_vm12 = vcmp.lt.s32.totalorder %v2183_v20, %v12397_v43  ;;  %v12872_v3 = vsel %vm2120_vm3, 1, %v17435_v39  ;;  %v12875_v4 = vsel %vm2121_vm10, 1, %v17435_v39  ;;  %vm2655_vm1 = vmand %vm2111_vm6, %vm2399_vm9 }
 0x1eb   : > { %v12884_v23 = vsel %vm2122_vm4, 1, %v17435_v39  ;;  %v12887_v6 = vsel %vm2123_vm2, 1, %v17435_v39  ;;  %v1537_v63 = vadd.s32 %v1536_v59, %v1421_v35  ;;  %vm2113_vm8 = vcmp.eq.s32.totalorder %v12739_v49, %v10502_v32  ;;  %vm2663_vm10 = vmand %vm2119_vm15, %vm2407_vm12 }
 0x1ec   : > { %vm2114_vm5 = vcmp.eq.s32.totalorder %v12739_v49, %v10505_v33  ;;  %vm2115_vm3 = vcmp.eq.s32.totalorder %v12739_v49, %v10508_v34  ;;  %v2912_v57 = vsel %vm2112_vm11, 1, %v17435_v39  ;;  %v12904_v35 = vadd.s32 232, %v10465_v10  ;;  %v17488_v49 = vld [vmem:[#allocation17_spill] sm:$0xff] }
 0x1ed   : > { %v1429_v37 = vsel %vm1173_vm7, 1, %v17435_v39  ;;  %v3091_v53 = vadd.s32 %v3090_v24, %v2903_v36  ;;  %v3128_v55 = vadd.s32 %v3127_v14, %v12778_v12  ;;  %v12916_v46 = vadd.s32 224, %v10465_v10  ;;  %v17487_v14 = vld [vmem:[#allocation18_spill] sm:$0xff] }
 0x1ee   : > { %17485 = vst [vmem:[#allocation16_spill] sm:$0xff] %v12904_v35  ;;  %v2911_v59 = vsel %vm2655_vm1, 1, %v17435_v39  ;;  %v3165_v11 = vadd.s32 %v3164_v42, %v12781_v47  ;;  %v3202_v48 = vadd.s32 %v3201_v19, %v12804_v50  ;;  %v3239_v25 = vadd.s32 %v3238_v30, %v2907_v13  ;;  %v12940_v19 = vpop.permute.xlu0 %3299 }
 0x1ef   : > { %17486 = vst [vmem:[#allocation15_spill] sm:$0xff] %v12916_v46  ;;  %v2913_v20 = vsel %vm2113_vm8, 1, %v17435_v39  ;;  %v2914_v9 = vsel %vm2114_vm5, 1, %v17435_v39  ;;  %v2915_v36 = vsel %vm2115_vm3, 1, %v17435_v39  ;;  %v2184_v12 = vadd.s32 256, %v12916_v46 }
 0x1f0   : > { %vm701_vm15 = vcmp.eq.s32.totalorder %v17487_v14, %v10485_v26  ;;  %v2919_v24 = vsel %vm2663_vm10, 1, %v17435_v39  ;;  %v1538_v42 = vadd.s32 %v1537_v63, %v1429_v37  ;;  %vm941_vm14 = vcmp.lt.s32.totalorder %v12904_v35, %v12386_v1 }
 0x1f1   : > { %vm2135_vm4 = vcmp.eq.s32.totalorder %v12745_v58, %v10491_v28  ;;  %v3092_v47 = vadd.s32 %v3091_v53, %v2911_v59  ;;  %v3129_v50 = vadd.s32 %v3128_v55, %v2912_v57  ;;  %v2185_v13 = vadd.s32 256, %v12904_v35  ;;  %vm1197_vm11 = vmand %vm685_vm13, %vm941_vm14 }
 0x1f2   : > { %vm933_vm6 = vcmp.lt.s32.totalorder %v12916_v46, %v12386_v1  ;;  %v3166_v30 = vadd.s32 %v3165_v11, %v2913_v20  ;;  %v3203_v63 = vadd.s32 %v3202_v48, %v2914_v9  ;;  %v3240_v37 = vadd.s32 %v3239_v25, %v2915_v36  ;;  %v12991_v20 = vpop.permute.xlu0 %3305 }
 0x1f3   : > { %vm2136_vm9 = vcmp.eq.s32.totalorder %v12745_v58, %v10499_v31  ;;  %vm2137_vm12 = vcmp.eq.s32.totalorder %v12745_v58, %v10502_v32  ;;  %vm2127_vm7 = vcmp.eq.s32.totalorder %v12788_v0, %v10491_v28  ;;  %vm2128_vm8 = vcmp.eq.s32.totalorder %v12788_v0, %v10499_v31  ;;  %vm1189_vm13 = vmand %vm677_vm0, %vm933_vm6 }
 0x1f4   : > { %vm2415_vm1 = vcmp.lt.s32.totalorder %v2184_v12, %v12397_v43  ;;  %vm2138_vm5 = vcmp.eq.s32.totalorder %v12745_v58, %v10505_v33  ;;  %vm2139_vm3 = vcmp.eq.s32.totalorder %v12745_v58, %v10508_v34  ;;  %vm2129_vm10 = vcmp.eq.s32.totalorder %v12788_v0, %v10502_v32 }
 0x1f5   : > { %v12966_v62 = vadd.s32 248, %v10465_v10  ;;  %vm2423_vm14 = vcmp.lt.s32.totalorder %v2185_v13, %v12397_v43  ;;  %v12970_v57 = vsel %vm2136_vm9, 1, %v17435_v39  ;;  %vm2130_vm2 = vcmp.eq.s32.totalorder %v12788_v0, %v10505_v33  ;;  %vm2671_vm6 = vmand %vm2127_vm7, %vm2415_vm1 }
 0x1f6   : > { %v12975_v53 = vadd.s32 240, %v10465_v10  ;;  %v1453_v51 = vsel %vm1197_vm11, 1, %v17435_v39  ;;  %v1539_v55 = vadd.s32 %v1538_v42, %v1437_v41  ;;  %vm2131_vm0 = vcmp.eq.s32.totalorder %v12788_v0, %v10508_v34  ;;  %vm2679_vm9 = vmand %vm2135_vm4, %vm2423_vm14  ;;  %v13000_v42 = vpop.permute.xlu1 %3314  ;;  %v13038_v58 = vpop.permute.xlu0 %3311 }
 0x1f7   : > { %17489 = vst [vmem:[#allocation18_spill] sm:$0xff] %v12966_v62  ;;  %v2928_v59 = vsel %vm2128_vm8, 1, %v17435_v39  ;;  %v1445_v11 = vsel %vm1189_vm13, 1, %v17435_v39  ;;  %v2929_v48 = vsel %vm2129_vm10, 1, %v17435_v39  ;;  %v3130_v25 = vadd.s32 %v3129_v50, %v12872_v3 }
 0x1f8   : > { %17490 = vst [vmem:[#allocation17_spill] sm:$0xff] %v12975_v53  ;;  %v3167_v41 = vadd.s32 %v3166_v30, %v12875_v4  ;;  %v2930_v9 = vsel %vm2130_vm2, 1, %v17435_v39  ;;  %v3093_v36 = vadd.s32 %v3092_v47, %v2919_v24  ;;  %v3204_v12 = vadd.s32 %v3203_v63, %v12884_v23 }
 0x1f9   : > { %vm957_vm11 = vcmp.lt.s32.totalorder %v12966_v62, %v12386_v1  ;;  %v2927_v3 = vsel %vm2671_vm6, 1, %v17435_v39  ;;  %v3241_v4 = vadd.s32 %v3240_v37, %v12887_v6  ;;  %v2187_v50 = vadd.s32 256, %v12966_v62 }
 0x1fa   : > { %vm949_vm7 = vcmp.lt.s32.totalorder %v12975_v53, %v12386_v1  ;;  %v2937_v24 = vsel %vm2137_vm12, 1, %v17435_v39  ;;  %v2938_v23 = vsel %vm2138_vm5, 1, %v17435_v39  ;;  %v1540_v47 = vadd.s32 %v1539_v55, %v1445_v11  ;;  %vm1213_vm4 = vmand %vm701_vm15, %vm957_vm11 }
 0x1fb   : > { %v2931_v6 = vsel %vm2131_vm0, 1, %v17435_v39  ;;  %v2935_v13 = vsel %vm2679_vm9, 1, %v17435_v39  ;;  %v2939_v1 = vsel %vm2139_vm3, 1, %v17435_v39  ;;  %v3131_v30 = vadd.s32 %v3130_v25, %v2928_v59 }
 0x1fc   : > { %v3168_v63 = vadd.s32 %v3167_v41, %v2929_v48  ;;  %v3094_v37 = vadd.s32 %v3093_v36, %v2927_v3  ;;  %v3205_v55 = vadd.s32 %v3204_v12, %v2930_v9  ;;  %vm2151_vm2 = vcmp.eq.s32.totalorder %v12801_v2, %v10491_v28  ;;  %v17492_v48 = vld [vmem:[#allocation23_spill] sm:$0xff]  ;;  %v17493_v41 = vld [vmem:[#allocation24_spill] sm:$0xff] }
 0x1fd   : > { %vm17491_vm12 = vcmp.eq.s32.totalorder %v17488_v49, %v10485_v26  ;;  %v2186_v0 = vadd.s32 256, %v12975_v53  ;;  %v3242_v11 = vadd.s32 %v3241_v4, %v2931_v6  ;;  %vm2152_vm1 = vcmp.eq.s32.totalorder %v12801_v2, %v10499_v31  ;;  %v13045_v49 = vpop.permute.xlu1 %3320  ;;  %v17494_v36 = vld [vmem:[#allocation7_spill] sm:$0xff] }
 0x1fe   : > { %vm1205_vm8 = vmand %vm17491_vm12, %vm949_vm7  ;;  %vm2153_vm5 = vcmp.eq.s32.totalorder %v12801_v2, %v10502_v32  ;;  %vm2439_vm15 = vcmp.lt.s32.totalorder %v2187_v50, %v12397_v43  ;;  %v1469_v14 = vsel %vm1213_vm4, 1, %v17435_v39  ;;  %vm2154_vm3 = vcmp.eq.s32.totalorder %v12801_v2, %v10505_v33 }
 0x1ff   : > { %vm2155_vm13 = vcmp.eq.s32.totalorder %v12801_v2, %v10508_v34  ;;  %v1541_v26 = vadd.s32 %v1540_v47, %v1453_v51  ;;  %v1461_v59 = vsel %vm1205_vm8, 1, %v17435_v39  ;;  %v1622_v25 = vrot.slane %v17492_v48, 1  ;;  %vm2695_vm14 = vmand %vm2151_vm2, %vm2439_vm15 }
 0x200   : > { %v1659_v9 = vrot.slane %v17493_v41, 1  ;;  %vm2143_vm10 = vcmp.eq.s32.totalorder %v12839_v15, %v10491_v28  ;;  %vm2144_vm0 = vcmp.eq.s32.totalorder %v12839_v15, %v10499_v31  ;;  %vm2431_vm6 = vcmp.lt.s32.totalorder %v2186_v0, %v12397_v43 }
 0x201   : > { %v13059_v51 = vadd.s32 512, %v10473_v17  ;;  %v3645_v12 = vadd.s32 512, %v17494_v36  ;;  %v13066_v3 = vsel %vm2152_vm1, 1, %v17435_v39  ;;  %v13072_v4 = vsel %vm2153_vm5, 1, %v17435_v39  ;;  %vm2687_vm4 = vmand %vm2143_vm10, %vm2431_vm6 }
 0x202   : > { %v13075_v50 = vsel %vm2154_vm3, 1, %v17435_v39  ;;  %vm2145_vm9 = vcmp.eq.s32.totalorder %v12839_v15, %v10502_v32  ;;  %v13083_v43 = vsel %vm2155_vm13, 1, %v17435_v39  ;;  %v1542_v47 = vadd.s32 %v1541_v26, %v1461_v59  ;;  %v13105_v26 = vpop.permute.xlu0 %3317 }
 0x203   : > { %vm2146_vm11 = vcmp.eq.s32.totalorder %v12839_v15, %v10505_v33  ;;  %vm2147_vm7 = vcmp.eq.s32.totalorder %v12839_v15, %v10508_v34  ;;  %v13090_v6 = vsel %vm2695_vm14, 1, %v17435_v39  ;;  %v13093_v0 = vadd.s32 %v1622_v25, %v17492_v48  ;;  %v13112_v48 = vpop.permute.xlu1 %3326 }
 0x204   : > { %v13096_v62 = vadd.s32 %v1659_v9, %v17493_v41  ;;  %v2944_v2 = vsel %vm2144_vm0, 1, %v17435_v39  ;;  %v2945_v59 = vsel %vm2145_vm9, 1, %v17435_v39  ;;  %v3132_v53 = vadd.s32 %v3131_v30, %v12970_v57 }
 0x205   : > { %17495 = vst [vmem:[#allocation23_spill] sm:$0xff] %v13093_v0  ;;  %vm3400_vm2 = vcmp.eq.s32.totalorder %v12843_v8, %v10499_v31  ;;  %vm3688_vm12 = vcmp.lt.s32.totalorder %v3645_v12, %v13059_v51  ;;  %v2946_v28 = vsel %vm2146_vm11, 1, %v17435_v39  ;;  %v13116_v25 = vsel %vm2147_vm7, 1, %v17435_v39 }
 0x206   : > { %17496 = vst [vmem:[#allocation24_spill] sm:$0xff] %v13096_v62  ;;  %v3169_v15 = vadd.s32 %v3168_v63, %v2937_v24  ;;  %v3206_v41 = vadd.s32 %v3205_v55, %v2938_v23  ;;  %v13118_v9 = vadd.s32 %v1542_v47, %v1469_v14  ;;  %v2943_v62 = vsel %vm2687_vm4, 1, %v17435_v39  ;;  %vm3944_vm5 = vmand %vm3400_vm2, %vm3688_vm12 }
 0x207   : > { %v3095_v0 = vadd.s32 %v3094_v37, %v2935_v13  ;;  %v13121_v57 = vadd.s32 %v3242_v11, %v2939_v1  ;;  %vm3401_vm8 = vcmp.eq.s32.totalorder %v12843_v8, %v10502_v32  ;;  %vm3402_vm1 = vcmp.eq.s32.totalorder %v12843_v8, %v10505_v33  ;;  %v13160_v11 = vpop.permute.xlu1 %3332 }
 0x208   : > { %vm3392_vm15 = vcmp.eq.s32.totalorder %v12896_v29, %v10499_v31  ;;  %v3644_v24 = vadd.s32 512, %v10465_v10  ;;  %v13130_v23 = vadd.s32 %v3132_v53, %v2944_v2  ;;  %vm3403_vm3 = vcmp.eq.s32.totalorder %v12843_v8, %v10508_v34  ;;  %v13145_v53 = vpop.permute.xlu0 %3323  ;;  %v17497_v2 = vld [vmem:[#allocation22_spill] sm:$0xff] }
 0x209   : > { %vm3393_vm13 = vcmp.eq.s32.totalorder %v12896_v29, %v10502_v32  ;;  %vm3394_vm10 = vcmp.eq.s32.totalorder %v12896_v29, %v10505_v33  ;;  %v13138_v13 = vadd.s32 %v3169_v15, %v2945_v59  ;;  %v13140_v1 = vadd.s32 %v3206_v41, %v2946_v28 }
 0x20a   : > { %vm3395_vm14 = vcmp.eq.s32.totalorder %v12896_v29, %v10508_v34  ;;  %vm3680_vm0 = vcmp.lt.s32.totalorder %v3644_v24, %v13059_v51  ;;  %v4200_v63 = vsel %vm3944_vm5, 1, %v17435_v39  ;;  %v4201_v37 = vsel %vm3401_vm8, 1, %v17435_v39  ;;  %v17498_v29 = vld [vmem:[#allocation25_spill] sm:$0xff] }
 0x20b   : > { %v4202_v55 = vsel %vm3402_vm1, 1, %v17435_v39  ;;  %vm3936_vm6 = vmand %vm3392_vm15, %vm3680_vm0  ;;  %v4203_v14 = vsel %vm3403_vm3, 1, %v17435_v39  ;;  %v4193_v12 = vsel %vm3393_vm13, 1, %v17435_v39  ;;  %v4194_v47 = vsel %vm3394_vm10, 1, %v17435_v39 }
 0x20c   : > { %v3647_v59 = vadd.s32 512, %v17497_v2  ;;  %v4195_v28 = vsel %vm3395_vm14, 1, %v17435_v39  ;;  %vm3416_vm9 = vcmp.eq.s32.totalorder %v12906_v56, %v10499_v31  ;;  %vm3417_vm11 = vcmp.eq.s32.totalorder %v12906_v56, %v10502_v32  ;;  %v13190_v35 = vpop.permute.xlu0 %3329 }
 0x20d   : > { %vm3418_vm7 = vcmp.eq.s32.totalorder %v12906_v56, %v10505_v33  ;;  %v4192_v8 = vsel %vm3936_vm6, 1, %v17435_v39  ;;  %vm3419_vm4 = vcmp.eq.s32.totalorder %v12906_v56, %v10508_v34  ;;  %vm3409_vm12 = vcmp.eq.s32.totalorder %v12940_v19, %v10502_v32 }
 0x20e   : > { %vm3704_vm2 = vcmp.lt.s32.totalorder %v3647_v59, %v13059_v51  ;;  %vm3408_vm8 = vcmp.eq.s32.totalorder %v12940_v19, %v10499_v31  ;;  %vm3410_vm1 = vcmp.eq.s32.totalorder %v12940_v19, %v10505_v33  ;;  %vm3411_vm5 = vcmp.eq.s32.totalorder %v12940_v19, %v10508_v34 }
 0x20f   : > { %v3646_v15 = vadd.s32 512, %v17498_v29  ;;  %v13186_v41 = vadd.s32 %v3095_v0, %v2943_v62  ;;  %v4629_v24 = vadd.s32 %v4201_v37, %v4193_v12  ;;  %v4209_v30 = vsel %vm3409_vm12, 1, %v17435_v39  ;;  %vm3960_vm15 = vmand %vm3416_vm9, %vm3704_vm2  ;;  %v13197_v29 = vpop.permute.xlu1 %3338 }
 0x210   : > { %v4210_v59 = vsel %vm3410_vm1, 1, %v17435_v39  ;;  %v4666_v46 = vadd.s32 %v4202_v55, %v4194_v47  ;;  %v4703_v38 = vadd.s32 %v4203_v14, %v4195_v28  ;;  %v4211_v2 = vsel %vm3411_vm5, 1, %v17435_v39  ;;  %v17499_v47 = vld [vmem:[#allocation26_spill] sm:$0xff] }
 0x211   : > { %vm3696_vm3 = vcmp.lt.s32.totalorder %v3646_v15, %v13059_v51  ;;  %v4592_v62 = vadd.s32 %v4200_v63, %v4192_v8  ;;  %v4217_v0 = vsel %vm3417_vm11, 1, %v17435_v39  ;;  %v4218_v37 = vsel %vm3418_vm7, 1, %v17435_v39 }
 0x212   : > { %v4219_v55 = vsel %vm3419_vm4, 1, %v17435_v39  ;;  %vm3952_vm13 = vmand %vm3408_vm8, %vm3696_vm3  ;;  %v4630_v14 = vadd.s32 %v4629_v24, %v4209_v30  ;;  %v4667_v12 = vadd.s32 %v4666_v46, %v4210_v59  ;;  %v3649_v28 = vadd.s32 512, %v17499_v47  ;;  %v13233_v46 = vpop.permute.xlu0 %3335 }
 0x213   : > { %v4208_v63 = vsel %vm3952_vm13, 1, %v17435_v39  ;;  %v4216_v8 = vsel %vm3960_vm15, 1, %v17435_v39  ;;  %v4704_v10 = vadd.s32 %v4703_v38, %v4211_v2  ;;  %vm3432_vm10 = vcmp.eq.s32.totalorder %v12944_v54, %v10499_v31  ;;  %v17500_v38 = vld [vmem:[#allocation27_spill] sm:$0xff]  ;;  %v13237_v59 = vpop.permute.xlu1 %3344 }
 0x214   : > { %v4593_v15 = vadd.s32 %v4592_v62, %v4208_v63  ;;  %vm3433_vm14 = vcmp.eq.s32.totalorder %v12944_v54, %v10502_v32  ;;  %vm3425_vm0 = vcmp.eq.s32.totalorder %v12991_v20, %v10502_v32  ;;  %vm3426_vm6 = vcmp.eq.s32.totalorder %v12991_v20, %v10505_v33 }
 0x215   : > { %vm3427_vm9 = vcmp.eq.s32.totalorder %v12991_v20, %v10508_v34  ;;  %vm3434_vm11 = vcmp.eq.s32.totalorder %v12944_v54, %v10505_v33  ;;  %vm3720_vm7 = vcmp.lt.s32.totalorder %v3649_v28, %v13059_v51  ;;  %vm3424_vm4 = vcmp.eq.s32.totalorder %v12991_v20, %v10499_v31 }
 0x216   : > { %v3648_v56 = vadd.s32 512, %v17500_v38  ;;  %v4225_v19 = vsel %vm3425_vm0, 1, %v17435_v39  ;;  %v4226_v30 = vsel %vm3426_vm6, 1, %v17435_v39  ;;  %v4631_v2 = vadd.s32 %v4630_v14, %v4217_v0  ;;  %vm3976_vm1 = vmand %vm3432_vm10, %vm3720_vm7 }
 0x217   : > { %v4668_v24 = vadd.s32 %v4667_v12, %v4218_v37  ;;  %v4227_v62 = vsel %vm3427_vm9, 1, %v17435_v39  ;;  %v4594_v63 = vadd.s32 %v4593_v15, %v4216_v8  ;;  %v4705_v47 = vadd.s32 %v4704_v10, %v4219_v55  ;;  %v13292_v12 = vpop.permute.xlu1 %3350 }
 0x218   : > { %vm3712_vm2 = vcmp.lt.s32.totalorder %v3648_v56, %v13059_v51  ;;  %v13243_v36 = vadd.s32 %v13130_v23, %v13066_v3  ;;  %v13247_v38 = vadd.s32 %v13138_v13, %v13072_v4  ;;  %v13251_v0 = vadd.s32 %v13140_v1, %v13075_v50 }
 0x219   : > { %v3244_v37 = vadd.s32 %v13121_v57, %v13116_v25  ;;  %vm3968_vm12 = vmand %vm3424_vm4, %vm3712_vm2  ;;  %vm3435_vm8 = vcmp.eq.s32.totalorder %v12944_v54, %v10508_v34  ;;  %v4632_v3 = vadd.s32 %v4631_v2, %v4225_v19  ;;  %v4669_v23 = vadd.s32 %v4668_v24, %v4226_v30  ;;  %v17502_v54 = vld [vmem:[#allocation28_spill] sm:$0xff] }
 0x21a   : > { %v4224_v10 = vsel %vm3968_vm12, 1, %v17435_v39  ;;  %v17501_v4 = vrot.slane %v13118_v9, 4  ;;  %v4233_v20 = vsel %vm3433_vm14, 1, %v17435_v39  ;;  %v4234_v50 = vsel %vm3434_vm11, 1, %v17435_v39 }
 0x21b   : > { %v4706_v25 = vadd.s32 %v4705_v47, %v4227_v62  ;;  %v4595_v57 = vadd.s32 %v4594_v63, %v4224_v10  ;;  %vm3441_vm5 = vcmp.eq.s32.totalorder %v13038_v58, %v10502_v32  ;;  %vm3442_vm15 = vcmp.eq.s32.totalorder %v13038_v58, %v10505_v33 }
 0x21c   : > { %v13264_v13 = vadd.s32 %v17501_v4, %v13118_v9  ;;  %vm3443_vm3 = vcmp.eq.s32.totalorder %v13038_v58, %v10508_v34  ;;  %v13285_v9 = vpop.permute.xlu0 %3341  ;;  %v4235_v1 = vsel %vm3435_vm8, 1, %v17435_v39  ;;  %v3651_v55 = vadd.s32 512, %v11870_v44  ;;  %v13324_v4 = vpop.permute.xlu1 %3356 }
 0x21d   : > { %vm3440_vm13 = vcmp.eq.s32.totalorder %v13038_v58, %v10499_v31  ;;  %v3650_v14 = vadd.s32 512, %v17502_v54  ;;  %v4232_v47 = vsel %vm3976_vm1, 1, %v17435_v39  ;;  %v4242_v28 = vsel %vm3442_vm15, 1, %v17435_v39 }
 0x21e   : > { %v4633_v8 = vadd.s32 %v4632_v3, %v4233_v20  ;;  %v4670_v15 = vadd.s32 %v4669_v23, %v4234_v50  ;;  %v4241_v56 = vsel %vm3441_vm5, 1, %v17435_v39  ;;  %v4243_v19 = vsel %vm3443_vm3, 1, %v17435_v39  ;;  %v17503_v20 = vld [vmem:[#allocation29_spill] sm:$0xff] }
 0x21f   : > { %vm3728_vm10 = vcmp.lt.s32.totalorder %v3650_v14, %v13059_v51  ;;  %v4707_v30 = vadd.s32 %v4706_v25, %v4235_v1  ;;  %v13301_v58 = vadd.s32 %v13186_v41, %v13090_v6  ;;  %vm3449_vm14 = vcmp.eq.s32.totalorder %v13000_v42, %v10502_v32 }
 0x220   : > { %vm3450_vm0 = vcmp.eq.s32.totalorder %v13000_v42, %v10505_v33  ;;  %vm3984_vm6 = vmand %vm3440_vm13, %vm3728_vm10  ;;  %v4596_v2 = vadd.s32 %v4595_v57, %v4232_v47  ;;  %vm3448_vm9 = vcmp.eq.s32.totalorder %v13000_v42, %v10499_v31  ;;  %vm3736_vm11 = vcmp.lt.s32.totalorder %v3651_v55, %v13059_v51  ;;  %v13316_v10 = vpop.permute.xlu0 %3347 }
 0x221   : > { %v4240_v24 = vsel %vm3984_vm6, 1, %v17435_v39  ;;  %v4671_v62 = vadd.s32 %v4670_v15, %v4242_v28  ;;  %v13312_v63 = vadd.s32 %v3244_v37, %v13083_v43  ;;  %vm3451_vm7 = vcmp.eq.s32.totalorder %v13000_v42, %v10508_v34  ;;  %vm3992_vm12 = vmand %vm3448_vm9, %vm3736_vm11 }
 0x222   : > { %v4634_v6 = vadd.s32 %v4633_v8, %v4241_v56  ;;  %v4708_v41 = vadd.s32 %v4707_v30, %v4243_v19  ;;  %v4249_v3 = vsel %vm3449_vm14, 1, %v17435_v39  ;;  %v4250_v23 = vsel %vm3450_vm0, 1, %v17435_v39 }
 0x223   : > { %vm3458_vm4 = vcmp.eq.s32.totalorder %v13105_v26, %v10505_v33  ;;  %vm3459_vm2 = vcmp.eq.s32.totalorder %v13105_v26, %v10508_v34  ;;  %v4597_v43 = vadd.s32 %v4596_v2, %v4240_v24  ;;  %vm3456_vm8 = vcmp.eq.s32.totalorder %v13105_v26, %v10499_v31  ;;  %v13351_v2 = vpop.permute.xlu1 %3362 }
 0x224   : > { %vm3457_vm1 = vcmp.eq.s32.totalorder %v13105_v26, %v10502_v32  ;;  %v3652_v42 = vadd.s32 512, %v11998_v5  ;;  %v4251_v37 = vsel %vm3451_vm7, 1, %v17435_v39  ;;  %v3653_v50 = vadd.s32 512, %v17503_v20  ;;  %v13347_v15 = vpop.permute.xlu0 %3353 }
 0x225   : > { %v4258_v25 = vsel %vm3458_vm4, 1, %v17435_v39  ;;  %v4672_v57 = vadd.s32 %v4671_v62, %v4250_v23  ;;  %v4259_v1 = vsel %vm3459_vm2, 1, %v17435_v39  ;;  %v4635_v55 = vadd.s32 %v4634_v6, %v4249_v3 }
 0x226   : > { %vm3744_vm5 = vcmp.lt.s32.totalorder %v3652_v42, %v13059_v51  ;;  %v4709_v14 = vadd.s32 %v4708_v41, %v4251_v37  ;;  %v3135_v47 = vrot.slane %v13243_v36, 4  ;;  %v4248_v28 = vsel %vm3992_vm12, 1, %v17435_v39 }
 0x227   : > { %vm3465_vm15 = vcmp.eq.s32.totalorder %v13045_v49, %v10502_v32  ;;  %vm4000_vm3 = vmand %vm3456_vm8, %vm3744_vm5  ;;  %v4257_v26 = vsel %vm3457_vm1, 1, %v17435_v39  ;;  %vm3464_vm13 = vcmp.eq.s32.totalorder %v13045_v49, %v10499_v31  ;;  %vm3466_vm10 = vcmp.eq.s32.totalorder %v13045_v49, %v10505_v33 }
 0x228   : > { %vm3467_vm14 = vcmp.eq.s32.totalorder %v13045_v49, %v10508_v34  ;;  %v4598_v8 = vadd.s32 %v4597_v43, %v4248_v28  ;;  %vm3752_vm0 = vcmp.lt.s32.totalorder %v3653_v50, %v13059_v51  ;;  %v4256_v56 = vsel %vm4000_vm3, 1, %v17435_v39  ;;  %v13385_v49 = vpop.permute.xlu0 %3359 }
 0x229   : > { %v4673_v19 = vadd.s32 %v4672_v57, %v4258_v25  ;;  %v4710_v30 = vadd.s32 %v4709_v14, %v4259_v1  ;;  %v3172_v24 = vrot.slane %v13247_v38, 4  ;;  %v3209_v62 = vrot.slane %v13251_v0, 4  ;;  %vm13366_vm7 = vmand %vm3464_vm13, %vm3752_vm0 }
 0x22a   : > { %v4265_v6 = vsel %vm3465_vm15, 1, %v17435_v39  ;;  %v4636_v41 = vadd.s32 %v4635_v55, %v4257_v26  ;;  %vm3472_vm6 = vcmp.eq.s32.totalorder %v13145_v53, %v10499_v31  ;;  %vm3474_vm9 = vcmp.eq.s32.totalorder %v13145_v53, %v10505_v33 }
 0x22b   : > { %vm3475_vm11 = vcmp.eq.s32.totalorder %v13145_v53, %v10508_v34  ;;  %v3654_v3 = vadd.s32 512, %v12052_v61  ;;  %v4266_v43 = vsel %vm3466_vm10, 1, %v17435_v39  ;;  %v4267_v42 = vsel %vm3467_vm14, 1, %v17435_v39 }
 0x22c   : > { %v4599_v37 = vadd.s32 %v4598_v8, %v4256_v56  ;;  %vm3473_vm4 = vcmp.eq.s32.totalorder %v13145_v53, %v10502_v32  ;;  %v3655_v50 = vadd.s32 512, %v12046_v45  ;;  %v4674_v25 = vadd.s32 %v4673_v19, %v4266_v43  ;;  %v13393_v19 = vpop.permute.xlu1 %3368 }
 0x22d   : > { %vm3760_vm2 = vcmp.lt.s32.totalorder %v3654_v3, %v13059_v51  ;;  %v4711_v57 = vadd.s32 %v4710_v30, %v4267_v42  ;;  %v1546_v1 = vrot.slane %v13264_v13, 2  ;;  %v4274_v55 = vsel %vm3474_vm9, 1, %v17435_v39  ;;  %17506 = vst [vmem:[#allocation28_spill] sm:$0xff] %v13393_v19  ;;  %v17507_v42 = vld [vmem:[#allocation30_spill] sm:$0xff] }
 0x22e   : > { %vm4016_vm12 = vmand %vm3472_vm6, %vm3760_vm2  ;;  %v4275_v14 = vsel %vm3475_vm11, 1, %v17435_v39  ;;  %v4637_v28 = vadd.s32 %v4636_v41, %v4265_v6  ;;  %v3098_v26 = vrot.slane %v13301_v58, 4  ;;  %v4264_v8 = vsel %vm13366_vm7, 1, %v17435_v39 }
 0x22f   : > { %v4273_v56 = vsel %vm3473_vm4, 1, %v17435_v39  ;;  %vm3480_vm8 = vcmp.eq.s32.totalorder %v13112_v48, %v10499_v31  ;;  %vm3482_vm1 = vcmp.eq.s32.totalorder %v13112_v48, %v10505_v33  ;;  %vm3483_vm5 = vcmp.eq.s32.totalorder %v13112_v48, %v10508_v34 }
 0x230   : > { %v4600_v30 = vadd.s32 %v4599_v37, %v4264_v8  ;;  %vm3768_vm15 = vcmp.lt.s32.totalorder %v3655_v50, %v13059_v51  ;;  %v4272_v6 = vsel %vm4016_vm12, 1, %v17435_v39  ;;  %v4675_v41 = vadd.s32 %v4674_v25, %v4274_v55  ;;  %v13430_v50 = vpop.permute.xlu0 %3365 }
 0x231   : > { %v4712_v3 = vadd.s32 %v4711_v57, %v4275_v14  ;;  %v13404_v23 = vadd.s32 %v3135_v47, %v13243_v36  ;;  %vm3481_vm3 = vcmp.eq.s32.totalorder %v13112_v48, %v10502_v32  ;;  %v4638_v43 = vadd.s32 %v4637_v28, %v4273_v56  ;;  %vm13419_vm0 = vmand %vm3480_vm8, %vm3768_vm15  ;;  %v13436_v28 = vpop.permute.xlu1 %4784 }
 0x232   : > { %v3656_v53 = vadd.s32 512, %v17507_v42  ;;  %v4282_v19 = vsel %vm3482_vm1, 1, %v17435_v39  ;;  %vm3488_vm13 = vcmp.eq.s32.totalorder %v13190_v35, %v10499_v31  ;;  %vm3490_vm10 = vcmp.eq.s32.totalorder %v13190_v35, %v10505_v33 }
 0x233   : > { %vm3491_vm14 = vcmp.eq.s32.totalorder %v13190_v35, %v10508_v34  ;;  %v4283_v47 = vsel %vm3483_vm5, 1, %v17435_v39  ;;  %v4601_v37 = vadd.s32 %v4600_v30, %v4272_v6  ;;  %vm3489_vm6 = vcmp.eq.s32.totalorder %v13190_v35, %v10502_v32 }
 0x234   : > { %vm3776_vm9 = vcmp.lt.s32.totalorder %v3656_v53, %v13059_v51  ;;  %v13433_v25 = vadd.s32 %v3172_v24, %v13247_v38  ;;  %v4281_v57 = vsel %vm3481_vm3, 1, %v17435_v39  ;;  %v4676_v55 = vadd.s32 %v4675_v41, %v4282_v19 }
 0x235   : > { %v4713_v14 = vadd.s32 %v4712_v3, %v4283_v47  ;;  %v3657_v48 = vadd.s32 512, %v12151_v60  ;;  %vm4032_vm11 = vmand %vm3488_vm13, %vm3776_vm9  ;;  %v4290_v53 = vsel %vm3490_vm10, 1, %v17435_v39  ;;  %v4291_v38 = vsel %vm3491_vm14, 1, %v17435_v39  ;;  %v13474_v3 = vpop.permute.xlu0 %4781 }
 0x236   : > { %v4639_v24 = vadd.s32 %v4638_v43, %v4281_v57  ;;  %v13448_v8 = vadd.s32 %v1546_v1, %v13264_v13  ;;  %v13451_v56 = vadd.s32 %v3209_v62, %v13251_v0  ;;  %v4280_v19 = vsel %vm13419_vm0, 1, %v17435_v39 }
 0x237   : > { %v4289_v30 = vsel %vm3489_vm6, 1, %v17435_v39  ;;  %vm3497_vm7 = vcmp.eq.s32.totalorder %v13160_v11, %v10502_v32  ;;  %vm3498_vm4 = vcmp.eq.s32.totalorder %v13160_v11, %v10505_v33  ;;  %vm3499_vm2 = vcmp.eq.s32.totalorder %v13160_v11, %v10508_v34 }
 0x238   : > { %17510 = vst [vmem:[#allocation29_spill] sm:$0xff] %v13448_v8  ;;  %v4602_v0 = vadd.s32 %v4601_v37, %v4280_v19  ;;  %v4288_v13 = vsel %vm4032_vm11, 1, %v17435_v39  ;;  %v4677_v62 = vadd.s32 %v4676_v55, %v4290_v53  ;;  %v4714_v1 = vadd.s32 %v4713_v14, %v4291_v38 }
 0x239   : > { %v3658_v6 = vadd.s32 512, %v12234_v18  ;;  %v13469_v41 = vadd.s32 %v3098_v26, %v13301_v58  ;;  %vm3496_vm12 = vcmp.eq.s32.totalorder %v13160_v11, %v10499_v31  ;;  %vm3784_vm8 = vcmp.lt.s32.totalorder %v3657_v48, %v13059_v51  ;;  %v13482_v58 = vpop.permute.xlu1 %4790 }
 0x23a   : > { %v4640_v35 = vadd.s32 %v4639_v24, %v4289_v30  ;;  %v4297_v43 = vsel %vm3497_vm7, 1, %v17435_v39  ;;  %v4298_v36 = vsel %vm3498_vm4, 1, %v17435_v39  ;;  %vm3506_vm1 = vcmp.eq.s32.totalorder %v13233_v46, %v10505_v33  ;;  %vm4040_vm3 = vmand %vm3496_vm12, %vm3784_vm8 }
 0x23b   : > { %vm3507_vm5 = vcmp.eq.s32.totalorder %v13233_v46, %v10508_v34  ;;  %v4299_v26 = vsel %vm3499_vm2, 1, %v17435_v39  ;;  %v4603_v47 = vadd.s32 %v4602_v0, %v4288_v13  ;;  %v3659_v37 = vadd.s32 512, %v12199_v21 }
 0x23c   : > { %vm3505_vm15 = vcmp.eq.s32.totalorder %v13233_v46, %v10502_v32  ;;  %vm3504_vm13 = vcmp.eq.s32.totalorder %v13233_v46, %v10499_v31  ;;  %vm3792_vm10 = vcmp.lt.s32.totalorder %v3658_v6, %v13059_v51  ;;  %v4678_v57 = vadd.s32 %v4677_v62, %v4298_v36 }
 0x23d   : > { %v4715_v55 = vadd.s32 %v4714_v1, %v4299_v26  ;;  %v4306_v14 = vsel %vm3506_vm1, 1, %v17435_v39  ;;  %v4307_v48 = vsel %vm3507_vm5, 1, %v17435_v39  ;;  %v4641_v11 = vadd.s32 %v4640_v35, %v4297_v43  ;;  %vm4048_vm9 = vmand %vm3504_vm13, %vm3792_vm10  ;;  %v13524_v35 = vpop.permute.xlu1 %4796 }
 0x23e   : > { %v13497_v53 = vadd.s32 640, %v10473_v17  ;;  %v3137_v38 = vrot.slane %v13404_v23, 2  ;;  %v17511_v24 = vrot.slane %v13312_v63, 4  ;;  %v4305_v30 = vsel %vm3505_vm15, 1, %v17435_v39 }
 0x23f   : > { %v3660_v0 = vadd.s32 512, %v12402_v22  ;;  %v4296_v13 = vsel %vm4040_vm3, 1, %v17435_v39  ;;  %vm3512_vm14 = vcmp.eq.s32.totalorder %v13197_v29, %v10499_v31  ;;  %vm3513_vm0 = vcmp.eq.s32.totalorder %v13197_v29, %v10502_v32 }
 0x240   : > { %v13503_v19 = vadd.s32 %v17511_v24, %v13312_v63  ;;  %vm3514_vm6 = vcmp.eq.s32.totalorder %v13197_v29, %v10505_v33  ;;  %v13519_v63 = vpop.permute.xlu0 %4787  ;;  %vm3515_vm11 = vcmp.eq.s32.totalorder %v13197_v29, %v10508_v34  ;;  %vm3800_vm7 = vcmp.lt.s32.totalorder %v3659_v37, %v13059_v51 }
 0x241   : > { %v4679_v62 = vadd.s32 %v4678_v57, %v4306_v14  ;;  %v4716_v1 = vadd.s32 %v4715_v55, %v4307_v48  ;;  %v4604_v43 = vadd.s32 %v4603_v47, %v4296_v13  ;;  %v4642_v36 = vadd.s32 %v4641_v11, %v4305_v30  ;;  %vm13540_vm1 = vmand %vm3512_vm14, %vm3800_vm7  ;;  %v13570_v8 = vpop.permute.xlu1 %4802 }
 0x242   : > { %vm3521_vm4 = vcmp.eq.s32.totalorder %v13285_v9, %v10502_v32  ;;  %vm3809_vm2 = vcmp.lt.s32.totalorder %v3660_v0, %v13497_v53  ;;  %v4304_v46 = vsel %vm4048_vm9, 1, %v17435_v39  ;;  %v3661_v6 = vadd.s32 512, %v12389_v27 }
 0x243   : > { %vm3522_vm12 = vcmp.eq.s32.totalorder %v13285_v9, %v10505_v33  ;;  %vm3523_vm8 = vcmp.eq.s32.totalorder %v13285_v9, %v10508_v34  ;;  %v3174_v51 = vrot.slane %v13433_v25, 2  ;;  %v3211_v26 = vrot.slane %v13451_v56, 2  ;;  %vm13557_vm5 = vmand %vm3521_vm4, %vm3809_vm2 }
 0x244   : > { %v4314_v37 = vsel %vm3514_vm6, 1, %v17435_v39  ;;  %v4315_v9 = vsel %vm3515_vm11, 1, %v17435_v39  ;;  %v4313_v31 = vsel %vm3513_vm0, 1, %v17435_v39  ;;  %v4605_v11 = vadd.s32 %v4604_v43, %v4304_v46  ;;  %v13564_v13 = vpop.permute.xlu0 %4793 }
 0x245   : > { %v4680_v14 = vadd.s32 %v4679_v62, %v4314_v37  ;;  %v4717_v48 = vadd.s32 %v4716_v1, %v4315_v9  ;;  %v4322_v24 = vsel %vm3522_vm12, 1, %v17435_v39  ;;  %v4323_v30 = vsel %vm3523_vm8, 1, %v17435_v39 }
 0x246   : > { %v3662_v0 = vadd.s32 512, %v12485_v40  ;;  %v3100_v57 = vrot.slane %v13469_v41, 2  ;;  %vm3529_vm15 = vcmp.eq.s32.totalorder %v13237_v59, %v10502_v32  ;;  %vm3817_vm3 = vcmp.lt.s32.totalorder %v3661_v6, %v13497_v53 }
 0x247   : > { %v4643_v29 = vadd.s32 %v4642_v36, %v4313_v31  ;;  %v13573_v62 = vadd.s32 %v3137_v38, %v13404_v23  ;;  %v3248_v1 = vrot.slane %v13503_v19, 2  ;;  %v4312_v43 = vsel %vm13540_vm1, 1, %v17435_v39  ;;  %vm4073_vm14 = vmand %vm3529_vm15, %vm3817_vm3 }
 0x248   : > { %v4321_v46 = vsel %vm13557_vm5, 1, %v17435_v39  ;;  %vm3530_vm13 = vcmp.eq.s32.totalorder %v13237_v59, %v10505_v33  ;;  %vm3531_vm10 = vcmp.eq.s32.totalorder %v13237_v59, %v10508_v34  ;;  %v4681_v36 = vadd.s32 %v4680_v14, %v4322_v24  ;;  %v13605_v31 = vpop.permute.xlu0 %4799 }
 0x249   : > { %v4718_v6 = vadd.s32 %v4717_v48, %v4323_v30  ;;  %v13587_v23 = vadd.s32 %v3174_v51, %v13433_v25  ;;  %v4606_v38 = vadd.s32 %v4605_v11, %v4312_v43  ;;  %vm3537_vm0 = vcmp.eq.s32.totalorder %v13316_v10, %v10502_v32 }
 0x24a   : > { %vm3825_vm6 = vcmp.lt.s32.totalorder %v3662_v0, %v13497_v53  ;;  %v13593_v47 = vadd.s32 %v3211_v26, %v13451_v56  ;;  %v4644_v37 = vadd.s32 %v4643_v29, %v4321_v46  ;;  %vm3538_vm9 = vcmp.eq.s32.totalorder %v13316_v10, %v10505_v33 }
 0x24b   : > { %17516 = vst [vmem:[#allocation30_spill] sm:$0xff] %v13587_v23  ;;  %vm3539_vm11 = vcmp.eq.s32.totalorder %v13316_v10, %v10508_v34  ;;  %v13600_v59 = vadd.s32 %v3100_v57, %v13469_v41  ;;  %v4330_v25 = vsel %vm3530_vm13, 1, %v17435_v39  ;;  %v4331_v51 = vsel %vm3531_vm10, 1, %v17435_v39  ;;  %vm4081_vm7 = vmand %vm3537_vm0, %vm3825_vm6  ;;  %v13611_v10 = vpop.permute.xlu1 %4808 }
 0x24c   : > { %17517 = vst [vmem:[#allocation33_spill] sm:$0xff] %v13593_v47  ;;  %v3663_v9 = vadd.s32 512, %v12448_v52  ;;  %v13608_v56 = vadd.s32 %v3248_v1, %v13503_v19  ;;  %v4329_v26 = vsel %vm4073_vm14, 1, %v17435_v39  ;;  %v4682_v55 = vadd.s32 %v4681_v36, %v4330_v25 }
 0x24d   : > { %v4719_v14 = vadd.s32 %v4718_v6, %v4331_v51  ;;  %v4623_v41 = vrot.slane %v4606_v38, 4  ;;  %v4338_v57 = vsel %vm3538_vm9, 1, %v17435_v39  ;;  %v4339_v48 = vsel %vm3539_vm11, 1, %v17435_v39  ;;  %v13635_v6 = vpop.permute.xlu0 %4805 }
 0x24e   : > { %17518 = vst [vmem:[#allocation34_spill] sm:$0xff] %v13608_v56  ;;  %v3664_v11 = vadd.s32 512, %v12567_v16  ;;  %v3139_v24 = vrot.slane %v13573_v62, 1  ;;  %v4645_v19 = vadd.s32 %v4644_v37, %v4329_v26  ;;  %v3665_v0 = vadd.s32 512, %v12549_v7 }
 0x24f   : > { %vm3545_vm4 = vcmp.eq.s32.totalorder %v13292_v12, %v10502_v32  ;;  %vm3833_vm2 = vcmp.lt.s32.totalorder %v3663_v9, %v13497_v53  ;;  %v4337_v1 = vsel %vm4081_vm7, 1, %v17435_v39  ;;  %vm3546_vm12 = vcmp.eq.s32.totalorder %v13292_v12, %v10505_v33 }
 0x250   : > { %vm3547_vm8 = vcmp.eq.s32.totalorder %v13292_v12, %v10508_v34  ;;  %v4683_v43 = vadd.s32 %v4682_v55, %v4338_v57  ;;  %v4720_v46 = vadd.s32 %v4719_v14, %v4339_v48  ;;  %v13628_v36 = vadd.s32 %v4623_v41, %v4606_v38  ;;  %vm13637_vm3 = vmand %vm3545_vm4, %vm3833_vm2  ;;  %v13646_v38 = vpop.permute.xlu1 %4814  ;;  %v17523_v55 = vld [vmem:[#allocation7_spill] sm:$0xff] }
 0x251   : > { %vm3561_vm1 = vcmp.eq.s32.totalorder %v13324_v4, %v10502_v32  ;;  %vm3553_vm5 = vcmp.eq.s32.totalorder %v13347_v15, %v10502_v32  ;;  %vm3841_vm15 = vcmp.lt.s32.totalorder %v3664_v11, %v13497_v53  ;;  %v4646_v25 = vadd.s32 %v4645_v19, %v4337_v1  ;;  %v13696_v1 = vpop.permute.xlu0 %4811 }
 0x252   : > { %vm3849_vm13 = vcmp.lt.s32.totalorder %v3665_v0, %v13497_v53  ;;  %vm3554_vm10 = vcmp.eq.s32.totalorder %v13347_v15, %v10505_v33  ;;  %vm3555_vm14 = vcmp.eq.s32.totalorder %v13347_v15, %v10508_v34  ;;  %v4346_v9 = vsel %vm3546_vm12, 1, %v17435_v39  ;;  %vm4097_vm9 = vmand %vm3553_vm5, %vm3841_vm15 }
 0x253   : > { %v4347_v26 = vsel %vm3547_vm8, 1, %v17435_v39  ;;  %vm3562_vm0 = vcmp.eq.s32.totalorder %v13324_v4, %v10505_v33  ;;  %vm3563_vm6 = vcmp.eq.s32.totalorder %v13324_v4, %v10508_v34  ;;  %v4684_v14 = vadd.s32 %v4683_v43, %v4346_v9  ;;  %vm4105_vm11 = vmand %vm3561_vm1, %vm3849_vm13 }
 0x254   : > { %v4721_v41 = vadd.s32 %v4720_v46, %v4347_v26  ;;  %v13666_v57 = vadd.s32 %v3139_v24, %v13573_v62  ;;  %v4345_v12 = vsel %vm13637_vm3, 1, %v17435_v39  ;;  %v4354_v48 = vsel %vm3554_vm10, 1, %v17435_v39  ;;  %v13708_v26 = vpop.permute.xlu1 %4820 }
 0x255   : > { %v4355_v11 = vsel %vm3555_vm14, 1, %v17435_v39  ;;  %v13683_v24 = vsel %vm3562_vm0, 1, %v17435_v39  ;;  %v4647_v19 = vadd.s32 %v4646_v25, %v4345_v12  ;;  %vm3578_vm7 = vcmp.eq.s32.totalorder %v13351_v2, %v10505_v33  ;;  %v17522_v25 = vld [vmem:[#allocation9_spill] sm:$0xff]  ;;  %v13745_v51 = vpop.permute.xlu0 %4817 }
 0x256   : > { %17521 = vst [vmem:[#allocation35_spill] sm:$0xff] %v13666_v57  ;;  %v13688_v0 = vsel %vm3563_vm6, 1, %v17435_v39  ;;  %v4353_v4 = vsel %vm4097_vm9, 1, %v17435_v39  ;;  %vm3579_vm4 = vcmp.eq.s32.totalorder %v13351_v2, %v10508_v34  ;;  %v13694_v15 = vadd.s32 768, %v10473_v17 }
 0x257   : > { %v13699_v43 = vsel %vm4105_vm11, 1, %v17435_v39  ;;  %v13701_v46 = vadd.s32 %v4684_v14, %v4354_v48  ;;  %v13703_v37 = vadd.s32 %v4721_v41, %v4355_v11  ;;  %v13706_v9 = vadd.s32 512, %v17522_v25  ;;  %v17524_v11 = vld [vmem:[#allocation6_spill] sm:$0xff] }
 0x258   : > { %v13711_v12 = vsel %vm3578_vm7, 1, %v17435_v39  ;;  %vm4890_vm2 = vcmp.eq.s32.totalorder %v13436_v28, %v10505_v33  ;;  %vm4891_vm12 = vcmp.eq.s32.totalorder %v13436_v28, %v10508_v34  ;;  %v5133_v29 = vadd.s32 768, %v17523_v55  ;;  %v17525_v55 = vld [vmem:[#allocation10_spill] sm:$0xff]  ;;  %v13753_v56 = vpop.permute.xlu1 %4826 }
 0x259   : > { %v13718_v14 = vadd.s32 %v4647_v19, %v4353_v4  ;;  %v13721_v41 = vsel %vm3579_vm4, 1, %v17435_v39  ;;  %v5691_v48 = vsel %vm4891_vm12, 1, %v17435_v39  ;;  %vm4883_vm8 = vcmp.eq.s32.totalorder %v13474_v3, %v10508_v34 }
 0x25a   : > { %vm5178_vm1 = vcmp.lt.s32.totalorder %v5133_v29, %v13694_v15  ;;  %vm4882_vm5 = vcmp.eq.s32.totalorder %v13474_v3, %v10505_v33  ;;  %v5132_v30 = vadd.s32 768, %v17524_v11  ;;  %v5683_v28 = vsel %vm4883_vm8, 1, %v17435_v39  ;;  %v17526_v29 = vld [vmem:[#allocation22_spill] sm:$0xff] }
 0x25b   : > { %vm3570_vm15 = vcmp.eq.s32.totalorder %v13385_v49, %v10505_v33  ;;  %vm3571_vm3 = vcmp.eq.s32.totalorder %v13385_v49, %v10508_v34  ;;  %v13736_v19 = vadd.s32 512, %v17525_v55  ;;  %vm5434_vm13 = vmand %vm4890_vm2, %vm5178_vm1  ;;  %vm4907_vm10 = vcmp.eq.s32.totalorder %v13482_v58, %v10508_v34 }
 0x25c   : > { %v5135_v4 = vadd.s32 768, %v17526_v29  ;;  %v5690_v3 = vsel %vm5434_vm13, 1, %v17435_v39  ;;  %vm5170_vm14 = vcmp.lt.s32.totalorder %v5132_v30, %v13694_v15  ;;  %v6191_v62 = vadd.s32 %v5691_v48, %v5683_v28  ;;  %v17527_v29 = vld [vmem:[#allocation25_spill] sm:$0xff]  ;;  %v17528_v28 = vld [vmem:[#allocation26_spill] sm:$0xff] }
 0x25d   : > { %vm4906_vm0 = vcmp.eq.s32.totalorder %v13482_v58, %v10505_v33  ;;  %vm5426_vm6 = vmand %vm4882_vm5, %vm5170_vm14  ;;  %vm4898_vm11 = vcmp.eq.s32.totalorder %v13519_v63, %v10505_v33  ;;  %vm4899_vm7 = vcmp.eq.s32.totalorder %v13519_v63, %v10508_v34  ;;  %v5134_v11 = vadd.s32 768, %v17527_v29 }
 0x25e   : > { %vm5194_vm9 = vcmp.lt.s32.totalorder %v5135_v4, %v13694_v15  ;;  %v5682_v30 = vsel %vm5426_vm6, 1, %v17435_v39  ;;  %v5707_v48 = vsel %vm4907_vm10, 1, %v17435_v39  ;;  %v5699_v58 = vsel %vm4899_vm7, 1, %v17435_v39  ;;  %v13802_v4 = vpop.permute.xlu1 %4832 }
 0x25f   : > { %v5137_v57 = vadd.s32 768, %v17528_v28  ;;  %vm13759_vm4 = vmand %vm4906_vm0, %vm5194_vm9  ;;  %vm5186_vm2 = vcmp.lt.s32.totalorder %v5134_v11, %v13694_v15  ;;  %v6192_v47 = vadd.s32 %v6191_v62, %v5699_v58  ;;  %vm4922_vm12 = vcmp.eq.s32.totalorder %v13524_v35, %v10505_v33  ;;  %v17531_v11 = vld [vmem:[#allocation27_spill] sm:$0xff] }
 0x260   : > { %vm4923_vm8 = vcmp.eq.s32.totalorder %v13524_v35, %v10508_v34  ;;  %vm3577_vm1 = vcmp.eq.s32.totalorder %v13351_v2, %v10502_v32  ;;  %vm3865_vm5 = vcmp.lt.s32.totalorder %v13706_v9, %v13497_v53  ;;  %v6154_v29 = vadd.s32 %v5690_v3, %v5682_v30  ;;  %vm5442_vm13 = vmand %vm4898_vm11, %vm5186_vm2  ;;  %v13789_v30 = vpop.permute.xlu0 %4823 }
 0x261   : > { %vm5210_vm10 = vcmp.lt.s32.totalorder %v5137_v57, %v13694_v15  ;;  %vm4914_vm14 = vcmp.eq.s32.totalorder %v13564_v13, %v10505_v33  ;;  %vm4915_vm0 = vcmp.eq.s32.totalorder %v13564_v13, %v10508_v34  ;;  %v5698_v62 = vsel %vm5442_vm13, 1, %v17435_v39 }
 0x262   : > { %v5136_v58 = vadd.s32 768, %v17531_v11  ;;  %v5715_v28 = vsel %vm4915_vm0, 1, %v17435_v39  ;;  %v6193_v23 = vadd.s32 %v6192_v47, %v5707_v48  ;;  %v5706_v63 = vsel %vm13759_vm4, 1, %v17435_v39  ;;  %vm13794_vm9 = vmand %vm4922_vm12, %vm5210_vm10 }
 0x263   : > { %v6155_v3 = vadd.s32 %v6154_v29, %v5698_v62  ;;  %v5723_v57 = vsel %vm4923_vm8, 1, %v17435_v39  ;;  %vm4938_vm6 = vcmp.eq.s32.totalorder %v13570_v8, %v10505_v33  ;;  %vm4939_vm7 = vcmp.eq.s32.totalorder %v13570_v8, %v10508_v34 }
 0x264   : > { %vm5202_vm11 = vcmp.lt.s32.totalorder %v5136_v58, %v13694_v15  ;;  %v6194_v47 = vadd.s32 %v6193_v23, %v5715_v28  ;;  %v5139_v48 = vadd.s32 768, %v11870_v44  ;;  %vm4930_vm2 = vcmp.eq.s32.totalorder %v13605_v31, %v10505_v33 }
 0x265   : > { %vm5458_vm4 = vmand %vm4914_vm14, %vm5202_vm11  ;;  %v6156_v29 = vadd.s32 %v6155_v3, %v5706_v63  ;;  %vm4931_vm12 = vcmp.eq.s32.totalorder %v13605_v31, %v10508_v34  ;;  %v5138_v35 = vadd.s32 768, %v17502_v54  ;;  %v4370_v13 = vsel %vm3570_vm15, 1, %v17435_v39 }
 0x266   : > { %v5714_v23 = vsel %vm5458_vm4, 1, %v17435_v39  ;;  %vm5226_vm8 = vcmp.lt.s32.totalorder %v5139_v48, %v13694_v15  ;;  %v5731_v44 = vsel %vm4931_vm12, 1, %v17435_v39  ;;  %v6195_v62 = vadd.s32 %v6194_v47, %v5723_v57  ;;  %v13844_v48 = vpop.permute.xlu0 %4829 }
 0x267   : > { %v4371_v58 = vsel %vm3571_vm3, 1, %v17435_v39  ;;  %v6157_v31 = vadd.s32 %v6156_v29, %v5714_v23  ;;  %vm5218_vm13 = vcmp.lt.s32.totalorder %v5138_v35, %v13694_v15  ;;  %v5722_v54 = vsel %vm13794_vm9, 1, %v17435_v39  ;;  %vm13835_vm15 = vmand %vm4938_vm6, %vm5226_vm8  ;;  %v13850_v35 = vpop.permute.xlu1 %4838 }
 0x268   : > { %v5739_v28 = vsel %vm4939_vm7, 1, %v17435_v39  ;;  %vm5474_vm10 = vmand %vm4930_vm2, %vm5218_vm13  ;;  %v6196_v63 = vadd.s32 %v6195_v62, %v5731_v44  ;;  %v5141_v3 = vadd.s32 768, %v17503_v20  ;;  %vm4955_vm3 = vcmp.eq.s32.totalorder %v13611_v10, %v10508_v34 }
 0x269   : > { %v5730_v47 = vsel %vm5474_vm10, 1, %v17435_v39  ;;  %v6158_v11 = vadd.s32 %v6157_v31, %v5722_v54  ;;  %vm4947_vm14 = vcmp.eq.s32.totalorder %v13635_v6, %v10508_v34  ;;  %vm4946_vm0 = vcmp.eq.s32.totalorder %v13635_v6, %v10505_v33  ;;  %vm4121_vm7 = vmand %vm3577_vm1, %vm3865_vm5 }
 0x26a   : > { %v5140_v20 = vadd.s32 768, %v11998_v5  ;;  %v5747_v8 = vsel %vm4947_vm14, 1, %v17435_v39  ;;  %v6197_v29 = vadd.s32 %v6196_v63, %v5739_v28  ;;  %vm3569_vm6 = vcmp.eq.s32.totalorder %v13385_v49, %v10502_v32  ;;  %v13895_v57 = vpop.permute.xlu0 %4835 }
 0x26b   : > { %v4686_v23 = vadd.s32 %v13701_v46, %v13683_v24  ;;  %v6159_v44 = vadd.s32 %v6158_v11, %v5730_v47  ;;  %vm4954_vm9 = vcmp.eq.s32.totalorder %v13611_v10, %v10505_v33  ;;  %vm5242_vm11 = vcmp.lt.s32.totalorder %v5141_v3, %v13694_v15  ;;  %v13901_v11 = vpop.permute.xlu1 %4844 }
 0x26c   : > { %v5738_v5 = vsel %vm13835_vm15, 1, %v17435_v39  ;;  %v5755_v62 = vsel %vm4955_vm3, 1, %v17435_v39  ;;  %vm5234_vm4 = vcmp.lt.s32.totalorder %v5140_v20, %v13694_v15  ;;  %v6198_v24 = vadd.s32 %v6197_v29, %v5747_v8  ;;  %vm13879_vm8 = vmand %vm4954_vm9, %vm5242_vm11  ;;  %v17538_v8 = vld [vmem:[#allocation28_spill] sm:$0xff] }
 0x26d   : > { %vm5490_vm2 = vmand %vm4946_vm0, %vm5234_vm4  ;;  %v6160_v10 = vadd.s32 %v6159_v44, %v5738_v5  ;;  %vm4971_vm12 = vcmp.eq.s32.totalorder %v13646_v38, %v10508_v34  ;;  %vm4962_vm1 = vcmp.eq.s32.totalorder %v13696_v1, %v10505_v33  ;;  %vm4963_vm5 = vcmp.eq.s32.totalorder %v13696_v1, %v10508_v34 }
 0x26e   : > { %v5746_v46 = vsel %vm5490_vm2, 1, %v17435_v39  ;;  %v5142_v9 = vadd.s32 768, %v12052_v61  ;;  %v5763_v6 = vsel %vm4963_vm5, 1, %v17435_v39  ;;  %v6199_v31 = vadd.s32 %v6198_v24, %v5755_v62  ;;  %v13939_v5 = vpop.permute.xlu0 %4841 }
 0x26f   : > { %v13887_v54 = vsel %vm4121_vm7, 1, %v17435_v39  ;;  %v13891_v28 = vadd.s32 %v13718_v14, %v13699_v43  ;;  %v4723_v63 = vadd.s32 %v13703_v37, %v13688_v0  ;;  %v6161_v3 = vadd.s32 %v6160_v10, %v5746_v46  ;;  %v13955_v2 = vpop.permute.xlu1 %4850 }
 0x270   : > { %vm3857_vm13 = vcmp.lt.s32.totalorder %v13736_v19, %v13497_v53  ;;  %v5143_v61 = vadd.s32 768, %v12046_v45  ;;  %vm5250_vm10 = vcmp.lt.s32.totalorder %v5142_v9, %v13694_v15  ;;  %v6200_v47 = vadd.s32 %v6199_v31, %v5763_v6 }
 0x271   : > { %v13903_v20 = vadd.s32 %v4686_v23, %v4370_v13  ;;  %v5754_v43 = vsel %vm13879_vm8, 1, %v17435_v39  ;;  %v5771_v0 = vsel %vm4971_vm12, 1, %v17435_v39  ;;  %vm5506_vm15 = vmand %vm4962_vm1, %vm5250_vm10  ;;  %vm4979_vm3 = vcmp.eq.s32.totalorder %v13745_v51, %v10508_v34  ;;  %v17539_v23 = vld [vmem:[#allocation11_spill] sm:$0xff] }
 0x272   : > { %vm4987_vm14 = vcmp.eq.s32.totalorder %v13708_v26, %v10508_v34  ;;  %v5144_v45 = vadd.s32 768, %v17507_v42  ;;  %v5779_v37 = vsel %vm4979_vm3, 1, %v17435_v39  ;;  %v6201_v14 = vadd.s32 %v6200_v47, %v5771_v0  ;;  %vm13947_vm12 = vmand %vm3569_vm6, %vm3857_vm13 }
 0x273   : > { %v13921_v13 = vadd.s32 %v4723_v63, %v4371_v58  ;;  %vm3594_vm0 = vcmp.eq.s32.totalorder %v17538_v8, %v10505_v33  ;;  %vm3595_vm9 = vcmp.eq.s32.totalorder %v17538_v8, %v10508_v34  ;;  %v6162_v1 = vadd.s32 %v6161_v3, %v5754_v43  ;;  %v14013_v43 = vpop.permute.xlu0 %4847 }
 0x274   : > { %vm4970_vm11 = vcmp.eq.s32.totalorder %v13646_v38, %v10505_v33  ;;  %vm5258_vm7 = vcmp.lt.s32.totalorder %v5143_v61, %v13694_v15  ;;  %v5762_v29 = vsel %vm5506_vm15, 1, %v17435_v39  ;;  %v6202_v42 = vadd.s32 %v6201_v14, %v5779_v37 }
 0x275   : > { %v13932_v44 = vadd.s32 512, %v17539_v23  ;;  %v5787_v58 = vsel %vm4987_vm14, 1, %v17435_v39  ;;  %vm4978_vm4 = vcmp.eq.s32.totalorder %v13745_v51, %v10505_v33  ;;  %vm4995_vm2 = vcmp.eq.s32.totalorder %v13789_v30, %v10508_v34  ;;  %vm5514_vm6 = vmand %vm4970_vm11, %vm5258_vm7 }
 0x276   : > { %vm5266_vm1 = vcmp.lt.s32.totalorder %v5144_v45, %v13694_v15  ;;  %vm5003_vm5 = vcmp.eq.s32.totalorder %v13753_v56, %v10508_v34  ;;  %v5795_v24 = vsel %vm4995_vm2, 1, %v17435_v39  ;;  %v6203_v10 = vadd.s32 %v6202_v42, %v5787_v58  ;;  %v14025_v45 = vpop.permute.xlu1 %3371 }
 0x277   : > { %vm3593_vm8 = vcmp.eq.s32.totalorder %v17538_v8, %v10502_v32  ;;  %v13963_v49 = vsel %vm3594_vm0, 1, %v17435_v39  ;;  %v6163_v19 = vadd.s32 %v6162_v1, %v5762_v29  ;;  %v13971_v46 = vadd.s32 896, %v10473_v17  ;;  %vm13988_vm10 = vmand %vm4978_vm4, %vm5266_vm1  ;;  %v14069_v62 = vpop.permute.xlu0 %4853 }
 0x278   : > { %v5149_v9 = vadd.s32 768, %v12389_v27  ;;  %v13978_v6 = vsel %vm3595_vm9, 1, %v17435_v39  ;;  %v5145_v31 = vadd.s32 768, %v12151_v60  ;;  %v6204_v63 = vadd.s32 %v6203_v10, %v5795_v24 }
 0x279   : > { %vm5019_vm13 = vcmp.eq.s32.totalorder %v13802_v4, %v10508_v34  ;;  %v5803_v27 = vsel %vm5003_vm5, 1, %v17435_v39  ;;  %vm5011_vm3 = vcmp.eq.s32.totalorder %v13844_v48, %v10508_v34  ;;  %v5148_v60 = vadd.s32 768, %v12402_v22 }
 0x27a   : > { %vm5307_vm15 = vcmp.lt.s32.totalorder %v5149_v9, %v13971_v46  ;;  %v4369_v38 = vsel %vm13947_vm12, 1, %v17435_v39  ;;  %v5770_v51 = vsel %vm5514_vm6, 1, %v17435_v39  ;;  %v5146_v4 = vadd.s32 768, %v12234_v18  ;;  %v14086_v24 = vpop.permute.xlu1 %3374 }
 0x27b   : > { %v6205_v3 = vadd.s32 %v6204_v63, %v5803_v27  ;;  %v6164_v61 = vadd.s32 %v6163_v19, %v5770_v51  ;;  %vm14005_vm14 = vmand %vm5019_vm13, %vm5307_vm15  ;;  %vm5299_vm0 = vcmp.lt.s32.totalorder %v5148_v60, %v13971_v46  ;;  %vm5027_vm9 = vcmp.eq.s32.totalorder %v13895_v57, %v10508_v34  ;;  %v17551_v63 = vld [vmem:[#allocation14_spill] sm:$0xff]  ;;  %v14133_v27 = vpop.permute.xlu0 %4856  ;;  %v17554_v60 = vld [vmem:[#allocation13_spill] sm:$0xff] }
 0x27c   : > { %v5150_v22 = vadd.s32 768, %v12485_v40  ;;  %vm4986_vm11 = vcmp.eq.s32.totalorder %v13708_v26, %v10505_v33  ;;  %vm5274_vm7 = vcmp.lt.s32.totalorder %v5145_v31, %v13694_v15  ;;  %v5778_v18 = vsel %vm13988_vm10, 1, %v17435_v39  ;;  %vm5555_vm4 = vmand %vm5011_vm3, %vm5299_vm0  ;;  %v17546_v40 = vld [vmem:[#allocation12_spill] sm:$0xff] }
 0x27d   : > { %v5151_v0 = vadd.s32 768, %v12448_v52  ;;  %vm3586_vm2 = vcmp.eq.s32.totalorder %v13430_v50, %v10505_v33  ;;  %v3668_v37 = vadd.s32 512, %v17546_v40  ;;  %v5811_v14 = vsel %vm5555_vm4, 1, %v17435_v39  ;;  %vm5530_vm15 = vmand %vm4986_vm11, %vm5274_vm7 }
 0x27e   : > { %vm5315_vm12 = vcmp.lt.s32.totalorder %v5150_v22, %v13971_v46  ;;  %vm4994_vm1 = vcmp.eq.s32.totalorder %v13789_v30, %v10505_v33  ;;  %vm5282_vm5 = vcmp.lt.s32.totalorder %v5146_v4, %v13694_v15  ;;  %v6206_v48 = vadd.s32 %v6205_v3, %v5811_v14 }
 0x27f   : > { %vm5571_vm6 = vmand %vm5027_vm9, %vm5315_vm12  ;;  %v5152_v52 = vadd.s32 768, %v12567_v16  ;;  %vm3881_vm13 = vcmp.lt.s32.totalorder %v13932_v44, %v13497_v53  ;;  %vm3587_vm10 = vcmp.eq.s32.totalorder %v13430_v50, %v10508_v34  ;;  %v6165_v1 = vadd.s32 %v6164_v61, %v5778_v18 }
 0x280   : > { %v5819_v57 = vsel %vm14005_vm14, 1, %v17435_v39  ;;  %vm5035_vm3 = vcmp.eq.s32.totalorder %v13850_v35, %v10508_v34  ;;  %vm5323_vm0 = vcmp.lt.s32.totalorder %v5151_v0, %v13971_v46  ;;  %v5827_v16 = vsel %vm5571_vm6, 1, %v17435_v39  ;;  %vm14065_vm14 = vmand %vm4994_vm1, %vm5282_vm5 }
 0x281   : > { %v6207_v29 = vadd.s32 %v6206_v48, %v5819_v57  ;;  %v4650_v42 = vadd.s32 %v13891_v28, %v4369_v38  ;;  %vm3585_vm9 = vcmp.eq.s32.totalorder %v13430_v50, %v10502_v32  ;;  %vm3873_vm11 = vcmp.lt.s32.totalorder %v3668_v37, %v13497_v53  ;;  %vm14077_vm7 = vmand %vm3593_vm8, %vm3881_vm13  ;;  %v17559_v37 = vld [vmem:[#allocation15_spill] sm:$0xff] }
 0x282   : > { %v5147_v26 = vadd.s32 768, %v12199_v21  ;;  %v5786_v21 = vsel %vm5530_vm15, 1, %v17435_v39  ;;  %v5153_v30 = vadd.s32 768, %v12549_v7  ;;  %vm5043_vm4 = vcmp.eq.s32.totalorder %v13939_v5, %v10508_v34  ;;  %vm5579_vm8 = vmand %vm5035_vm3, %vm5323_vm0 }
 0x283   : > { %vm5331_vm12 = vcmp.lt.s32.totalorder %v5152_v52, %v13971_v46  ;;  %v4386_v8 = vsel %vm3586_vm2, 1, %v17435_v39  ;;  %v4387_v44 = vsel %vm3587_vm10, 1, %v17435_v39  ;;  %v6166_v10 = vadd.s32 %v6165_v1, %v5786_v21  ;;  %vm4129_vm1 = vmand %vm3585_vm9, %vm3873_vm11 }
 0x284   : > { %v6208_v7 = vadd.s32 %v6207_v29, %v5827_v16  ;;  %v4688_v19 = vadd.s32 %v13903_v20, %v13711_v12  ;;  %v4725_v9 = vadd.s32 %v13921_v13, %v13721_v41  ;;  %v5794_v31 = vsel %vm14065_vm14, 1, %v17435_v39  ;;  %vm5587_vm6 = vmand %vm5043_vm4, %vm5331_vm12 }
 0x285   : > { %v3670_v35 = vadd.s32 512, %v17551_v63  ;;  %v4393_v17 = vsel %vm14077_vm7, 1, %v17435_v39  ;;  %vm5002_vm2 = vcmp.eq.s32.totalorder %v13753_v56, %v10505_v33  ;;  %vm5290_vm5 = vcmp.lt.s32.totalorder %v5147_v26, %v13694_v15 }
 0x286   : > { %v5155_v50 = vadd.s32 768, %v17522_v25  ;;  %v5835_v12 = vsel %vm5579_vm8, 1, %v17435_v39  ;;  %vm5051_vm13 = vcmp.eq.s32.totalorder %v13901_v11, %v10508_v34  ;;  %vm5339_vm10 = vcmp.lt.s32.totalorder %v5153_v30, %v13971_v46  ;;  %vm14135_vm15 = vmand %vm5002_vm2, %vm5290_vm5 }
 0x287   : > { %v5154_v41 = vadd.s32 768, %v17525_v55  ;;  %v4385_v56 = vsel %vm4129_vm1, 1, %v17435_v39  ;;  %v4651_v15 = vadd.s32 %v4650_v42, %v13887_v54  ;;  %v6167_v20 = vadd.s32 %v6166_v10, %v5794_v31  ;;  %v14145_v55 = vpop.permute.xlu1 %3377  ;;  %vm5595_vm11 = vmand %vm5051_vm13, %vm5339_vm10  ;;  %v17561_v31 = vld [vmem:[#allocation17_spill] sm:$0xff] }
 0x288   : > { %v6209_v13 = vadd.s32 %v6208_v7, %v5835_v12  ;;  %v5843_v25 = vsel %vm5587_vm6, 1, %v17435_v39  ;;  %vm5067_vm3 = vcmp.eq.s32.totalorder %v13955_v2, %v10508_v34  ;;  %vm3601_vm0 = vcmp.eq.s32.totalorder %v14025_v45, %v10502_v32  ;;  %v14193_v2 = vpop.permute.xlu0 %4859 }
 0x289   : > { %vm3889_vm9 = vcmp.lt.s32.totalorder %v3670_v35, %v13497_v53  ;;  %vm5355_vm14 = vcmp.lt.s32.totalorder %v5155_v50, %v13971_v46  ;;  %vm3602_vm7 = vcmp.eq.s32.totalorder %v14025_v45, %v10505_v33  ;;  %vm3603_vm4 = vcmp.eq.s32.totalorder %v14025_v45, %v10508_v34 }
 0x28a   : > { %v5156_v54 = vadd.s32 768, %v17546_v40  ;;  %v4689_v11 = vadd.s32 %v4688_v19, %v4386_v8  ;;  %vm5059_vm12 = vcmp.eq.s32.totalorder %v14013_v43, %v10508_v34  ;;  %vm5347_vm8 = vcmp.lt.s32.totalorder %v5154_v41, %v13971_v46  ;;  %vm4145_vm1 = vmand %vm3601_vm0, %vm3889_vm9 }
 0x28b   : > { %v3671_v38 = vadd.s32 512, %v17554_v60  ;;  %v4652_v51 = vadd.s32 %v4651_v15, %v4385_v56  ;;  %v4726_v4 = vadd.s32 %v4725_v9, %v4387_v44  ;;  %v5802_v3 = vsel %vm14135_vm15, 1, %v17435_v39  ;;  %vm14173_vm2 = vmand %vm5067_vm3, %vm5355_vm14  ;;  %v3381_v48 = vpop.permute.xlu1 %3380 }
 0x28c   : > { %v6210_v61 = vadd.s32 %v6209_v13, %v5843_v25  ;;  %v14165_v47 = vadd.s32 %v6167_v20, %v5802_v3  ;;  %v5851_v22 = vsel %vm5595_vm11, 1, %v17435_v39  ;;  %v4402_v18 = vsel %vm3602_vm7, 1, %v17435_v39  ;;  %vm14182_vm5 = vmand %vm5059_vm12, %vm5347_vm8  ;;  %v4863_v10 = vpop.permute.xlu0 %4862 }
 0x28d   : > { %v4403_v0 = vsel %vm3603_vm4, 1, %v17435_v39  ;;  %vm5075_vm6 = vcmp.eq.s32.totalorder %v14069_v62, %v10508_v34  ;;  %vm5363_vm13 = vcmp.lt.s32.totalorder %v5156_v54, %v13971_v46  ;;  %vm3609_vm10 = vcmp.eq.s32.totalorder %v14086_v24, %v10502_v32 }
 0x28e   : > { %vm3610_vm15 = vcmp.eq.s32.totalorder %v14086_v24, %v10505_v33  ;;  %v4401_v45 = vsel %vm4145_vm1, 1, %v17435_v39  ;;  %vm3611_vm3 = vcmp.eq.s32.totalorder %v14086_v24, %v10508_v34  ;;  %vm3897_vm0 = vcmp.lt.s32.totalorder %v3671_v38, %v13497_v53  ;;  %vm5619_vm9 = vmand %vm5075_vm6, %vm5363_vm13 }
 0x28f   : > { %v3672_v14 = vadd.s32 512, %v17559_v37  ;;  %v6211_v52 = vadd.s32 %v6210_v61, %v5851_v22  ;;  %v4653_v1 = vadd.s32 %v4652_v51, %v4393_v17  ;;  %v4690_v57 = vadd.s32 %v4689_v11, %v13963_v49  ;;  %vm4153_vm11 = vmand %vm3609_vm10, %vm3897_vm0  ;;  %v3384_v19 = vpop.permute.xlu1 %3383 }
 0x290   : > { %v4727_v16 = vadd.s32 %v4726_v4, %v13978_v6  ;;  %v5867_v29 = vsel %vm14173_vm2, 1, %v17435_v39  ;;  %v5859_v42 = vsel %vm14182_vm5, 1, %v17435_v39  ;;  %v4410_v26 = vsel %vm3610_vm15, 1, %v17435_v39  ;;  %v4866_v5 = vpop.permute.xlu0 %4865 }
 0x291   : > { %v5157_v49 = vadd.s32 768, %v17539_v23  ;;  %v4654_v58 = vadd.s32 %v4653_v1, %v4401_v45  ;;  %v4691_v6 = vadd.s32 %v4690_v57, %v4402_v18  ;;  %v4411_v21 = vsel %vm3611_vm3, 1, %v17435_v39  ;;  %v17560_v23 = vld [vmem:[#allocation16_spill] sm:$0xff] }
 0x292   : > { %v4728_v28 = vadd.s32 %v4727_v16, %v4403_v0  ;;  %vm3617_vm14 = vcmp.eq.s32.totalorder %v14145_v55, %v10502_v32  ;;  %vm3618_vm7 = vcmp.eq.s32.totalorder %v14145_v55, %v10505_v33  ;;  %vm3905_vm4 = vcmp.lt.s32.totalorder %v3672_v14, %v13497_v53  ;;  %v17564_v0 = vld [vmem:[#allocation18_spill] sm:$0xff] }
 0x293   : > { %v3673_v62 = vadd.s32 512, %v17560_v23  ;;  %v6212_v30 = vadd.s32 %v6211_v52, %v5859_v42  ;;  %v5875_v8 = vsel %vm5619_vm9, 1, %v17435_v39  ;;  %v4692_v44 = vadd.s32 %v4691_v6, %v4410_v26  ;;  %vm4161_vm2 = vmand %vm3617_vm14, %vm3905_vm4  ;;  %v3387_v11 = vpop.permute.xlu1 %3386  ;;  %v17565_v42 = vld [vmem:[#allocation21_spill] sm:$0xff] }
 0x294   : > { %vm3619_vm12 = vcmp.eq.s32.totalorder %v14145_v55, %v10508_v34  ;;  %v4409_v24 = vsel %vm4153_vm11, 1, %v17435_v39  ;;  %v4729_v7 = vadd.s32 %v4728_v28, %v4411_v21  ;;  %vm5083_vm8 = vcmp.eq.s32.totalorder %v14133_v27, %v10508_v34  ;;  %v4869_v52 = vpop.permute.xlu0 %4868 }
 0x295   : > { %vm5371_vm1 = vcmp.lt.s32.totalorder %v5157_v49, %v13971_v46  ;;  %v4418_v9 = vsel %vm3618_vm7, 1, %v17435_v39  ;;  %vm3626_vm5 = vcmp.eq.s32.totalorder %v3381_v48, %v10505_v33  ;;  %vm3627_vm6 = vcmp.eq.s32.totalorder %v3381_v48, %v10508_v34 }
 0x296   : > { %v3674_v35 = vadd.s32 512, %v17561_v31  ;;  %v4419_v17 = vsel %vm3619_vm12, 1, %v17435_v39  ;;  %v5158_v50 = vadd.s32 768, %v17551_v63  ;;  %vm3625_vm13 = vcmp.eq.s32.totalorder %v3381_v48, %v10502_v32  ;;  %vm5627_vm15 = vmand %vm5083_vm8, %vm5371_vm1 }
 0x297   : > { %vm3913_vm10 = vcmp.lt.s32.totalorder %v3673_v62, %v13497_v53  ;;  %vm3633_vm3 = vcmp.eq.s32.totalorder %v3384_v19, %v10502_v32  ;;  %vm3634_vm0 = vcmp.eq.s32.totalorder %v3384_v19, %v10505_v33  ;;  %vm3635_vm9 = vcmp.eq.s32.totalorder %v3384_v19, %v10508_v34 }
 0x298   : > { %vm3921_vm11 = vcmp.lt.s32.totalorder %v3674_v35, %v13497_v53  ;;  %v4417_v12 = vsel %vm4161_vm2, 1, %v17435_v39  ;;  %v4426_v41 = vsel %vm3626_vm5, 1, %v17435_v39  ;;  %v4427_v56 = vsel %vm3627_vm6, 1, %v17435_v39  ;;  %vm4169_vm14 = vmand %vm3625_vm13, %vm3913_vm10  ;;  %v4872_v35 = vpop.permute.xlu0 %4871 }
 0x299   : > { %v5159_v63 = vadd.s32 768, %v17554_v60  ;;  %v6213_v15 = vadd.s32 %v6212_v30, %v5867_v29  ;;  %v4655_v20 = vadd.s32 %v4654_v58, %v4409_v24  ;;  %v4693_v13 = vadd.s32 %v4692_v44, %v4418_v9  ;;  %vm4177_vm4 = vmand %vm3633_vm3, %vm3921_vm11  ;;  %v17567_v30 = vld [vmem:[#allocation19_spill] sm:$0xff] }
 0x29a   : > { %v4730_v27 = vadd.s32 %v4729_v7, %v4419_v17  ;;  %v5883_v25 = vsel %vm5627_vm15, 1, %v17435_v39  ;;  %vm5091_vm7 = vcmp.eq.s32.totalorder %v14193_v2, %v10508_v34  ;;  %v4434_v55 = vsel %vm3634_vm0, 1, %v17435_v39 }
 0x29b   : > { %v4435_v54 = vsel %vm3635_vm9, 1, %v17435_v39  ;;  %v4656_v60 = vadd.s32 %v4655_v20, %v4417_v12  ;;  %vm5379_vm12 = vcmp.lt.s32.totalorder %v5158_v50, %v13971_v46  ;;  %v4694_v38 = vadd.s32 %v4693_v13, %v4426_v41  ;;  %v17570_v41 = vld [vmem:[#allocation20_spill] sm:$0xff] }
 0x29c   : > { %v4731_v51 = vadd.s32 %v4730_v27, %v4427_v56  ;;  %v4425_v4 = vsel %vm4169_vm14, 1, %v17435_v39  ;;  %vm5099_vm8 = vcmp.eq.s32.totalorder %v4863_v10, %v10508_v34  ;;  %vm5387_vm1 = vcmp.lt.s32.totalorder %v5159_v63, %v13971_v46  ;;  %vm14276_vm5 = vmand %vm5091_vm7, %vm5379_vm12  ;;  %v4875_v10 = vpop.permute.xlu1 %4874 }
 0x29d   : > { %v5160_v3 = vadd.s32 768, %v17559_v37  ;;  %v4433_v61 = vsel %vm4177_vm4, 1, %v17435_v39  ;;  %v4695_v22 = vadd.s32 %v4694_v38, %v4434_v55  ;;  %vm3642_vm2 = vcmp.eq.s32.totalorder %v3387_v11, %v10505_v33  ;;  %vm5643_vm10 = vmand %vm5099_vm8, %vm5387_vm1 }
 0x29e   : > { %v4732_v43 = vadd.s32 %v4731_v51, %v4435_v54  ;;  %vm3641_vm6 = vcmp.eq.s32.totalorder %v3387_v11, %v10502_v32  ;;  %vm3643_vm13 = vcmp.eq.s32.totalorder %v3387_v11, %v10508_v34  ;;  %v3675_v40 = vadd.s32 512, %v17564_v0  ;;  %v17572_v54 = vld [vmem:[#allocation32_spill] sm:$0xff] }
 0x29f   : > { %v4442_v45 = vsel %vm3642_vm2, 1, %v17435_v39  ;;  %v6214_v37 = vadd.s32 %v6213_v15, %v5875_v8  ;;  %v4657_v14 = vadd.s32 %v4656_v60, %v4425_v4  ;;  %v4443_v48 = vsel %vm3643_vm13, 1, %v17435_v39  ;;  %v17573_v60 = vld [vmem:[#allocation23_spill] sm:$0xff] }
 0x2a0   : > { %v4696_v33 = vadd.s32 %v4695_v22, %v4442_v45  ;;  %vm5107_vm15 = vcmp.eq.s32.totalorder %v4866_v5, %v10508_v34  ;;  %vm5395_vm3 = vcmp.lt.s32.totalorder %v5160_v3, %v13971_v46  ;;  %vm3929_vm0 = vcmp.lt.s32.totalorder %v3675_v40, %v13497_v53  ;;  %v17587_v3 = vld [vmem:[#allocation8_spill] sm:$0xff] }
 0x2a1   : > { %v4733_v2 = vadd.s32 %v4732_v43, %v4443_v48  ;;  %v6215_v1 = vadd.s32 %v6214_v37, %v5883_v25  ;;  %v5891_v57 = vsel %vm14276_vm5, 1, %v17435_v39  ;;  %v4658_v16 = vadd.s32 %v4657_v14, %v4433_v61  ;;  %vm4185_vm9 = vmand %vm3641_vm6, %vm3929_vm0 }
 0x2a2   : > { %v4697_v29 = vrot.slane %v4696_v33, 4  ;;  %v1694_v26 = vrot.slane %v17565_v42, 2  ;;  %v4441_v49 = vsel %vm4185_vm9, 1, %v17435_v39  ;;  %vm5115_vm11 = vcmp.eq.s32.totalorder %v4869_v52, %v10508_v34  ;;  %vm5651_vm14 = vmand %vm5107_vm15, %vm5395_vm3 }
 0x2a3   : > { %v5161_v58 = vadd.s32 768, %v17560_v23  ;;  %v17566_v53 = vrot.slane %v13600_v59, 1  ;;  %v5899_v28 = vsel %vm5643_vm10, 1, %v17435_v39  ;;  %v4659_v32 = vadd.s32 %v4658_v16, %v4441_v49 }
 0x2a4   : > { %v4734_v21 = vrot.slane %v4733_v2, 4  ;;  %v6216_v62 = vadd.s32 %v6215_v1, %v5891_v57  ;;  %v17568_v8 = vrot.slane %v17567_v30, 4  ;;  %v5163_v23 = vadd.s32 768, %v17564_v0  ;;  %v17578_v57 = vld [vmem:[#allocation30_spill] sm:$0xff] }
 0x2a5   : > { %v3103_v6 = vadd.s32 %v17566_v53, %v13600_v59  ;;  %vm5403_vm7 = vcmp.lt.s32.totalorder %v5161_v58, %v13971_v46  ;;  %v17569_v59 = vrot.slane %v13628_v36, 2  ;;  %v6185_v7 = vrot.slane %v14165_v47, 4 }
 0x2a6   : > { %v1730_v44 = vadd.s32 %v17568_v8, %v17567_v30  ;;  %v4660_v19 = vrot.slane %v4659_v32, 4  ;;  %v4698_v9 = vadd.s32 %v4697_v29, %v4696_v33  ;;  %vm5659_vm4 = vmand %vm5115_vm11, %vm5403_vm7  ;;  %v6217_v17 = vadd.s32 %v6216_v62, %v5899_v28 }
 0x2a7   : > { %v4626_v24 = vadd.s32 %v17569_v59, %v13628_v36  ;;  %v5907_v50 = vsel %vm5651_vm14, 1, %v17435_v39  ;;  %v1695_v12 = vadd.s32 %v1694_v26, %v17565_v42  ;;  %v17571_v56 = vrot.slane %v17570_v41, 4  ;;  %v17580_v42 = vld [vmem:[#allocation31_spill] sm:$0xff] }
 0x2a8   : > { %v4661_v15 = vadd.s32 %v4660_v19, %v4659_v32  ;;  %v4735_v20 = vadd.s32 %v4734_v21, %v4733_v2  ;;  %vm5131_vm12 = vcmp.eq.s32.totalorder %v4875_v10, %v10508_v34  ;;  %vm5419_vm8 = vcmp.lt.s32.totalorder %v5163_v23, %v13971_v46  ;;  %v17581_v23 = vld [vmem:[#allocation33_spill] sm:$0xff] }
 0x2a9   : > { %v1767_v63 = vadd.s32 %v17571_v56, %v17570_v41  ;;  %v1731_v36 = vrot.slane %v1730_v44, 2  ;;  %v5915_v13 = vsel %vm5659_vm4, 1, %v17435_v39  ;;  %vm5123_vm1 = vcmp.eq.s32.totalorder %v4872_v35, %v10508_v34  ;;  %vm14331_vm2 = vmand %vm5131_vm12, %vm5419_vm8 }
 0x2aa   : > { %v5162_v27 = vadd.s32 768, %v17561_v31  ;;  %v6218_v5 = vadd.s32 %v6217_v17, %v5907_v50  ;;  %v4662_v25 = vrot.slane %v4661_v15, 2  ;;  %v4699_v55 = vrot.slane %v4698_v9, 2  ;;  %v17576_v31 = vld [vmem:[#allocation29_spill] sm:$0xff]  ;;  %v17583_v17 = vld [vmem:[#allocation24_spill] sm:$0xff]  ;;  %v17584_v50 = vld [vmem:[#allocation35_spill] sm:$0xff] }
 0x2ab   : > { %v1511_v11 = vrot.slane %v17572_v54, 1  ;;  %v3255_v38 = vadd.s32 %v3103_v6, %v17573_v60  ;;  %v6186_v51 = vadd.s32 %v6185_v7, %v14165_v47  ;;  %v1768_v4 = vrot.slane %v1767_v63, 2 }
 0x2ac   : > { %vm5411_vm5 = vcmp.lt.s32.totalorder %v5162_v27, %v13971_v46  ;;  %v4663_v61 = vadd.s32 %v4662_v25, %v4661_v15  ;;  %v4736_v22 = vrot.slane %v4735_v20, 2  ;;  %v6219_v43 = vadd.s32 %v6218_v5, %v5915_v13 }
 0x2ad   : > { %v17577_v18 = vrot.slane %v17576_v31, 1  ;;  %vm5667_vm6 = vmand %vm5123_vm1, %vm5411_vm5  ;;  %v4627_v40 = vrot.slane %v4626_v24, 1  ;;  %v1696_v45 = vrot.slane %v1695_v12, 1  ;;  %v1732_v47 = vadd.s32 %v1731_v36, %v1730_v44 }
 0x2ae   : > { %v5923_v37 = vsel %vm5667_vm6, 1, %v17435_v39  ;;  %v4664_v14 = vrot.slane %v4663_v61, 1  ;;  %v4700_v48 = vadd.s32 %v4699_v55, %v4698_v9  ;;  %v1512_v33 = vadd.s32 %v1511_v11, %v17572_v54 }
 0x2af   : > { %v1549_v0 = vadd.s32 %v17577_v18, %v17576_v31  ;;  %v6220_v46 = vadd.s32 %v6219_v43, %v5923_v37  ;;  %v6187_v52 = vrot.slane %v6186_v51, 2  ;;  %v1769_v2 = vadd.s32 %v1768_v4, %v1767_v63  ;;  %v17585_v63 = vld [vmem:[#allocation34_spill] sm:$0xff] }
 0x2b0   : > { %v5931_v1 = vsel %vm14331_vm2, 1, %v17435_v39  ;;  %v17579_v34 = vrot.slane %v17578_v57, 1  ;;  %v4737_v29 = vadd.s32 %v4736_v22, %v4735_v20  ;;  %v4743_v58 = vadd.s32 %v3255_v38, %v17580_v42  ;;  %v17588_v37 = vld [vmem:[#allocation6_spill] sm:$0xff] }
 0x2b1   : > { %v3253_v26 = vadd.s32 %v17580_v42, %v1549_v0  ;;  %v6221_v49 = vadd.s32 %v6220_v46, %v5931_v1  ;;  %v4628_v53 = vadd.s32 %v4627_v40, %v4626_v24  ;;  %v1697_v6 = vadd.s32 %v1696_v45, %v1695_v12 }
 0x2b2   : > { %v3177_v16 = vadd.s32 %v17579_v34, %v17578_v57  ;;  %v1733_v28 = vrot.slane %v1732_v47, 1  ;;  %v4665_v32 = vadd.s32 %v4664_v14, %v4663_v61  ;;  %v4701_v21 = vrot.slane %v4700_v48, 1 }
 0x2b3   : > { %v3252_v62 = vadd.s32 %v17580_v42, %v1512_v33  ;;  %v6222_v30 = vrot.slane %v6221_v49, 4  ;;  %v6188_v8 = vadd.s32 %v6187_v52, %v6186_v51  ;;  %v10318_v39 = vmov 1966171168  }
 0x2b4   : > { %v6241_v44 = vunpack.c.l.s4 %v10318_v39  ;;  %v1770_v10 = vrot.slane %v1769_v2, 1  ;;  %v17582_v59 = vrot.slane %v17581_v23, 1  ;;  %v3257_v19 = vadd.s32 %v3177_v16, %v1697_v6 }
 0x2b5   : > { %v4738_v9 = vrot.slane %v4737_v29, 1  ;;  %v4741_v35 = vadd.s32 %v3253_v26, %v17580_v42  ;;  %v6223_v24 = vadd.s32 %v6222_v30, %v6221_v49  ;;  %v3256_v12 = vadd.s32 %v17584_v50, %v17583_v17 }
 0x2b6   : > { %v3214_v7 = vadd.s32 %v17582_v59, %v17581_v23  ;;  %v6231_v41 = vadd.s32 %v4743_v58, %v17580_v42  ;;  %v1734_v56 = vadd.s32 %v1733_v28, %v1732_v47  ;;  %v17586_v15 = vrot.slane %v17585_v63, 1 }
 0x2b7   : > { %v4702_v36 = vadd.s32 %v4701_v21, %v4700_v48  ;;  %v4745_v13 = vadd.s32 %v4665_v32, %v3257_v19  ;;  %v4740_v27 = vadd.s32 %v3252_v62, %v17580_v42  ;;  %v6224_v5 = vrot.slane %v6223_v24, 2 }
 0x2b8   : > { %v3251_v20 = vadd.s32 %v17586_v15, %v17585_v63  ;;  %v4744_v25 = vadd.s32 %v4628_v53, %v3256_v12  ;;  %v6189_v55 = vrot.slane %v6188_v8, 1  ;;  %v6242_v54 = vunpack.c.0.s8 %v6241_v44 }
 0x2b9   : > { %v1771_v11 = vadd.s32 %v1770_v10, %v1769_v2  ;;  %v3258_v60 = vadd.s32 %v3214_v7, %v1734_v56  ;;  %v4739_v38 = vadd.s32 %v4738_v9, %v4737_v29  ;;  %v6225_v51 = vadd.s32 %v6224_v5, %v6223_v24 }
 0x2ba   : > { %v6229_v4 = vadd.s32 %v4741_v35, %v17580_v42  ;;  %v6237_v61 = vcombine.low %v17587_v3, %v6231_v41  ;;  %v6233_v31 = vadd.s32 %v4745_v13, %v17580_v42  ;;  %v6228_v0 = vadd.s32 %v4740_v27, %v17580_v42 }
 0x2bb   : > { %v3259_v22 = vadd.s32 %v3251_v20, %v1771_v11  ;;  %v4746_v43 = vadd.s32 %v4702_v36, %v3258_v60  ;;  %v6226_v18 = vrot.slane %v6225_v51, 1  ;;  %v6190_v40 = vadd.s32 %v6189_v55, %v6188_v8 }
 0x2bc   : > { %v6232_v45 = vadd.s32 %v4744_v25, %v17580_v42  ;;  %v6245_v14 = vsub.s32 %v6242_v54, %v17588_v37  ;;  %v6236_v33 = vcombine.low %v6228_v0, %v6229_v4  ;;  %v249_v42 = vld [vmem:[%s10382_s9] sm:$0xff] }
 0x2bd   : > { %v4747_v47 = vadd.s32 %v4739_v38, %v3259_v22  ;;  %v6227_v48 = vadd.s32 %v6226_v18, %v6225_v51  ;;  %v6234_v46 = vadd.s32 %v6190_v40, %v4746_v43 }
 0x2be   : > { %v6238_v52 = vcombine.low %v6232_v45, %v6233_v31  ;;  %v6253_v1 = vrot.slane %v6237_v61, %v6245_v14  ;;  %v6246_v34 = vrot.slane %v6236_v33, %v6245_v14 }
 0x2bf   : > { %v6235_v2 = vadd.s32 %v6227_v48, %v4747_v47 }
 0x2c0   : > { %v6260_v16 = vrot.slane %v6238_v52, %v6245_v14  ;;  %v6268_v26 = vcombine.low %v6246_v34, %v6253_v1 }
 0x2c1   : > { %v6239_v57 = vcombine.low %v6234_v46, %v6235_v2 }
 0x2c2   : > { %v6276_v58 = vrot.slane %v6268_v26, %v6245_v14 }
 0x2c3   : > { %v6267_v29 = vrot.slane %v6239_v57, %v6245_v14 }
 0x2c5   : > { %v6269_v49 = vcombine.low %v6260_v16, %v6267_v29 }
 0x2c7   : > { %v6283_v53 = vrot.slane %v6269_v49, %v6245_v14 }
 0x2c9   : > { %v6284_v6 = vcombine.low %v6276_v58, %v6283_v53 }
 0x2cb   : > { %v6285_v28 = vadd.s32 %v6284_v6, %v249_v42 }
 0x2cd   : > { %6286 = vst [vmem:[%s10382_s9] sm:$0xff] %v6285_v28 }
 0x2ce PF: > { %p10256_p9 = scmp.eq.s32.totalorder %s10372_s22, %s10370_s1 }
 0x2d0   : > { %6290 = sbr.rel (%p10256_p9) target bundleno = 1682 (0x692), region = 40 }
 0x2d5   : > { %v6294_v32 = vld [vmem:[%s10387_s12 + $0x10] sm:$0xff]  ;;  %v6292_v21 = vld [vmem:[%s10387_s12] sm:$0xff]  ;;  %v17416_v62 = vmov 0   ;;  %v6295_v30 = vld [vmem:[%s10387_s12 + $0x18] sm:$0xff]  ;;  %v6420_v58 = vlaneseq }
 0x2d6   : > { %10291 = vset.pattern.permute.xlu1 %v17416_v62  ;;  %10290 = vset.pattern.permute.xlu0 %v17416_v62  ;;  %v6293_v8 = vld [vmem:[%s10387_s12 + $0x8] sm:$0xff]  ;;  %v6296_v44 = vld [vmem:[%s10387_s12 + $0x20] sm:$0xff]  ;;  %v6299_v10 = vld [vmem:[%s10387_s12 + $0x38] sm:$0xff] }
 0x2d7   : > { %6331 = vperm.xlu1 %10291, %v6294_v32   ;;  %6325 = vperm.xlu0 %10290, %v6292_v21   ;;  %v6297_v39 = vld [vmem:[%s10387_s12 + $0x28] sm:$0xff]  ;;  %v6298_v23 = vld [vmem:[%s10387_s12 + $0x30] sm:$0xff]  ;;  %v6300_v7 = vld [vmem:[%s10387_s12 + $0x40] sm:$0xff]  ;;  %v14435_v6 = vshrl.u32 %v6420_v58, 7 }
 0x2d8   : > { %v6301_v59 = vld [vmem:[%s10387_s12 + $0x48] sm:$0xff]  ;;  %v6303_v19 = vld [vmem:[%s10387_s12 + $0x58] sm:$0xff]  ;;  %v6302_v9 = vld [vmem:[%s10387_s12 + $0x50] sm:$0xff] }
 0x2d9   : > { %v6305_v35 = vld [vmem:[%s10387_s12 + $0x68] sm:$0xff]  ;;  %v6304_v24 = vld [vmem:[%s10387_s12 + $0x60] sm:$0xff]  ;;  %v6307_v17 = vld [vmem:[%s10387_s12 + $0x78] sm:$0xff]  ;;  %17589 = vst [vmem:[#allocation36_spill] sm:$0xff] %v14435_v6  ;;  %v6422_v21 = vsub.s32 0, %v14435_v6 }
 0x2da   : > { %v6306_v50 = vld [vmem:[%s10387_s12 + $0x70] sm:$0xff]  ;;  %v6309_v12 = vld [vmem:[%s10387_s12 + $0x88] sm:$0xff]  ;;  %v6308_v41 = vld [vmem:[%s10387_s12 + $0x80] sm:$0xff] }
 0x2db   : > { %6334 = vperm.xlu1 %10291, %v6295_v30   ;;  %6328 = vperm.xlu0 %10290, %v6293_v8   ;;  %v6311_v56 = vld [vmem:[%s10387_s12 + $0x98] sm:$0xff]  ;;  %v6310_v63 = vld [vmem:[%s10387_s12 + $0x90] sm:$0xff]  ;;  %v6313_v15 = vld [vmem:[%s10387_s12 + $0xa8] sm:$0xff]  ;;  %v6426_v30 = vsub.s32 1, %v14435_v6  ;;  %v6430_v8 = vsub.s32 2, %v14435_v6 }
 0x2dc   : > { %v6312_v20 = vld [vmem:[%s10387_s12 + $0xa0] sm:$0xff]  ;;  %v6315_v36 = vld [vmem:[%s10387_s12 + $0xb8] sm:$0xff]  ;;  %v6314_v13 = vld [vmem:[%s10387_s12 + $0xb0] sm:$0xff] }
 0x2dd   : > { %v6317_v27 = vld [vmem:[%s10387_s12 + $0xc8] sm:$0xff]  ;;  %v6316_v5 = vld [vmem:[%s10387_s12 + $0xc0] sm:$0xff]  ;;  %v6319_v25 = vld [vmem:[%s10387_s12 + $0xd8] sm:$0xff] }
 0x2de   : > { %v6318_v55 = vld [vmem:[%s10387_s12 + $0xd0] sm:$0xff]  ;;  %v6321_v54 = vld [vmem:[%s10387_s12 + $0xe8] sm:$0xff]  ;;  %v6320_v11 = vld [vmem:[%s10387_s12 + $0xe0] sm:$0xff] }
 0x2df   : > { %6340 = vperm.xlu1 %10291, %v6297_v39   ;;  %6337 = vperm.xlu0 %10290, %v6296_v44   ;;  %v6323_v60 = vld [vmem:[%s10387_s12 + $0xf8] sm:$0xff]  ;;  %v6322_v38 = vld [vmem:[%s10387_s12 + $0xf0] sm:$0xff]  ;;  %v7261_v51 = vld [vmem:[%s10387_s12 + $0x108] sm:$0xff]  ;;  %v6434_v39 = vsub.s32 3, %v14435_v6  ;;  %v6438_v44 = vsub.s32 4, %v14435_v6 }
 0x2e0   : > { %v7260_v4 = vld [vmem:[%s10387_s12 + $0x100] sm:$0xff]  ;;  %v7263_v3 = vld [vmem:[%s10387_s12 + $0x118] sm:$0xff]  ;;  %v7262_v61 = vld [vmem:[%s10387_s12 + $0x110] sm:$0xff] }
 0x2e1   : > { %v7265_v22 = vld [vmem:[%s10387_s12 + $0x128] sm:$0xff]  ;;  %v7264_v43 = vld [vmem:[%s10387_s12 + $0x120] sm:$0xff]  ;;  %v7267_v31 = vld [vmem:[%s10387_s12 + $0x138] sm:$0xff] }
 0x2e2   : > { %v7266_v18 = vld [vmem:[%s10387_s12 + $0x130] sm:$0xff]  ;;  %v7269_v0 = vld [vmem:[%s10387_s12 + $0x148] sm:$0xff]  ;;  %v7268_v40 = vld [vmem:[%s10387_s12 + $0x140] sm:$0xff] }
 0x2e3   : > { %6346 = vperm.xlu1 %10291, %v6299_v10   ;;  %6343 = vperm.xlu0 %10290, %v6298_v23   ;;  %v7271_v45 = vld [vmem:[%s10387_s12 + $0x158] sm:$0xff]  ;;  %v7270_v47 = vld [vmem:[%s10387_s12 + $0x150] sm:$0xff]  ;;  %v7273_v37 = vld [vmem:[%s10387_s12 + $0x168] sm:$0xff]  ;;  %v6442_v10 = vsub.s32 5, %v14435_v6  ;;  %v6446_v23 = vsub.s32 6, %v14435_v6 }
 0x2e4   : > { %v7272_v14 = vld [vmem:[%s10387_s12 + $0x160] sm:$0xff]  ;;  %v7275_v48 = vld [vmem:[%s10387_s12 + $0x178] sm:$0xff]  ;;  %v7274_v33 = vld [vmem:[%s10387_s12 + $0x170] sm:$0xff] }
 0x2e5   : > { %v7277_v46 = vld [vmem:[%s10387_s12 + $0x188] sm:$0xff]  ;;  %v7276_v52 = vld [vmem:[%s10387_s12 + $0x180] sm:$0xff]  ;;  %v7279_v2 = vld [vmem:[%s10387_s12 + $0x198] sm:$0xff] }
 0x2e6   : > { %v7278_v1 = vld [vmem:[%s10387_s12 + $0x190] sm:$0xff]  ;;  %v7281_v57 = vld [vmem:[%s10387_s12 + $0x1a8] sm:$0xff]  ;;  %v7280_v34 = vld [vmem:[%s10387_s12 + $0x1a0] sm:$0xff] }
 0x2e7   : > { %6352 = vperm.xlu1 %10291, %v6301_v59   ;;  %6349 = vperm.xlu0 %10290, %v6300_v7   ;;  %v7283_v16 = vld [vmem:[%s10387_s12 + $0x1b8] sm:$0xff]  ;;  %v7282_v29 = vld [vmem:[%s10387_s12 + $0x1b0] sm:$0xff]  ;;  %v7285_v26 = vld [vmem:[%s10387_s12 + $0x1c8] sm:$0xff]  ;;  %v6450_v59 = vsub.s32 7, %v14435_v6 }
 0x2e8   : > { %v7284_v49 = vld [vmem:[%s10387_s12 + $0x1c0] sm:$0xff]  ;;  %v7287_v53 = vld [vmem:[%s10387_s12 + $0x1d8] sm:$0xff]  ;;  %v7286_v42 = vld [vmem:[%s10387_s12 + $0x1d0] sm:$0xff] }
 0x2e9   : > { %v7289_v28 = vld [vmem:[%s10387_s12 + $0x1e8] sm:$0xff]  ;;  %v7288_v32 = vld [vmem:[%s10387_s12 + $0x1e0] sm:$0xff]  ;;  %v7291_v7 = vld [vmem:[%s10387_s12 + $0x1f8] sm:$0xff] }
 0x2eb   : > { %6358 = vperm.xlu1 %10291, %v6303_v19   ;;  %6355 = vperm.xlu0 %10290, %v6302_v9   ;;  %v17590_v19 = vld [vmem:[#allocation5_spill] sm:$0xff] }
 0x2ec   : > { %v14449_v9 = vrot.slane %v17590_v19, %v6422_v21 }
 0x2ef   : > { %6364 = vperm.xlu1 %10291, %v6305_v35   ;;  %6361 = vperm.xlu0 %10290, %v6304_v24   ;;  %v14452_v35 = vrot.slane %v17590_v19, %v6426_v30  ;;  %v14455_v24 = vrot.slane %v17590_v19, %v6430_v8 }
 0x2f3   : > { %6370 = vperm.xlu1 %10291, %v6307_v17   ;;  %6367 = vperm.xlu0 %10290, %v6306_v50   ;;  %v14458_v17 = vrot.slane %v17590_v19, %v6434_v39  ;;  %v7290_v50 = vld [vmem:[%s10387_s12 + $0x1f0] sm:$0xff] }
 0x2f7   : > { %6376 = vperm.xlu1 %10291, %v6309_v12   ;;  %6373 = vperm.xlu0 %10290, %v6308_v41   ;;  %v14462_v12 = vrot.slane %v17590_v19, %v6438_v44  ;;  %v14465_v41 = vrot.slane %v17590_v19, %v6442_v10 }
 0x2fb   : > { %6382 = vperm.xlu1 %10291, %v6311_v56   ;;  %6379 = vperm.xlu0 %10290, %v6310_v63   ;;  %v14468_v56 = vrot.slane %v17590_v19, %v6446_v23  ;;  %v14471_v63 = vrot.slane %v17590_v19, %v6450_v59 }
 0x2ff   : > { %6388 = vperm.xlu1 %10291, %v6313_v15   ;;  %6385 = vperm.xlu0 %10290, %v6312_v20  }
 0x303   : > { %6394 = vperm.xlu1 %10291, %v6315_v36   ;;  %6391 = vperm.xlu0 %10290, %v6314_v13   ;;  %v8205_v36 = vld [vmem:[%s10387_s12 + $0x208] sm:$0xff] }
 0x307   : > { %6400 = vperm.xlu1 %10291, %v6317_v27   ;;  %6397 = vperm.xlu0 %10290, %v6316_v5  }
 0x30b   : > { %6406 = vperm.xlu1 %10291, %v6319_v25   ;;  %6403 = vperm.xlu0 %10290, %v6318_v55   ;;  %v8204_v55 = vld [vmem:[%s10387_s12 + $0x200] sm:$0xff] }
 0x30f   : > { %6412 = vperm.xlu1 %10291, %v6321_v54   ;;  %6409 = vperm.xlu0 %10290, %v6320_v11  }
 0x313   : > { %6418 = vperm.xlu1 %10291, %v6323_v60   ;;  %6415 = vperm.xlu0 %10290, %v6322_v38  }
 0x317   : > { %7296 = vperm.xlu1 %10291, %v7261_v51   ;;  %7293 = vperm.xlu0 %10290, %v7260_v4   ;;  %v8207_v4 = vld [vmem:[%s10387_s12 + $0x218] sm:$0xff] }
 0x31b   : > { %7302 = vperm.xlu1 %10291, %v7263_v3   ;;  %7299 = vperm.xlu0 %10290, %v7262_v61  }
 0x31f   : > { %7308 = vperm.xlu1 %10291, %v7265_v22   ;;  %7305 = vperm.xlu0 %10290, %v7264_v43  }
 0x323   : > { %7314 = vperm.xlu1 %10291, %v7267_v31   ;;  %7311 = vperm.xlu0 %10290, %v7266_v18   ;;  %v8206_v31 = vld [vmem:[%s10387_s12 + $0x210] sm:$0xff] }
 0x327   : > { %7320 = vperm.xlu1 %10291, %v7269_v0   ;;  %7317 = vperm.xlu0 %10290, %v7268_v40  }
 0x32b   : > { %7326 = vperm.xlu1 %10291, %v7271_v45   ;;  %7323 = vperm.xlu0 %10290, %v7270_v47  }
 0x32f   : > { %7332 = vperm.xlu1 %10291, %v7273_v37   ;;  %7329 = vperm.xlu0 %10290, %v7272_v14   ;;  %v8209_v37 = vld [vmem:[%s10387_s12 + $0x228] sm:$0xff] }
 0x333   : > { %7338 = vperm.xlu1 %10291, %v7275_v48   ;;  %7335 = vperm.xlu0 %10290, %v7274_v33  }
 0x337   : > { %7344 = vperm.xlu1 %10291, %v7277_v46   ;;  %7341 = vperm.xlu0 %10290, %v7276_v52   ;;  %v8208_v52 = vld [vmem:[%s10387_s12 + $0x220] sm:$0xff] }
 0x33b   : > { %7350 = vperm.xlu1 %10291, %v7279_v2   ;;  %7347 = vperm.xlu0 %10290, %v7278_v1  }
 0x33f   : > { %7356 = vperm.xlu1 %10291, %v7281_v57   ;;  %7353 = vperm.xlu0 %10290, %v7280_v34  }
 0x343   : > { %7362 = vperm.xlu1 %10291, %v7283_v16   ;;  %7359 = vperm.xlu0 %10290, %v7282_v29   ;;  %v8211_v16 = vld [vmem:[%s10387_s12 + $0x238] sm:$0xff] }
 0x347   : > { %7368 = vperm.xlu1 %10291, %v7285_v26   ;;  %7365 = vperm.xlu0 %10290, %v7284_v49  }
 0x34b   : > { %7374 = vperm.xlu1 %10291, %v7287_v53   ;;  %7371 = vperm.xlu0 %10290, %v7286_v42   ;;  %v8210_v53 = vld [vmem:[%s10387_s12 + $0x230] sm:$0xff] }
 0x34f   : > { %7380 = vperm.xlu1 %10291, %v7289_v28   ;;  %7377 = vperm.xlu0 %10290, %v7288_v32  }
 0x352   : > { %v6332_v15 = vpop.permute.xlu1 %6331  ;;  %v6326_v20 = vpop.permute.xlu0 %6325 }
 0x353   : > { %vm6468_vm13 = vcmp.eq.s32.totalorder %v6332_v15, %v14449_v9  ;;  %vm6469_vm10 = vcmp.eq.s32.totalorder %v6332_v15, %v14452_v35  ;;  %vm6470_vm15 = vcmp.eq.s32.totalorder %v6332_v15, %v14455_v24  ;;  %vm6471_vm3 = vcmp.eq.s32.totalorder %v6332_v15, %v14458_v17  ;;  %7386 = vperm.xlu1 %10291, %v7291_v7  }
 0x354   : > { %vm6472_vm0 = vcmp.eq.s32.totalorder %v6332_v15, %v14462_v12  ;;  %vm6473_vm9 = vcmp.eq.s32.totalorder %v6332_v15, %v14465_v41  ;;  %vm6474_vm11 = vcmp.eq.s32.totalorder %v6332_v15, %v14468_v56  ;;  %vm6475_vm14 = vcmp.eq.s32.totalorder %v6332_v15, %v14471_v63  ;;  %7383 = vperm.xlu0 %10290, %v7290_v50   ;;  %v8213_v50 = vld [vmem:[%s10387_s12 + $0x248] sm:$0xff] }
 0x355   : > { %v14483_v13 = vsel %vm6468_vm13, 1, %v17416_v62  ;;  %v14486_v27 = vsel %vm6469_vm10, 1, %v17416_v62  ;;  %v14489_v5 = vsel %vm6470_vm15, 1, %v17416_v62  ;;  %v14492_v25 = vsel %vm6471_vm3, 1, %v17416_v62 }
 0x356   : > { %v14496_v54 = vsel %vm6472_vm0, 1, %v17416_v62  ;;  %v14499_v11 = vsel %vm6473_vm9, 1, %v17416_v62  ;;  %v14502_v60 = vsel %vm6474_vm11, 1, %v17416_v62  ;;  %v14505_v38 = vsel %vm6475_vm14, 1, %v17416_v62  ;;  %v6335_v51 = vpop.permute.xlu1 %6334  ;;  %v6329_v47 = vpop.permute.xlu0 %6328 }
 0x357   : > { %vm6452_vm7 = vcmp.eq.s32.totalorder %v6326_v20, %v14449_v9  ;;  %vm6453_vm4 = vcmp.eq.s32.totalorder %v6326_v20, %v14452_v35  ;;  %vm6454_vm12 = vcmp.eq.s32.totalorder %v6326_v20, %v14455_v24  ;;  %vm6455_vm8 = vcmp.eq.s32.totalorder %v6326_v20, %v14458_v17  ;;  %8240 = vperm.xlu1 %10291, %v8205_v36  }
 0x358   : > { %vm6456_vm1 = vcmp.eq.s32.totalorder %v6326_v20, %v14462_v12  ;;  %vm6457_vm2 = vcmp.eq.s32.totalorder %v6326_v20, %v14465_v41  ;;  %vm6458_vm5 = vcmp.eq.s32.totalorder %v6326_v20, %v14468_v56  ;;  %vm6459_vm6 = vcmp.eq.s32.totalorder %v6326_v20, %v14471_v63  ;;  %8237 = vperm.xlu0 %10290, %v8204_v55  }
 0x359   : > { %v6708_v3 = vsel %vm6452_vm7, 1, %v17416_v62  ;;  %v6709_v61 = vsel %vm6453_vm4, 1, %v17416_v62  ;;  %v6710_v22 = vsel %vm6454_vm12, 1, %v17416_v62  ;;  %v6711_v43 = vsel %vm6455_vm8, 1, %v17416_v62 }
 0x35a   : > { %v6712_v18 = vsel %vm6456_vm1, 1, %v17416_v62  ;;  %v6713_v0 = vsel %vm6457_vm2, 1, %v17416_v62  ;;  %v6714_v40 = vsel %vm6458_vm5, 1, %v17416_v62  ;;  %v6715_v45 = vsel %vm6459_vm6, 1, %v17416_v62  ;;  %v6341_v19 = vpop.permute.xlu1 %6340 }
 0x35b   : > { %vm6476_vm13 = vcmp.eq.s32.totalorder %v6335_v51, %v14449_v9  ;;  %vm6477_vm10 = vcmp.eq.s32.totalorder %v6335_v51, %v14452_v35  ;;  %vm6478_vm15 = vcmp.eq.s32.totalorder %v6335_v51, %v14455_v24  ;;  %vm6479_vm3 = vcmp.eq.s32.totalorder %v6335_v51, %v14458_v17  ;;  %8246 = vperm.xlu1 %10291, %v8207_v4  }
 0x35c   : > { %vm6480_vm0 = vcmp.eq.s32.totalorder %v6335_v51, %v14462_v12  ;;  %vm6481_vm9 = vcmp.eq.s32.totalorder %v6335_v51, %v14465_v41  ;;  %vm6482_vm11 = vcmp.eq.s32.totalorder %v6335_v51, %v14468_v56  ;;  %vm6483_vm14 = vcmp.eq.s32.totalorder %v6335_v51, %v14471_v63  ;;  %8243 = vperm.xlu0 %10290, %v8206_v31   ;;  %v8212_v51 = vld [vmem:[%s10387_s12 + $0x240] sm:$0xff] }
 0x35d   : > { %v14535_v14 = vsel %vm6476_vm13, 1, %v17416_v62  ;;  %v14538_v48 = vsel %vm6477_vm10, 1, %v17416_v62  ;;  %v14541_v33 = vsel %vm6478_vm15, 1, %v17416_v62  ;;  %v14544_v46 = vsel %vm6479_vm3, 1, %v17416_v62 }
 0x35e   : > { %v14548_v2 = vsel %vm6480_vm0, 1, %v17416_v62  ;;  %v14551_v1 = vsel %vm6481_vm9, 1, %v17416_v62  ;;  %v14554_v57 = vsel %vm6482_vm11, 1, %v17416_v62  ;;  %v14557_v34 = vsel %vm6483_vm14, 1, %v17416_v62 }
 0x35f   : > { %vm6460_vm7 = vcmp.eq.s32.totalorder %v6329_v47, %v14449_v9  ;;  %vm6461_vm4 = vcmp.eq.s32.totalorder %v6329_v47, %v14452_v35  ;;  %vm6462_vm12 = vcmp.eq.s32.totalorder %v6329_v47, %v14455_v24  ;;  %vm6463_vm8 = vcmp.eq.s32.totalorder %v6329_v47, %v14458_v17  ;;  %8252 = vperm.xlu1 %10291, %v8209_v37  }
 0x360   : > { %vm6464_vm1 = vcmp.eq.s32.totalorder %v6329_v47, %v14462_v12  ;;  %vm6465_vm2 = vcmp.eq.s32.totalorder %v6329_v47, %v14465_v41  ;;  %vm6466_vm5 = vcmp.eq.s32.totalorder %v6329_v47, %v14468_v56  ;;  %vm6467_vm6 = vcmp.eq.s32.totalorder %v6329_v47, %v14471_v63  ;;  %8249 = vperm.xlu0 %10290, %v8208_v52  }
 0x361   : > { %v6716_v29 = vsel %vm6460_vm7, 1, %v17416_v62  ;;  %v6717_v26 = vsel %vm6461_vm4, 1, %v17416_v62  ;;  %v6718_v49 = vsel %vm6462_vm12, 1, %v17416_v62  ;;  %v6719_v58 = vsel %vm6463_vm8, 1, %v17416_v62 }
 0x362   : > { %v6720_v42 = vsel %vm6464_vm1, 1, %v17416_v62  ;;  %v6721_v28 = vsel %vm6465_vm2, 1, %v17416_v62  ;;  %v6722_v32 = vsel %vm6466_vm5, 1, %v17416_v62  ;;  %v6723_v21 = vsel %vm6467_vm6, 1, %v17416_v62 }
 0x363   : > { %v6964_v30 = vadd.s32 %v6716_v29, %v6708_v3  ;;  %v7001_v8 = vadd.s32 %v6717_v26, %v6709_v61  ;;  %v7038_v39 = vadd.s32 %v6718_v49, %v6710_v22  ;;  %v7075_v44 = vadd.s32 %v6719_v58, %v6711_v43  ;;  %8258 = vperm.xlu1 %10291, %v8211_v16   ;;  %v8217_v26 = vld [vmem:[%s10387_s12 + $0x268] sm:$0xff]  ;;  %v6347_v58 = vpop.permute.xlu1 %6346 }
 0x364   : > { %v7112_v10 = vadd.s32 %v6720_v42, %v6712_v18  ;;  %v7149_v23 = vadd.s32 %v6721_v28, %v6713_v0  ;;  %v7186_v59 = vadd.s32 %v6722_v32, %v6714_v40  ;;  %v7223_v7 = vadd.s32 %v6723_v21, %v6715_v45  ;;  %8255 = vperm.xlu0 %10290, %v8210_v53   ;;  %v6338_v18 = vpop.permute.xlu0 %6337  ;;  %v8219_v53 = vld [vmem:[%s10387_s12 + $0x278] sm:$0xff] }
 0x365   : > { %v6965_v15 = vadd.s32 %v6964_v30, %v14483_v13  ;;  %v7002_v20 = vadd.s32 %v7001_v8, %v14486_v27  ;;  %v7039_v36 = vadd.s32 %v7038_v39, %v14489_v5  ;;  %v7076_v55 = vadd.s32 %v7075_v44, %v14492_v25  ;;  %v8215_v13 = vld [vmem:[%s10387_s12 + $0x258] sm:$0xff]  ;;  %v8218_v30 = vld [vmem:[%s10387_s12 + $0x270] sm:$0xff] }
 0x366   : > { %v7113_v4 = vadd.s32 %v7112_v10, %v14496_v54  ;;  %v7150_v3 = vadd.s32 %v7149_v23, %v14499_v11  ;;  %v7187_v61 = vadd.s32 %v7186_v59, %v14502_v60  ;;  %v7224_v22 = vadd.s32 %v7223_v7, %v14505_v38  ;;  %v8214_v11 = vld [vmem:[%s10387_s12 + $0x250] sm:$0xff]  ;;  %v8221_v23 = vld [vmem:[%s10387_s12 + $0x288] sm:$0xff] }
 0x367   : > { %vm6492_vm13 = vcmp.eq.s32.totalorder %v6341_v19, %v14449_v9  ;;  %vm6493_vm10 = vcmp.eq.s32.totalorder %v6341_v19, %v14452_v35  ;;  %vm6494_vm15 = vcmp.eq.s32.totalorder %v6341_v19, %v14455_v24  ;;  %vm6495_vm3 = vcmp.eq.s32.totalorder %v6341_v19, %v14458_v17  ;;  %8264 = vperm.xlu1 %10291, %v8213_v50  }
 0x368   : > { %vm6496_vm0 = vcmp.eq.s32.totalorder %v6341_v19, %v14462_v12  ;;  %vm6497_vm9 = vcmp.eq.s32.totalorder %v6341_v19, %v14465_v41  ;;  %vm6498_vm11 = vcmp.eq.s32.totalorder %v6341_v19, %v14468_v56  ;;  %vm6499_vm14 = vcmp.eq.s32.totalorder %v6341_v19, %v14471_v63  ;;  %8261 = vperm.xlu0 %10290, %v8212_v51  }
 0x369   : > { %v14597_v27 = vsel %vm6492_vm13, 1, %v17416_v62  ;;  %v14600_v5 = vsel %vm6493_vm10, 1, %v17416_v62  ;;  %v14603_v25 = vsel %vm6494_vm15, 1, %v17416_v62  ;;  %v14606_v54 = vsel %vm6495_vm3, 1, %v17416_v62 }
 0x36a   : > { %v14610_v60 = vsel %vm6496_vm0, 1, %v17416_v62  ;;  %v14613_v38 = vsel %vm6497_vm9, 1, %v17416_v62  ;;  %v14616_v43 = vsel %vm6498_vm11, 1, %v17416_v62  ;;  %v14619_v31 = vsel %vm6499_vm14, 1, %v17416_v62 }
 0x36b   : > { %v6966_v0 = vadd.s32 %v6965_v15, %v14535_v14  ;;  %v7003_v40 = vadd.s32 %v7002_v20, %v14538_v48  ;;  %v7040_v45 = vadd.s32 %v7039_v36, %v14541_v33  ;;  %v7077_v47 = vadd.s32 %v7076_v55, %v14544_v46  ;;  %8270 = vperm.xlu1 %10291, %v8215_v13   ;;  %v8216_v14 = vld [vmem:[%s10387_s12 + $0x260] sm:$0xff] }
 0x36c   : > { %v7114_v37 = vadd.s32 %v7113_v4, %v14548_v2  ;;  %v7151_v52 = vadd.s32 %v7150_v3, %v14551_v1  ;;  %v7188_v16 = vadd.s32 %v7187_v61, %v14554_v57  ;;  %v7225_v29 = vadd.s32 %v7224_v22, %v14557_v34  ;;  %8267 = vperm.xlu0 %10290, %v8214_v11   ;;  %v8220_v15 = vld [vmem:[%s10387_s12 + $0x280] sm:$0xff]  ;;  %v6344_v4 = vpop.permute.xlu0 %6343 }
 0x36d   : > { %vm6484_vm7 = vcmp.eq.s32.totalorder %v6338_v18, %v14449_v9  ;;  %vm6485_vm4 = vcmp.eq.s32.totalorder %v6338_v18, %v14452_v35  ;;  %vm6486_vm12 = vcmp.eq.s32.totalorder %v6338_v18, %v14455_v24  ;;  %vm6487_vm8 = vcmp.eq.s32.totalorder %v6338_v18, %v14458_v17 }
 0x36e   : > { %vm6488_vm1 = vcmp.eq.s32.totalorder %v6338_v18, %v14462_v12  ;;  %vm6489_vm2 = vcmp.eq.s32.totalorder %v6338_v18, %v14465_v41  ;;  %vm6490_vm5 = vcmp.eq.s32.totalorder %v6338_v18, %v14468_v56  ;;  %vm6491_vm6 = vcmp.eq.s32.totalorder %v6338_v18, %v14471_v63 }
 0x36f   : > { %v6740_v48 = vsel %vm6484_vm7, 1, %v17416_v62  ;;  %v6741_v33 = vsel %vm6485_vm4, 1, %v17416_v62  ;;  %v6742_v46 = vsel %vm6486_vm12, 1, %v17416_v62  ;;  %v6743_v2 = vsel %vm6487_vm8, 1, %v17416_v62  ;;  %8276 = vperm.xlu1 %10291, %v8217_v26  }
 0x370   : > { %v6744_v1 = vsel %vm6488_vm1, 1, %v17416_v62  ;;  %v6745_v57 = vsel %vm6489_vm2, 1, %v17416_v62  ;;  %v6746_v34 = vsel %vm6490_vm5, 1, %v17416_v62  ;;  %v6747_v49 = vsel %vm6491_vm6, 1, %v17416_v62  ;;  %8273 = vperm.xlu0 %10290, %v8216_v14  }
 0x371   : > { %v6967_v42 = vadd.s32 %v6966_v0, %v6740_v48  ;;  %v7004_v28 = vadd.s32 %v7003_v40, %v6741_v33  ;;  %v7041_v32 = vadd.s32 %v7040_v45, %v6742_v46  ;;  %v7078_v21 = vadd.s32 %v7077_v47, %v6743_v2  ;;  %v8223_v45 = vld [vmem:[%s10387_s12 + $0x298] sm:$0xff]  ;;  %v8224_v48 = vld [vmem:[%s10387_s12 + $0x2a0] sm:$0xff] }
 0x372   : > { %v7115_v8 = vadd.s32 %v7114_v37, %v6744_v1  ;;  %v7152_v39 = vadd.s32 %v7151_v52, %v6745_v57  ;;  %v7189_v44 = vadd.s32 %v7188_v16, %v6746_v34  ;;  %v7226_v10 = vadd.s32 %v7225_v29, %v6747_v49  ;;  %v6353_v37 = vpop.permute.xlu1 %6352  ;;  %v8225_v52 = vld [vmem:[%s10387_s12 + $0x2a8] sm:$0xff]  ;;  %v8227_v57 = vld [vmem:[%s10387_s12 + $0x2b8] sm:$0xff] }
 0x373   : > { %vm6508_vm13 = vcmp.eq.s32.totalorder %v6347_v58, %v14449_v9  ;;  %vm6509_vm10 = vcmp.eq.s32.totalorder %v6347_v58, %v14452_v35  ;;  %vm6510_vm15 = vcmp.eq.s32.totalorder %v6347_v58, %v14455_v24  ;;  %vm6511_vm3 = vcmp.eq.s32.totalorder %v6347_v58, %v14458_v17  ;;  %8282 = vperm.xlu1 %10291, %v8219_v53  }
 0x374   : > { %vm6512_vm0 = vcmp.eq.s32.totalorder %v6347_v58, %v14462_v12  ;;  %vm6513_vm9 = vcmp.eq.s32.totalorder %v6347_v58, %v14465_v41  ;;  %vm6514_vm11 = vcmp.eq.s32.totalorder %v6347_v58, %v14468_v56  ;;  %vm6515_vm14 = vcmp.eq.s32.totalorder %v6347_v58, %v14471_v63  ;;  %8279 = vperm.xlu0 %10290, %v8218_v30  }
 0x375   : > { %v14659_v59 = vsel %vm6508_vm13, 1, %v17416_v62  ;;  %v14662_v7 = vsel %vm6509_vm10, 1, %v17416_v62  ;;  %v14665_v19 = vsel %vm6510_vm15, 1, %v17416_v62  ;;  %v14668_v50 = vsel %vm6511_vm3, 1, %v17416_v62 }
 0x376   : > { %v14672_v20 = vsel %vm6512_vm0, 1, %v17416_v62  ;;  %v14675_v36 = vsel %vm6513_vm9, 1, %v17416_v62  ;;  %v14678_v55 = vsel %vm6514_vm11, 1, %v17416_v62  ;;  %v14681_v51 = vsel %vm6515_vm14, 1, %v17416_v62 }
 0x377   : > { %v6968_v3 = vadd.s32 %v6967_v42, %v14597_v27  ;;  %v7005_v61 = vadd.s32 %v7004_v28, %v14600_v5  ;;  %v7042_v22 = vadd.s32 %v7041_v32, %v14603_v25  ;;  %v7079_v13 = vadd.s32 %v7078_v21, %v14606_v54  ;;  %8288 = vperm.xlu1 %10291, %v8221_v23   ;;  %v8222_v27 = vld [vmem:[%s10387_s12 + $0x290] sm:$0xff] }
 0x378   : > { %v7116_v11 = vadd.s32 %v7115_v8, %v14610_v60  ;;  %v7153_v18 = vadd.s32 %v7152_v39, %v14613_v38  ;;  %v7190_v0 = vadd.s32 %v7189_v44, %v14616_v43  ;;  %v7227_v40 = vadd.s32 %v7226_v10, %v14619_v31  ;;  %8285 = vperm.xlu0 %10290, %v8220_v15   ;;  %v8226_v42 = vld [vmem:[%s10387_s12 + $0x2b0] sm:$0xff]  ;;  %v6350_v8 = vpop.permute.xlu0 %6349 }
 0x379   : > { %vm6500_vm7 = vcmp.eq.s32.totalorder %v6344_v4, %v14449_v9  ;;  %vm6501_vm4 = vcmp.eq.s32.totalorder %v6344_v4, %v14452_v35  ;;  %vm6502_vm12 = vcmp.eq.s32.totalorder %v6344_v4, %v14455_v24  ;;  %vm6503_vm8 = vcmp.eq.s32.totalorder %v6344_v4, %v14458_v17 }
 0x37a   : > { %vm6504_vm1 = vcmp.eq.s32.totalorder %v6344_v4, %v14462_v12  ;;  %vm6505_vm2 = vcmp.eq.s32.totalorder %v6344_v4, %v14465_v41  ;;  %vm6506_vm5 = vcmp.eq.s32.totalorder %v6344_v4, %v14468_v56  ;;  %vm6507_vm6 = vcmp.eq.s32.totalorder %v6344_v4, %v14471_v63 }
 0x37b   : > { %v6756_v5 = vsel %vm6500_vm7, 1, %v17416_v62  ;;  %v6757_v25 = vsel %vm6501_vm4, 1, %v17416_v62  ;;  %v6758_v54 = vsel %vm6502_vm12, 1, %v17416_v62  ;;  %v6759_v60 = vsel %vm6503_vm8, 1, %v17416_v62  ;;  %8294 = vperm.xlu1 %10291, %v8223_v45  }
 0x37c   : > { %v6760_v38 = vsel %vm6504_vm1, 1, %v17416_v62  ;;  %v6761_v43 = vsel %vm6505_vm2, 1, %v17416_v62  ;;  %v6762_v31 = vsel %vm6506_vm5, 1, %v17416_v62  ;;  %v6763_v47 = vsel %vm6507_vm6, 1, %v17416_v62  ;;  %8291 = vperm.xlu0 %10290, %v8222_v27  }
 0x37d   : > { %v6969_v16 = vadd.s32 %v6968_v3, %v6756_v5  ;;  %v7006_v29 = vadd.s32 %v7005_v61, %v6757_v25  ;;  %v7043_v26 = vadd.s32 %v7042_v22, %v6758_v54  ;;  %v7080_v14 = vadd.s32 %v7079_v13, %v6759_v60  ;;  %v8229_v22 = vld [vmem:[%s10387_s12 + $0x2c8] sm:$0xff]  ;;  %v9148_v5 = vld [vmem:[%s10387_s12 + $0x300] sm:$0xff] }
 0x37e   : > { %v7117_v33 = vadd.s32 %v7116_v11, %v6760_v38  ;;  %v7154_v46 = vadd.s32 %v7153_v18, %v6761_v43  ;;  %v7191_v2 = vadd.s32 %v7190_v0, %v6762_v31  ;;  %v7228_v1 = vadd.s32 %v7227_v40, %v6763_v47  ;;  %v6359_v11 = vpop.permute.xlu1 %6358  ;;  %v9149_v18 = vld [vmem:[%s10387_s12 + $0x308] sm:$0xff]  ;;  %v9151_v43 = vld [vmem:[%s10387_s12 + $0x318] sm:$0xff] }
 0x37f   : > { %vm6524_vm13 = vcmp.eq.s32.totalorder %v6353_v37, %v14449_v9  ;;  %vm6525_vm10 = vcmp.eq.s32.totalorder %v6353_v37, %v14452_v35  ;;  %vm6526_vm15 = vcmp.eq.s32.totalorder %v6353_v37, %v14455_v24  ;;  %vm6527_vm3 = vcmp.eq.s32.totalorder %v6353_v37, %v14458_v17  ;;  %8300 = vperm.xlu1 %10291, %v8225_v52  }
 0x380   : > { %vm6528_vm0 = vcmp.eq.s32.totalorder %v6353_v37, %v14462_v12  ;;  %vm6529_vm9 = vcmp.eq.s32.totalorder %v6353_v37, %v14465_v41  ;;  %vm6530_vm11 = vcmp.eq.s32.totalorder %v6353_v37, %v14468_v56  ;;  %vm6531_vm14 = vcmp.eq.s32.totalorder %v6353_v37, %v14471_v63  ;;  %8297 = vperm.xlu0 %10290, %v8224_v48  }
 0x381   : > { %v14721_v34 = vsel %vm6524_vm13, 1, %v17416_v62  ;;  %v14724_v49 = vsel %vm6525_vm10, 1, %v17416_v62  ;;  %v14727_v58 = vsel %vm6526_vm15, 1, %v17416_v62  ;;  %v14730_v53 = vsel %vm6527_vm3, 1, %v17416_v62 }
 0x382   : > { %v14734_v28 = vsel %vm6528_vm0, 1, %v17416_v62  ;;  %v14737_v32 = vsel %vm6529_vm9, 1, %v17416_v62  ;;  %v14740_v21 = vsel %vm6530_vm11, 1, %v17416_v62  ;;  %v14743_v30 = vsel %vm6531_vm14, 1, %v17416_v62 }
 0x383   : > { %v6970_v39 = vadd.s32 %v6969_v16, %v14659_v59  ;;  %v7007_v44 = vadd.s32 %v7006_v29, %v14662_v7  ;;  %v7044_v10 = vadd.s32 %v7043_v26, %v14665_v19  ;;  %v7081_v23 = vadd.s32 %v7080_v14, %v14668_v50  ;;  %8306 = vperm.xlu1 %10291, %v8227_v57   ;;  %v8228_v59 = vld [vmem:[%s10387_s12 + $0x2c0] sm:$0xff]  ;;  %v9150_v16 = vld [vmem:[%s10387_s12 + $0x310] sm:$0xff] }
 0x384   : > { %v7118_v15 = vadd.s32 %v7117_v33, %v14672_v20  ;;  %v7155_v4 = vadd.s32 %v7154_v46, %v14675_v36  ;;  %v7192_v3 = vadd.s32 %v7191_v2, %v14678_v55  ;;  %v7229_v61 = vadd.s32 %v7228_v1, %v14681_v51  ;;  %8303 = vperm.xlu0 %10290, %v8226_v42   ;;  %v6356_v33 = vpop.permute.xlu0 %6355 }
 0x385   : > { %vm6516_vm7 = vcmp.eq.s32.totalorder %v6350_v8, %v14449_v9  ;;  %vm6517_vm4 = vcmp.eq.s32.totalorder %v6350_v8, %v14452_v35  ;;  %vm6518_vm12 = vcmp.eq.s32.totalorder %v6350_v8, %v14455_v24  ;;  %vm6519_vm8 = vcmp.eq.s32.totalorder %v6350_v8, %v14458_v17 }
 0x386   : > { %vm6520_vm1 = vcmp.eq.s32.totalorder %v6350_v8, %v14462_v12  ;;  %vm6521_vm2 = vcmp.eq.s32.totalorder %v6350_v8, %v14465_v41  ;;  %vm6522_vm5 = vcmp.eq.s32.totalorder %v6350_v8, %v14468_v56  ;;  %vm6523_vm6 = vcmp.eq.s32.totalorder %v6350_v8, %v14471_v63 }
 0x387   : > { %v6772_v7 = vsel %vm6516_vm7, 1, %v17416_v62  ;;  %v6773_v19 = vsel %vm6517_vm4, 1, %v17416_v62  ;;  %v6774_v50 = vsel %vm6518_vm12, 1, %v17416_v62  ;;  %v6775_v20 = vsel %vm6519_vm8, 1, %v17416_v62  ;;  %8312 = vperm.xlu1 %10291, %v8229_v22  }
 0x388   : > { %v6776_v36 = vsel %vm6520_vm1, 1, %v17416_v62  ;;  %v6777_v55 = vsel %vm6521_vm2, 1, %v17416_v62  ;;  %v6778_v51 = vsel %vm6522_vm5, 1, %v17416_v62  ;;  %v6779_v13 = vsel %vm6523_vm6, 1, %v17416_v62  ;;  %8309 = vperm.xlu0 %10290, %v8228_v59  }
 0x389   : > { %v6971_v0 = vadd.s32 %v6970_v39, %v6772_v7  ;;  %v7008_v40 = vadd.s32 %v7007_v44, %v6773_v19  ;;  %v7045_v45 = vadd.s32 %v7044_v10, %v6774_v50  ;;  %v7082_v27 = vadd.s32 %v7081_v23, %v6775_v20  ;;  %v6365_v10 = vpop.permute.xlu1 %6364 }
 0x38a   : > { %v7119_v25 = vadd.s32 %v7118_v15, %v6776_v36  ;;  %v7156_v54 = vadd.s32 %v7155_v4, %v6777_v55  ;;  %v7193_v60 = vadd.s32 %v7192_v3, %v6778_v51  ;;  %v7230_v38 = vadd.s32 %v7229_v61, %v6779_v13 }
 0x38b   : > { %vm6540_vm13 = vcmp.eq.s32.totalorder %v6359_v11, %v14449_v9  ;;  %vm6541_vm10 = vcmp.eq.s32.totalorder %v6359_v11, %v14452_v35  ;;  %vm6542_vm15 = vcmp.eq.s32.totalorder %v6359_v11, %v14455_v24  ;;  %vm6543_vm3 = vcmp.eq.s32.totalorder %v6359_v11, %v14458_v17  ;;  %9184 = vperm.xlu1 %10291, %v9149_v18   ;;  %v6362_v18 = vpop.permute.xlu0 %6361 }
 0x38c   : > { %vm6544_vm0 = vcmp.eq.s32.totalorder %v6359_v11, %v14462_v12  ;;  %vm6545_vm9 = vcmp.eq.s32.totalorder %v6359_v11, %v14465_v41  ;;  %vm6546_vm11 = vcmp.eq.s32.totalorder %v6359_v11, %v14468_v56  ;;  %vm6547_vm14 = vcmp.eq.s32.totalorder %v6359_v11, %v14471_v63  ;;  %9181 = vperm.xlu0 %10290, %v9148_v5  }
 0x38d   : > { %v6796_v31 = vsel %vm6540_vm13, 1, %v17416_v62  ;;  %v6797_v47 = vsel %vm6541_vm10, 1, %v17416_v62  ;;  %v6798_v37 = vsel %vm6542_vm15, 1, %v17416_v62  ;;  %v6799_v52 = vsel %vm6543_vm3, 1, %v17416_v62 }
 0x38e   : > { %v6800_v29 = vsel %vm6544_vm0, 1, %v17416_v62  ;;  %v6801_v26 = vsel %vm6545_vm9, 1, %v17416_v62  ;;  %v6802_v14 = vsel %vm6546_vm11, 1, %v17416_v62  ;;  %v6803_v48 = vsel %vm6547_vm14, 1, %v17416_v62 }
 0x38f   : > { %v6972_v46 = vadd.s32 %v6971_v0, %v14721_v34  ;;  %v7009_v2 = vadd.s32 %v7008_v40, %v14724_v49  ;;  %v7046_v1 = vadd.s32 %v7045_v45, %v14727_v58  ;;  %v7083_v57 = vadd.s32 %v7082_v27, %v14730_v53  ;;  %9190 = vperm.xlu1 %10291, %v9151_v43  }
 0x390   : > { %v7120_v42 = vadd.s32 %v7119_v25, %v14734_v28  ;;  %v7157_v8 = vadd.s32 %v7156_v54, %v14737_v32  ;;  %v7194_v39 = vadd.s32 %v7193_v60, %v14740_v21  ;;  %v7231_v44 = vadd.s32 %v7230_v38, %v14743_v30  ;;  %9187 = vperm.xlu0 %10290, %v9150_v16  }
 0x391   : > { %vm6532_vm7 = vcmp.eq.s32.totalorder %v6356_v33, %v14449_v9  ;;  %vm6533_vm4 = vcmp.eq.s32.totalorder %v6356_v33, %v14452_v35  ;;  %vm6534_vm12 = vcmp.eq.s32.totalorder %v6356_v33, %v14455_v24  ;;  %vm6535_vm8 = vcmp.eq.s32.totalorder %v6356_v33, %v14458_v17 }
 0x392   : > { %vm6536_vm1 = vcmp.eq.s32.totalorder %v6356_v33, %v14462_v12  ;;  %vm6537_vm2 = vcmp.eq.s32.totalorder %v6356_v33, %v14465_v41  ;;  %vm6538_vm5 = vcmp.eq.s32.totalorder %v6356_v33, %v14468_v56  ;;  %vm6539_vm6 = vcmp.eq.s32.totalorder %v6356_v33, %v14471_v63 }
 0x393   : > { %v6788_v34 = vsel %vm6532_vm7, 1, %v17416_v62  ;;  %v6789_v49 = vsel %vm6533_vm4, 1, %v17416_v62  ;;  %v6790_v58 = vsel %vm6534_vm12, 1, %v17416_v62  ;;  %v6791_v53 = vsel %vm6535_vm8, 1, %v17416_v62 }
 0x394   : > { %v6792_v28 = vsel %vm6536_vm1, 1, %v17416_v62  ;;  %v6793_v32 = vsel %vm6537_vm2, 1, %v17416_v62  ;;  %v6794_v21 = vsel %vm6538_vm5, 1, %v17416_v62  ;;  %v6795_v30 = vsel %vm6539_vm6, 1, %v17416_v62 }
 0x395   : > { %v6973_v23 = vadd.s32 %v6972_v46, %v6788_v34  ;;  %v7010_v15 = vadd.s32 %v7009_v2, %v6789_v49  ;;  %v7047_v4 = vadd.s32 %v7046_v1, %v6790_v58  ;;  %v7084_v3 = vadd.s32 %v7083_v57, %v6791_v53 }
 0x396   : > { %v7121_v61 = vadd.s32 %v7120_v42, %v6792_v28  ;;  %v7158_v22 = vadd.s32 %v7157_v8, %v6793_v32  ;;  %v7195_v59 = vadd.s32 %v7194_v39, %v6794_v21  ;;  %v7232_v7 = vadd.s32 %v7231_v44, %v6795_v30  ;;  %v9153_v8 = vld [vmem:[%s10387_s12 + $0x328] sm:$0xff]  ;;  %v9152_v39 = vld [vmem:[%s10387_s12 + $0x320] sm:$0xff]  ;;  %v6368_v30 = vpop.permute.xlu0 %6367 }
 0x397   : > { %vm6556_vm13 = vcmp.eq.s32.totalorder %v6365_v10, %v14449_v9  ;;  %vm6557_vm10 = vcmp.eq.s32.totalorder %v6365_v10, %v14452_v35  ;;  %vm6558_vm15 = vcmp.eq.s32.totalorder %v6365_v10, %v14455_v24  ;;  %vm6559_vm3 = vcmp.eq.s32.totalorder %v6365_v10, %v14458_v17  ;;  %9196 = vperm.xlu1 %10291, %v9153_v8  }
 0x398   : > { %vm6560_vm0 = vcmp.eq.s32.totalorder %v6365_v10, %v14462_v12  ;;  %vm6561_vm9 = vcmp.eq.s32.totalorder %v6365_v10, %v14465_v41  ;;  %vm6562_vm11 = vcmp.eq.s32.totalorder %v6365_v10, %v14468_v56  ;;  %vm6563_vm14 = vcmp.eq.s32.totalorder %v6365_v10, %v14471_v63  ;;  %9193 = vperm.xlu0 %10290, %v9152_v39  }
 0x399   : > { %v14824_v19 = vsel %vm6556_vm13, 1, %v17416_v62  ;;  %v14827_v50 = vsel %vm6557_vm10, 1, %v17416_v62  ;;  %v14830_v20 = vsel %vm6558_vm15, 1, %v17416_v62  ;;  %v14833_v36 = vsel %vm6559_vm3, 1, %v17416_v62 }
 0x39a   : > { %v14836_v55 = vsel %vm6560_vm0, 1, %v17416_v62  ;;  %v14839_v51 = vsel %vm6561_vm9, 1, %v17416_v62  ;;  %v14842_v13 = vsel %vm6562_vm11, 1, %v17416_v62  ;;  %v14845_v11 = vsel %vm6563_vm14, 1, %v17416_v62 }
 0x39b   : > { %v6974_v0 = vadd.s32 %v6973_v23, %v6796_v31  ;;  %v7011_v40 = vadd.s32 %v7010_v15, %v6797_v47  ;;  %v7048_v45 = vadd.s32 %v7047_v4, %v6798_v37  ;;  %v7085_v27 = vadd.s32 %v7084_v3, %v6799_v52 }
 0x39c   : > { %v7122_v5 = vadd.s32 %v7121_v61, %v6800_v29  ;;  %v7159_v25 = vadd.s32 %v7158_v22, %v6801_v26  ;;  %v7196_v54 = vadd.s32 %v7195_v59, %v6802_v14  ;;  %v7233_v60 = vadd.s32 %v7232_v7, %v6803_v48  ;;  %v6371_v26 = vpop.permute.xlu1 %6370 }
 0x39d   : > { %vm6548_vm7 = vcmp.eq.s32.totalorder %v6362_v18, %v14449_v9  ;;  %vm6549_vm4 = vcmp.eq.s32.totalorder %v6362_v18, %v14452_v35  ;;  %vm6550_vm12 = vcmp.eq.s32.totalorder %v6362_v18, %v14455_v24  ;;  %vm6551_vm8 = vcmp.eq.s32.totalorder %v6362_v18, %v14458_v17 }
 0x39e   : > { %vm6552_vm1 = vcmp.eq.s32.totalorder %v6362_v18, %v14462_v12  ;;  %vm6553_vm2 = vcmp.eq.s32.totalorder %v6362_v18, %v14465_v41  ;;  %vm6554_vm5 = vcmp.eq.s32.totalorder %v6362_v18, %v14468_v56  ;;  %vm6555_vm6 = vcmp.eq.s32.totalorder %v6362_v18, %v14471_v63 }
 0x39f   : > { %v6804_v38 = vsel %vm6548_vm7, 1, %v17416_v62  ;;  %v6805_v43 = vsel %vm6549_vm4, 1, %v17416_v62  ;;  %v6806_v31 = vsel %vm6550_vm12, 1, %v17416_v62  ;;  %v6807_v47 = vsel %vm6551_vm8, 1, %v17416_v62 }
 0x3a0   : > { %v6808_v37 = vsel %vm6552_vm1, 1, %v17416_v62  ;;  %v6809_v52 = vsel %vm6553_vm2, 1, %v17416_v62  ;;  %v6810_v16 = vsel %vm6554_vm5, 1, %v17416_v62  ;;  %v6811_v29 = vsel %vm6555_vm6, 1, %v17416_v62 }
 0x3a1   : > { %v6975_v14 = vadd.s32 %v6974_v0, %v6804_v38  ;;  %v7012_v48 = vadd.s32 %v7011_v40, %v6805_v43  ;;  %v7049_v33 = vadd.s32 %v7048_v45, %v6806_v31  ;;  %v7086_v46 = vadd.s32 %v7085_v27, %v6807_v47  ;;  %v9155_v27 = vld [vmem:[%s10387_s12 + $0x338] sm:$0xff] }
 0x3a2   : > { %v7123_v2 = vadd.s32 %v7122_v5, %v6808_v37  ;;  %v7160_v1 = vadd.s32 %v7159_v25, %v6809_v52  ;;  %v7197_v57 = vadd.s32 %v7196_v54, %v6810_v16  ;;  %v7234_v42 = vadd.s32 %v7233_v60, %v6811_v29  ;;  %v9154_v5 = vld [vmem:[%s10387_s12 + $0x330] sm:$0xff]  ;;  %9202 = vperm.xlu1 %10291, %v9155_v27  }
 0x3a3   : > { %vm6572_vm13 = vcmp.eq.s32.totalorder %v6371_v26, %v14449_v9  ;;  %vm6573_vm10 = vcmp.eq.s32.totalorder %v6371_v26, %v14452_v35  ;;  %vm6574_vm15 = vcmp.eq.s32.totalorder %v6371_v26, %v14455_v24  ;;  %vm6575_vm3 = vcmp.eq.s32.totalorder %v6371_v26, %v14458_v17  ;;  %9199 = vperm.xlu0 %10290, %v9154_v5  }
 0x3a4   : > { %vm6576_vm0 = vcmp.eq.s32.totalorder %v6371_v26, %v14462_v12  ;;  %vm6577_vm9 = vcmp.eq.s32.totalorder %v6371_v26, %v14465_v41  ;;  %vm6578_vm11 = vcmp.eq.s32.totalorder %v6371_v26, %v14468_v56  ;;  %vm6579_vm14 = vcmp.eq.s32.totalorder %v6371_v26, %v14471_v63 }
 0x3a5   : > { %v14874_v44 = vsel %vm6572_vm13, 1, %v17416_v62  ;;  %v14877_v34 = vsel %vm6573_vm10, 1, %v17416_v62  ;;  %v14880_v49 = vsel %vm6574_vm15, 1, %v17416_v62  ;;  %v14883_v58 = vsel %vm6575_vm3, 1, %v17416_v62 }
 0x3a6   : > { %v14886_v53 = vsel %vm6576_vm0, 1, %v17416_v62  ;;  %v14889_v28 = vsel %vm6577_vm9, 1, %v17416_v62  ;;  %v14892_v32 = vsel %vm6578_vm11, 1, %v17416_v62  ;;  %v14895_v21 = vsel %vm6579_vm14, 1, %v17416_v62 }
 0x3a7   : > { %v6976_v10 = vadd.s32 %v6975_v14, %v14824_v19  ;;  %v7013_v23 = vadd.s32 %v7012_v48, %v14827_v50  ;;  %v7050_v15 = vadd.s32 %v7049_v33, %v14830_v20  ;;  %v7087_v4 = vadd.s32 %v7086_v46, %v14833_v36  ;;  %v6374_v14 = vpop.permute.xlu0 %6373 }
 0x3a8   : > { %v7124_v3 = vadd.s32 %v7123_v2, %v14836_v55  ;;  %v7161_v61 = vadd.s32 %v7160_v1, %v14839_v51  ;;  %v7198_v22 = vadd.s32 %v7197_v57, %v14842_v13  ;;  %v7235_v59 = vadd.s32 %v7234_v42, %v14845_v11  ;;  %v6377_v11 = vpop.permute.xlu1 %6376 }
 0x3a9   : > { %vm6564_vm7 = vcmp.eq.s32.totalorder %v6368_v30, %v14449_v9  ;;  %vm6565_vm4 = vcmp.eq.s32.totalorder %v6368_v30, %v14452_v35  ;;  %vm6566_vm12 = vcmp.eq.s32.totalorder %v6368_v30, %v14455_v24  ;;  %vm6567_vm8 = vcmp.eq.s32.totalorder %v6368_v30, %v14458_v17 }
 0x3aa   : > { %vm6568_vm1 = vcmp.eq.s32.totalorder %v6368_v30, %v14462_v12  ;;  %vm6569_vm2 = vcmp.eq.s32.totalorder %v6368_v30, %v14465_v41  ;;  %vm6570_vm5 = vcmp.eq.s32.totalorder %v6368_v30, %v14468_v56  ;;  %vm6571_vm6 = vcmp.eq.s32.totalorder %v6368_v30, %v14471_v63 }
 0x3ab   : > { %v6820_v7 = vsel %vm6564_vm7, 1, %v17416_v62  ;;  %v6821_v19 = vsel %vm6565_vm4, 1, %v17416_v62  ;;  %v6822_v50 = vsel %vm6566_vm12, 1, %v17416_v62  ;;  %v6823_v20 = vsel %vm6567_vm8, 1, %v17416_v62 }
 0x3ac   : > { %v6824_v36 = vsel %vm6568_vm1, 1, %v17416_v62  ;;  %v6825_v55 = vsel %vm6569_vm2, 1, %v17416_v62  ;;  %v6826_v51 = vsel %vm6570_vm5, 1, %v17416_v62  ;;  %v6827_v13 = vsel %vm6571_vm6, 1, %v17416_v62 }
 0x3ad   : > { %v6977_v18 = vadd.s32 %v6976_v10, %v6820_v7  ;;  %v7014_v0 = vadd.s32 %v7013_v23, %v6821_v19  ;;  %v7051_v40 = vadd.s32 %v7050_v15, %v6822_v50  ;;  %v7088_v45 = vadd.s32 %v7087_v4, %v6823_v20  ;;  %v9157_v4 = vld [vmem:[%s10387_s12 + $0x348] sm:$0xff] }
 0x3ae   : > { %v7125_v25 = vadd.s32 %v7124_v3, %v6824_v36  ;;  %v7162_v54 = vadd.s32 %v7161_v61, %v6825_v55  ;;  %v7199_v60 = vadd.s32 %v7198_v22, %v6826_v51  ;;  %v7236_v38 = vadd.s32 %v7235_v59, %v6827_v13  ;;  %v9156_v3 = vld [vmem:[%s10387_s12 + $0x340] sm:$0xff]  ;;  %9208 = vperm.xlu1 %10291, %v9157_v4  }
 0x3af   : > { %vm6588_vm13 = vcmp.eq.s32.totalorder %v6377_v11, %v14449_v9  ;;  %vm6589_vm10 = vcmp.eq.s32.totalorder %v6377_v11, %v14452_v35  ;;  %vm6590_vm15 = vcmp.eq.s32.totalorder %v6377_v11, %v14455_v24  ;;  %vm6591_vm3 = vcmp.eq.s32.totalorder %v6377_v11, %v14458_v17  ;;  %9205 = vperm.xlu0 %10290, %v9156_v3  }
 0x3b0   : > { %vm6592_vm0 = vcmp.eq.s32.totalorder %v6377_v11, %v14462_v12  ;;  %vm6593_vm9 = vcmp.eq.s32.totalorder %v6377_v11, %v14465_v41  ;;  %vm6594_vm11 = vcmp.eq.s32.totalorder %v6377_v11, %v14468_v56  ;;  %vm6595_vm14 = vcmp.eq.s32.totalorder %v6377_v11, %v14471_v63 }
 0x3b1   : > { %v14932_v43 = vsel %vm6588_vm13, 1, %v17416_v62  ;;  %v14935_v31 = vsel %vm6589_vm10, 1, %v17416_v62  ;;  %v14938_v47 = vsel %vm6590_vm15, 1, %v17416_v62  ;;  %v14941_v37 = vsel %vm6591_vm3, 1, %v17416_v62 }
 0x3b2   : > { %v14944_v52 = vsel %vm6592_vm0, 1, %v17416_v62  ;;  %v14947_v16 = vsel %vm6593_vm9, 1, %v17416_v62  ;;  %v14950_v29 = vsel %vm6594_vm11, 1, %v17416_v62  ;;  %v14953_v26 = vsel %vm6595_vm14, 1, %v17416_v62 }
 0x3b3   : > { %v6978_v48 = vadd.s32 %v6977_v18, %v14874_v44  ;;  %v7015_v33 = vadd.s32 %v7014_v0, %v14877_v34  ;;  %v7052_v46 = vadd.s32 %v7051_v40, %v14880_v49  ;;  %v7089_v2 = vadd.s32 %v7088_v45, %v14883_v58  ;;  %v6380_v18 = vpop.permute.xlu0 %6379 }
 0x3b4   : > { %v7126_v1 = vadd.s32 %v7125_v25, %v14886_v53  ;;  %v7163_v57 = vadd.s32 %v7162_v54, %v14889_v28  ;;  %v7200_v42 = vadd.s32 %v7199_v60, %v14892_v32  ;;  %v7237_v8 = vadd.s32 %v7236_v38, %v14895_v21  ;;  %v6383_v21 = vpop.permute.xlu1 %6382 }
 0x3b5   : > { %vm6580_vm7 = vcmp.eq.s32.totalorder %v6374_v14, %v14449_v9  ;;  %vm6581_vm4 = vcmp.eq.s32.totalorder %v6374_v14, %v14452_v35  ;;  %vm6582_vm12 = vcmp.eq.s32.totalorder %v6374_v14, %v14455_v24  ;;  %vm6583_vm8 = vcmp.eq.s32.totalorder %v6374_v14, %v14458_v17 }
 0x3b6   : > { %vm6584_vm1 = vcmp.eq.s32.totalorder %v6374_v14, %v14462_v12  ;;  %vm6585_vm2 = vcmp.eq.s32.totalorder %v6374_v14, %v14465_v41  ;;  %vm6586_vm5 = vcmp.eq.s32.totalorder %v6374_v14, %v14468_v56  ;;  %vm6587_vm6 = vcmp.eq.s32.totalorder %v6374_v14, %v14471_v63 }
 0x3b7   : > { %v6836_v39 = vsel %vm6580_vm7, 1, %v17416_v62  ;;  %v6837_v44 = vsel %vm6581_vm4, 1, %v17416_v62  ;;  %v6838_v34 = vsel %vm6582_vm12, 1, %v17416_v62  ;;  %v6839_v49 = vsel %vm6583_vm8, 1, %v17416_v62 }
 0x3b8   : > { %v6840_v58 = vsel %vm6584_vm1, 1, %v17416_v62  ;;  %v6841_v53 = vsel %vm6585_vm2, 1, %v17416_v62  ;;  %v6842_v28 = vsel %vm6586_vm5, 1, %v17416_v62  ;;  %v6843_v32 = vsel %vm6587_vm6, 1, %v17416_v62 }
 0x3b9   : > { %v6979_v30 = vadd.s32 %v6978_v48, %v6836_v39  ;;  %v7016_v10 = vadd.s32 %v7015_v33, %v6837_v44  ;;  %v7053_v23 = vadd.s32 %v7052_v46, %v6838_v34  ;;  %v7090_v15 = vadd.s32 %v7089_v2, %v6839_v49  ;;  %v9159_v2 = vld [vmem:[%s10387_s12 + $0x358] sm:$0xff] }
 0x3ba   : > { %v7127_v61 = vadd.s32 %v7126_v1, %v6840_v58  ;;  %v7164_v22 = vadd.s32 %v7163_v57, %v6841_v53  ;;  %v7201_v59 = vadd.s32 %v7200_v42, %v6842_v28  ;;  %v7238_v7 = vadd.s32 %v7237_v8, %v6843_v32  ;;  %v9158_v1 = vld [vmem:[%s10387_s12 + $0x350] sm:$0xff]  ;;  %9214 = vperm.xlu1 %10291, %v9159_v2  }
 0x3bb   : > { %vm6604_vm13 = vcmp.eq.s32.totalorder %v6383_v21, %v14449_v9  ;;  %vm6605_vm10 = vcmp.eq.s32.totalorder %v6383_v21, %v14452_v35  ;;  %vm6606_vm15 = vcmp.eq.s32.totalorder %v6383_v21, %v14455_v24  ;;  %vm6607_vm3 = vcmp.eq.s32.totalorder %v6383_v21, %v14458_v17  ;;  %9211 = vperm.xlu0 %10290, %v9158_v1  }
 0x3bc   : > { %vm6608_vm0 = vcmp.eq.s32.totalorder %v6383_v21, %v14462_v12  ;;  %vm6609_vm9 = vcmp.eq.s32.totalorder %v6383_v21, %v14465_v41  ;;  %vm6610_vm11 = vcmp.eq.s32.totalorder %v6383_v21, %v14468_v56  ;;  %vm6611_vm14 = vcmp.eq.s32.totalorder %v6383_v21, %v14471_v63 }
 0x3bd   : > { %v14990_v19 = vsel %vm6604_vm13, 1, %v17416_v62  ;;  %v14993_v50 = vsel %vm6605_vm10, 1, %v17416_v62  ;;  %v14996_v20 = vsel %vm6606_vm15, 1, %v17416_v62  ;;  %v14999_v36 = vsel %vm6607_vm3, 1, %v17416_v62 }
 0x3be   : > { %v15002_v55 = vsel %vm6608_vm0, 1, %v17416_v62  ;;  %v15005_v51 = vsel %vm6609_vm9, 1, %v17416_v62  ;;  %v15008_v13 = vsel %vm6610_vm11, 1, %v17416_v62  ;;  %v15011_v11 = vsel %vm6611_vm14, 1, %v17416_v62 }
 0x3bf   : > { %v6980_v0 = vadd.s32 %v6979_v30, %v14932_v43  ;;  %v7017_v40 = vadd.s32 %v7016_v10, %v14935_v31  ;;  %v7054_v45 = vadd.s32 %v7053_v23, %v14938_v47  ;;  %v7091_v27 = vadd.s32 %v7090_v15, %v14941_v37  ;;  %v6386_v30 = vpop.permute.xlu0 %6385 }
 0x3c0   : > { %v7128_v5 = vadd.s32 %v7127_v61, %v14944_v52  ;;  %v7165_v25 = vadd.s32 %v7164_v22, %v14947_v16  ;;  %v7202_v54 = vadd.s32 %v7201_v59, %v14950_v29  ;;  %v7239_v60 = vadd.s32 %v7238_v7, %v14953_v26  ;;  %v6389_v26 = vpop.permute.xlu1 %6388 }
 0x3c1   : > { %vm6596_vm7 = vcmp.eq.s32.totalorder %v6380_v18, %v14449_v9  ;;  %vm6597_vm4 = vcmp.eq.s32.totalorder %v6380_v18, %v14452_v35  ;;  %vm6598_vm12 = vcmp.eq.s32.totalorder %v6380_v18, %v14455_v24  ;;  %vm6599_vm8 = vcmp.eq.s32.totalorder %v6380_v18, %v14458_v17 }
 0x3c2   : > { %vm6600_vm1 = vcmp.eq.s32.totalorder %v6380_v18, %v14462_v12  ;;  %vm6601_vm2 = vcmp.eq.s32.totalorder %v6380_v18, %v14465_v41  ;;  %vm6602_vm5 = vcmp.eq.s32.totalorder %v6380_v18, %v14468_v56  ;;  %vm6603_vm6 = vcmp.eq.s32.totalorder %v6380_v18, %v14471_v63 }
 0x3c3   : > { %v6852_v38 = vsel %vm6596_vm7, 1, %v17416_v62  ;;  %v6853_v43 = vsel %vm6597_vm4, 1, %v17416_v62  ;;  %v6854_v31 = vsel %vm6598_vm12, 1, %v17416_v62  ;;  %v6855_v47 = vsel %vm6599_vm8, 1, %v17416_v62 }
 0x3c4   : > { %v6856_v37 = vsel %vm6600_vm1, 1, %v17416_v62  ;;  %v6857_v52 = vsel %vm6601_vm2, 1, %v17416_v62  ;;  %v6858_v16 = vsel %vm6602_vm5, 1, %v17416_v62  ;;  %v6859_v29 = vsel %vm6603_vm6, 1, %v17416_v62 }
 0x3c5   : > { %v6981_v14 = vadd.s32 %v6980_v0, %v6852_v38  ;;  %v7018_v48 = vadd.s32 %v7017_v40, %v6853_v43  ;;  %v7055_v33 = vadd.s32 %v7054_v45, %v6854_v31  ;;  %v7092_v46 = vadd.s32 %v7091_v27, %v6855_v47  ;;  %v9161_v27 = vld [vmem:[%s10387_s12 + $0x368] sm:$0xff] }
 0x3c6   : > { %v7129_v57 = vadd.s32 %v7128_v5, %v6856_v37  ;;  %v7166_v42 = vadd.s32 %v7165_v25, %v6857_v52  ;;  %v7203_v8 = vadd.s32 %v7202_v54, %v6858_v16  ;;  %v7240_v39 = vadd.s32 %v7239_v60, %v6859_v29  ;;  %v9160_v5 = vld [vmem:[%s10387_s12 + $0x360] sm:$0xff]  ;;  %9220 = vperm.xlu1 %10291, %v9161_v27  }
 0x3c7   : > { %vm6620_vm13 = vcmp.eq.s32.totalorder %v6389_v26, %v14449_v9  ;;  %vm6621_vm10 = vcmp.eq.s32.totalorder %v6389_v26, %v14452_v35  ;;  %vm6622_vm15 = vcmp.eq.s32.totalorder %v6389_v26, %v14455_v24  ;;  %vm6623_vm3 = vcmp.eq.s32.totalorder %v6389_v26, %v14458_v17  ;;  %9217 = vperm.xlu0 %10290, %v9160_v5  }
 0x3c8   : > { %vm6624_vm0 = vcmp.eq.s32.totalorder %v6389_v26, %v14462_v12  ;;  %vm6625_vm9 = vcmp.eq.s32.totalorder %v6389_v26, %v14465_v41  ;;  %vm6626_vm11 = vcmp.eq.s32.totalorder %v6389_v26, %v14468_v56  ;;  %vm6627_vm14 = vcmp.eq.s32.totalorder %v6389_v26, %v14471_v63 }
 0x3c9   : > { %v15048_v44 = vsel %vm6620_vm13, 1, %v17416_v62  ;;  %v15051_v34 = vsel %vm6621_vm10, 1, %v17416_v62  ;;  %v15054_v49 = vsel %vm6622_vm15, 1, %v17416_v62  ;;  %v15057_v58 = vsel %vm6623_vm3, 1, %v17416_v62 }
 0x3ca   : > { %v15060_v53 = vsel %vm6624_vm0, 1, %v17416_v62  ;;  %v15063_v28 = vsel %vm6625_vm9, 1, %v17416_v62  ;;  %v15066_v32 = vsel %vm6626_vm11, 1, %v17416_v62  ;;  %v15069_v21 = vsel %vm6627_vm14, 1, %v17416_v62 }
 0x3cb   : > { %v6982_v10 = vadd.s32 %v6981_v14, %v14990_v19  ;;  %v7019_v23 = vadd.s32 %v7018_v48, %v14993_v50  ;;  %v7056_v15 = vadd.s32 %v7055_v33, %v14996_v20  ;;  %v7093_v4 = vadd.s32 %v7092_v46, %v14999_v36  ;;  %v6392_v14 = vpop.permute.xlu0 %6391 }
 0x3cc   : > { %v7130_v3 = vadd.s32 %v7129_v57, %v15002_v55  ;;  %v7167_v61 = vadd.s32 %v7166_v42, %v15005_v51  ;;  %v7204_v22 = vadd.s32 %v7203_v8, %v15008_v13  ;;  %v7241_v59 = vadd.s32 %v7240_v39, %v15011_v11  ;;  %v6395_v11 = vpop.permute.xlu1 %6394 }
 0x3cd   : > { %vm6612_vm7 = vcmp.eq.s32.totalorder %v6386_v30, %v14449_v9  ;;  %vm6613_vm4 = vcmp.eq.s32.totalorder %v6386_v30, %v14452_v35  ;;  %vm6614_vm12 = vcmp.eq.s32.totalorder %v6386_v30, %v14455_v24  ;;  %vm6615_vm8 = vcmp.eq.s32.totalorder %v6386_v30, %v14458_v17 }
 0x3ce   : > { %vm6616_vm1 = vcmp.eq.s32.totalorder %v6386_v30, %v14462_v12  ;;  %vm6617_vm2 = vcmp.eq.s32.totalorder %v6386_v30, %v14465_v41  ;;  %vm6618_vm5 = vcmp.eq.s32.totalorder %v6386_v30, %v14468_v56  ;;  %vm6619_vm6 = vcmp.eq.s32.totalorder %v6386_v30, %v14471_v63 }
 0x3cf   : > { %v6868_v7 = vsel %vm6612_vm7, 1, %v17416_v62  ;;  %v6869_v19 = vsel %vm6613_vm4, 1, %v17416_v62  ;;  %v6870_v50 = vsel %vm6614_vm12, 1, %v17416_v62  ;;  %v6871_v20 = vsel %vm6615_vm8, 1, %v17416_v62 }
 0x3d0   : > { %v6872_v36 = vsel %vm6616_vm1, 1, %v17416_v62  ;;  %v6873_v55 = vsel %vm6617_vm2, 1, %v17416_v62  ;;  %v6874_v51 = vsel %vm6618_vm5, 1, %v17416_v62  ;;  %v6875_v13 = vsel %vm6619_vm6, 1, %v17416_v62 }
 0x3d1   : > { %v6983_v18 = vadd.s32 %v6982_v10, %v6868_v7  ;;  %v7020_v0 = vadd.s32 %v7019_v23, %v6869_v19  ;;  %v7057_v40 = vadd.s32 %v7056_v15, %v6870_v50  ;;  %v7094_v45 = vadd.s32 %v7093_v4, %v6871_v20  ;;  %v9163_v4 = vld [vmem:[%s10387_s12 + $0x378] sm:$0xff] }
 0x3d2   : > { %v7131_v25 = vadd.s32 %v7130_v3, %v6872_v36  ;;  %v7168_v54 = vadd.s32 %v7167_v61, %v6873_v55  ;;  %v7205_v60 = vadd.s32 %v7204_v22, %v6874_v51  ;;  %v7242_v38 = vadd.s32 %v7241_v59, %v6875_v13  ;;  %v9162_v3 = vld [vmem:[%s10387_s12 + $0x370] sm:$0xff]  ;;  %9226 = vperm.xlu1 %10291, %v9163_v4  }
 0x3d3   : > { %vm6636_vm13 = vcmp.eq.s32.totalorder %v6395_v11, %v14449_v9  ;;  %vm6637_vm10 = vcmp.eq.s32.totalorder %v6395_v11, %v14452_v35  ;;  %vm6638_vm15 = vcmp.eq.s32.totalorder %v6395_v11, %v14455_v24  ;;  %vm6639_vm3 = vcmp.eq.s32.totalorder %v6395_v11, %v14458_v17  ;;  %9223 = vperm.xlu0 %10290, %v9162_v3  }
 0x3d4   : > { %vm6640_vm0 = vcmp.eq.s32.totalorder %v6395_v11, %v14462_v12  ;;  %vm6641_vm9 = vcmp.eq.s32.totalorder %v6395_v11, %v14465_v41  ;;  %vm6642_vm11 = vcmp.eq.s32.totalorder %v6395_v11, %v14468_v56  ;;  %vm6643_vm14 = vcmp.eq.s32.totalorder %v6395_v11, %v14471_v63 }
 0x3d5   : > { %v15106_v43 = vsel %vm6636_vm13, 1, %v17416_v62  ;;  %v15109_v31 = vsel %vm6637_vm10, 1, %v17416_v62  ;;  %v15112_v47 = vsel %vm6638_vm15, 1, %v17416_v62  ;;  %v15115_v37 = vsel %vm6639_vm3, 1, %v17416_v62 }
 0x3d6   : > { %v15118_v52 = vsel %vm6640_vm0, 1, %v17416_v62  ;;  %v15121_v16 = vsel %vm6641_vm9, 1, %v17416_v62  ;;  %v15124_v29 = vsel %vm6642_vm11, 1, %v17416_v62  ;;  %v15127_v26 = vsel %vm6643_vm14, 1, %v17416_v62 }
 0x3d7   : > { %v6984_v48 = vadd.s32 %v6983_v18, %v15048_v44  ;;  %v7021_v33 = vadd.s32 %v7020_v0, %v15051_v34  ;;  %v7058_v46 = vadd.s32 %v7057_v40, %v15054_v49  ;;  %v7095_v2 = vadd.s32 %v7094_v45, %v15057_v58  ;;  %v6398_v18 = vpop.permute.xlu0 %6397 }
 0x3d8   : > { %v7132_v1 = vadd.s32 %v7131_v25, %v15060_v53  ;;  %v7169_v57 = vadd.s32 %v7168_v54, %v15063_v28  ;;  %v7206_v42 = vadd.s32 %v7205_v60, %v15066_v32  ;;  %v7243_v8 = vadd.s32 %v7242_v38, %v15069_v21  ;;  %v6401_v21 = vpop.permute.xlu1 %6400 }
 0x3d9   : > { %vm6628_vm7 = vcmp.eq.s32.totalorder %v6392_v14, %v14449_v9  ;;  %vm6629_vm4 = vcmp.eq.s32.totalorder %v6392_v14, %v14452_v35  ;;  %vm6630_vm12 = vcmp.eq.s32.totalorder %v6392_v14, %v14455_v24  ;;  %vm6631_vm8 = vcmp.eq.s32.totalorder %v6392_v14, %v14458_v17 }
 0x3da   : > { %vm6632_vm1 = vcmp.eq.s32.totalorder %v6392_v14, %v14462_v12  ;;  %vm6633_vm2 = vcmp.eq.s32.totalorder %v6392_v14, %v14465_v41  ;;  %vm6634_vm5 = vcmp.eq.s32.totalorder %v6392_v14, %v14468_v56  ;;  %vm6635_vm6 = vcmp.eq.s32.totalorder %v6392_v14, %v14471_v63 }
 0x3db   : > { %v6884_v39 = vsel %vm6628_vm7, 1, %v17416_v62  ;;  %v6885_v44 = vsel %vm6629_vm4, 1, %v17416_v62  ;;  %v6886_v34 = vsel %vm6630_vm12, 1, %v17416_v62  ;;  %v6887_v49 = vsel %vm6631_vm8, 1, %v17416_v62 }
 0x3dc   : > { %v6888_v58 = vsel %vm6632_vm1, 1, %v17416_v62  ;;  %v6889_v53 = vsel %vm6633_vm2, 1, %v17416_v62  ;;  %v6890_v28 = vsel %vm6634_vm5, 1, %v17416_v62  ;;  %v6891_v32 = vsel %vm6635_vm6, 1, %v17416_v62 }
 0x3dd   : > { %v6985_v30 = vadd.s32 %v6984_v48, %v6884_v39  ;;  %v7022_v10 = vadd.s32 %v7021_v33, %v6885_v44  ;;  %v7059_v23 = vadd.s32 %v7058_v46, %v6886_v34  ;;  %v7096_v15 = vadd.s32 %v7095_v2, %v6887_v49  ;;  %v9165_v2 = vld [vmem:[%s10387_s12 + $0x388] sm:$0xff] }
 0x3de   : > { %v7133_v61 = vadd.s32 %v7132_v1, %v6888_v58  ;;  %v7170_v22 = vadd.s32 %v7169_v57, %v6889_v53  ;;  %v7207_v59 = vadd.s32 %v7206_v42, %v6890_v28  ;;  %v7244_v7 = vadd.s32 %v7243_v8, %v6891_v32  ;;  %v9164_v1 = vld [vmem:[%s10387_s12 + $0x380] sm:$0xff]  ;;  %9232 = vperm.xlu1 %10291, %v9165_v2  }
 0x3df   : > { %vm6652_vm13 = vcmp.eq.s32.totalorder %v6401_v21, %v14449_v9  ;;  %vm6653_vm10 = vcmp.eq.s32.totalorder %v6401_v21, %v14452_v35  ;;  %vm6654_vm15 = vcmp.eq.s32.totalorder %v6401_v21, %v14455_v24  ;;  %vm6655_vm3 = vcmp.eq.s32.totalorder %v6401_v21, %v14458_v17  ;;  %9229 = vperm.xlu0 %10290, %v9164_v1  }
 0x3e0   : > { %vm6656_vm0 = vcmp.eq.s32.totalorder %v6401_v21, %v14462_v12  ;;  %vm6657_vm9 = vcmp.eq.s32.totalorder %v6401_v21, %v14465_v41  ;;  %vm6658_vm11 = vcmp.eq.s32.totalorder %v6401_v21, %v14468_v56  ;;  %vm6659_vm14 = vcmp.eq.s32.totalorder %v6401_v21, %v14471_v63 }
 0x3e1   : > { %v15164_v19 = vsel %vm6652_vm13, 1, %v17416_v62  ;;  %v15167_v50 = vsel %vm6653_vm10, 1, %v17416_v62  ;;  %v15170_v20 = vsel %vm6654_vm15, 1, %v17416_v62  ;;  %v15173_v36 = vsel %vm6655_vm3, 1, %v17416_v62 }
 0x3e2   : > { %v15176_v55 = vsel %vm6656_vm0, 1, %v17416_v62  ;;  %v15179_v51 = vsel %vm6657_vm9, 1, %v17416_v62  ;;  %v15182_v13 = vsel %vm6658_vm11, 1, %v17416_v62  ;;  %v15185_v11 = vsel %vm6659_vm14, 1, %v17416_v62 }
 0x3e3   : > { %v6986_v0 = vadd.s32 %v6985_v30, %v15106_v43  ;;  %v7023_v40 = vadd.s32 %v7022_v10, %v15109_v31  ;;  %v7060_v45 = vadd.s32 %v7059_v23, %v15112_v47  ;;  %v7097_v27 = vadd.s32 %v7096_v15, %v15115_v37  ;;  %v6404_v30 = vpop.permute.xlu0 %6403 }
 0x3e4   : > { %v7134_v5 = vadd.s32 %v7133_v61, %v15118_v52  ;;  %v7171_v25 = vadd.s32 %v7170_v22, %v15121_v16  ;;  %v7208_v54 = vadd.s32 %v7207_v59, %v15124_v29  ;;  %v7245_v60 = vadd.s32 %v7244_v7, %v15127_v26  ;;  %v6407_v26 = vpop.permute.xlu1 %6406 }
 0x3e5   : > { %vm6644_vm7 = vcmp.eq.s32.totalorder %v6398_v18, %v14449_v9  ;;  %vm6645_vm4 = vcmp.eq.s32.totalorder %v6398_v18, %v14452_v35  ;;  %vm6646_vm12 = vcmp.eq.s32.totalorder %v6398_v18, %v14455_v24  ;;  %vm6647_vm8 = vcmp.eq.s32.totalorder %v6398_v18, %v14458_v17 }
 0x3e6   : > { %vm6648_vm1 = vcmp.eq.s32.totalorder %v6398_v18, %v14462_v12  ;;  %vm6649_vm2 = vcmp.eq.s32.totalorder %v6398_v18, %v14465_v41  ;;  %vm6650_vm5 = vcmp.eq.s32.totalorder %v6398_v18, %v14468_v56  ;;  %vm6651_vm6 = vcmp.eq.s32.totalorder %v6398_v18, %v14471_v63 }
 0x3e7   : > { %v6900_v38 = vsel %vm6644_vm7, 1, %v17416_v62  ;;  %v6901_v43 = vsel %vm6645_vm4, 1, %v17416_v62  ;;  %v6902_v31 = vsel %vm6646_vm12, 1, %v17416_v62  ;;  %v6903_v47 = vsel %vm6647_vm8, 1, %v17416_v62 }
 0x3e8   : > { %v6904_v37 = vsel %vm6648_vm1, 1, %v17416_v62  ;;  %v6905_v52 = vsel %vm6649_vm2, 1, %v17416_v62  ;;  %v6906_v16 = vsel %vm6650_vm5, 1, %v17416_v62  ;;  %v6907_v29 = vsel %vm6651_vm6, 1, %v17416_v62 }
 0x3e9   : > { %v6987_v14 = vadd.s32 %v6986_v0, %v6900_v38  ;;  %v7024_v48 = vadd.s32 %v7023_v40, %v6901_v43  ;;  %v7061_v33 = vadd.s32 %v7060_v45, %v6902_v31  ;;  %v7098_v46 = vadd.s32 %v7097_v27, %v6903_v47  ;;  %v9167_v27 = vld [vmem:[%s10387_s12 + $0x398] sm:$0xff]  ;;  %v6410_v43 = vpop.permute.xlu0 %6409 }
 0x3ea   : > { %v7135_v57 = vadd.s32 %v7134_v5, %v6904_v37  ;;  %v7172_v42 = vadd.s32 %v7171_v25, %v6905_v52  ;;  %v7209_v8 = vadd.s32 %v7208_v54, %v6906_v16  ;;  %v7246_v39 = vadd.s32 %v7245_v60, %v6907_v29  ;;  %v9166_v5 = vld [vmem:[%s10387_s12 + $0x390] sm:$0xff]  ;;  %9238 = vperm.xlu1 %10291, %v9167_v27  }
 0x3eb   : > { %vm6668_vm13 = vcmp.eq.s32.totalorder %v6407_v26, %v14449_v9  ;;  %vm6669_vm10 = vcmp.eq.s32.totalorder %v6407_v26, %v14452_v35  ;;  %vm6670_vm15 = vcmp.eq.s32.totalorder %v6407_v26, %v14455_v24  ;;  %vm6671_vm3 = vcmp.eq.s32.totalorder %v6407_v26, %v14458_v17  ;;  %9235 = vperm.xlu0 %10290, %v9166_v5  }
 0x3ec   : > { %vm6672_vm0 = vcmp.eq.s32.totalorder %v6407_v26, %v14462_v12  ;;  %vm6673_vm9 = vcmp.eq.s32.totalorder %v6407_v26, %v14465_v41  ;;  %vm6674_vm11 = vcmp.eq.s32.totalorder %v6407_v26, %v14468_v56  ;;  %vm6675_vm14 = vcmp.eq.s32.totalorder %v6407_v26, %v14471_v63 }
 0x3ed   : > { %v15222_v44 = vsel %vm6668_vm13, 1, %v17416_v62  ;;  %v15225_v34 = vsel %vm6669_vm10, 1, %v17416_v62  ;;  %v15228_v49 = vsel %vm6670_vm15, 1, %v17416_v62  ;;  %v15231_v58 = vsel %vm6671_vm3, 1, %v17416_v62 }
 0x3ee   : > { %v15234_v53 = vsel %vm6672_vm0, 1, %v17416_v62  ;;  %v15237_v28 = vsel %vm6673_vm9, 1, %v17416_v62  ;;  %v15240_v32 = vsel %vm6674_vm11, 1, %v17416_v62  ;;  %v15243_v21 = vsel %vm6675_vm14, 1, %v17416_v62 }
 0x3ef   : > { %v6988_v10 = vadd.s32 %v6987_v14, %v15164_v19  ;;  %v7025_v23 = vadd.s32 %v7024_v48, %v15167_v50  ;;  %v7062_v15 = vadd.s32 %v7061_v33, %v15170_v20  ;;  %v7099_v4 = vadd.s32 %v7098_v46, %v15173_v36 }
 0x3f0   : > { %v7136_v3 = vadd.s32 %v7135_v57, %v15176_v55  ;;  %v7173_v61 = vadd.s32 %v7172_v42, %v15179_v51  ;;  %v7210_v22 = vadd.s32 %v7209_v8, %v15182_v13  ;;  %v7247_v59 = vadd.s32 %v7246_v39, %v15185_v11  ;;  %v15269_v11 = vpop.permute.xlu1 %6412 }
 0x3f1   : > { %vm6660_vm7 = vcmp.eq.s32.totalorder %v6404_v30, %v14449_v9  ;;  %vm6661_vm4 = vcmp.eq.s32.totalorder %v6404_v30, %v14452_v35  ;;  %vm6662_vm12 = vcmp.eq.s32.totalorder %v6404_v30, %v14455_v24  ;;  %vm6663_vm8 = vcmp.eq.s32.totalorder %v6404_v30, %v14458_v17 }
 0x3f2   : > { %vm6664_vm1 = vcmp.eq.s32.totalorder %v6404_v30, %v14462_v12  ;;  %vm6665_vm2 = vcmp.eq.s32.totalorder %v6404_v30, %v14465_v41  ;;  %vm6666_vm5 = vcmp.eq.s32.totalorder %v6404_v30, %v14468_v56  ;;  %vm6667_vm6 = vcmp.eq.s32.totalorder %v6404_v30, %v14471_v63 }
 0x3f3   : > { %v6916_v7 = vsel %vm6660_vm7, 1, %v17416_v62  ;;  %v6917_v19 = vsel %vm6661_vm4, 1, %v17416_v62  ;;  %v6918_v50 = vsel %vm6662_vm12, 1, %v17416_v62  ;;  %v6919_v20 = vsel %vm6663_vm8, 1, %v17416_v62 }
 0x3f4   : > { %v6920_v36 = vsel %vm6664_vm1, 1, %v17416_v62  ;;  %v6921_v55 = vsel %vm6665_vm2, 1, %v17416_v62  ;;  %v6922_v51 = vsel %vm6666_vm5, 1, %v17416_v62  ;;  %v6923_v13 = vsel %vm6667_vm6, 1, %v17416_v62  ;;  %v6419_v31 = vpop.permute.xlu1 %6418 }
 0x3f5   : > { %v15271_v18 = vadd.s32 %v6988_v10, %v6916_v7  ;;  %v15273_v0 = vadd.s32 %v7025_v23, %v6917_v19  ;;  %v15275_v40 = vadd.s32 %v7062_v15, %v6918_v50  ;;  %v15277_v45 = vadd.s32 %v7099_v4, %v6919_v20  ;;  %v9169_v4 = vld [vmem:[%s10387_s12 + $0x3a8] sm:$0xff] }
 0x3f6   : > { %v15281_v25 = vadd.s32 %v7136_v3, %v6920_v36  ;;  %v15283_v54 = vadd.s32 %v7173_v61, %v6921_v55  ;;  %v15285_v60 = vadd.s32 %v7210_v22, %v6922_v51  ;;  %v15287_v38 = vadd.s32 %v7247_v59, %v6923_v13  ;;  %v9168_v3 = vld [vmem:[%s10387_s12 + $0x3a0] sm:$0xff]  ;;  %9244 = vperm.xlu1 %10291, %v9169_v4  }
 0x3f7   : > { %vm6684_vm13 = vcmp.eq.s32.totalorder %v15269_v11, %v14449_v9  ;;  %vm6685_vm10 = vcmp.eq.s32.totalorder %v15269_v11, %v14452_v35  ;;  %vm6686_vm15 = vcmp.eq.s32.totalorder %v15269_v11, %v14455_v24  ;;  %vm6687_vm3 = vcmp.eq.s32.totalorder %v15269_v11, %v14458_v17  ;;  %9241 = vperm.xlu0 %10290, %v9168_v3  }
 0x3f8   : > { %vm6688_vm0 = vcmp.eq.s32.totalorder %v15269_v11, %v14462_v12  ;;  %vm6689_vm9 = vcmp.eq.s32.totalorder %v15269_v11, %v14465_v41  ;;  %vm6676_vm7 = vcmp.eq.s32.totalorder %v6410_v43, %v14449_v9  ;;  %vm6677_vm4 = vcmp.eq.s32.totalorder %v6410_v43, %v14452_v35 }
 0x3f9   : > { %vm6678_vm12 = vcmp.eq.s32.totalorder %v6410_v43, %v14455_v24  ;;  %vm6679_vm8 = vcmp.eq.s32.totalorder %v6410_v43, %v14458_v17  ;;  %vm6680_vm1 = vcmp.eq.s32.totalorder %v6410_v43, %v14462_v12  ;;  %vm6681_vm2 = vcmp.eq.s32.totalorder %v6410_v43, %v14465_v41 }
 0x3fa   : > { %vm6682_vm5 = vcmp.eq.s32.totalorder %v6410_v43, %v14468_v56  ;;  %vm6683_vm6 = vcmp.eq.s32.totalorder %v6410_v43, %v14471_v63  ;;  %v6932_v47 = vsel %vm6676_vm7, 1, %v17416_v62  ;;  %v6933_v37 = vsel %vm6677_vm4, 1, %v17416_v62 }
 0x3fb   : > { %v6934_v52 = vsel %vm6678_vm12, 1, %v17416_v62  ;;  %v6935_v16 = vsel %vm6679_vm8, 1, %v17416_v62  ;;  %v6936_v29 = vsel %vm6680_vm1, 1, %v17416_v62  ;;  %v6937_v26 = vsel %vm6681_vm2, 1, %v17416_v62 }
 0x3fc   : > { %v6938_v14 = vsel %vm6682_vm5, 1, %v17416_v62  ;;  %v6939_v48 = vsel %vm6683_vm6, 1, %v17416_v62  ;;  %vm6700_vm14 = vcmp.eq.s32.totalorder %v6419_v31, %v14449_v9  ;;  %vm6701_vm11 = vcmp.eq.s32.totalorder %v6419_v31, %v14452_v35 }
 0x3fd   : > { %vm6702_vm7 = vcmp.eq.s32.totalorder %v6419_v31, %v14455_v24  ;;  %vm6703_vm4 = vcmp.eq.s32.totalorder %v6419_v31, %v14458_v17  ;;  %vm6704_vm12 = vcmp.eq.s32.totalorder %v6419_v31, %v14462_v12  ;;  %vm6705_vm8 = vcmp.eq.s32.totalorder %v6419_v31, %v14465_v41 }
 0x3fe   : > { %vm6706_vm1 = vcmp.eq.s32.totalorder %v6419_v31, %v14468_v56  ;;  %vm6707_vm2 = vcmp.eq.s32.totalorder %v6419_v31, %v14471_v63  ;;  %v15330_v33 = vsel %vm6700_vm14, 1, %v17416_v62  ;;  %v15333_v46 = vsel %vm6701_vm11, 1, %v17416_v62 }
 0x3ff   : > { %v15336_v2 = vsel %vm6702_vm7, 1, %v17416_v62  ;;  %v15339_v1 = vsel %vm6703_vm4, 1, %v17416_v62  ;;  %v15342_v57 = vsel %vm6704_vm12, 1, %v17416_v62  ;;  %v15345_v42 = vsel %vm6705_vm8, 1, %v17416_v62 }
 0x400   : > { %v15348_v8 = vsel %vm6706_vm1, 1, %v17416_v62  ;;  %v15351_v39 = vsel %vm6707_vm2, 1, %v17416_v62  ;;  %v6940_v30 = vsel %vm6684_vm13, 1, %v17416_v62  ;;  %v6941_v10 = vsel %vm6685_vm10, 1, %v17416_v62 }
 0x401   : > { %v6942_v23 = vsel %vm6686_vm15, 1, %v17416_v62  ;;  %v6943_v15 = vsel %vm6687_vm3, 1, %v17416_v62  ;;  %v6944_v61 = vsel %vm6688_vm0, 1, %v17416_v62  ;;  %v6945_v22 = vsel %vm6689_vm9, 1, %v17416_v62 }
 0x402   : > { %vm17591_vm13 = vcmp.eq.s32.totalorder %v15269_v11, %v14468_v56  ;;  %vm17592_vm10 = vcmp.eq.s32.totalorder %v15269_v11, %v14471_v63  ;;  %v6990_v19 = vadd.s32 %v15271_v18, %v15222_v44  ;;  %v7027_v50 = vadd.s32 %v15273_v0, %v15225_v34 }
 0x403   : > { %v6946_v59 = vsel %vm17591_vm13, 1, %v17416_v62  ;;  %v6947_v7 = vsel %vm17592_vm10, 1, %v17416_v62  ;;  %v7064_v20 = vadd.s32 %v15275_v40, %v15228_v49  ;;  %v7101_v36 = vadd.s32 %v15277_v45, %v15231_v58  ;;  %v6416_v45 = vpop.permute.xlu0 %6415 }
 0x404   : > { %v7138_v55 = vadd.s32 %v15281_v25, %v15234_v53  ;;  %v7175_v51 = vadd.s32 %v15283_v54, %v15237_v28  ;;  %v7212_v13 = vadd.s32 %v15285_v60, %v15240_v32  ;;  %v7249_v44 = vadd.s32 %v15287_v38, %v15243_v21 }
 0x405   : > { %v6991_v11 = vadd.s32 %v6990_v19, %v6932_v47  ;;  %v7028_v34 = vadd.s32 %v7027_v50, %v6933_v37  ;;  %v7065_v18 = vadd.s32 %v7064_v20, %v6934_v52  ;;  %v7102_v0 = vadd.s32 %v7101_v36, %v6935_v16 }
 0x406   : > { %v7139_v49 = vadd.s32 %v7138_v55, %v6936_v29  ;;  %v7176_v40 = vadd.s32 %v7175_v51, %v6937_v26  ;;  %v7213_v27 = vadd.s32 %v7212_v13, %v6938_v14  ;;  %v7250_v58 = vadd.s32 %v7249_v44, %v6939_v48 }
 0x407   : > { %v6992_v5 = vadd.s32 %v6991_v11, %v6940_v30  ;;  %v7029_v53 = vadd.s32 %v7028_v34, %v6941_v10  ;;  %v7066_v25 = vadd.s32 %v7065_v18, %v6942_v23  ;;  %v7103_v43 = vadd.s32 %v7102_v0, %v6943_v15  ;;  %v9171_v10 = vld [vmem:[%s10387_s12 + $0x3b8] sm:$0xff]  ;;  %v9170_v23 = vld [vmem:[%s10387_s12 + $0x3b0] sm:$0xff] }
 0x408   : > { %v7140_v28 = vadd.s32 %v7139_v49, %v6944_v61  ;;  %v7177_v54 = vadd.s32 %v7176_v40, %v6945_v22  ;;  %v7214_v31 = vadd.s32 %v7213_v27, %v6946_v59  ;;  %v7251_v32 = vadd.s32 %v7250_v58, %v6947_v7  ;;  %9250 = vperm.xlu1 %10291, %v9171_v10  }
 0x409   : > { %vm6692_vm15 = vcmp.eq.s32.totalorder %v6416_v45, %v14449_v9  ;;  %vm6693_vm3 = vcmp.eq.s32.totalorder %v6416_v45, %v14452_v35  ;;  %vm6694_vm0 = vcmp.eq.s32.totalorder %v6416_v45, %v14455_v24  ;;  %vm6695_vm9 = vcmp.eq.s32.totalorder %v6416_v45, %v14458_v17  ;;  %9247 = vperm.xlu0 %10290, %v9170_v23  }
 0x40a   : > { %vm6696_vm11 = vcmp.eq.s32.totalorder %v6416_v45, %v14462_v12  ;;  %vm6697_vm14 = vcmp.eq.s32.totalorder %v6416_v45, %v14465_v41  ;;  %vm6698_vm5 = vcmp.eq.s32.totalorder %v6416_v45, %v14468_v56  ;;  %vm6699_vm6 = vcmp.eq.s32.totalorder %v6416_v45, %v14471_v63 }
 0x40b   : > { %v6948_v21 = vsel %vm6692_vm15, 1, %v17416_v62  ;;  %v6949_v60 = vsel %vm6693_vm3, 1, %v17416_v62  ;;  %v6950_v38 = vsel %vm6694_vm0, 1, %v17416_v62  ;;  %v6951_v47 = vsel %vm6695_vm9, 1, %v17416_v62 }
 0x40c   : > { %v6952_v37 = vsel %vm6696_vm11, 1, %v17416_v62  ;;  %v6953_v52 = vsel %vm6697_vm14, 1, %v17416_v62  ;;  %v6954_v16 = vsel %vm6698_vm5, 1, %v17416_v62  ;;  %v6955_v29 = vsel %vm6699_vm6, 1, %v17416_v62 }
 0x40d   : > { %v6993_v26 = vadd.s32 %v6992_v5, %v6948_v21  ;;  %v7030_v14 = vadd.s32 %v7029_v53, %v6949_v60  ;;  %v7067_v48 = vadd.s32 %v7066_v25, %v6950_v38  ;;  %v7104_v30 = vadd.s32 %v7103_v43, %v6951_v47 }
 0x40e   : > { %v7141_v15 = vadd.s32 %v7140_v28, %v6952_v37  ;;  %v7178_v4 = vadd.s32 %v7177_v54, %v6953_v52  ;;  %v7215_v3 = vadd.s32 %v7214_v31, %v6954_v16  ;;  %v7252_v61 = vadd.s32 %v7251_v32, %v6955_v29 }
 0x40f   : > { %v6994_v22 = vadd.s32 %v6993_v26, %v15330_v33  ;;  %v7031_v59 = vadd.s32 %v7030_v14, %v15333_v46  ;;  %v7068_v7 = vadd.s32 %v7067_v48, %v15336_v2  ;;  %v7105_v19 = vadd.s32 %v7104_v30, %v15339_v1  ;;  %v8230_v26 = vld [vmem:[%s10387_s12 + $0x2d0] sm:$0xff]  ;;  %v9172_v14 = vld [vmem:[%s10387_s12 + $0x3c0] sm:$0xff] }
 0x410   : > { %v7142_v50 = vadd.s32 %v7141_v15, %v15342_v57  ;;  %v7179_v20 = vadd.s32 %v7178_v4, %v15345_v42  ;;  %v7216_v36 = vadd.s32 %v7215_v3, %v15348_v8  ;;  %v7253_v55 = vadd.s32 %v7252_v61, %v15351_v39  ;;  %v7297_v15 = vpop.permute.xlu1 %7296  ;;  %8315 = vperm.xlu1 %10291, %v8230_v26  }
 0x411   : > { %v6995_v51 = vrot.slane %v6994_v22, 4  ;;  %v7032_v13 = vrot.slane %v7031_v59, 4  ;;  %v7069_v44 = vrot.slane %v7068_v7, 4  ;;  %v7106_v11 = vrot.slane %v7105_v19, 4  ;;  %9253 = vperm.xlu0 %10290, %v9172_v14  }
 0x412   : > { %v7143_v33 = vrot.slane %v7142_v50, 4  ;;  %v7180_v34 = vrot.slane %v7179_v20, 4  ;;  %v7217_v46 = vrot.slane %v7216_v36, 4  ;;  %v7254_v18 = vrot.slane %v7253_v55, 4 }
 0x413   : > { %v6996_v2 = vadd.s32 %v6995_v51, %v6994_v22  ;;  %v7033_v0 = vadd.s32 %v7032_v13, %v7031_v59  ;;  %v7070_v1 = vadd.s32 %v7069_v44, %v7068_v7  ;;  %v7107_v49 = vadd.s32 %v7106_v11, %v7105_v19 }
 0x414   : > { %v7144_v40 = vadd.s32 %v7143_v33, %v7142_v50  ;;  %v7181_v57 = vadd.s32 %v7180_v34, %v7179_v20  ;;  %v7218_v27 = vadd.s32 %v7217_v46, %v7216_v36  ;;  %v7255_v42 = vadd.s32 %v7254_v18, %v7253_v55  ;;  %v7294_v20 = vpop.permute.xlu0 %7293 }
 0x415   : > { %v6997_v58 = vrot.slane %v6996_v2, 2  ;;  %v7034_v8 = vrot.slane %v7033_v0, 2  ;;  %v7071_v45 = vrot.slane %v7070_v1, 2  ;;  %v7108_v39 = vrot.slane %v7107_v49, 2 }
 0x416   : > { %v7145_v5 = vrot.slane %v7144_v40, 2  ;;  %v7182_v53 = vrot.slane %v7181_v57, 2  ;;  %v7219_v25 = vrot.slane %v7218_v27, 2  ;;  %v7256_v43 = vrot.slane %v7255_v42, 2 }
 0x417   : > { %v6998_v28 = vadd.s32 %v6997_v58, %v6996_v2  ;;  %v7035_v54 = vadd.s32 %v7034_v8, %v7033_v0  ;;  %v7072_v31 = vadd.s32 %v7071_v45, %v7070_v1  ;;  %v7109_v32 = vadd.s32 %v7108_v39, %v7107_v49  ;;  %v8231_v39 = vld [vmem:[%s10387_s12 + $0x2d8] sm:$0xff] }
 0x418   : > { %v7146_v21 = vadd.s32 %v7145_v5, %v7144_v40  ;;  %v7183_v60 = vadd.s32 %v7182_v53, %v7181_v57  ;;  %v7220_v38 = vadd.s32 %v7219_v25, %v7218_v27  ;;  %v7257_v47 = vadd.s32 %v7256_v43, %v7255_v42  ;;  %v7303_v27 = vpop.permute.xlu1 %7302  ;;  %v9173_v5 = vld [vmem:[%s10387_s12 + $0x3c8] sm:$0xff]  ;;  %8318 = vperm.xlu1 %10291, %v8231_v39  }
 0x419   : > { %v6999_v37 = vrot.slane %v6998_v28, 1  ;;  %v7036_v52 = vrot.slane %v7035_v54, 1  ;;  %v7073_v16 = vrot.slane %v7072_v31, 1  ;;  %v7110_v29 = vrot.slane %v7109_v32, 1  ;;  %9256 = vperm.xlu0 %10290, %v9173_v5  }
 0x41a   : > { %v7147_v48 = vrot.slane %v7146_v21, 1  ;;  %v7184_v30 = vrot.slane %v7183_v60, 1  ;;  %v7221_v10 = vrot.slane %v7220_v38, 1  ;;  %v7258_v23 = vrot.slane %v7257_v47, 1 }
 0x41b   : > { %v15431_v4 = vadd.s32 %v6999_v37, %v6998_v28  ;;  %v15433_v3 = vadd.s32 %v7036_v52, %v7035_v54  ;;  %v15435_v61 = vadd.s32 %v7073_v16, %v7072_v31  ;;  %v15437_v22 = vadd.s32 %v7110_v29, %v7109_v32  ;;  %v7300_v54 = vpop.permute.xlu0 %7299 }
 0x41c   : > { %v15439_v59 = vadd.s32 %v7147_v48, %v7146_v21  ;;  %v15441_v7 = vadd.s32 %v7184_v30, %v7183_v60  ;;  %v15443_v19 = vadd.s32 %v7221_v10, %v7220_v38  ;;  %v15445_v50 = vadd.s32 %v7258_v23, %v7257_v47 }
 0x41d   : > { %17593 = vst [vmem:[#allocation37_spill] sm:$0xff] %v15437_v22  ;;  %vm7396_vm7 = vcmp.eq.s32.totalorder %v7297_v15, %v14449_v9  ;;  %vm7397_vm4 = vcmp.eq.s32.totalorder %v7297_v15, %v14452_v35  ;;  %vm7398_vm12 = vcmp.eq.s32.totalorder %v7297_v15, %v14455_v24  ;;  %vm7399_vm8 = vcmp.eq.s32.totalorder %v7297_v15, %v14458_v17 }
 0x41e   : > { %17594 = vst [vmem:[#allocation38_spill] sm:$0xff] %v15439_v59  ;;  %17595 = vst [vmem:[#allocation39_spill] sm:$0xff] %v15441_v7  ;;  %vm7400_vm1 = vcmp.eq.s32.totalorder %v7297_v15, %v14462_v12  ;;  %vm7401_vm2 = vcmp.eq.s32.totalorder %v7297_v15, %v14465_v41  ;;  %vm7402_vm13 = vcmp.eq.s32.totalorder %v7297_v15, %v14468_v56  ;;  %v7652_v36 = vsel %vm7396_vm7, 1, %v17416_v62 }
 0x41f   : > { %17596 = vst [vmem:[#allocation40_spill] sm:$0xff] %v15443_v19  ;;  %17597 = vst [vmem:[#allocation41_spill] sm:$0xff] %v15445_v50  ;;  %vm7403_vm10 = vcmp.eq.s32.totalorder %v7297_v15, %v14471_v63  ;;  %v7653_v55 = vsel %vm7397_vm4, 1, %v17416_v62  ;;  %v7654_v51 = vsel %vm7398_vm12, 1, %v17416_v62  ;;  %v7655_v13 = vsel %vm7399_vm8, 1, %v17416_v62  ;;  %v7309_v15 = vpop.permute.xlu1 %7308 }
 0x420   : > { %v7656_v44 = vsel %vm7400_vm1, 1, %v17416_v62  ;;  %v7657_v11 = vsel %vm7401_vm2, 1, %v17416_v62  ;;  %v7658_v33 = vsel %vm7402_vm13, 1, %v17416_v62  ;;  %v7659_v34 = vsel %vm7403_vm10, 1, %v17416_v62 }
 0x421   : > { %vm7388_vm15 = vcmp.eq.s32.totalorder %v7294_v20, %v14449_v9  ;;  %vm7389_vm3 = vcmp.eq.s32.totalorder %v7294_v20, %v14452_v35  ;;  %vm7390_vm0 = vcmp.eq.s32.totalorder %v7294_v20, %v14455_v24  ;;  %vm7391_vm9 = vcmp.eq.s32.totalorder %v7294_v20, %v14458_v17 }
 0x422   : > { %vm7392_vm11 = vcmp.eq.s32.totalorder %v7294_v20, %v14462_v12  ;;  %vm7393_vm14 = vcmp.eq.s32.totalorder %v7294_v20, %v14465_v41  ;;  %vm7394_vm5 = vcmp.eq.s32.totalorder %v7294_v20, %v14468_v56  ;;  %vm7395_vm6 = vcmp.eq.s32.totalorder %v7294_v20, %v14471_v63 }
 0x423   : > { %v7644_v46 = vsel %vm7388_vm15, 1, %v17416_v62  ;;  %v7645_v18 = vsel %vm7389_vm3, 1, %v17416_v62  ;;  %v7646_v2 = vsel %vm7390_vm0, 1, %v17416_v62  ;;  %v7647_v0 = vsel %vm7391_vm9, 1, %v17416_v62 }
 0x424   : > { %v7648_v1 = vsel %vm7392_vm11, 1, %v17416_v62  ;;  %v7649_v49 = vsel %vm7393_vm14, 1, %v17416_v62  ;;  %v7650_v40 = vsel %vm7394_vm5, 1, %v17416_v62  ;;  %v7651_v57 = vsel %vm7395_vm6, 1, %v17416_v62 }
 0x425   : > { %v7900_v42 = vadd.s32 %v7652_v36, %v7644_v46  ;;  %v7937_v58 = vadd.s32 %v7653_v55, %v7645_v18  ;;  %v7974_v8 = vadd.s32 %v7654_v51, %v7646_v2  ;;  %v8011_v45 = vadd.s32 %v7655_v13, %v7647_v0  ;;  %v9174_v46 = vld [vmem:[%s10387_s12 + $0x3d0] sm:$0xff] }
 0x426   : > { %v8048_v53 = vadd.s32 %v7656_v44, %v7648_v1  ;;  %v8085_v25 = vadd.s32 %v7657_v11, %v7649_v49  ;;  %v8122_v43 = vadd.s32 %v7658_v33, %v7650_v40  ;;  %v8159_v28 = vadd.s32 %v7659_v34, %v7651_v57  ;;  %v8232_v34 = vld [vmem:[%s10387_s12 + $0x2e0] sm:$0xff]  ;;  %9259 = vperm.xlu0 %10290, %v9174_v46  }
 0x427   : > { %vm7412_vm7 = vcmp.eq.s32.totalorder %v7303_v27, %v14449_v9  ;;  %vm7413_vm4 = vcmp.eq.s32.totalorder %v7303_v27, %v14452_v35  ;;  %vm7414_vm12 = vcmp.eq.s32.totalorder %v7303_v27, %v14455_v24  ;;  %vm7415_vm8 = vcmp.eq.s32.totalorder %v7303_v27, %v14458_v17  ;;  %8321 = vperm.xlu1 %10291, %v8232_v34  }
 0x428   : > { %vm7416_vm1 = vcmp.eq.s32.totalorder %v7303_v27, %v14462_v12  ;;  %vm7417_vm2 = vcmp.eq.s32.totalorder %v7303_v27, %v14465_v41  ;;  %vm7418_vm13 = vcmp.eq.s32.totalorder %v7303_v27, %v14468_v56  ;;  %vm7419_vm10 = vcmp.eq.s32.totalorder %v7303_v27, %v14471_v63 }
 0x429   : > { %v7668_v31 = vsel %vm7412_vm7, 1, %v17416_v62  ;;  %v7669_v32 = vsel %vm7413_vm4, 1, %v17416_v62  ;;  %v7670_v21 = vsel %vm7414_vm12, 1, %v17416_v62  ;;  %v7671_v60 = vsel %vm7415_vm8, 1, %v17416_v62 }
 0x42a   : > { %v7672_v38 = vsel %vm7416_vm1, 1, %v17416_v62  ;;  %v7673_v47 = vsel %vm7417_vm2, 1, %v17416_v62  ;;  %v7674_v37 = vsel %vm7418_vm13, 1, %v17416_v62  ;;  %v7675_v52 = vsel %vm7419_vm10, 1, %v17416_v62 }
 0x42b   : > { %vm7404_vm15 = vcmp.eq.s32.totalorder %v7300_v54, %v14449_v9  ;;  %vm7405_vm3 = vcmp.eq.s32.totalorder %v7300_v54, %v14452_v35  ;;  %vm7406_vm0 = vcmp.eq.s32.totalorder %v7300_v54, %v14455_v24  ;;  %vm7407_vm9 = vcmp.eq.s32.totalorder %v7300_v54, %v14458_v17 }
 0x42c   : > { %vm7408_vm11 = vcmp.eq.s32.totalorder %v7300_v54, %v14462_v12  ;;  %vm7409_vm14 = vcmp.eq.s32.totalorder %v7300_v54, %v14465_v41  ;;  %vm7410_vm5 = vcmp.eq.s32.totalorder %v7300_v54, %v14468_v56  ;;  %vm7411_vm6 = vcmp.eq.s32.totalorder %v7300_v54, %v14471_v63 }
 0x42d   : > { %v7660_v16 = vsel %vm7404_vm15, 1, %v17416_v62  ;;  %v7661_v29 = vsel %vm7405_vm3, 1, %v17416_v62  ;;  %v7662_v26 = vsel %vm7406_vm0, 1, %v17416_v62  ;;  %v7663_v14 = vsel %vm7407_vm9, 1, %v17416_v62 }
 0x42e   : > { %v7664_v48 = vsel %vm7408_vm11, 1, %v17416_v62  ;;  %v7665_v30 = vsel %vm7409_vm14, 1, %v17416_v62  ;;  %v7666_v10 = vsel %vm7410_vm5, 1, %v17416_v62  ;;  %v7667_v23 = vsel %vm7411_vm6, 1, %v17416_v62 }
 0x42f   : > { %v7901_v20 = vadd.s32 %v7900_v42, %v7660_v16  ;;  %v7938_v36 = vadd.s32 %v7937_v58, %v7661_v29  ;;  %v7975_v55 = vadd.s32 %v7974_v8, %v7662_v26  ;;  %v8012_v51 = vadd.s32 %v8011_v45, %v7663_v14  ;;  %v7306_v42 = vpop.permute.xlu0 %7305 }
 0x430   : > { %v8049_v13 = vadd.s32 %v8048_v53, %v7664_v48  ;;  %v8086_v44 = vadd.s32 %v8085_v25, %v7665_v30  ;;  %v8123_v11 = vadd.s32 %v8122_v43, %v7666_v10  ;;  %v8160_v33 = vadd.s32 %v8159_v28, %v7667_v23  ;;  %v8233_v23 = vld [vmem:[%s10387_s12 + $0x2e8] sm:$0xff] }
 0x431   : > { %vm7428_vm7 = vcmp.eq.s32.totalorder %v7309_v15, %v14449_v9  ;;  %vm7429_vm4 = vcmp.eq.s32.totalorder %v7309_v15, %v14452_v35  ;;  %vm7430_vm12 = vcmp.eq.s32.totalorder %v7309_v15, %v14455_v24  ;;  %vm7431_vm8 = vcmp.eq.s32.totalorder %v7309_v15, %v14458_v17  ;;  %8324 = vperm.xlu1 %10291, %v8233_v23  }
 0x432   : > { %vm7432_vm1 = vcmp.eq.s32.totalorder %v7309_v15, %v14462_v12  ;;  %vm7433_vm2 = vcmp.eq.s32.totalorder %v7309_v15, %v14465_v41  ;;  %vm7434_vm13 = vcmp.eq.s32.totalorder %v7309_v15, %v14468_v56  ;;  %vm7435_vm10 = vcmp.eq.s32.totalorder %v7309_v15, %v14471_v63  ;;  %v9175_v15 = vld [vmem:[%s10387_s12 + $0x3d8] sm:$0xff] }
 0x433   : > { %v15524_v18 = vsel %vm7428_vm7, 1, %v17416_v62  ;;  %v15527_v2 = vsel %vm7429_vm4, 1, %v17416_v62  ;;  %v15530_v0 = vsel %vm7430_vm12, 1, %v17416_v62  ;;  %v15533_v1 = vsel %vm7431_vm8, 1, %v17416_v62  ;;  %9262 = vperm.xlu0 %10290, %v9175_v15   ;;  %v7312_v34 = vpop.permute.xlu0 %7311 }
 0x434   : > { %v15536_v49 = vsel %vm7432_vm1, 1, %v17416_v62  ;;  %v15539_v40 = vsel %vm7433_vm2, 1, %v17416_v62  ;;  %v15542_v57 = vsel %vm7434_vm13, 1, %v17416_v62  ;;  %v15545_v27 = vsel %vm7435_vm10, 1, %v17416_v62 }
 0x435   : > { %v7902_v58 = vadd.s32 %v7901_v20, %v7668_v31  ;;  %v7939_v8 = vadd.s32 %v7938_v36, %v7669_v32  ;;  %v7976_v45 = vadd.s32 %v7975_v55, %v7670_v21  ;;  %v8013_v39 = vadd.s32 %v8012_v51, %v7671_v60 }
 0x436   : > { %v8050_v5 = vadd.s32 %v8049_v13, %v7672_v38  ;;  %v8087_v53 = vadd.s32 %v8086_v44, %v7673_v47  ;;  %v8124_v25 = vadd.s32 %v8123_v11, %v7674_v37  ;;  %v8161_v43 = vadd.s32 %v8160_v33, %v7675_v52  ;;  %v7315_v37 = vpop.permute.xlu1 %7314 }
 0x437   : > { %vm7420_vm15 = vcmp.eq.s32.totalorder %v7306_v42, %v14449_v9  ;;  %vm7421_vm3 = vcmp.eq.s32.totalorder %v7306_v42, %v14452_v35  ;;  %vm7422_vm0 = vcmp.eq.s32.totalorder %v7306_v42, %v14455_v24  ;;  %vm7423_vm9 = vcmp.eq.s32.totalorder %v7306_v42, %v14458_v17  ;;  %v7318_v23 = vpop.permute.xlu0 %7317 }
 0x438   : > { %vm7424_vm11 = vcmp.eq.s32.totalorder %v7306_v42, %v14462_v12  ;;  %vm7425_vm14 = vcmp.eq.s32.totalorder %v7306_v42, %v14465_v41  ;;  %vm7426_vm5 = vcmp.eq.s32.totalorder %v7306_v42, %v14468_v56  ;;  %vm7427_vm6 = vcmp.eq.s32.totalorder %v7306_v42, %v14471_v63 }
 0x439   : > { %v7676_v28 = vsel %vm7420_vm15, 1, %v17416_v62  ;;  %v7677_v54 = vsel %vm7421_vm3, 1, %v17416_v62  ;;  %v7678_v31 = vsel %vm7422_vm0, 1, %v17416_v62  ;;  %v7679_v32 = vsel %vm7423_vm9, 1, %v17416_v62 }
 0x43a   : > { %v7680_v21 = vsel %vm7424_vm11, 1, %v17416_v62  ;;  %v7681_v60 = vsel %vm7425_vm14, 1, %v17416_v62  ;;  %v7682_v38 = vsel %vm7426_vm5, 1, %v17416_v62  ;;  %v7683_v47 = vsel %vm7427_vm6, 1, %v17416_v62 }
 0x43b   : > { %v7903_v52 = vadd.s32 %v7902_v58, %v7676_v28  ;;  %v7940_v16 = vadd.s32 %v7939_v8, %v7677_v54  ;;  %v7977_v29 = vadd.s32 %v7976_v45, %v7678_v31  ;;  %v8014_v26 = vadd.s32 %v8013_v39, %v7679_v32 }
 0x43c   : > { %v8051_v14 = vadd.s32 %v8050_v5, %v7680_v21  ;;  %v8088_v48 = vadd.s32 %v8087_v53, %v7681_v60  ;;  %v8125_v30 = vadd.s32 %v8124_v25, %v7682_v38  ;;  %v8162_v10 = vadd.s32 %v8161_v43, %v7683_v47  ;;  %v7321_v25 = vpop.permute.xlu1 %7320  ;;  %v8234_v47 = vld [vmem:[%s10387_s12 + $0x2f0] sm:$0xff] }
 0x43d   : > { %vm7444_vm7 = vcmp.eq.s32.totalorder %v7315_v37, %v14449_v9  ;;  %vm7445_vm4 = vcmp.eq.s32.totalorder %v7315_v37, %v14452_v35  ;;  %vm7446_vm12 = vcmp.eq.s32.totalorder %v7315_v37, %v14455_v24  ;;  %vm7447_vm8 = vcmp.eq.s32.totalorder %v7315_v37, %v14458_v17  ;;  %8327 = vperm.xlu1 %10291, %v8234_v47   ;;  %v7324_v47 = vpop.permute.xlu0 %7323 }
 0x43e   : > { %vm7448_vm1 = vcmp.eq.s32.totalorder %v7315_v37, %v14462_v12  ;;  %vm7449_vm2 = vcmp.eq.s32.totalorder %v7315_v37, %v14465_v41  ;;  %vm7450_vm13 = vcmp.eq.s32.totalorder %v7315_v37, %v14468_v56  ;;  %vm7451_vm10 = vcmp.eq.s32.totalorder %v7315_v37, %v14471_v63  ;;  %v9176_v37 = vld [vmem:[%s10387_s12 + $0x3e0] sm:$0xff] }
 0x43f   : > { %v15574_v20 = vsel %vm7444_vm7, 1, %v17416_v62  ;;  %v15577_v36 = vsel %vm7445_vm4, 1, %v17416_v62  ;;  %v15580_v55 = vsel %vm7446_vm12, 1, %v17416_v62  ;;  %v15583_v51 = vsel %vm7447_vm8, 1, %v17416_v62  ;;  %9265 = vperm.xlu0 %10290, %v9176_v37  }
 0x440   : > { %v15586_v13 = vsel %vm7448_vm1, 1, %v17416_v62  ;;  %v15589_v44 = vsel %vm7449_vm2, 1, %v17416_v62  ;;  %v15592_v11 = vsel %vm7450_vm13, 1, %v17416_v62  ;;  %v15595_v33 = vsel %vm7451_vm10, 1, %v17416_v62 }
 0x441   : > { %v7904_v46 = vadd.s32 %v7903_v52, %v15524_v18  ;;  %v7941_v42 = vadd.s32 %v7940_v16, %v15527_v2  ;;  %v7978_v58 = vadd.s32 %v7977_v29, %v15530_v0  ;;  %v8015_v8 = vadd.s32 %v8014_v26, %v15533_v1 }
 0x442   : > { %v8052_v45 = vadd.s32 %v8051_v14, %v15536_v49  ;;  %v8089_v39 = vadd.s32 %v8088_v48, %v15539_v40  ;;  %v8126_v5 = vadd.s32 %v8125_v30, %v15542_v57  ;;  %v8163_v53 = vadd.s32 %v8162_v10, %v15545_v27 }
 0x443   : > { %vm7436_vm15 = vcmp.eq.s32.totalorder %v7312_v34, %v14449_v9  ;;  %vm7437_vm3 = vcmp.eq.s32.totalorder %v7312_v34, %v14452_v35  ;;  %vm7438_vm0 = vcmp.eq.s32.totalorder %v7312_v34, %v14455_v24  ;;  %vm7439_vm9 = vcmp.eq.s32.totalorder %v7312_v34, %v14458_v17 }
 0x444   : > { %vm7440_vm11 = vcmp.eq.s32.totalorder %v7312_v34, %v14462_v12  ;;  %vm7441_vm14 = vcmp.eq.s32.totalorder %v7312_v34, %v14465_v41  ;;  %vm7442_vm5 = vcmp.eq.s32.totalorder %v7312_v34, %v14468_v56  ;;  %vm7443_vm6 = vcmp.eq.s32.totalorder %v7312_v34, %v14471_v63 }
 0x445   : > { %v7692_v18 = vsel %vm7436_vm15, 1, %v17416_v62  ;;  %v7693_v2 = vsel %vm7437_vm3, 1, %v17416_v62  ;;  %v7694_v0 = vsel %vm7438_vm0, 1, %v17416_v62  ;;  %v7695_v1 = vsel %vm7439_vm9, 1, %v17416_v62 }
 0x446   : > { %v7696_v49 = vsel %vm7440_vm11, 1, %v17416_v62  ;;  %v7697_v40 = vsel %vm7441_vm14, 1, %v17416_v62  ;;  %v7698_v57 = vsel %vm7442_vm5, 1, %v17416_v62  ;;  %v7699_v27 = vsel %vm7443_vm6, 1, %v17416_v62 }
 0x447   : > { %v7905_v43 = vadd.s32 %v7904_v46, %v7692_v18  ;;  %v7942_v28 = vadd.s32 %v7941_v42, %v7693_v2  ;;  %v7979_v54 = vadd.s32 %v7978_v58, %v7694_v0  ;;  %v8016_v31 = vadd.s32 %v8015_v8, %v7695_v1 }
 0x448   : > { %v8053_v32 = vadd.s32 %v8052_v45, %v7696_v49  ;;  %v8090_v21 = vadd.s32 %v8089_v39, %v7697_v40  ;;  %v8127_v60 = vadd.s32 %v8126_v5, %v7698_v57  ;;  %v8164_v38 = vadd.s32 %v8163_v53, %v7699_v27  ;;  %v7327_v5 = vpop.permute.xlu1 %7326  ;;  %v8235_v27 = vld [vmem:[%s10387_s12 + $0x2f8] sm:$0xff] }
 0x449   : > { %vm7460_vm7 = vcmp.eq.s32.totalorder %v7321_v25, %v14449_v9  ;;  %vm7461_vm4 = vcmp.eq.s32.totalorder %v7321_v25, %v14452_v35  ;;  %vm7462_vm12 = vcmp.eq.s32.totalorder %v7321_v25, %v14455_v24  ;;  %vm7463_vm8 = vcmp.eq.s32.totalorder %v7321_v25, %v14458_v17  ;;  %8330 = vperm.xlu1 %10291, %v8235_v27  }
 0x44a   : > { %vm7464_vm1 = vcmp.eq.s32.totalorder %v7321_v25, %v14462_v12  ;;  %vm7465_vm2 = vcmp.eq.s32.totalorder %v7321_v25, %v14465_v41  ;;  %vm7466_vm13 = vcmp.eq.s32.totalorder %v7321_v25, %v14468_v56  ;;  %vm7467_vm10 = vcmp.eq.s32.totalorder %v7321_v25, %v14471_v63  ;;  %v9177_v25 = vld [vmem:[%s10387_s12 + $0x3e8] sm:$0xff] }
 0x44b   : > { %v15632_v52 = vsel %vm7460_vm7, 1, %v17416_v62  ;;  %v15635_v16 = vsel %vm7461_vm4, 1, %v17416_v62  ;;  %v15638_v29 = vsel %vm7462_vm12, 1, %v17416_v62  ;;  %v15641_v26 = vsel %vm7463_vm8, 1, %v17416_v62  ;;  %9268 = vperm.xlu0 %10290, %v9177_v25  }
 0x44c   : > { %v15644_v14 = vsel %vm7464_vm1, 1, %v17416_v62  ;;  %v15647_v48 = vsel %vm7465_vm2, 1, %v17416_v62  ;;  %v15650_v30 = vsel %vm7466_vm13, 1, %v17416_v62  ;;  %v15653_v10 = vsel %vm7467_vm10, 1, %v17416_v62 }
 0x44d   : > { %v7906_v15 = vadd.s32 %v7905_v43, %v15574_v20  ;;  %v7943_v34 = vadd.s32 %v7942_v28, %v15577_v36  ;;  %v7980_v46 = vadd.s32 %v7979_v54, %v15580_v55  ;;  %v8017_v42 = vadd.s32 %v8016_v31, %v15583_v51 }
 0x44e   : > { %v8054_v58 = vadd.s32 %v8053_v32, %v15586_v13  ;;  %v8091_v8 = vadd.s32 %v8090_v21, %v15589_v44  ;;  %v8128_v45 = vadd.s32 %v8127_v60, %v15592_v11  ;;  %v8165_v39 = vadd.s32 %v8164_v38, %v15595_v33 }
 0x44f   : > { %vm7452_vm15 = vcmp.eq.s32.totalorder %v7318_v23, %v14449_v9  ;;  %vm7453_vm3 = vcmp.eq.s32.totalorder %v7318_v23, %v14452_v35  ;;  %vm7454_vm0 = vcmp.eq.s32.totalorder %v7318_v23, %v14455_v24  ;;  %vm7455_vm9 = vcmp.eq.s32.totalorder %v7318_v23, %v14458_v17 }
 0x450   : > { %vm7456_vm11 = vcmp.eq.s32.totalorder %v7318_v23, %v14462_v12  ;;  %vm7457_vm14 = vcmp.eq.s32.totalorder %v7318_v23, %v14465_v41  ;;  %vm7458_vm5 = vcmp.eq.s32.totalorder %v7318_v23, %v14468_v56  ;;  %vm7459_vm6 = vcmp.eq.s32.totalorder %v7318_v23, %v14471_v63 }
 0x451   : > { %v7708_v20 = vsel %vm7452_vm15, 1, %v17416_v62  ;;  %v7709_v36 = vsel %vm7453_vm3, 1, %v17416_v62  ;;  %v7710_v55 = vsel %vm7454_vm0, 1, %v17416_v62  ;;  %v7711_v51 = vsel %vm7455_vm9, 1, %v17416_v62 }
 0x452   : > { %v7712_v13 = vsel %vm7456_vm11, 1, %v17416_v62  ;;  %v7713_v44 = vsel %vm7457_vm14, 1, %v17416_v62  ;;  %v7714_v11 = vsel %vm7458_vm5, 1, %v17416_v62  ;;  %v7715_v33 = vsel %vm7459_vm6, 1, %v17416_v62 }
 0x453   : > { %v7907_v53 = vadd.s32 %v7906_v15, %v7708_v20  ;;  %v7944_v18 = vadd.s32 %v7943_v34, %v7709_v36  ;;  %v7981_v2 = vadd.s32 %v7980_v46, %v7710_v55  ;;  %v8018_v0 = vadd.s32 %v8017_v42, %v7711_v51 }
 0x454   : > { %v8055_v1 = vadd.s32 %v8054_v58, %v7712_v13  ;;  %v8092_v49 = vadd.s32 %v8091_v8, %v7713_v44  ;;  %v8129_v40 = vadd.s32 %v8128_v45, %v7714_v11  ;;  %v8166_v57 = vadd.s32 %v8165_v39, %v7715_v33  ;;  %v7333_v45 = vpop.permute.xlu1 %7332 }
 0x455   : > { %vm7476_vm7 = vcmp.eq.s32.totalorder %v7327_v5, %v14449_v9  ;;  %vm7477_vm4 = vcmp.eq.s32.totalorder %v7327_v5, %v14452_v35  ;;  %vm7478_vm12 = vcmp.eq.s32.totalorder %v7327_v5, %v14455_v24  ;;  %vm7479_vm8 = vcmp.eq.s32.totalorder %v7327_v5, %v14458_v17 }
 0x456   : > { %vm7480_vm1 = vcmp.eq.s32.totalorder %v7327_v5, %v14462_v12  ;;  %vm7481_vm2 = vcmp.eq.s32.totalorder %v7327_v5, %v14465_v41  ;;  %vm7482_vm13 = vcmp.eq.s32.totalorder %v7327_v5, %v14468_v56  ;;  %vm7483_vm10 = vcmp.eq.s32.totalorder %v7327_v5, %v14471_v63 }
 0x457   : > { %v7732_v43 = vsel %vm7476_vm7, 1, %v17416_v62  ;;  %v7733_v28 = vsel %vm7477_vm4, 1, %v17416_v62  ;;  %v7734_v54 = vsel %vm7478_vm12, 1, %v17416_v62  ;;  %v7735_v31 = vsel %vm7479_vm8, 1, %v17416_v62 }
 0x458   : > { %v7736_v32 = vsel %vm7480_vm1, 1, %v17416_v62  ;;  %v7737_v21 = vsel %vm7481_vm2, 1, %v17416_v62  ;;  %v7738_v60 = vsel %vm7482_vm13, 1, %v17416_v62  ;;  %v7739_v38 = vsel %vm7483_vm10, 1, %v17416_v62 }
 0x459   : > { %v7908_v37 = vadd.s32 %v7907_v53, %v15632_v52  ;;  %v7945_v23 = vadd.s32 %v7944_v18, %v15635_v16  ;;  %v7982_v15 = vadd.s32 %v7981_v2, %v15638_v29  ;;  %v8019_v34 = vadd.s32 %v8018_v0, %v15641_v26 }
 0x45a   : > { %v8056_v46 = vadd.s32 %v8055_v1, %v15644_v14  ;;  %v8093_v42 = vadd.s32 %v8092_v49, %v15647_v48  ;;  %v8130_v58 = vadd.s32 %v8129_v40, %v15650_v30  ;;  %v8167_v8 = vadd.s32 %v8166_v57, %v15653_v10  ;;  %v7330_v40 = vpop.permute.xlu0 %7329 }
 0x45b   : > { %vm7468_vm15 = vcmp.eq.s32.totalorder %v7324_v47, %v14449_v9  ;;  %vm7469_vm3 = vcmp.eq.s32.totalorder %v7324_v47, %v14452_v35  ;;  %vm7470_vm0 = vcmp.eq.s32.totalorder %v7324_v47, %v14455_v24  ;;  %vm7471_vm9 = vcmp.eq.s32.totalorder %v7324_v47, %v14458_v17 }
 0x45c   : > { %vm7472_vm11 = vcmp.eq.s32.totalorder %v7324_v47, %v14462_v12  ;;  %vm7473_vm14 = vcmp.eq.s32.totalorder %v7324_v47, %v14465_v41  ;;  %vm7474_vm5 = vcmp.eq.s32.totalorder %v7324_v47, %v14468_v56  ;;  %vm7475_vm6 = vcmp.eq.s32.totalorder %v7324_v47, %v14471_v63 }
 0x45d   : > { %v7724_v52 = vsel %vm7468_vm15, 1, %v17416_v62  ;;  %v7725_v16 = vsel %vm7469_vm3, 1, %v17416_v62  ;;  %v7726_v29 = vsel %vm7470_vm0, 1, %v17416_v62  ;;  %v7727_v26 = vsel %vm7471_vm9, 1, %v17416_v62 }
 0x45e   : > { %v7728_v14 = vsel %vm7472_vm11, 1, %v17416_v62  ;;  %v7729_v48 = vsel %vm7473_vm14, 1, %v17416_v62  ;;  %v7730_v30 = vsel %vm7474_vm5, 1, %v17416_v62  ;;  %v7731_v10 = vsel %vm7475_vm6, 1, %v17416_v62 }
 0x45f   : > { %v7909_v39 = vadd.s32 %v7908_v37, %v7724_v52  ;;  %v7946_v20 = vadd.s32 %v7945_v23, %v7725_v16  ;;  %v7983_v36 = vadd.s32 %v7982_v15, %v7726_v29  ;;  %v8020_v55 = vadd.s32 %v8019_v34, %v7727_v26 }
 0x460   : > { %v8057_v51 = vadd.s32 %v8056_v46, %v7728_v14  ;;  %v8094_v13 = vadd.s32 %v8093_v42, %v7729_v48  ;;  %v8131_v44 = vadd.s32 %v8130_v58, %v7730_v30  ;;  %v8168_v11 = vadd.s32 %v8167_v8, %v7731_v10  ;;  %v7339_v46 = vpop.permute.xlu1 %7338  ;;  %v9179_v48 = vld [vmem:[%s10387_s12 + $0x3f8] sm:$0xff]  ;;  %v9178_v30 = vld [vmem:[%s10387_s12 + $0x3f0] sm:$0xff] }
 0x461   : > { %vm7492_vm7 = vcmp.eq.s32.totalorder %v7333_v45, %v14449_v9  ;;  %vm7493_vm4 = vcmp.eq.s32.totalorder %v7333_v45, %v14452_v35  ;;  %vm7494_vm12 = vcmp.eq.s32.totalorder %v7333_v45, %v14455_v24  ;;  %vm7495_vm8 = vcmp.eq.s32.totalorder %v7333_v45, %v14458_v17  ;;  %9274 = vperm.xlu1 %10291, %v9179_v48  }
 0x462   : > { %vm7496_vm1 = vcmp.eq.s32.totalorder %v7333_v45, %v14462_v12  ;;  %vm7497_vm2 = vcmp.eq.s32.totalorder %v7333_v45, %v14465_v41  ;;  %vm7498_vm13 = vcmp.eq.s32.totalorder %v7333_v45, %v14468_v56  ;;  %vm7499_vm10 = vcmp.eq.s32.totalorder %v7333_v45, %v14471_v63  ;;  %9271 = vperm.xlu0 %10290, %v9178_v30  }
 0x463   : > { %v15730_v33 = vsel %vm7492_vm7, 1, %v17416_v62  ;;  %v15733_v5 = vsel %vm7493_vm4, 1, %v17416_v62  ;;  %v15736_v53 = vsel %vm7494_vm12, 1, %v17416_v62  ;;  %v15739_v18 = vsel %vm7495_vm8, 1, %v17416_v62 }
 0x464   : > { %v15742_v2 = vsel %vm7496_vm1, 1, %v17416_v62  ;;  %v15745_v0 = vsel %vm7497_vm2, 1, %v17416_v62  ;;  %v15748_v1 = vsel %vm7498_vm13, 1, %v17416_v62  ;;  %v15751_v49 = vsel %vm7499_vm10, 1, %v17416_v62 }
 0x465   : > { %v7910_v57 = vadd.s32 %v7909_v39, %v7732_v43  ;;  %v7947_v27 = vadd.s32 %v7946_v20, %v7733_v28  ;;  %v7984_v25 = vadd.s32 %v7983_v36, %v7734_v54  ;;  %v8021_v47 = vadd.s32 %v8020_v55, %v7735_v31 }
 0x466   : > { %v8058_v37 = vadd.s32 %v8057_v51, %v7736_v32  ;;  %v8095_v23 = vadd.s32 %v8094_v13, %v7737_v21  ;;  %v8132_v15 = vadd.s32 %v8131_v44, %v7738_v60  ;;  %v8169_v34 = vadd.s32 %v8168_v11, %v7739_v38  ;;  %v7336_v44 = vpop.permute.xlu0 %7335 }
 0x467   : > { %vm7484_vm15 = vcmp.eq.s32.totalorder %v7330_v40, %v14449_v9  ;;  %vm7485_vm3 = vcmp.eq.s32.totalorder %v7330_v40, %v14452_v35  ;;  %vm7486_vm0 = vcmp.eq.s32.totalorder %v7330_v40, %v14455_v24  ;;  %vm7487_vm9 = vcmp.eq.s32.totalorder %v7330_v40, %v14458_v17 }
 0x468   : > { %vm7488_vm11 = vcmp.eq.s32.totalorder %v7330_v40, %v14462_v12  ;;  %vm7489_vm14 = vcmp.eq.s32.totalorder %v7330_v40, %v14465_v41  ;;  %vm7490_vm5 = vcmp.eq.s32.totalorder %v7330_v40, %v14468_v56  ;;  %vm7491_vm6 = vcmp.eq.s32.totalorder %v7330_v40, %v14471_v63 }
 0x469   : > { %v7740_v43 = vsel %vm7484_vm15, 1, %v17416_v62  ;;  %v7741_v28 = vsel %vm7485_vm3, 1, %v17416_v62  ;;  %v7742_v54 = vsel %vm7486_vm0, 1, %v17416_v62  ;;  %v7743_v31 = vsel %vm7487_vm9, 1, %v17416_v62 }
 0x46a   : > { %v7744_v32 = vsel %vm7488_vm11, 1, %v17416_v62  ;;  %v7745_v21 = vsel %vm7489_vm14, 1, %v17416_v62  ;;  %v7746_v60 = vsel %vm7490_vm5, 1, %v17416_v62  ;;  %v7747_v38 = vsel %vm7491_vm6, 1, %v17416_v62 }
 0x46b   : > { %v7911_v42 = vadd.s32 %v7910_v57, %v7740_v43  ;;  %v7948_v58 = vadd.s32 %v7947_v27, %v7741_v28  ;;  %v7985_v8 = vadd.s32 %v7984_v25, %v7742_v54  ;;  %v8022_v52 = vadd.s32 %v8021_v47, %v7743_v31 }
 0x46c   : > { %v8059_v16 = vadd.s32 %v8058_v37, %v7744_v32  ;;  %v8096_v29 = vadd.s32 %v8095_v23, %v7745_v21  ;;  %v8133_v26 = vadd.s32 %v8132_v15, %v7746_v60  ;;  %v8170_v14 = vadd.s32 %v8169_v34, %v7747_v38  ;;  %v7345_v15 = vpop.permute.xlu1 %7344 }
 0x46d   : > { %vm7508_vm7 = vcmp.eq.s32.totalorder %v7339_v46, %v14449_v9  ;;  %vm7509_vm4 = vcmp.eq.s32.totalorder %v7339_v46, %v14452_v35  ;;  %vm7510_vm12 = vcmp.eq.s32.totalorder %v7339_v46, %v14455_v24  ;;  %vm7511_vm8 = vcmp.eq.s32.totalorder %v7339_v46, %v14458_v17 }
 0x46e   : > { %vm7512_vm1 = vcmp.eq.s32.totalorder %v7339_v46, %v14462_v12  ;;  %vm7513_vm2 = vcmp.eq.s32.totalorder %v7339_v46, %v14465_v41  ;;  %vm7514_vm13 = vcmp.eq.s32.totalorder %v7339_v46, %v14468_v56  ;;  %vm7515_vm10 = vcmp.eq.s32.totalorder %v7339_v46, %v14471_v63 }
 0x46f   : > { %v7764_v10 = vsel %vm7508_vm7, 1, %v17416_v62  ;;  %v7765_v45 = vsel %vm7509_vm4, 1, %v17416_v62  ;;  %v7766_v39 = vsel %vm7510_vm12, 1, %v17416_v62  ;;  %v7767_v20 = vsel %vm7511_vm8, 1, %v17416_v62 }
 0x470   : > { %v7768_v36 = vsel %vm7512_vm1, 1, %v17416_v62  ;;  %v7769_v55 = vsel %vm7513_vm2, 1, %v17416_v62  ;;  %v7770_v51 = vsel %vm7514_vm13, 1, %v17416_v62  ;;  %v7771_v13 = vsel %vm7515_vm10, 1, %v17416_v62 }
 0x471   : > { %v7912_v11 = vadd.s32 %v7911_v42, %v15730_v33  ;;  %v7949_v40 = vadd.s32 %v7948_v58, %v15733_v5  ;;  %v7986_v57 = vadd.s32 %v7985_v8, %v15736_v53  ;;  %v8023_v27 = vadd.s32 %v8022_v52, %v15739_v18 }
 0x472   : > { %v8060_v25 = vadd.s32 %v8059_v16, %v15742_v2  ;;  %v8097_v47 = vadd.s32 %v8096_v29, %v15745_v0  ;;  %v8134_v37 = vadd.s32 %v8133_v26, %v15748_v1  ;;  %v8171_v23 = vadd.s32 %v8170_v14, %v15751_v49  ;;  %v7342_v26 = vpop.permute.xlu0 %7341 }
 0x473   : > { %vm7500_vm15 = vcmp.eq.s32.totalorder %v7336_v44, %v14449_v9  ;;  %vm7501_vm3 = vcmp.eq.s32.totalorder %v7336_v44, %v14452_v35  ;;  %vm7502_vm0 = vcmp.eq.s32.totalorder %v7336_v44, %v14455_v24  ;;  %vm7503_vm9 = vcmp.eq.s32.totalorder %v7336_v44, %v14458_v17 }
 0x474   : > { %vm7504_vm11 = vcmp.eq.s32.totalorder %v7336_v44, %v14462_v12  ;;  %vm7505_vm14 = vcmp.eq.s32.totalorder %v7336_v44, %v14465_v41  ;;  %vm7506_vm5 = vcmp.eq.s32.totalorder %v7336_v44, %v14468_v56  ;;  %vm7507_vm6 = vcmp.eq.s32.totalorder %v7336_v44, %v14471_v63 }
 0x475   : > { %v7756_v33 = vsel %vm7500_vm15, 1, %v17416_v62  ;;  %v7757_v5 = vsel %vm7501_vm3, 1, %v17416_v62  ;;  %v7758_v53 = vsel %vm7502_vm0, 1, %v17416_v62  ;;  %v7759_v18 = vsel %vm7503_vm9, 1, %v17416_v62 }
 0x476   : > { %v7760_v2 = vsel %vm7504_vm11, 1, %v17416_v62  ;;  %v7761_v0 = vsel %vm7505_vm14, 1, %v17416_v62  ;;  %v7762_v1 = vsel %vm7506_vm5, 1, %v17416_v62  ;;  %v7763_v49 = vsel %vm7507_vm6, 1, %v17416_v62 }
 0x477   : > { %v7913_v34 = vadd.s32 %v7912_v11, %v7756_v33  ;;  %v7950_v43 = vadd.s32 %v7949_v40, %v7757_v5  ;;  %v7987_v28 = vadd.s32 %v7986_v57, %v7758_v53  ;;  %v8024_v54 = vadd.s32 %v8023_v27, %v7759_v18 }
 0x478   : > { %v8061_v31 = vadd.s32 %v8060_v25, %v7760_v2  ;;  %v8098_v32 = vadd.s32 %v8097_v47, %v7761_v0  ;;  %v8135_v21 = vadd.s32 %v8134_v37, %v7762_v1  ;;  %v8172_v60 = vadd.s32 %v8171_v23, %v7763_v49  ;;  %v7351_v25 = vpop.permute.xlu1 %7350 }
 0x479   : > { %vm7524_vm7 = vcmp.eq.s32.totalorder %v7345_v15, %v14449_v9  ;;  %vm7525_vm4 = vcmp.eq.s32.totalorder %v7345_v15, %v14452_v35  ;;  %vm7526_vm12 = vcmp.eq.s32.totalorder %v7345_v15, %v14455_v24  ;;  %vm7527_vm8 = vcmp.eq.s32.totalorder %v7345_v15, %v14458_v17 }
 0x47a   : > { %vm7528_vm1 = vcmp.eq.s32.totalorder %v7345_v15, %v14462_v12  ;;  %vm7529_vm2 = vcmp.eq.s32.totalorder %v7345_v15, %v14465_v41  ;;  %vm7530_vm13 = vcmp.eq.s32.totalorder %v7345_v15, %v14468_v56  ;;  %vm7531_vm10 = vcmp.eq.s32.totalorder %v7345_v15, %v14471_v63 }
 0x47b   : > { %v7780_v38 = vsel %vm7524_vm7, 1, %v17416_v62  ;;  %v7781_v46 = vsel %vm7525_vm4, 1, %v17416_v62  ;;  %v7782_v42 = vsel %vm7526_vm12, 1, %v17416_v62  ;;  %v7783_v58 = vsel %vm7527_vm8, 1, %v17416_v62 }
 0x47c   : > { %v7784_v8 = vsel %vm7528_vm1, 1, %v17416_v62  ;;  %v7785_v52 = vsel %vm7529_vm2, 1, %v17416_v62  ;;  %v7786_v16 = vsel %vm7530_vm13, 1, %v17416_v62  ;;  %v7787_v29 = vsel %vm7531_vm10, 1, %v17416_v62 }
 0x47d   : > { %v7914_v14 = vadd.s32 %v7913_v34, %v7764_v10  ;;  %v7951_v48 = vadd.s32 %v7950_v43, %v7765_v45  ;;  %v7988_v30 = vadd.s32 %v7987_v28, %v7766_v39  ;;  %v8025_v44 = vadd.s32 %v8024_v54, %v7767_v20 }
 0x47e   : > { %v8062_v11 = vadd.s32 %v8061_v31, %v7768_v36  ;;  %v8099_v40 = vadd.s32 %v8098_v32, %v7769_v55  ;;  %v8136_v57 = vadd.s32 %v8135_v21, %v7770_v51  ;;  %v8173_v27 = vadd.s32 %v8172_v60, %v7771_v13  ;;  %v7348_v31 = vpop.permute.xlu0 %7347 }
 0x47f   : > { %vm7516_vm15 = vcmp.eq.s32.totalorder %v7342_v26, %v14449_v9  ;;  %vm7517_vm3 = vcmp.eq.s32.totalorder %v7342_v26, %v14452_v35  ;;  %vm7518_vm0 = vcmp.eq.s32.totalorder %v7342_v26, %v14455_v24  ;;  %vm7519_vm9 = vcmp.eq.s32.totalorder %v7342_v26, %v14458_v17 }
 0x480   : > { %vm7520_vm11 = vcmp.eq.s32.totalorder %v7342_v26, %v14462_v12  ;;  %vm7521_vm14 = vcmp.eq.s32.totalorder %v7342_v26, %v14465_v41  ;;  %vm7522_vm5 = vcmp.eq.s32.totalorder %v7342_v26, %v14468_v56  ;;  %vm7523_vm6 = vcmp.eq.s32.totalorder %v7342_v26, %v14471_v63 }
 0x481   : > { %v7772_v10 = vsel %vm7516_vm15, 1, %v17416_v62  ;;  %v7773_v45 = vsel %vm7517_vm3, 1, %v17416_v62  ;;  %v7774_v39 = vsel %vm7518_vm0, 1, %v17416_v62  ;;  %v7775_v20 = vsel %vm7519_vm9, 1, %v17416_v62 }
 0x482   : > { %v7776_v36 = vsel %vm7520_vm11, 1, %v17416_v62  ;;  %v7777_v55 = vsel %vm7521_vm14, 1, %v17416_v62  ;;  %v7778_v51 = vsel %vm7522_vm5, 1, %v17416_v62  ;;  %v7779_v13 = vsel %vm7523_vm6, 1, %v17416_v62 }
 0x483   : > { %v7915_v47 = vadd.s32 %v7914_v14, %v7772_v10  ;;  %v7952_v37 = vadd.s32 %v7951_v48, %v7773_v45  ;;  %v7989_v23 = vadd.s32 %v7988_v30, %v7774_v39  ;;  %v8026_v33 = vadd.s32 %v8025_v44, %v7775_v20 }
 0x484   : > { %v8063_v5 = vadd.s32 %v8062_v11, %v7776_v36  ;;  %v8100_v53 = vadd.s32 %v8099_v40, %v7777_v55  ;;  %v8137_v18 = vadd.s32 %v8136_v57, %v7778_v51  ;;  %v8174_v2 = vadd.s32 %v8173_v27, %v7779_v13  ;;  %v7357_v11 = vpop.permute.xlu1 %7356 }
 0x485   : > { %vm7540_vm7 = vcmp.eq.s32.totalorder %v7351_v25, %v14449_v9  ;;  %vm7541_vm4 = vcmp.eq.s32.totalorder %v7351_v25, %v14452_v35  ;;  %vm7542_vm12 = vcmp.eq.s32.totalorder %v7351_v25, %v14455_v24  ;;  %vm7543_vm8 = vcmp.eq.s32.totalorder %v7351_v25, %v14458_v17 }
 0x486   : > { %vm7544_vm1 = vcmp.eq.s32.totalorder %v7351_v25, %v14462_v12  ;;  %vm7545_vm2 = vcmp.eq.s32.totalorder %v7351_v25, %v14465_v41  ;;  %vm7546_vm13 = vcmp.eq.s32.totalorder %v7351_v25, %v14468_v56  ;;  %vm7547_vm10 = vcmp.eq.s32.totalorder %v7351_v25, %v14471_v63 }
 0x487   : > { %v7796_v0 = vsel %vm7540_vm7, 1, %v17416_v62  ;;  %v7797_v1 = vsel %vm7541_vm4, 1, %v17416_v62  ;;  %v7798_v49 = vsel %vm7542_vm12, 1, %v17416_v62  ;;  %v7799_v15 = vsel %vm7543_vm8, 1, %v17416_v62 }
 0x488   : > { %v7800_v34 = vsel %vm7544_vm1, 1, %v17416_v62  ;;  %v7801_v43 = vsel %vm7545_vm2, 1, %v17416_v62  ;;  %v7802_v28 = vsel %vm7546_vm13, 1, %v17416_v62  ;;  %v7803_v54 = vsel %vm7547_vm10, 1, %v17416_v62 }
 0x489   : > { %v7916_v32 = vadd.s32 %v7915_v47, %v7780_v38  ;;  %v7953_v21 = vadd.s32 %v7952_v37, %v7781_v46  ;;  %v7990_v60 = vadd.s32 %v7989_v23, %v7782_v42  ;;  %v8027_v26 = vadd.s32 %v8026_v33, %v7783_v58 }
 0x48a   : > { %v8064_v14 = vadd.s32 %v8063_v5, %v7784_v8  ;;  %v8101_v48 = vadd.s32 %v8100_v53, %v7785_v52  ;;  %v8138_v30 = vadd.s32 %v8137_v18, %v7786_v16  ;;  %v8175_v44 = vadd.s32 %v8174_v2, %v7787_v29  ;;  %v7354_v5 = vpop.permute.xlu0 %7353 }
 0x48b   : > { %vm7532_vm15 = vcmp.eq.s32.totalorder %v7348_v31, %v14449_v9  ;;  %vm7533_vm3 = vcmp.eq.s32.totalorder %v7348_v31, %v14452_v35  ;;  %vm7534_vm0 = vcmp.eq.s32.totalorder %v7348_v31, %v14455_v24  ;;  %vm7535_vm9 = vcmp.eq.s32.totalorder %v7348_v31, %v14458_v17 }
 0x48c   : > { %vm7536_vm11 = vcmp.eq.s32.totalorder %v7348_v31, %v14462_v12  ;;  %vm7537_vm14 = vcmp.eq.s32.totalorder %v7348_v31, %v14465_v41  ;;  %vm7538_vm5 = vcmp.eq.s32.totalorder %v7348_v31, %v14468_v56  ;;  %vm7539_vm6 = vcmp.eq.s32.totalorder %v7348_v31, %v14471_v63 }
 0x48d   : > { %v7788_v38 = vsel %vm7532_vm15, 1, %v17416_v62  ;;  %v7789_v46 = vsel %vm7533_vm3, 1, %v17416_v62  ;;  %v7790_v42 = vsel %vm7534_vm0, 1, %v17416_v62  ;;  %v7791_v58 = vsel %vm7535_vm9, 1, %v17416_v62 }
 0x48e   : > { %v7792_v8 = vsel %vm7536_vm11, 1, %v17416_v62  ;;  %v7793_v52 = vsel %vm7537_vm14, 1, %v17416_v62  ;;  %v7794_v16 = vsel %vm7538_vm5, 1, %v17416_v62  ;;  %v7795_v29 = vsel %vm7539_vm6, 1, %v17416_v62 }
 0x48f   : > { %v7917_v40 = vadd.s32 %v7916_v32, %v7788_v38  ;;  %v7954_v57 = vadd.s32 %v7953_v21, %v7789_v46  ;;  %v7991_v27 = vadd.s32 %v7990_v60, %v7790_v42  ;;  %v8028_v10 = vadd.s32 %v8027_v26, %v7791_v58 }
 0x490   : > { %v8065_v45 = vadd.s32 %v8064_v14, %v7792_v8  ;;  %v8102_v39 = vadd.s32 %v8101_v48, %v7793_v52  ;;  %v8139_v20 = vadd.s32 %v8138_v30, %v7794_v16  ;;  %v8176_v36 = vadd.s32 %v8175_v44, %v7795_v29  ;;  %v7363_v14 = vpop.permute.xlu1 %7362 }
 0x491   : > { %vm7556_vm7 = vcmp.eq.s32.totalorder %v7357_v11, %v14449_v9  ;;  %vm7557_vm4 = vcmp.eq.s32.totalorder %v7357_v11, %v14452_v35  ;;  %vm7558_vm12 = vcmp.eq.s32.totalorder %v7357_v11, %v14455_v24  ;;  %vm7559_vm8 = vcmp.eq.s32.totalorder %v7357_v11, %v14458_v17 }
 0x492   : > { %vm7560_vm1 = vcmp.eq.s32.totalorder %v7357_v11, %v14462_v12  ;;  %vm7561_vm2 = vcmp.eq.s32.totalorder %v7357_v11, %v14465_v41  ;;  %vm7562_vm13 = vcmp.eq.s32.totalorder %v7357_v11, %v14468_v56  ;;  %vm7563_vm10 = vcmp.eq.s32.totalorder %v7357_v11, %v14471_v63 }
 0x493   : > { %v7812_v55 = vsel %vm7556_vm7, 1, %v17416_v62  ;;  %v7813_v51 = vsel %vm7557_vm4, 1, %v17416_v62  ;;  %v7814_v13 = vsel %vm7558_vm12, 1, %v17416_v62  ;;  %v7815_v25 = vsel %vm7559_vm8, 1, %v17416_v62 }
 0x494   : > { %v7816_v47 = vsel %vm7560_vm1, 1, %v17416_v62  ;;  %v7817_v37 = vsel %vm7561_vm2, 1, %v17416_v62  ;;  %v7818_v23 = vsel %vm7562_vm13, 1, %v17416_v62  ;;  %v7819_v33 = vsel %vm7563_vm10, 1, %v17416_v62 }
 0x495   : > { %v7918_v53 = vadd.s32 %v7917_v40, %v7796_v0  ;;  %v7955_v18 = vadd.s32 %v7954_v57, %v7797_v1  ;;  %v7992_v2 = vadd.s32 %v7991_v27, %v7798_v49  ;;  %v8029_v31 = vadd.s32 %v8028_v10, %v7799_v15 }
 0x496   : > { %v8066_v32 = vadd.s32 %v8065_v45, %v7800_v34  ;;  %v8103_v21 = vadd.s32 %v8102_v39, %v7801_v43  ;;  %v8140_v60 = vadd.s32 %v8139_v20, %v7802_v28  ;;  %v8177_v26 = vadd.s32 %v8176_v36, %v7803_v54  ;;  %v7360_v45 = vpop.permute.xlu0 %7359 }
 0x497   : > { %vm7548_vm15 = vcmp.eq.s32.totalorder %v7354_v5, %v14449_v9  ;;  %vm7549_vm3 = vcmp.eq.s32.totalorder %v7354_v5, %v14452_v35  ;;  %vm7550_vm0 = vcmp.eq.s32.totalorder %v7354_v5, %v14455_v24  ;;  %vm7551_vm9 = vcmp.eq.s32.totalorder %v7354_v5, %v14458_v17 }
 0x498   : > { %vm7552_vm11 = vcmp.eq.s32.totalorder %v7354_v5, %v14462_v12  ;;  %vm7553_vm14 = vcmp.eq.s32.totalorder %v7354_v5, %v14465_v41  ;;  %vm7554_vm5 = vcmp.eq.s32.totalorder %v7354_v5, %v14468_v56  ;;  %vm7555_vm6 = vcmp.eq.s32.totalorder %v7354_v5, %v14471_v63 }
 0x499   : > { %v7804_v0 = vsel %vm7548_vm15, 1, %v17416_v62  ;;  %v7805_v1 = vsel %vm7549_vm3, 1, %v17416_v62  ;;  %v7806_v49 = vsel %vm7550_vm0, 1, %v17416_v62  ;;  %v7807_v15 = vsel %vm7551_vm9, 1, %v17416_v62 }
 0x49a   : > { %v7808_v34 = vsel %vm7552_vm11, 1, %v17416_v62  ;;  %v7809_v43 = vsel %vm7553_vm14, 1, %v17416_v62  ;;  %v7810_v28 = vsel %vm7554_vm5, 1, %v17416_v62  ;;  %v7811_v54 = vsel %vm7555_vm6, 1, %v17416_v62 }
 0x49b   : > { %v7919_v48 = vadd.s32 %v7918_v53, %v7804_v0  ;;  %v7956_v30 = vadd.s32 %v7955_v18, %v7805_v1  ;;  %v7993_v44 = vadd.s32 %v7992_v2, %v7806_v49  ;;  %v8030_v38 = vadd.s32 %v8029_v31, %v7807_v15 }
 0x49c   : > { %v8067_v46 = vadd.s32 %v8066_v32, %v7808_v34  ;;  %v8104_v42 = vadd.s32 %v8103_v21, %v7809_v43  ;;  %v8141_v58 = vadd.s32 %v8140_v60, %v7810_v28  ;;  %v8178_v8 = vadd.s32 %v8177_v26, %v7811_v54  ;;  %v7369_v32 = vpop.permute.xlu1 %7368 }
 0x49d   : > { %vm7572_vm7 = vcmp.eq.s32.totalorder %v7363_v14, %v14449_v9  ;;  %vm7573_vm4 = vcmp.eq.s32.totalorder %v7363_v14, %v14452_v35  ;;  %vm7574_vm12 = vcmp.eq.s32.totalorder %v7363_v14, %v14455_v24  ;;  %vm7575_vm8 = vcmp.eq.s32.totalorder %v7363_v14, %v14458_v17 }
 0x49e   : > { %vm7576_vm1 = vcmp.eq.s32.totalorder %v7363_v14, %v14462_v12  ;;  %vm7577_vm2 = vcmp.eq.s32.totalorder %v7363_v14, %v14465_v41  ;;  %vm7578_vm13 = vcmp.eq.s32.totalorder %v7363_v14, %v14468_v56  ;;  %vm7579_vm10 = vcmp.eq.s32.totalorder %v7363_v14, %v14471_v63 }
 0x49f   : > { %v7828_v52 = vsel %vm7572_vm7, 1, %v17416_v62  ;;  %v7829_v16 = vsel %vm7573_vm4, 1, %v17416_v62  ;;  %v7830_v29 = vsel %vm7574_vm12, 1, %v17416_v62  ;;  %v7831_v11 = vsel %vm7575_vm8, 1, %v17416_v62 }
 0x4a0   : > { %v7832_v40 = vsel %vm7576_vm1, 1, %v17416_v62  ;;  %v7833_v57 = vsel %vm7577_vm2, 1, %v17416_v62  ;;  %v7834_v27 = vsel %vm7578_vm13, 1, %v17416_v62  ;;  %v7835_v10 = vsel %vm7579_vm10, 1, %v17416_v62 }
 0x4a1   : > { %v7920_v39 = vadd.s32 %v7919_v48, %v7812_v55  ;;  %v7957_v20 = vadd.s32 %v7956_v30, %v7813_v51  ;;  %v7994_v36 = vadd.s32 %v7993_v44, %v7814_v13  ;;  %v8031_v5 = vadd.s32 %v8030_v38, %v7815_v25 }
 0x4a2   : > { %v8068_v53 = vadd.s32 %v8067_v46, %v7816_v47  ;;  %v8105_v18 = vadd.s32 %v8104_v42, %v7817_v37  ;;  %v8142_v2 = vadd.s32 %v8141_v58, %v7818_v23  ;;  %v8179_v31 = vadd.s32 %v8178_v8, %v7819_v33  ;;  %v7366_v46 = vpop.permute.xlu0 %7365 }
 0x4a3   : > { %vm7564_vm15 = vcmp.eq.s32.totalorder %v7360_v45, %v14449_v9  ;;  %vm7565_vm3 = vcmp.eq.s32.totalorder %v7360_v45, %v14452_v35  ;;  %vm7566_vm0 = vcmp.eq.s32.totalorder %v7360_v45, %v14455_v24  ;;  %vm7567_vm9 = vcmp.eq.s32.totalorder %v7360_v45, %v14458_v17 }
 0x4a4   : > { %vm7568_vm11 = vcmp.eq.s32.totalorder %v7360_v45, %v14462_v12  ;;  %vm7569_vm14 = vcmp.eq.s32.totalorder %v7360_v45, %v14465_v41  ;;  %vm7570_vm5 = vcmp.eq.s32.totalorder %v7360_v45, %v14468_v56  ;;  %vm7571_vm6 = vcmp.eq.s32.totalorder %v7360_v45, %v14471_v63 }
 0x4a5   : > { %v7820_v55 = vsel %vm7564_vm15, 1, %v17416_v62  ;;  %v7821_v51 = vsel %vm7565_vm3, 1, %v17416_v62  ;;  %v7822_v13 = vsel %vm7566_vm0, 1, %v17416_v62  ;;  %v7823_v25 = vsel %vm7567_vm9, 1, %v17416_v62 }
 0x4a6   : > { %v7824_v47 = vsel %vm7568_vm11, 1, %v17416_v62  ;;  %v7825_v37 = vsel %vm7569_vm14, 1, %v17416_v62  ;;  %v7826_v23 = vsel %vm7570_vm5, 1, %v17416_v62  ;;  %v7827_v33 = vsel %vm7571_vm6, 1, %v17416_v62 }
 0x4a7   : > { %v7921_v21 = vadd.s32 %v7920_v39, %v7820_v55  ;;  %v7958_v60 = vadd.s32 %v7957_v20, %v7821_v51  ;;  %v7995_v26 = vadd.s32 %v7994_v36, %v7822_v13  ;;  %v8032_v0 = vadd.s32 %v8031_v5, %v7823_v25 }
 0x4a8   : > { %v8069_v1 = vadd.s32 %v8068_v53, %v7824_v47  ;;  %v8106_v49 = vadd.s32 %v8105_v18, %v7825_v37  ;;  %v8143_v15 = vadd.s32 %v8142_v2, %v7826_v23  ;;  %v8180_v34 = vadd.s32 %v8179_v31, %v7827_v33  ;;  %v7375_v53 = vpop.permute.xlu1 %7374 }
 0x4a9   : > { %vm7588_vm7 = vcmp.eq.s32.totalorder %v7369_v32, %v14449_v9  ;;  %vm7589_vm4 = vcmp.eq.s32.totalorder %v7369_v32, %v14452_v35  ;;  %vm7590_vm12 = vcmp.eq.s32.totalorder %v7369_v32, %v14455_v24  ;;  %vm7591_vm8 = vcmp.eq.s32.totalorder %v7369_v32, %v14458_v17 }
 0x4aa   : > { %vm7592_vm1 = vcmp.eq.s32.totalorder %v7369_v32, %v14462_v12  ;;  %vm7593_vm2 = vcmp.eq.s32.totalorder %v7369_v32, %v14465_v41  ;;  %vm7594_vm13 = vcmp.eq.s32.totalorder %v7369_v32, %v14468_v56  ;;  %vm7595_vm10 = vcmp.eq.s32.totalorder %v7369_v32, %v14471_v63 }
 0x4ab   : > { %v7844_v43 = vsel %vm7588_vm7, 1, %v17416_v62  ;;  %v7845_v28 = vsel %vm7589_vm4, 1, %v17416_v62  ;;  %v7846_v54 = vsel %vm7590_vm12, 1, %v17416_v62  ;;  %v7847_v14 = vsel %vm7591_vm8, 1, %v17416_v62 }
 0x4ac   : > { %v7848_v48 = vsel %vm7592_vm1, 1, %v17416_v62  ;;  %v7849_v30 = vsel %vm7593_vm2, 1, %v17416_v62  ;;  %v7850_v44 = vsel %vm7594_vm13, 1, %v17416_v62  ;;  %v7851_v38 = vsel %vm7595_vm10, 1, %v17416_v62 }
 0x4ad   : > { %v7922_v42 = vadd.s32 %v7921_v21, %v7828_v52  ;;  %v7959_v58 = vadd.s32 %v7958_v60, %v7829_v16  ;;  %v7996_v8 = vadd.s32 %v7995_v26, %v7830_v29  ;;  %v8033_v45 = vadd.s32 %v8032_v0, %v7831_v11 }
 0x4ae   : > { %v8070_v39 = vadd.s32 %v8069_v1, %v7832_v40  ;;  %v8107_v20 = vadd.s32 %v8106_v49, %v7833_v57  ;;  %v8144_v36 = vadd.s32 %v8143_v15, %v7834_v27  ;;  %v8181_v5 = vadd.s32 %v8180_v34, %v7835_v10  ;;  %v7372_v1 = vpop.permute.xlu0 %7371 }
 0x4af   : > { %vm7580_vm15 = vcmp.eq.s32.totalorder %v7366_v46, %v14449_v9  ;;  %vm7581_vm3 = vcmp.eq.s32.totalorder %v7366_v46, %v14452_v35  ;;  %vm7582_vm0 = vcmp.eq.s32.totalorder %v7366_v46, %v14455_v24  ;;  %vm7583_vm9 = vcmp.eq.s32.totalorder %v7366_v46, %v14458_v17 }
 0x4b0   : > { %vm7584_vm11 = vcmp.eq.s32.totalorder %v7366_v46, %v14462_v12  ;;  %vm7585_vm14 = vcmp.eq.s32.totalorder %v7366_v46, %v14465_v41  ;;  %vm7586_vm5 = vcmp.eq.s32.totalorder %v7366_v46, %v14468_v56  ;;  %vm7587_vm6 = vcmp.eq.s32.totalorder %v7366_v46, %v14471_v63 }
 0x4b1   : > { %v7836_v52 = vsel %vm7580_vm15, 1, %v17416_v62  ;;  %v7837_v16 = vsel %vm7581_vm3, 1, %v17416_v62  ;;  %v7838_v29 = vsel %vm7582_vm0, 1, %v17416_v62  ;;  %v7839_v11 = vsel %vm7583_vm9, 1, %v17416_v62 }
 0x4b2   : > { %v7840_v40 = vsel %vm7584_vm11, 1, %v17416_v62  ;;  %v7841_v57 = vsel %vm7585_vm14, 1, %v17416_v62  ;;  %v7842_v27 = vsel %vm7586_vm5, 1, %v17416_v62  ;;  %v7843_v10 = vsel %vm7587_vm6, 1, %v17416_v62 }
 0x4b3   : > { %v7923_v18 = vadd.s32 %v7922_v42, %v7836_v52  ;;  %v7960_v2 = vadd.s32 %v7959_v58, %v7837_v16  ;;  %v7997_v31 = vadd.s32 %v7996_v8, %v7838_v29  ;;  %v8034_v55 = vadd.s32 %v8033_v45, %v7839_v11 }
 0x4b4   : > { %v8071_v51 = vadd.s32 %v8070_v39, %v7840_v40  ;;  %v8108_v13 = vadd.s32 %v8107_v20, %v7841_v57  ;;  %v8145_v25 = vadd.s32 %v8144_v36, %v7842_v27  ;;  %v8182_v47 = vadd.s32 %v8181_v5, %v7843_v10  ;;  %v7381_v39 = vpop.permute.xlu1 %7380 }
 0x4b5   : > { %vm7604_vm7 = vcmp.eq.s32.totalorder %v7375_v53, %v14449_v9  ;;  %vm7605_vm4 = vcmp.eq.s32.totalorder %v7375_v53, %v14452_v35  ;;  %vm7606_vm12 = vcmp.eq.s32.totalorder %v7375_v53, %v14455_v24  ;;  %vm7607_vm8 = vcmp.eq.s32.totalorder %v7375_v53, %v14458_v17 }
 0x4b6   : > { %vm7608_vm1 = vcmp.eq.s32.totalorder %v7375_v53, %v14462_v12  ;;  %vm7609_vm2 = vcmp.eq.s32.totalorder %v7375_v53, %v14465_v41  ;;  %vm7610_vm13 = vcmp.eq.s32.totalorder %v7375_v53, %v14468_v56  ;;  %vm7611_vm10 = vcmp.eq.s32.totalorder %v7375_v53, %v14471_v63 }
 0x4b7   : > { %v7860_v37 = vsel %vm7604_vm7, 1, %v17416_v62  ;;  %v7861_v23 = vsel %vm7605_vm4, 1, %v17416_v62  ;;  %v7862_v33 = vsel %vm7606_vm12, 1, %v17416_v62  ;;  %v7863_v32 = vsel %vm7607_vm8, 1, %v17416_v62 }
 0x4b8   : > { %v7864_v21 = vsel %vm7608_vm1, 1, %v17416_v62  ;;  %v7865_v60 = vsel %vm7609_vm2, 1, %v17416_v62  ;;  %v7866_v26 = vsel %vm7610_vm13, 1, %v17416_v62  ;;  %v7867_v0 = vsel %vm7611_vm10, 1, %v17416_v62 }
 0x4b9   : > { %v7924_v49 = vadd.s32 %v7923_v18, %v7844_v43  ;;  %v7961_v15 = vadd.s32 %v7960_v2, %v7845_v28  ;;  %v7998_v34 = vadd.s32 %v7997_v31, %v7846_v54  ;;  %v8035_v46 = vadd.s32 %v8034_v55, %v7847_v14 }
 0x4ba   : > { %v8072_v42 = vadd.s32 %v8071_v51, %v7848_v48  ;;  %v8109_v58 = vadd.s32 %v8108_v13, %v7849_v30  ;;  %v8146_v8 = vadd.s32 %v8145_v25, %v7850_v44  ;;  %v8183_v45 = vadd.s32 %v8182_v47, %v7851_v38  ;;  %v7378_v51 = vpop.permute.xlu0 %7377 }
 0x4bb   : > { %vm7596_vm15 = vcmp.eq.s32.totalorder %v7372_v1, %v14449_v9  ;;  %vm7597_vm3 = vcmp.eq.s32.totalorder %v7372_v1, %v14452_v35  ;;  %vm7598_vm0 = vcmp.eq.s32.totalorder %v7372_v1, %v14455_v24  ;;  %vm7599_vm9 = vcmp.eq.s32.totalorder %v7372_v1, %v14458_v17 }
 0x4bc   : > { %vm7600_vm11 = vcmp.eq.s32.totalorder %v7372_v1, %v14462_v12  ;;  %vm7601_vm14 = vcmp.eq.s32.totalorder %v7372_v1, %v14465_v41  ;;  %vm7602_vm5 = vcmp.eq.s32.totalorder %v7372_v1, %v14468_v56  ;;  %vm7603_vm6 = vcmp.eq.s32.totalorder %v7372_v1, %v14471_v63 }
 0x4bd   : > { %v7852_v43 = vsel %vm7596_vm15, 1, %v17416_v62  ;;  %v7853_v28 = vsel %vm7597_vm3, 1, %v17416_v62  ;;  %v7854_v54 = vsel %vm7598_vm0, 1, %v17416_v62  ;;  %v7855_v14 = vsel %vm7599_vm9, 1, %v17416_v62 }
 0x4be   : > { %v7856_v48 = vsel %vm7600_vm11, 1, %v17416_v62  ;;  %v7857_v30 = vsel %vm7601_vm14, 1, %v17416_v62  ;;  %v7858_v44 = vsel %vm7602_vm5, 1, %v17416_v62  ;;  %v7859_v38 = vsel %vm7603_vm6, 1, %v17416_v62 }
 0x4bf   : > { %v7925_v20 = vadd.s32 %v7924_v49, %v7852_v43  ;;  %v7962_v36 = vadd.s32 %v7961_v15, %v7853_v28  ;;  %v7999_v5 = vadd.s32 %v7998_v34, %v7854_v54  ;;  %v8036_v52 = vadd.s32 %v8035_v46, %v7855_v14 }
 0x4c0   : > { %v8073_v16 = vadd.s32 %v8072_v42, %v7856_v48  ;;  %v8110_v29 = vadd.s32 %v8109_v58, %v7857_v30  ;;  %v8147_v11 = vadd.s32 %v8146_v8, %v7858_v44  ;;  %v8184_v40 = vadd.s32 %v8183_v45, %v7859_v38  ;;  %v7387_v42 = vpop.permute.xlu1 %7386 }
 0x4c1   : > { %vm7620_vm7 = vcmp.eq.s32.totalorder %v7381_v39, %v14449_v9  ;;  %vm7621_vm4 = vcmp.eq.s32.totalorder %v7381_v39, %v14452_v35  ;;  %vm7622_vm12 = vcmp.eq.s32.totalorder %v7381_v39, %v14455_v24  ;;  %vm7623_vm8 = vcmp.eq.s32.totalorder %v7381_v39, %v14458_v17 }
 0x4c2   : > { %vm7624_vm1 = vcmp.eq.s32.totalorder %v7381_v39, %v14462_v12  ;;  %vm7625_vm2 = vcmp.eq.s32.totalorder %v7381_v39, %v14465_v41  ;;  %vm7626_vm13 = vcmp.eq.s32.totalorder %v7381_v39, %v14468_v56  ;;  %vm7627_vm10 = vcmp.eq.s32.totalorder %v7381_v39, %v14471_v63 }
 0x4c3   : > { %v7876_v57 = vsel %vm7620_vm7, 1, %v17416_v62  ;;  %v7877_v27 = vsel %vm7621_vm4, 1, %v17416_v62  ;;  %v7878_v10 = vsel %vm7622_vm12, 1, %v17416_v62  ;;  %v7879_v53 = vsel %vm7623_vm8, 1, %v17416_v62 }
 0x4c4   : > { %v7880_v18 = vsel %vm7624_vm1, 1, %v17416_v62  ;;  %v7881_v2 = vsel %vm7625_vm2, 1, %v17416_v62  ;;  %v7882_v31 = vsel %vm7626_vm13, 1, %v17416_v62  ;;  %v7883_v55 = vsel %vm7627_vm10, 1, %v17416_v62 }
 0x4c5   : > { %v7926_v13 = vadd.s32 %v7925_v20, %v7860_v37  ;;  %v7963_v25 = vadd.s32 %v7962_v36, %v7861_v23  ;;  %v8000_v47 = vadd.s32 %v7999_v5, %v7862_v33  ;;  %v8037_v1 = vadd.s32 %v8036_v52, %v7863_v32 }
 0x4c6   : > { %v8074_v49 = vadd.s32 %v8073_v16, %v7864_v21  ;;  %v8111_v15 = vadd.s32 %v8110_v29, %v7865_v60  ;;  %v8148_v34 = vadd.s32 %v8147_v11, %v7866_v26  ;;  %v8185_v46 = vadd.s32 %v8184_v40, %v7867_v0  ;;  %v7384_v16 = vpop.permute.xlu0 %7383 }
 0x4c7   : > { %vm7612_vm15 = vcmp.eq.s32.totalorder %v7378_v51, %v14449_v9  ;;  %vm7613_vm3 = vcmp.eq.s32.totalorder %v7378_v51, %v14452_v35  ;;  %vm7614_vm0 = vcmp.eq.s32.totalorder %v7378_v51, %v14455_v24  ;;  %vm7615_vm9 = vcmp.eq.s32.totalorder %v7378_v51, %v14458_v17 }
 0x4c8   : > { %vm7616_vm11 = vcmp.eq.s32.totalorder %v7378_v51, %v14462_v12  ;;  %vm7617_vm14 = vcmp.eq.s32.totalorder %v7378_v51, %v14465_v41  ;;  %vm7618_vm5 = vcmp.eq.s32.totalorder %v7378_v51, %v14468_v56  ;;  %vm7619_vm6 = vcmp.eq.s32.totalorder %v7378_v51, %v14471_v63 }
 0x4c9   : > { %v7868_v37 = vsel %vm7612_vm15, 1, %v17416_v62  ;;  %v7869_v23 = vsel %vm7613_vm3, 1, %v17416_v62  ;;  %v7870_v33 = vsel %vm7614_vm0, 1, %v17416_v62  ;;  %v7871_v32 = vsel %vm7615_vm9, 1, %v17416_v62 }
 0x4ca   : > { %v7872_v21 = vsel %vm7616_vm11, 1, %v17416_v62  ;;  %v7873_v60 = vsel %vm7617_vm14, 1, %v17416_v62  ;;  %v7874_v26 = vsel %vm7618_vm5, 1, %v17416_v62  ;;  %v7875_v0 = vsel %vm7619_vm6, 1, %v17416_v62 }
 0x4cb   : > { %v7927_v58 = vadd.s32 %v7926_v13, %v7868_v37  ;;  %v7964_v8 = vadd.s32 %v7963_v25, %v7869_v23  ;;  %v8001_v45 = vadd.s32 %v8000_v47, %v7870_v33  ;;  %v8038_v43 = vadd.s32 %v8037_v1, %v7871_v32 }
 0x4cc   : > { %v8075_v28 = vadd.s32 %v8074_v49, %v7872_v21  ;;  %v8112_v54 = vadd.s32 %v8111_v15, %v7873_v60  ;;  %v8149_v14 = vadd.s32 %v8148_v34, %v7874_v26  ;;  %v8186_v48 = vadd.s32 %v8185_v46, %v7875_v0 }
 0x4cd   : > { %vm7636_vm7 = vcmp.eq.s32.totalorder %v7387_v42, %v14449_v9  ;;  %vm7637_vm4 = vcmp.eq.s32.totalorder %v7387_v42, %v14452_v35  ;;  %vm7638_vm12 = vcmp.eq.s32.totalorder %v7387_v42, %v14455_v24  ;;  %vm7639_vm8 = vcmp.eq.s32.totalorder %v7387_v42, %v14458_v17 }
 0x4ce   : > { %vm7640_vm1 = vcmp.eq.s32.totalorder %v7387_v42, %v14462_v12  ;;  %vm7641_vm2 = vcmp.eq.s32.totalorder %v7387_v42, %v14465_v41  ;;  %vm7642_vm13 = vcmp.eq.s32.totalorder %v7387_v42, %v14468_v56  ;;  %vm7643_vm10 = vcmp.eq.s32.totalorder %v7387_v42, %v14471_v63 }
 0x4cf   : > { %v7892_v30 = vsel %vm7636_vm7, 1, %v17416_v62  ;;  %v7893_v44 = vsel %vm7637_vm4, 1, %v17416_v62  ;;  %v7894_v38 = vsel %vm7638_vm12, 1, %v17416_v62  ;;  %v7895_v39 = vsel %vm7639_vm8, 1, %v17416_v62 }
 0x4d0   : > { %v7896_v20 = vsel %vm7640_vm1, 1, %v17416_v62  ;;  %v7897_v36 = vsel %vm7641_vm2, 1, %v17416_v62  ;;  %v7898_v5 = vsel %vm7642_vm13, 1, %v17416_v62  ;;  %v7899_v52 = vsel %vm7643_vm10, 1, %v17416_v62 }
 0x4d1   : > { %v7928_v29 = vadd.s32 %v7927_v58, %v7876_v57  ;;  %v7965_v11 = vadd.s32 %v7964_v8, %v7877_v27  ;;  %v8002_v40 = vadd.s32 %v8001_v45, %v7878_v10  ;;  %v8039_v51 = vadd.s32 %v8038_v43, %v7879_v53 }
 0x4d2   : > { %v8076_v13 = vadd.s32 %v8075_v28, %v7880_v18  ;;  %v8113_v25 = vadd.s32 %v8112_v54, %v7881_v2  ;;  %v8150_v47 = vadd.s32 %v8149_v14, %v7882_v31  ;;  %v8187_v1 = vadd.s32 %v8186_v48, %v7883_v55 }
 0x4d3   : > { %vm7628_vm15 = vcmp.eq.s32.totalorder %v7384_v16, %v14449_v9  ;;  %vm7629_vm3 = vcmp.eq.s32.totalorder %v7384_v16, %v14452_v35  ;;  %vm7630_vm0 = vcmp.eq.s32.totalorder %v7384_v16, %v14455_v24  ;;  %vm7631_vm9 = vcmp.eq.s32.totalorder %v7384_v16, %v14458_v17 }
 0x4d4   : > { %vm7632_vm11 = vcmp.eq.s32.totalorder %v7384_v16, %v14462_v12  ;;  %vm7633_vm14 = vcmp.eq.s32.totalorder %v7384_v16, %v14465_v41  ;;  %vm7634_vm5 = vcmp.eq.s32.totalorder %v7384_v16, %v14468_v56  ;;  %vm7635_vm6 = vcmp.eq.s32.totalorder %v7384_v16, %v14471_v63 }
 0x4d5   : > { %v7884_v57 = vsel %vm7628_vm15, 1, %v17416_v62  ;;  %v7885_v27 = vsel %vm7629_vm3, 1, %v17416_v62  ;;  %v7886_v10 = vsel %vm7630_vm0, 1, %v17416_v62  ;;  %v7887_v53 = vsel %vm7631_vm9, 1, %v17416_v62 }
 0x4d6   : > { %v7888_v18 = vsel %vm7632_vm11, 1, %v17416_v62  ;;  %v7889_v2 = vsel %vm7633_vm14, 1, %v17416_v62  ;;  %v7890_v31 = vsel %vm7634_vm5, 1, %v17416_v62  ;;  %v7891_v55 = vsel %vm7635_vm6, 1, %v17416_v62 }
 0x4d7   : > { %v7929_v49 = vadd.s32 %v7928_v29, %v7884_v57  ;;  %v7966_v15 = vadd.s32 %v7965_v11, %v7885_v27  ;;  %v8003_v34 = vadd.s32 %v8002_v40, %v7886_v10  ;;  %v8040_v46 = vadd.s32 %v8039_v51, %v7887_v53 }
 0x4d8   : > { %v8077_v37 = vadd.s32 %v8076_v13, %v7888_v18  ;;  %v8114_v23 = vadd.s32 %v8113_v25, %v7889_v2  ;;  %v8151_v33 = vadd.s32 %v8150_v47, %v7890_v31  ;;  %v8188_v32 = vadd.s32 %v8187_v1, %v7891_v55 }
 0x4d9   : > { %v7930_v21 = vadd.s32 %v7929_v49, %v7892_v30  ;;  %v7967_v60 = vadd.s32 %v7966_v15, %v7893_v44  ;;  %v8004_v26 = vadd.s32 %v8003_v34, %v7894_v38  ;;  %v8041_v0 = vadd.s32 %v8040_v46, %v7895_v39 }
 0x4da   : > { %v8078_v42 = vadd.s32 %v8077_v37, %v7896_v20  ;;  %v8115_v58 = vadd.s32 %v8114_v23, %v7897_v36  ;;  %v8152_v8 = vadd.s32 %v8151_v33, %v7898_v5  ;;  %v8189_v45 = vadd.s32 %v8188_v32, %v7899_v52 }
 0x4db   : > { %v7931_v43 = vrot.slane %v7930_v21, 4  ;;  %v7968_v28 = vrot.slane %v7967_v60, 4  ;;  %v8005_v54 = vrot.slane %v8004_v26, 4  ;;  %v8042_v14 = vrot.slane %v8041_v0, 4 }
 0x4dc   : > { %v8079_v48 = vrot.slane %v8078_v42, 4  ;;  %v8116_v16 = vrot.slane %v8115_v58, 4  ;;  %v8153_v29 = vrot.slane %v8152_v8, 4  ;;  %v8190_v11 = vrot.slane %v8189_v45, 4 }
 0x4dd   : > { %v7932_v40 = vadd.s32 %v7931_v43, %v7930_v21  ;;  %v7969_v51 = vadd.s32 %v7968_v28, %v7967_v60  ;;  %v8006_v13 = vadd.s32 %v8005_v54, %v8004_v26  ;;  %v8043_v25 = vadd.s32 %v8042_v14, %v8041_v0  ;;  %v8241_v26 = vpop.permute.xlu1 %8240  ;;  %v8238_v14 = vpop.permute.xlu0 %8237 }
 0x4de   : > { %v8080_v30 = vadd.s32 %v8079_v48, %v8078_v42  ;;  %v8117_v44 = vadd.s32 %v8116_v16, %v8115_v58  ;;  %v8154_v38 = vadd.s32 %v8153_v29, %v8152_v8  ;;  %v8191_v39 = vadd.s32 %v8190_v11, %v8189_v45 }
 0x4df   : > { %v7933_v20 = vrot.slane %v7932_v40, 2  ;;  %v7970_v36 = vrot.slane %v7969_v51, 2  ;;  %v8007_v5 = vrot.slane %v8006_v13, 2  ;;  %v8044_v52 = vrot.slane %v8043_v25, 2 }
 0x4e0   : > { %v8081_v47 = vrot.slane %v8080_v30, 2  ;;  %v8118_v1 = vrot.slane %v8117_v44, 2  ;;  %v8155_v57 = vrot.slane %v8154_v38, 2  ;;  %v8192_v27 = vrot.slane %v8191_v39, 2 }
 0x4e1   : > { %v7934_v10 = vadd.s32 %v7933_v20, %v7932_v40  ;;  %v7971_v53 = vadd.s32 %v7970_v36, %v7969_v51  ;;  %v8008_v18 = vadd.s32 %v8007_v5, %v8006_v13  ;;  %v8045_v2 = vadd.s32 %v8044_v52, %v8043_v25 }
 0x4e2   : > { %v8082_v31 = vadd.s32 %v8081_v47, %v8080_v30  ;;  %v8119_v55 = vadd.s32 %v8118_v1, %v8117_v44  ;;  %v8156_v49 = vadd.s32 %v8155_v57, %v8154_v38  ;;  %v8193_v15 = vadd.s32 %v8192_v27, %v8191_v39  ;;  %v8247_v47 = vpop.permute.xlu1 %8246 }
 0x4e3   : > { %v7935_v34 = vrot.slane %v7934_v10, 1  ;;  %v7972_v46 = vrot.slane %v7971_v53, 1  ;;  %v8009_v37 = vrot.slane %v8008_v18, 1  ;;  %v8046_v23 = vrot.slane %v8045_v2, 1 }
 0x4e4   : > { %v8083_v33 = vrot.slane %v8082_v31, 1  ;;  %v8120_v32 = vrot.slane %v8119_v55, 1  ;;  %v8157_v21 = vrot.slane %v8156_v49, 1  ;;  %v8194_v60 = vrot.slane %v8193_v15, 1 }
 0x4e5   : > { %v16067_v0 = vadd.s32 %v7935_v34, %v7934_v10  ;;  %v16069_v42 = vadd.s32 %v7972_v46, %v7971_v53  ;;  %v16071_v58 = vadd.s32 %v8009_v37, %v8008_v18  ;;  %v16073_v8 = vadd.s32 %v8046_v23, %v8045_v2 }
 0x4e6   : > { %v16075_v45 = vadd.s32 %v8083_v33, %v8082_v31  ;;  %v16077_v43 = vadd.s32 %v8120_v32, %v8119_v55  ;;  %v16079_v28 = vadd.s32 %v8157_v21, %v8156_v49  ;;  %v16081_v54 = vadd.s32 %v8194_v60, %v8193_v15  ;;  %v8244_v55 = vpop.permute.xlu0 %8243 }
 0x4e7   : > { %17598 = vst [vmem:[#allocation42_spill] sm:$0xff] %v16073_v8  ;;  %vm8340_vm7 = vcmp.eq.s32.totalorder %v8241_v26, %v14449_v9  ;;  %vm8341_vm4 = vcmp.eq.s32.totalorder %v8241_v26, %v14452_v35  ;;  %vm8342_vm12 = vcmp.eq.s32.totalorder %v8241_v26, %v14455_v24  ;;  %vm8343_vm8 = vcmp.eq.s32.totalorder %v8241_v26, %v14458_v17 }
 0x4e8   : > { %17599 = vst [vmem:[#allocation43_spill] sm:$0xff] %v16075_v45  ;;  %17600 = vst [vmem:[#allocation44_spill] sm:$0xff] %v16077_v43  ;;  %vm8344_vm1 = vcmp.eq.s32.totalorder %v8241_v26, %v14462_v12  ;;  %vm8345_vm2 = vcmp.eq.s32.totalorder %v8241_v26, %v14465_v41  ;;  %vm8346_vm13 = vcmp.eq.s32.totalorder %v8241_v26, %v14468_v56  ;;  %v8596_v48 = vsel %vm8340_vm7, 1, %v17416_v62 }
 0x4e9   : > { %17601 = vst [vmem:[#allocation45_spill] sm:$0xff] %v16079_v28  ;;  %17602 = vst [vmem:[#allocation46_spill] sm:$0xff] %v16081_v54  ;;  %vm8347_vm10 = vcmp.eq.s32.totalorder %v8241_v26, %v14471_v63  ;;  %v8597_v16 = vsel %vm8341_vm4, 1, %v17416_v62  ;;  %v8598_v29 = vsel %vm8342_vm12, 1, %v17416_v62  ;;  %v8599_v11 = vsel %vm8343_vm8, 1, %v17416_v62 }
 0x4ea   : > { %v8600_v40 = vsel %vm8344_vm1, 1, %v17416_v62  ;;  %v8601_v51 = vsel %vm8345_vm2, 1, %v17416_v62  ;;  %v8602_v13 = vsel %vm8346_vm13, 1, %v17416_v62  ;;  %v8603_v25 = vsel %vm8347_vm10, 1, %v17416_v62 }
 0x4eb   : > { %vm8332_vm15 = vcmp.eq.s32.totalorder %v8238_v14, %v14449_v9  ;;  %vm8333_vm3 = vcmp.eq.s32.totalorder %v8238_v14, %v14452_v35  ;;  %vm8334_vm0 = vcmp.eq.s32.totalorder %v8238_v14, %v14455_v24  ;;  %vm8335_vm9 = vcmp.eq.s32.totalorder %v8238_v14, %v14458_v17 }
 0x4ec   : > { %vm8336_vm11 = vcmp.eq.s32.totalorder %v8238_v14, %v14462_v12  ;;  %vm8337_vm14 = vcmp.eq.s32.totalorder %v8238_v14, %v14465_v41  ;;  %vm8338_vm5 = vcmp.eq.s32.totalorder %v8238_v14, %v14468_v56  ;;  %vm8339_vm6 = vcmp.eq.s32.totalorder %v8238_v14, %v14471_v63 }
 0x4ed   : > { %v8588_v30 = vsel %vm8332_vm15, 1, %v17416_v62  ;;  %v8589_v44 = vsel %vm8333_vm3, 1, %v17416_v62  ;;  %v8590_v38 = vsel %vm8334_vm0, 1, %v17416_v62  ;;  %v8591_v39 = vsel %vm8335_vm9, 1, %v17416_v62 }
 0x4ee   : > { %v8592_v20 = vsel %vm8336_vm11, 1, %v17416_v62  ;;  %v8593_v36 = vsel %vm8337_vm14, 1, %v17416_v62  ;;  %v8594_v5 = vsel %vm8338_vm5, 1, %v17416_v62  ;;  %v8595_v52 = vsel %vm8339_vm6, 1, %v17416_v62 }
 0x4ef   : > { %v8844_v1 = vadd.s32 %v8596_v48, %v8588_v30  ;;  %v8881_v57 = vadd.s32 %v8597_v16, %v8589_v44  ;;  %v8918_v27 = vadd.s32 %v8598_v29, %v8590_v38  ;;  %v8955_v10 = vadd.s32 %v8599_v11, %v8591_v39 }
 0x4f0   : > { %v8992_v53 = vadd.s32 %v8600_v40, %v8592_v20  ;;  %v9029_v18 = vadd.s32 %v8601_v51, %v8593_v36  ;;  %v9066_v2 = vadd.s32 %v8602_v13, %v8594_v5  ;;  %v9103_v31 = vadd.s32 %v8603_v25, %v8595_v52  ;;  %v8253_v40 = vpop.permute.xlu1 %8252 }
 0x4f1   : > { %vm8356_vm7 = vcmp.eq.s32.totalorder %v8247_v47, %v14449_v9  ;;  %vm8357_vm4 = vcmp.eq.s32.totalorder %v8247_v47, %v14452_v35  ;;  %vm8358_vm12 = vcmp.eq.s32.totalorder %v8247_v47, %v14455_v24  ;;  %vm8359_vm8 = vcmp.eq.s32.totalorder %v8247_v47, %v14458_v17 }
 0x4f2   : > { %vm8360_vm1 = vcmp.eq.s32.totalorder %v8247_v47, %v14462_v12  ;;  %vm8361_vm2 = vcmp.eq.s32.totalorder %v8247_v47, %v14465_v41  ;;  %vm8362_vm13 = vcmp.eq.s32.totalorder %v8247_v47, %v14468_v56  ;;  %vm8363_vm10 = vcmp.eq.s32.totalorder %v8247_v47, %v14471_v63 }
 0x4f3   : > { %v8612_v49 = vsel %vm8356_vm7, 1, %v17416_v62  ;;  %v8613_v15 = vsel %vm8357_vm4, 1, %v17416_v62  ;;  %v8614_v34 = vsel %vm8358_vm12, 1, %v17416_v62  ;;  %v8615_v46 = vsel %vm8359_vm8, 1, %v17416_v62 }
 0x4f4   : > { %v8616_v37 = vsel %vm8360_vm1, 1, %v17416_v62  ;;  %v8617_v23 = vsel %vm8361_vm2, 1, %v17416_v62  ;;  %v8618_v33 = vsel %vm8362_vm13, 1, %v17416_v62  ;;  %v8619_v32 = vsel %vm8363_vm10, 1, %v17416_v62 }
 0x4f5   : > { %vm8348_vm15 = vcmp.eq.s32.totalorder %v8244_v55, %v14449_v9  ;;  %vm8349_vm3 = vcmp.eq.s32.totalorder %v8244_v55, %v14452_v35  ;;  %vm8350_vm0 = vcmp.eq.s32.totalorder %v8244_v55, %v14455_v24  ;;  %vm8351_vm9 = vcmp.eq.s32.totalorder %v8244_v55, %v14458_v17 }
 0x4f6   : > { %vm8352_vm11 = vcmp.eq.s32.totalorder %v8244_v55, %v14462_v12  ;;  %vm8353_vm14 = vcmp.eq.s32.totalorder %v8244_v55, %v14465_v41  ;;  %vm8354_vm5 = vcmp.eq.s32.totalorder %v8244_v55, %v14468_v56  ;;  %vm8355_vm6 = vcmp.eq.s32.totalorder %v8244_v55, %v14471_v63 }
 0x4f7   : > { %v8604_v21 = vsel %vm8348_vm15, 1, %v17416_v62  ;;  %v8605_v60 = vsel %vm8349_vm3, 1, %v17416_v62  ;;  %v8606_v26 = vsel %vm8350_vm0, 1, %v17416_v62  ;;  %v8607_v14 = vsel %vm8351_vm9, 1, %v17416_v62 }
 0x4f8   : > { %v8608_v48 = vsel %vm8352_vm11, 1, %v17416_v62  ;;  %v8609_v16 = vsel %vm8353_vm14, 1, %v17416_v62  ;;  %v8610_v29 = vsel %vm8354_vm5, 1, %v17416_v62  ;;  %v8611_v11 = vsel %vm8355_vm6, 1, %v17416_v62 }
 0x4f9   : > { %v8845_v51 = vadd.s32 %v8844_v1, %v8604_v21  ;;  %v8882_v13 = vadd.s32 %v8881_v57, %v8605_v60  ;;  %v8919_v25 = vadd.s32 %v8918_v27, %v8606_v26  ;;  %v8956_v30 = vadd.s32 %v8955_v10, %v8607_v14 }
 0x4fa   : > { %v8993_v44 = vadd.s32 %v8992_v53, %v8608_v48  ;;  %v9030_v38 = vadd.s32 %v9029_v18, %v8609_v16  ;;  %v9067_v39 = vadd.s32 %v9066_v2, %v8610_v29  ;;  %v9104_v20 = vadd.s32 %v9103_v31, %v8611_v11  ;;  %v8250_v53 = vpop.permute.xlu0 %8249  ;;  %v8259_v48 = vpop.permute.xlu1 %8258 }
 0x4fb   : > { %vm8372_vm7 = vcmp.eq.s32.totalorder %v8253_v40, %v14449_v9  ;;  %vm8373_vm4 = vcmp.eq.s32.totalorder %v8253_v40, %v14452_v35  ;;  %vm8374_vm12 = vcmp.eq.s32.totalorder %v8253_v40, %v14455_v24  ;;  %vm8375_vm8 = vcmp.eq.s32.totalorder %v8253_v40, %v14458_v17 }
 0x4fc   : > { %vm8376_vm1 = vcmp.eq.s32.totalorder %v8253_v40, %v14462_v12  ;;  %vm8377_vm2 = vcmp.eq.s32.totalorder %v8253_v40, %v14465_v41  ;;  %vm8378_vm13 = vcmp.eq.s32.totalorder %v8253_v40, %v14468_v56  ;;  %vm8379_vm10 = vcmp.eq.s32.totalorder %v8253_v40, %v14471_v63 }
 0x4fd   : > { %v8628_v36 = vsel %vm8372_vm7, 1, %v17416_v62  ;;  %v8629_v5 = vsel %vm8373_vm4, 1, %v17416_v62  ;;  %v8630_v52 = vsel %vm8374_vm12, 1, %v17416_v62  ;;  %v8631_v47 = vsel %vm8375_vm8, 1, %v17416_v62 }
 0x4fe   : > { %v8632_v1 = vsel %vm8376_vm1, 1, %v17416_v62  ;;  %v8633_v57 = vsel %vm8377_vm2, 1, %v17416_v62  ;;  %v8634_v27 = vsel %vm8378_vm13, 1, %v17416_v62  ;;  %v8635_v10 = vsel %vm8379_vm10, 1, %v17416_v62 }
 0x4ff   : > { %v8846_v18 = vadd.s32 %v8845_v51, %v8612_v49  ;;  %v8883_v2 = vadd.s32 %v8882_v13, %v8613_v15  ;;  %v8920_v31 = vadd.s32 %v8919_v25, %v8614_v34  ;;  %v8957_v55 = vadd.s32 %v8956_v30, %v8615_v46 }
 0x500   : > { %v8994_v21 = vadd.s32 %v8993_v44, %v8616_v37  ;;  %v9031_v60 = vadd.s32 %v9030_v38, %v8617_v23  ;;  %v9068_v26 = vadd.s32 %v9067_v39, %v8618_v33  ;;  %v9105_v14 = vadd.s32 %v9104_v20, %v8619_v32 }
 0x501   : > { %vm8364_vm15 = vcmp.eq.s32.totalorder %v8250_v53, %v14449_v9  ;;  %vm8365_vm3 = vcmp.eq.s32.totalorder %v8250_v53, %v14452_v35  ;;  %vm8366_vm0 = vcmp.eq.s32.totalorder %v8250_v53, %v14455_v24  ;;  %vm8367_vm9 = vcmp.eq.s32.totalorder %v8250_v53, %v14458_v17 }
 0x502   : > { %vm8368_vm11 = vcmp.eq.s32.totalorder %v8250_v53, %v14462_v12  ;;  %vm8369_vm14 = vcmp.eq.s32.totalorder %v8250_v53, %v14465_v41  ;;  %vm8370_vm5 = vcmp.eq.s32.totalorder %v8250_v53, %v14468_v56  ;;  %vm8371_vm6 = vcmp.eq.s32.totalorder %v8250_v53, %v14471_v63 }
 0x503   : > { %v8620_v49 = vsel %vm8364_vm15, 1, %v17416_v62  ;;  %v8621_v15 = vsel %vm8365_vm3, 1, %v17416_v62  ;;  %v8622_v34 = vsel %vm8366_vm0, 1, %v17416_v62  ;;  %v8623_v46 = vsel %vm8367_vm9, 1, %v17416_v62 }
 0x504   : > { %v8624_v37 = vsel %vm8368_vm11, 1, %v17416_v62  ;;  %v8625_v23 = vsel %vm8369_vm14, 1, %v17416_v62  ;;  %v8626_v33 = vsel %vm8370_vm5, 1, %v17416_v62  ;;  %v8627_v32 = vsel %vm8371_vm6, 1, %v17416_v62 }
 0x505   : > { %v8847_v16 = vadd.s32 %v8846_v18, %v8620_v49  ;;  %v8884_v29 = vadd.s32 %v8883_v2, %v8621_v15  ;;  %v8921_v11 = vadd.s32 %v8920_v31, %v8622_v34  ;;  %v8958_v40 = vadd.s32 %v8957_v55, %v8623_v46  ;;  %v8256_v55 = vpop.permute.xlu0 %8255 }
 0x506   : > { %v8995_v51 = vadd.s32 %v8994_v21, %v8624_v37  ;;  %v9032_v13 = vadd.s32 %v9031_v60, %v8625_v23  ;;  %v9069_v25 = vadd.s32 %v9068_v26, %v8626_v33  ;;  %v9106_v30 = vadd.s32 %v9105_v14, %v8627_v32  ;;  %v8265_v37 = vpop.permute.xlu1 %8264 }
 0x507   : > { %vm8388_vm7 = vcmp.eq.s32.totalorder %v8259_v48, %v14449_v9  ;;  %vm8389_vm4 = vcmp.eq.s32.totalorder %v8259_v48, %v14452_v35  ;;  %vm8390_vm12 = vcmp.eq.s32.totalorder %v8259_v48, %v14455_v24  ;;  %vm8391_vm8 = vcmp.eq.s32.totalorder %v8259_v48, %v14458_v17 }
 0x508   : > { %vm8392_vm1 = vcmp.eq.s32.totalorder %v8259_v48, %v14462_v12  ;;  %vm8393_vm2 = vcmp.eq.s32.totalorder %v8259_v48, %v14465_v41  ;;  %vm8394_vm13 = vcmp.eq.s32.totalorder %v8259_v48, %v14468_v56  ;;  %vm8395_vm10 = vcmp.eq.s32.totalorder %v8259_v48, %v14471_v63 }
 0x509   : > { %v8644_v44 = vsel %vm8388_vm7, 1, %v17416_v62  ;;  %v8645_v38 = vsel %vm8389_vm4, 1, %v17416_v62  ;;  %v8646_v39 = vsel %vm8390_vm12, 1, %v17416_v62  ;;  %v8647_v20 = vsel %vm8391_vm8, 1, %v17416_v62 }
 0x50a   : > { %v8648_v53 = vsel %vm8392_vm1, 1, %v17416_v62  ;;  %v8649_v18 = vsel %vm8393_vm2, 1, %v17416_v62  ;;  %v8650_v2 = vsel %vm8394_vm13, 1, %v17416_v62  ;;  %v8651_v31 = vsel %vm8395_vm10, 1, %v17416_v62 }
 0x50b   : > { %v8848_v21 = vadd.s32 %v8847_v16, %v8628_v36  ;;  %v8885_v60 = vadd.s32 %v8884_v29, %v8629_v5  ;;  %v8922_v26 = vadd.s32 %v8921_v11, %v8630_v52  ;;  %v8959_v14 = vadd.s32 %v8958_v40, %v8631_v47 }
 0x50c   : > { %v8996_v49 = vadd.s32 %v8995_v51, %v8632_v1  ;;  %v9033_v15 = vadd.s32 %v9032_v13, %v8633_v57  ;;  %v9070_v34 = vadd.s32 %v9069_v25, %v8634_v27  ;;  %v9107_v46 = vadd.s32 %v9106_v30, %v8635_v10 }
 0x50d   : > { %vm8380_vm15 = vcmp.eq.s32.totalorder %v8256_v55, %v14449_v9  ;;  %vm8381_vm3 = vcmp.eq.s32.totalorder %v8256_v55, %v14452_v35  ;;  %vm8382_vm0 = vcmp.eq.s32.totalorder %v8256_v55, %v14455_v24  ;;  %vm8383_vm9 = vcmp.eq.s32.totalorder %v8256_v55, %v14458_v17 }
 0x50e   : > { %vm8384_vm11 = vcmp.eq.s32.totalorder %v8256_v55, %v14462_v12  ;;  %vm8385_vm14 = vcmp.eq.s32.totalorder %v8256_v55, %v14465_v41  ;;  %vm8386_vm5 = vcmp.eq.s32.totalorder %v8256_v55, %v14468_v56  ;;  %vm8387_vm6 = vcmp.eq.s32.totalorder %v8256_v55, %v14471_v63 }
 0x50f   : > { %v8636_v36 = vsel %vm8380_vm15, 1, %v17416_v62  ;;  %v8637_v5 = vsel %vm8381_vm3, 1, %v17416_v62  ;;  %v8638_v52 = vsel %vm8382_vm0, 1, %v17416_v62  ;;  %v8639_v47 = vsel %vm8383_vm9, 1, %v17416_v62 }
 0x510   : > { %v8640_v1 = vsel %vm8384_vm11, 1, %v17416_v62  ;;  %v8641_v57 = vsel %vm8385_vm14, 1, %v17416_v62  ;;  %v8642_v27 = vsel %vm8386_vm5, 1, %v17416_v62  ;;  %v8643_v10 = vsel %vm8387_vm6, 1, %v17416_v62 }
 0x511   : > { %v8849_v23 = vadd.s32 %v8848_v21, %v8636_v36  ;;  %v8886_v33 = vadd.s32 %v8885_v60, %v8637_v5  ;;  %v8923_v32 = vadd.s32 %v8922_v26, %v8638_v52  ;;  %v8960_v48 = vadd.s32 %v8959_v14, %v8639_v47  ;;  %v8262_v14 = vpop.permute.xlu0 %8261 }
 0x512   : > { %v8997_v16 = vadd.s32 %v8996_v49, %v8640_v1  ;;  %v9034_v29 = vadd.s32 %v9033_v15, %v8641_v57  ;;  %v9071_v11 = vadd.s32 %v9070_v34, %v8642_v27  ;;  %v9108_v40 = vadd.s32 %v9107_v46, %v8643_v10  ;;  %v8271_v1 = vpop.permute.xlu1 %8270 }
 0x513   : > { %vm8404_vm7 = vcmp.eq.s32.totalorder %v8265_v37, %v14449_v9  ;;  %vm8405_vm4 = vcmp.eq.s32.totalorder %v8265_v37, %v14452_v35  ;;  %vm8406_vm12 = vcmp.eq.s32.totalorder %v8265_v37, %v14455_v24  ;;  %vm8407_vm8 = vcmp.eq.s32.totalorder %v8265_v37, %v14458_v17 }
 0x514   : > { %vm8408_vm1 = vcmp.eq.s32.totalorder %v8265_v37, %v14462_v12  ;;  %vm8409_vm2 = vcmp.eq.s32.totalorder %v8265_v37, %v14465_v41  ;;  %vm8410_vm13 = vcmp.eq.s32.totalorder %v8265_v37, %v14468_v56  ;;  %vm8411_vm10 = vcmp.eq.s32.totalorder %v8265_v37, %v14471_v63 }
 0x515   : > { %v8660_v51 = vsel %vm8404_vm7, 1, %v17416_v62  ;;  %v8661_v13 = vsel %vm8405_vm4, 1, %v17416_v62  ;;  %v8662_v25 = vsel %vm8406_vm12, 1, %v17416_v62  ;;  %v8663_v30 = vsel %vm8407_vm8, 1, %v17416_v62 }
 0x516   : > { %v8664_v55 = vsel %vm8408_vm1, 1, %v17416_v62  ;;  %v8665_v21 = vsel %vm8409_vm2, 1, %v17416_v62  ;;  %v8666_v60 = vsel %vm8410_vm13, 1, %v17416_v62  ;;  %v8667_v26 = vsel %vm8411_vm10, 1, %v17416_v62 }
 0x517   : > { %v8850_v49 = vadd.s32 %v8849_v23, %v8644_v44  ;;  %v8887_v15 = vadd.s32 %v8886_v33, %v8645_v38  ;;  %v8924_v34 = vadd.s32 %v8923_v32, %v8646_v39  ;;  %v8961_v46 = vadd.s32 %v8960_v48, %v8647_v20 }
 0x518   : > { %v8998_v36 = vadd.s32 %v8997_v16, %v8648_v53  ;;  %v9035_v5 = vadd.s32 %v9034_v29, %v8649_v18  ;;  %v9072_v52 = vadd.s32 %v9071_v11, %v8650_v2  ;;  %v9109_v47 = vadd.s32 %v9108_v40, %v8651_v31 }
 0x519   : > { %vm8396_vm15 = vcmp.eq.s32.totalorder %v8262_v14, %v14449_v9  ;;  %vm8397_vm3 = vcmp.eq.s32.totalorder %v8262_v14, %v14452_v35  ;;  %vm8398_vm0 = vcmp.eq.s32.totalorder %v8262_v14, %v14455_v24  ;;  %vm8399_vm9 = vcmp.eq.s32.totalorder %v8262_v14, %v14458_v17 }
 0x51a   : > { %vm8400_vm11 = vcmp.eq.s32.totalorder %v8262_v14, %v14462_v12  ;;  %vm8401_vm14 = vcmp.eq.s32.totalorder %v8262_v14, %v14465_v41  ;;  %vm8402_vm5 = vcmp.eq.s32.totalorder %v8262_v14, %v14468_v56  ;;  %vm8403_vm6 = vcmp.eq.s32.totalorder %v8262_v14, %v14471_v63 }
 0x51b   : > { %v8652_v44 = vsel %vm8396_vm15, 1, %v17416_v62  ;;  %v8653_v38 = vsel %vm8397_vm3, 1, %v17416_v62  ;;  %v8654_v39 = vsel %vm8398_vm0, 1, %v17416_v62  ;;  %v8655_v20 = vsel %vm8399_vm9, 1, %v17416_v62 }
 0x51c   : > { %v8656_v53 = vsel %vm8400_vm11, 1, %v17416_v62  ;;  %v8657_v18 = vsel %vm8401_vm14, 1, %v17416_v62  ;;  %v8658_v2 = vsel %vm8402_vm5, 1, %v17416_v62  ;;  %v8659_v31 = vsel %vm8403_vm6, 1, %v17416_v62 }
 0x51d   : > { %v8851_v57 = vadd.s32 %v8850_v49, %v8652_v44  ;;  %v8888_v27 = vadd.s32 %v8887_v15, %v8653_v38  ;;  %v8925_v10 = vadd.s32 %v8924_v34, %v8654_v39  ;;  %v8962_v37 = vadd.s32 %v8961_v46, %v8655_v20  ;;  %v8268_v46 = vpop.permute.xlu0 %8267 }
 0x51e   : > { %v8999_v23 = vadd.s32 %v8998_v36, %v8656_v53  ;;  %v9036_v33 = vadd.s32 %v9035_v5, %v8657_v18  ;;  %v9073_v32 = vadd.s32 %v9072_v52, %v8658_v2  ;;  %v9110_v48 = vadd.s32 %v9109_v47, %v8659_v31  ;;  %v8277_v53 = vpop.permute.xlu1 %8276 }
 0x51f   : > { %vm8420_vm7 = vcmp.eq.s32.totalorder %v8271_v1, %v14449_v9  ;;  %vm8421_vm4 = vcmp.eq.s32.totalorder %v8271_v1, %v14452_v35  ;;  %vm8422_vm12 = vcmp.eq.s32.totalorder %v8271_v1, %v14455_v24  ;;  %vm8423_vm8 = vcmp.eq.s32.totalorder %v8271_v1, %v14458_v17 }
 0x520   : > { %vm8424_vm1 = vcmp.eq.s32.totalorder %v8271_v1, %v14462_v12  ;;  %vm8425_vm2 = vcmp.eq.s32.totalorder %v8271_v1, %v14465_v41  ;;  %vm8426_vm13 = vcmp.eq.s32.totalorder %v8271_v1, %v14468_v56  ;;  %vm8427_vm10 = vcmp.eq.s32.totalorder %v8271_v1, %v14471_v63 }
 0x521   : > { %v8676_v16 = vsel %vm8420_vm7, 1, %v17416_v62  ;;  %v8677_v29 = vsel %vm8421_vm4, 1, %v17416_v62  ;;  %v8678_v11 = vsel %vm8422_vm12, 1, %v17416_v62  ;;  %v8679_v40 = vsel %vm8423_vm8, 1, %v17416_v62 }
 0x522   : > { %v8680_v14 = vsel %vm8424_vm1, 1, %v17416_v62  ;;  %v8681_v49 = vsel %vm8425_vm2, 1, %v17416_v62  ;;  %v8682_v15 = vsel %vm8426_vm13, 1, %v17416_v62  ;;  %v8683_v34 = vsel %vm8427_vm10, 1, %v17416_v62 }
 0x523   : > { %v8852_v36 = vadd.s32 %v8851_v57, %v8660_v51  ;;  %v8889_v5 = vadd.s32 %v8888_v27, %v8661_v13  ;;  %v8926_v52 = vadd.s32 %v8925_v10, %v8662_v25  ;;  %v8963_v47 = vadd.s32 %v8962_v37, %v8663_v30 }
 0x524   : > { %v9000_v44 = vadd.s32 %v8999_v23, %v8664_v55  ;;  %v9037_v38 = vadd.s32 %v9036_v33, %v8665_v21  ;;  %v9074_v39 = vadd.s32 %v9073_v32, %v8666_v60  ;;  %v9111_v20 = vadd.s32 %v9110_v48, %v8667_v26 }
 0x525   : > { %vm8412_vm15 = vcmp.eq.s32.totalorder %v8268_v46, %v14449_v9  ;;  %vm8413_vm3 = vcmp.eq.s32.totalorder %v8268_v46, %v14452_v35  ;;  %vm8414_vm0 = vcmp.eq.s32.totalorder %v8268_v46, %v14455_v24  ;;  %vm8415_vm9 = vcmp.eq.s32.totalorder %v8268_v46, %v14458_v17 }
 0x526   : > { %vm8416_vm11 = vcmp.eq.s32.totalorder %v8268_v46, %v14462_v12  ;;  %vm8417_vm14 = vcmp.eq.s32.totalorder %v8268_v46, %v14465_v41  ;;  %vm8418_vm5 = vcmp.eq.s32.totalorder %v8268_v46, %v14468_v56  ;;  %vm8419_vm6 = vcmp.eq.s32.totalorder %v8268_v46, %v14471_v63 }
 0x527   : > { %v8668_v51 = vsel %vm8412_vm15, 1, %v17416_v62  ;;  %v8669_v13 = vsel %vm8413_vm3, 1, %v17416_v62  ;;  %v8670_v25 = vsel %vm8414_vm0, 1, %v17416_v62  ;;  %v8671_v30 = vsel %vm8415_vm9, 1, %v17416_v62 }
 0x528   : > { %v8672_v55 = vsel %vm8416_vm11, 1, %v17416_v62  ;;  %v8673_v21 = vsel %vm8417_vm14, 1, %v17416_v62  ;;  %v8674_v60 = vsel %vm8418_vm5, 1, %v17416_v62  ;;  %v8675_v26 = vsel %vm8419_vm6, 1, %v17416_v62 }
 0x529   : > { %v8853_v18 = vadd.s32 %v8852_v36, %v8668_v51  ;;  %v8890_v2 = vadd.s32 %v8889_v5, %v8669_v13  ;;  %v8927_v31 = vadd.s32 %v8926_v52, %v8670_v25  ;;  %v8964_v1 = vadd.s32 %v8963_v47, %v8671_v30  ;;  %v8274_v47 = vpop.permute.xlu0 %8273 }
 0x52a   : > { %v9001_v57 = vadd.s32 %v9000_v44, %v8672_v55  ;;  %v9038_v27 = vadd.s32 %v9037_v38, %v8673_v21  ;;  %v9075_v10 = vadd.s32 %v9074_v39, %v8674_v60  ;;  %v9112_v37 = vadd.s32 %v9111_v20, %v8675_v26  ;;  %v8283_v55 = vpop.permute.xlu1 %8282 }
 0x52b   : > { %vm8436_vm7 = vcmp.eq.s32.totalorder %v8277_v53, %v14449_v9  ;;  %vm8437_vm4 = vcmp.eq.s32.totalorder %v8277_v53, %v14452_v35  ;;  %vm8438_vm12 = vcmp.eq.s32.totalorder %v8277_v53, %v14455_v24  ;;  %vm8439_vm8 = vcmp.eq.s32.totalorder %v8277_v53, %v14458_v17 }
 0x52c   : > { %vm8440_vm1 = vcmp.eq.s32.totalorder %v8277_v53, %v14462_v12  ;;  %vm8441_vm2 = vcmp.eq.s32.totalorder %v8277_v53, %v14465_v41  ;;  %vm8442_vm13 = vcmp.eq.s32.totalorder %v8277_v53, %v14468_v56  ;;  %vm8443_vm10 = vcmp.eq.s32.totalorder %v8277_v53, %v14471_v63 }
 0x52d   : > { %v8692_v23 = vsel %vm8436_vm7, 1, %v17416_v62  ;;  %v8693_v33 = vsel %vm8437_vm4, 1, %v17416_v62  ;;  %v8694_v32 = vsel %vm8438_vm12, 1, %v17416_v62  ;;  %v8695_v48 = vsel %vm8439_vm8, 1, %v17416_v62 }
 0x52e   : > { %v8696_v46 = vsel %vm8440_vm1, 1, %v17416_v62  ;;  %v8697_v36 = vsel %vm8441_vm2, 1, %v17416_v62  ;;  %v8698_v5 = vsel %vm8442_vm13, 1, %v17416_v62  ;;  %v8699_v52 = vsel %vm8443_vm10, 1, %v17416_v62 }
 0x52f   : > { %v8854_v44 = vadd.s32 %v8853_v18, %v8676_v16  ;;  %v8891_v38 = vadd.s32 %v8890_v2, %v8677_v29  ;;  %v8928_v39 = vadd.s32 %v8927_v31, %v8678_v11  ;;  %v8965_v20 = vadd.s32 %v8964_v1, %v8679_v40 }
 0x530   : > { %v9002_v51 = vadd.s32 %v9001_v57, %v8680_v14  ;;  %v9039_v13 = vadd.s32 %v9038_v27, %v8681_v49  ;;  %v9076_v25 = vadd.s32 %v9075_v10, %v8682_v15  ;;  %v9113_v30 = vadd.s32 %v9112_v37, %v8683_v34 }
 0x531   : > { %vm8428_vm15 = vcmp.eq.s32.totalorder %v8274_v47, %v14449_v9  ;;  %vm8429_vm3 = vcmp.eq.s32.totalorder %v8274_v47, %v14452_v35  ;;  %vm8430_vm0 = vcmp.eq.s32.totalorder %v8274_v47, %v14455_v24  ;;  %vm8431_vm9 = vcmp.eq.s32.totalorder %v8274_v47, %v14458_v17 }
 0x532   : > { %vm8432_vm11 = vcmp.eq.s32.totalorder %v8274_v47, %v14462_v12  ;;  %vm8433_vm14 = vcmp.eq.s32.totalorder %v8274_v47, %v14465_v41  ;;  %vm8434_vm5 = vcmp.eq.s32.totalorder %v8274_v47, %v14468_v56  ;;  %vm8435_vm6 = vcmp.eq.s32.totalorder %v8274_v47, %v14471_v63 }
 0x533   : > { %v8684_v16 = vsel %vm8428_vm15, 1, %v17416_v62  ;;  %v8685_v29 = vsel %vm8429_vm3, 1, %v17416_v62  ;;  %v8686_v11 = vsel %vm8430_vm0, 1, %v17416_v62  ;;  %v8687_v40 = vsel %vm8431_vm9, 1, %v17416_v62 }
 0x534   : > { %v8688_v14 = vsel %vm8432_vm11, 1, %v17416_v62  ;;  %v8689_v49 = vsel %vm8433_vm14, 1, %v17416_v62  ;;  %v8690_v15 = vsel %vm8434_vm5, 1, %v17416_v62  ;;  %v8691_v34 = vsel %vm8435_vm6, 1, %v17416_v62 }
 0x535   : > { %v8855_v21 = vadd.s32 %v8854_v44, %v8684_v16  ;;  %v8892_v60 = vadd.s32 %v8891_v38, %v8685_v29  ;;  %v8929_v26 = vadd.s32 %v8928_v39, %v8686_v11  ;;  %v8966_v53 = vadd.s32 %v8965_v20, %v8687_v40  ;;  %v8280_v20 = vpop.permute.xlu0 %8279 }
 0x536   : > { %v9003_v18 = vadd.s32 %v9002_v51, %v8688_v14  ;;  %v9040_v2 = vadd.s32 %v9039_v13, %v8689_v49  ;;  %v9077_v31 = vadd.s32 %v9076_v25, %v8690_v15  ;;  %v9114_v1 = vadd.s32 %v9113_v30, %v8691_v34  ;;  %v8289_v14 = vpop.permute.xlu1 %8288 }
 0x537   : > { %vm8452_vm7 = vcmp.eq.s32.totalorder %v8283_v55, %v14449_v9  ;;  %vm8453_vm4 = vcmp.eq.s32.totalorder %v8283_v55, %v14452_v35  ;;  %vm8454_vm12 = vcmp.eq.s32.totalorder %v8283_v55, %v14455_v24  ;;  %vm8455_vm8 = vcmp.eq.s32.totalorder %v8283_v55, %v14458_v17 }
 0x538   : > { %vm8456_vm1 = vcmp.eq.s32.totalorder %v8283_v55, %v14462_v12  ;;  %vm8457_vm2 = vcmp.eq.s32.totalorder %v8283_v55, %v14465_v41  ;;  %vm8458_vm13 = vcmp.eq.s32.totalorder %v8283_v55, %v14468_v56  ;;  %vm8459_vm10 = vcmp.eq.s32.totalorder %v8283_v55, %v14471_v63 }
 0x539   : > { %v8708_v57 = vsel %vm8452_vm7, 1, %v17416_v62  ;;  %v8709_v27 = vsel %vm8453_vm4, 1, %v17416_v62  ;;  %v8710_v10 = vsel %vm8454_vm12, 1, %v17416_v62  ;;  %v8711_v37 = vsel %vm8455_vm8, 1, %v17416_v62 }
 0x53a   : > { %v8712_v47 = vsel %vm8456_vm1, 1, %v17416_v62  ;;  %v8713_v44 = vsel %vm8457_vm2, 1, %v17416_v62  ;;  %v8714_v38 = vsel %vm8458_vm13, 1, %v17416_v62  ;;  %v8715_v39 = vsel %vm8459_vm10, 1, %v17416_v62 }
 0x53b   : > { %v8856_v51 = vadd.s32 %v8855_v21, %v8692_v23  ;;  %v8893_v13 = vadd.s32 %v8892_v60, %v8693_v33  ;;  %v8930_v25 = vadd.s32 %v8929_v26, %v8694_v32  ;;  %v8967_v30 = vadd.s32 %v8966_v53, %v8695_v48 }
 0x53c   : > { %v9004_v16 = vadd.s32 %v9003_v18, %v8696_v46  ;;  %v9041_v29 = vadd.s32 %v9040_v2, %v8697_v36  ;;  %v9078_v11 = vadd.s32 %v9077_v31, %v8698_v5  ;;  %v9115_v40 = vadd.s32 %v9114_v1, %v8699_v52 }
 0x53d   : > { %vm8444_vm15 = vcmp.eq.s32.totalorder %v8280_v20, %v14449_v9  ;;  %vm8445_vm3 = vcmp.eq.s32.totalorder %v8280_v20, %v14452_v35  ;;  %vm8446_vm0 = vcmp.eq.s32.totalorder %v8280_v20, %v14455_v24  ;;  %vm8447_vm9 = vcmp.eq.s32.totalorder %v8280_v20, %v14458_v17 }
 0x53e   : > { %vm8448_vm11 = vcmp.eq.s32.totalorder %v8280_v20, %v14462_v12  ;;  %vm8449_vm14 = vcmp.eq.s32.totalorder %v8280_v20, %v14465_v41  ;;  %vm8450_vm5 = vcmp.eq.s32.totalorder %v8280_v20, %v14468_v56  ;;  %vm8451_vm6 = vcmp.eq.s32.totalorder %v8280_v20, %v14471_v63 }
 0x53f   : > { %v8700_v23 = vsel %vm8444_vm15, 1, %v17416_v62  ;;  %v8701_v33 = vsel %vm8445_vm3, 1, %v17416_v62  ;;  %v8702_v32 = vsel %vm8446_vm0, 1, %v17416_v62  ;;  %v8703_v48 = vsel %vm8447_vm9, 1, %v17416_v62 }
 0x540   : > { %v8704_v46 = vsel %vm8448_vm11, 1, %v17416_v62  ;;  %v8705_v36 = vsel %vm8449_vm14, 1, %v17416_v62  ;;  %v8706_v5 = vsel %vm8450_vm5, 1, %v17416_v62  ;;  %v8707_v52 = vsel %vm8451_vm6, 1, %v17416_v62 }
 0x541   : > { %v8857_v49 = vadd.s32 %v8856_v51, %v8700_v23  ;;  %v8894_v15 = vadd.s32 %v8893_v13, %v8701_v33  ;;  %v8931_v34 = vadd.s32 %v8930_v25, %v8702_v32  ;;  %v8968_v55 = vadd.s32 %v8967_v30, %v8703_v48  ;;  %v8286_v30 = vpop.permute.xlu0 %8285 }
 0x542   : > { %v9005_v21 = vadd.s32 %v9004_v16, %v8704_v46  ;;  %v9042_v60 = vadd.s32 %v9041_v29, %v8705_v36  ;;  %v9079_v26 = vadd.s32 %v9078_v11, %v8706_v5  ;;  %v9116_v53 = vadd.s32 %v9115_v40, %v8707_v52  ;;  %v8295_v46 = vpop.permute.xlu1 %8294 }
 0x543   : > { %vm8468_vm7 = vcmp.eq.s32.totalorder %v8289_v14, %v14449_v9  ;;  %vm8469_vm4 = vcmp.eq.s32.totalorder %v8289_v14, %v14452_v35  ;;  %vm8470_vm12 = vcmp.eq.s32.totalorder %v8289_v14, %v14455_v24  ;;  %vm8471_vm8 = vcmp.eq.s32.totalorder %v8289_v14, %v14458_v17 }
 0x544   : > { %vm8472_vm1 = vcmp.eq.s32.totalorder %v8289_v14, %v14462_v12  ;;  %vm8473_vm2 = vcmp.eq.s32.totalorder %v8289_v14, %v14465_v41  ;;  %vm8474_vm13 = vcmp.eq.s32.totalorder %v8289_v14, %v14468_v56  ;;  %vm8475_vm10 = vcmp.eq.s32.totalorder %v8289_v14, %v14471_v63 }
 0x545   : > { %v8724_v18 = vsel %vm8468_vm7, 1, %v17416_v62  ;;  %v8725_v2 = vsel %vm8469_vm4, 1, %v17416_v62  ;;  %v8726_v31 = vsel %vm8470_vm12, 1, %v17416_v62  ;;  %v8727_v1 = vsel %vm8471_vm8, 1, %v17416_v62 }
 0x546   : > { %v8728_v20 = vsel %vm8472_vm1, 1, %v17416_v62  ;;  %v8729_v51 = vsel %vm8473_vm2, 1, %v17416_v62  ;;  %v8730_v13 = vsel %vm8474_vm13, 1, %v17416_v62  ;;  %v8731_v25 = vsel %vm8475_vm10, 1, %v17416_v62 }
 0x547   : > { %v8858_v16 = vadd.s32 %v8857_v49, %v8708_v57  ;;  %v8895_v29 = vadd.s32 %v8894_v15, %v8709_v27  ;;  %v8932_v11 = vadd.s32 %v8931_v34, %v8710_v10  ;;  %v8969_v40 = vadd.s32 %v8968_v55, %v8711_v37 }
 0x548   : > { %v9006_v23 = vadd.s32 %v9005_v21, %v8712_v47  ;;  %v9043_v33 = vadd.s32 %v9042_v60, %v8713_v44  ;;  %v9080_v32 = vadd.s32 %v9079_v26, %v8714_v38  ;;  %v9117_v48 = vadd.s32 %v9116_v53, %v8715_v39 }
 0x549   : > { %vm8460_vm15 = vcmp.eq.s32.totalorder %v8286_v30, %v14449_v9  ;;  %vm8461_vm3 = vcmp.eq.s32.totalorder %v8286_v30, %v14452_v35  ;;  %vm8462_vm0 = vcmp.eq.s32.totalorder %v8286_v30, %v14455_v24  ;;  %vm8463_vm9 = vcmp.eq.s32.totalorder %v8286_v30, %v14458_v17 }
 0x54a   : > { %vm8464_vm11 = vcmp.eq.s32.totalorder %v8286_v30, %v14462_v12  ;;  %vm8465_vm14 = vcmp.eq.s32.totalorder %v8286_v30, %v14465_v41  ;;  %vm8466_vm5 = vcmp.eq.s32.totalorder %v8286_v30, %v14468_v56  ;;  %vm8467_vm6 = vcmp.eq.s32.totalorder %v8286_v30, %v14471_v63 }
 0x54b   : > { %v8716_v57 = vsel %vm8460_vm15, 1, %v17416_v62  ;;  %v8717_v27 = vsel %vm8461_vm3, 1, %v17416_v62  ;;  %v8718_v10 = vsel %vm8462_vm0, 1, %v17416_v62  ;;  %v8719_v37 = vsel %vm8463_vm9, 1, %v17416_v62 }
 0x54c   : > { %v8720_v47 = vsel %vm8464_vm11, 1, %v17416_v62  ;;  %v8721_v44 = vsel %vm8465_vm14, 1, %v17416_v62  ;;  %v8722_v38 = vsel %vm8466_vm5, 1, %v17416_v62  ;;  %v8723_v39 = vsel %vm8467_vm6, 1, %v17416_v62 }
 0x54d   : > { %v8859_v36 = vadd.s32 %v8858_v16, %v8716_v57  ;;  %v8896_v5 = vadd.s32 %v8895_v29, %v8717_v27  ;;  %v8933_v52 = vadd.s32 %v8932_v11, %v8718_v10  ;;  %v8970_v14 = vadd.s32 %v8969_v40, %v8719_v37  ;;  %v8292_v40 = vpop.permute.xlu0 %8291 }
 0x54e   : > { %v9007_v49 = vadd.s32 %v9006_v23, %v8720_v47  ;;  %v9044_v15 = vadd.s32 %v9043_v33, %v8721_v44  ;;  %v9081_v34 = vadd.s32 %v9080_v32, %v8722_v38  ;;  %v9118_v55 = vadd.s32 %v9117_v48, %v8723_v39  ;;  %v8301_v47 = vpop.permute.xlu1 %8300 }
 0x54f   : > { %vm8484_vm7 = vcmp.eq.s32.totalorder %v8295_v46, %v14449_v9  ;;  %vm8485_vm4 = vcmp.eq.s32.totalorder %v8295_v46, %v14452_v35  ;;  %vm8486_vm12 = vcmp.eq.s32.totalorder %v8295_v46, %v14455_v24  ;;  %vm8487_vm8 = vcmp.eq.s32.totalorder %v8295_v46, %v14458_v17 }
 0x550   : > { %vm8488_vm1 = vcmp.eq.s32.totalorder %v8295_v46, %v14462_v12  ;;  %vm8489_vm2 = vcmp.eq.s32.totalorder %v8295_v46, %v14465_v41  ;;  %vm8490_vm13 = vcmp.eq.s32.totalorder %v8295_v46, %v14468_v56  ;;  %vm8491_vm10 = vcmp.eq.s32.totalorder %v8295_v46, %v14471_v63 }
 0x551   : > { %v8740_v21 = vsel %vm8484_vm7, 1, %v17416_v62  ;;  %v8741_v60 = vsel %vm8485_vm4, 1, %v17416_v62  ;;  %v8742_v26 = vsel %vm8486_vm12, 1, %v17416_v62  ;;  %v8743_v53 = vsel %vm8487_vm8, 1, %v17416_v62 }
 0x552   : > { %v8744_v30 = vsel %vm8488_vm1, 1, %v17416_v62  ;;  %v8745_v16 = vsel %vm8489_vm2, 1, %v17416_v62  ;;  %v8746_v29 = vsel %vm8490_vm13, 1, %v17416_v62  ;;  %v8747_v11 = vsel %vm8491_vm10, 1, %v17416_v62 }
 0x553   : > { %v8860_v23 = vadd.s32 %v8859_v36, %v8724_v18  ;;  %v8897_v33 = vadd.s32 %v8896_v5, %v8725_v2  ;;  %v8934_v32 = vadd.s32 %v8933_v52, %v8726_v31  ;;  %v8971_v48 = vadd.s32 %v8970_v14, %v8727_v1 }
 0x554   : > { %v9008_v57 = vadd.s32 %v9007_v49, %v8728_v20  ;;  %v9045_v27 = vadd.s32 %v9044_v15, %v8729_v51  ;;  %v9082_v10 = vadd.s32 %v9081_v34, %v8730_v13  ;;  %v9119_v37 = vadd.s32 %v9118_v55, %v8731_v25 }
 0x555   : > { %vm8476_vm15 = vcmp.eq.s32.totalorder %v8292_v40, %v14449_v9  ;;  %vm8477_vm3 = vcmp.eq.s32.totalorder %v8292_v40, %v14452_v35  ;;  %vm8478_vm0 = vcmp.eq.s32.totalorder %v8292_v40, %v14455_v24  ;;  %vm8479_vm9 = vcmp.eq.s32.totalorder %v8292_v40, %v14458_v17 }
 0x556   : > { %vm8480_vm11 = vcmp.eq.s32.totalorder %v8292_v40, %v14462_v12  ;;  %vm8481_vm14 = vcmp.eq.s32.totalorder %v8292_v40, %v14465_v41  ;;  %vm8482_vm5 = vcmp.eq.s32.totalorder %v8292_v40, %v14468_v56  ;;  %vm8483_vm6 = vcmp.eq.s32.totalorder %v8292_v40, %v14471_v63 }
 0x557   : > { %v8732_v18 = vsel %vm8476_vm15, 1, %v17416_v62  ;;  %v8733_v2 = vsel %vm8477_vm3, 1, %v17416_v62  ;;  %v8734_v31 = vsel %vm8478_vm0, 1, %v17416_v62  ;;  %v8735_v1 = vsel %vm8479_vm9, 1, %v17416_v62 }
 0x558   : > { %v8736_v20 = vsel %vm8480_vm11, 1, %v17416_v62  ;;  %v8737_v51 = vsel %vm8481_vm14, 1, %v17416_v62  ;;  %v8738_v13 = vsel %vm8482_vm5, 1, %v17416_v62  ;;  %v8739_v25 = vsel %vm8483_vm6, 1, %v17416_v62 }
 0x559   : > { %v8861_v44 = vadd.s32 %v8860_v23, %v8732_v18  ;;  %v8898_v38 = vadd.s32 %v8897_v33, %v8733_v2  ;;  %v8935_v39 = vadd.s32 %v8934_v32, %v8734_v31  ;;  %v8972_v46 = vadd.s32 %v8971_v48, %v8735_v1  ;;  %v8298_v48 = vpop.permute.xlu0 %8297 }
 0x55a   : > { %v9009_v36 = vadd.s32 %v9008_v57, %v8736_v20  ;;  %v9046_v5 = vadd.s32 %v9045_v27, %v8737_v51  ;;  %v9083_v52 = vadd.s32 %v9082_v10, %v8738_v13  ;;  %v9120_v14 = vadd.s32 %v9119_v37, %v8739_v25  ;;  %v8307_v20 = vpop.permute.xlu1 %8306 }
 0x55b   : > { %vm8500_vm7 = vcmp.eq.s32.totalorder %v8301_v47, %v14449_v9  ;;  %vm8501_vm4 = vcmp.eq.s32.totalorder %v8301_v47, %v14452_v35  ;;  %vm8502_vm12 = vcmp.eq.s32.totalorder %v8301_v47, %v14455_v24  ;;  %vm8503_vm8 = vcmp.eq.s32.totalorder %v8301_v47, %v14458_v17 }
 0x55c   : > { %vm8504_vm1 = vcmp.eq.s32.totalorder %v8301_v47, %v14462_v12  ;;  %vm8505_vm2 = vcmp.eq.s32.totalorder %v8301_v47, %v14465_v41  ;;  %vm8506_vm13 = vcmp.eq.s32.totalorder %v8301_v47, %v14468_v56  ;;  %vm8507_vm10 = vcmp.eq.s32.totalorder %v8301_v47, %v14471_v63 }
 0x55d   : > { %v8756_v49 = vsel %vm8500_vm7, 1, %v17416_v62  ;;  %v8757_v15 = vsel %vm8501_vm4, 1, %v17416_v62  ;;  %v8758_v34 = vsel %vm8502_vm12, 1, %v17416_v62  ;;  %v8759_v55 = vsel %vm8503_vm8, 1, %v17416_v62 }
 0x55e   : > { %v8760_v40 = vsel %vm8504_vm1, 1, %v17416_v62  ;;  %v8761_v23 = vsel %vm8505_vm2, 1, %v17416_v62  ;;  %v8762_v33 = vsel %vm8506_vm13, 1, %v17416_v62  ;;  %v8763_v32 = vsel %vm8507_vm10, 1, %v17416_v62 }
 0x55f   : > { %v8862_v57 = vadd.s32 %v8861_v44, %v8740_v21  ;;  %v8899_v27 = vadd.s32 %v8898_v38, %v8741_v60  ;;  %v8936_v10 = vadd.s32 %v8935_v39, %v8742_v26  ;;  %v8973_v37 = vadd.s32 %v8972_v46, %v8743_v53 }
 0x560   : > { %v9010_v18 = vadd.s32 %v9009_v36, %v8744_v30  ;;  %v9047_v2 = vadd.s32 %v9046_v5, %v8745_v16  ;;  %v9084_v31 = vadd.s32 %v9083_v52, %v8746_v29  ;;  %v9121_v1 = vadd.s32 %v9120_v14, %v8747_v11 }
 0x561   : > { %vm8492_vm15 = vcmp.eq.s32.totalorder %v8298_v48, %v14449_v9  ;;  %vm8493_vm3 = vcmp.eq.s32.totalorder %v8298_v48, %v14452_v35  ;;  %vm8494_vm0 = vcmp.eq.s32.totalorder %v8298_v48, %v14455_v24  ;;  %vm8495_vm9 = vcmp.eq.s32.totalorder %v8298_v48, %v14458_v17 }
 0x562   : > { %vm8496_vm11 = vcmp.eq.s32.totalorder %v8298_v48, %v14462_v12  ;;  %vm8497_vm14 = vcmp.eq.s32.totalorder %v8298_v48, %v14465_v41  ;;  %vm8498_vm5 = vcmp.eq.s32.totalorder %v8298_v48, %v14468_v56  ;;  %vm8499_vm6 = vcmp.eq.s32.totalorder %v8298_v48, %v14471_v63 }
 0x563   : > { %v8748_v21 = vsel %vm8492_vm15, 1, %v17416_v62  ;;  %v8749_v60 = vsel %vm8493_vm3, 1, %v17416_v62  ;;  %v8750_v26 = vsel %vm8494_vm0, 1, %v17416_v62  ;;  %v8751_v53 = vsel %vm8495_vm9, 1, %v17416_v62 }
 0x564   : > { %v8752_v30 = vsel %vm8496_vm11, 1, %v17416_v62  ;;  %v8753_v16 = vsel %vm8497_vm14, 1, %v17416_v62  ;;  %v8754_v29 = vsel %vm8498_vm5, 1, %v17416_v62  ;;  %v8755_v11 = vsel %vm8499_vm6, 1, %v17416_v62 }
 0x565   : > { %v8863_v51 = vadd.s32 %v8862_v57, %v8748_v21  ;;  %v8900_v13 = vadd.s32 %v8899_v27, %v8749_v60  ;;  %v8937_v25 = vadd.s32 %v8936_v10, %v8750_v26  ;;  %v8974_v47 = vadd.s32 %v8973_v37, %v8751_v53  ;;  %v8304_v37 = vpop.permute.xlu0 %8303 }
 0x566   : > { %v9011_v44 = vadd.s32 %v9010_v18, %v8752_v30  ;;  %v9048_v38 = vadd.s32 %v9047_v2, %v8753_v16  ;;  %v9085_v39 = vadd.s32 %v9084_v31, %v8754_v29  ;;  %v9122_v46 = vadd.s32 %v9121_v1, %v8755_v11  ;;  %v8313_v30 = vpop.permute.xlu1 %8312 }
 0x567   : > { %vm8516_vm7 = vcmp.eq.s32.totalorder %v8307_v20, %v14449_v9  ;;  %vm8517_vm4 = vcmp.eq.s32.totalorder %v8307_v20, %v14452_v35  ;;  %vm8518_vm12 = vcmp.eq.s32.totalorder %v8307_v20, %v14455_v24  ;;  %vm8519_vm8 = vcmp.eq.s32.totalorder %v8307_v20, %v14458_v17 }
 0x568   : > { %vm8520_vm1 = vcmp.eq.s32.totalorder %v8307_v20, %v14462_v12  ;;  %vm8521_vm2 = vcmp.eq.s32.totalorder %v8307_v20, %v14465_v41  ;;  %vm8522_vm13 = vcmp.eq.s32.totalorder %v8307_v20, %v14468_v56  ;;  %vm8523_vm10 = vcmp.eq.s32.totalorder %v8307_v20, %v14471_v63 }
 0x569   : > { %v8772_v36 = vsel %vm8516_vm7, 1, %v17416_v62  ;;  %v8773_v5 = vsel %vm8517_vm4, 1, %v17416_v62  ;;  %v8774_v52 = vsel %vm8518_vm12, 1, %v17416_v62  ;;  %v8775_v14 = vsel %vm8519_vm8, 1, %v17416_v62 }
 0x56a   : > { %v8776_v48 = vsel %vm8520_vm1, 1, %v17416_v62  ;;  %v8777_v57 = vsel %vm8521_vm2, 1, %v17416_v62  ;;  %v8778_v27 = vsel %vm8522_vm13, 1, %v17416_v62  ;;  %v8779_v10 = vsel %vm8523_vm10, 1, %v17416_v62 }
 0x56b   : > { %v8864_v18 = vadd.s32 %v8863_v51, %v8756_v49  ;;  %v8901_v2 = vadd.s32 %v8900_v13, %v8757_v15  ;;  %v8938_v31 = vadd.s32 %v8937_v25, %v8758_v34  ;;  %v8975_v1 = vadd.s32 %v8974_v47, %v8759_v55 }
 0x56c   : > { %v9012_v21 = vadd.s32 %v9011_v44, %v8760_v40  ;;  %v9049_v60 = vadd.s32 %v9048_v38, %v8761_v23  ;;  %v9086_v26 = vadd.s32 %v9085_v39, %v8762_v33  ;;  %v9123_v53 = vadd.s32 %v9122_v46, %v8763_v32 }
 0x56d   : > { %vm8508_vm15 = vcmp.eq.s32.totalorder %v8304_v37, %v14449_v9  ;;  %vm8509_vm3 = vcmp.eq.s32.totalorder %v8304_v37, %v14452_v35  ;;  %vm8510_vm0 = vcmp.eq.s32.totalorder %v8304_v37, %v14455_v24  ;;  %vm8511_vm9 = vcmp.eq.s32.totalorder %v8304_v37, %v14458_v17 }
 0x56e   : > { %vm8512_vm11 = vcmp.eq.s32.totalorder %v8304_v37, %v14462_v12  ;;  %vm8513_vm14 = vcmp.eq.s32.totalorder %v8304_v37, %v14465_v41  ;;  %vm8514_vm5 = vcmp.eq.s32.totalorder %v8304_v37, %v14468_v56  ;;  %vm8515_vm6 = vcmp.eq.s32.totalorder %v8304_v37, %v14471_v63 }
 0x56f   : > { %v8764_v49 = vsel %vm8508_vm15, 1, %v17416_v62  ;;  %v8765_v15 = vsel %vm8509_vm3, 1, %v17416_v62  ;;  %v8766_v34 = vsel %vm8510_vm0, 1, %v17416_v62  ;;  %v8767_v55 = vsel %vm8511_vm9, 1, %v17416_v62 }
 0x570   : > { %v8768_v40 = vsel %vm8512_vm11, 1, %v17416_v62  ;;  %v8769_v23 = vsel %vm8513_vm14, 1, %v17416_v62  ;;  %v8770_v33 = vsel %vm8514_vm5, 1, %v17416_v62  ;;  %v8771_v32 = vsel %vm8515_vm6, 1, %v17416_v62 }
 0x571   : > { %v8865_v16 = vadd.s32 %v8864_v18, %v8764_v49  ;;  %v8902_v29 = vadd.s32 %v8901_v2, %v8765_v15  ;;  %v8939_v11 = vadd.s32 %v8938_v31, %v8766_v34  ;;  %v8976_v20 = vadd.s32 %v8975_v1, %v8767_v55  ;;  %v8310_v1 = vpop.permute.xlu0 %8309 }
 0x572   : > { %v9013_v51 = vadd.s32 %v9012_v21, %v8768_v40  ;;  %v9050_v13 = vadd.s32 %v9049_v60, %v8769_v23  ;;  %v9087_v25 = vadd.s32 %v9086_v26, %v8770_v33  ;;  %v9124_v47 = vadd.s32 %v9123_v53, %v8771_v32  ;;  %v9185_v40 = vpop.permute.xlu1 %9184 }
 0x573   : > { %vm8532_vm7 = vcmp.eq.s32.totalorder %v8313_v30, %v14449_v9  ;;  %vm8533_vm4 = vcmp.eq.s32.totalorder %v8313_v30, %v14452_v35  ;;  %vm8534_vm12 = vcmp.eq.s32.totalorder %v8313_v30, %v14455_v24  ;;  %vm8535_vm8 = vcmp.eq.s32.totalorder %v8313_v30, %v14458_v17 }
 0x574   : > { %vm8536_vm1 = vcmp.eq.s32.totalorder %v8313_v30, %v14462_v12  ;;  %vm8537_vm2 = vcmp.eq.s32.totalorder %v8313_v30, %v14465_v41  ;;  %vm8538_vm13 = vcmp.eq.s32.totalorder %v8313_v30, %v14468_v56  ;;  %vm8539_vm10 = vcmp.eq.s32.totalorder %v8313_v30, %v14471_v63 }
 0x575   : > { %v16476_v44 = vsel %vm8532_vm7, 1, %v17416_v62  ;;  %v16479_v38 = vsel %vm8533_vm4, 1, %v17416_v62  ;;  %v16482_v39 = vsel %vm8534_vm12, 1, %v17416_v62  ;;  %v16485_v46 = vsel %vm8535_vm8, 1, %v17416_v62 }
 0x576   : > { %v16488_v37 = vsel %vm8536_vm1, 1, %v17416_v62  ;;  %v16491_v18 = vsel %vm8537_vm2, 1, %v17416_v62  ;;  %v16494_v2 = vsel %vm8538_vm13, 1, %v17416_v62  ;;  %v16497_v31 = vsel %vm8539_vm10, 1, %v17416_v62 }
 0x577   : > { %v8866_v21 = vadd.s32 %v8865_v16, %v8772_v36  ;;  %v8903_v60 = vadd.s32 %v8902_v29, %v8773_v5  ;;  %v8940_v26 = vadd.s32 %v8939_v11, %v8774_v52  ;;  %v8977_v53 = vadd.s32 %v8976_v20, %v8775_v14 }
 0x578   : > { %v9014_v49 = vadd.s32 %v9013_v51, %v8776_v48  ;;  %v9051_v15 = vadd.s32 %v9050_v13, %v8777_v57  ;;  %v9088_v34 = vadd.s32 %v9087_v25, %v8778_v27  ;;  %v9125_v55 = vadd.s32 %v9124_v47, %v8779_v10  ;;  %v9182_v51 = vpop.permute.xlu0 %9181 }
 0x579   : > { %vm8524_vm15 = vcmp.eq.s32.totalorder %v8310_v1, %v14449_v9  ;;  %vm8525_vm3 = vcmp.eq.s32.totalorder %v8310_v1, %v14452_v35  ;;  %vm8526_vm0 = vcmp.eq.s32.totalorder %v8310_v1, %v14455_v24  ;;  %vm8527_vm9 = vcmp.eq.s32.totalorder %v8310_v1, %v14458_v17 }
 0x57a   : > { %vm8528_vm11 = vcmp.eq.s32.totalorder %v8310_v1, %v14462_v12  ;;  %vm8529_vm14 = vcmp.eq.s32.totalorder %v8310_v1, %v14465_v41  ;;  %vm8530_vm5 = vcmp.eq.s32.totalorder %v8310_v1, %v14468_v56  ;;  %vm8531_vm6 = vcmp.eq.s32.totalorder %v8310_v1, %v14471_v63 }
 0x57b   : > { %v8780_v36 = vsel %vm8524_vm15, 1, %v17416_v62  ;;  %v8781_v5 = vsel %vm8525_vm3, 1, %v17416_v62  ;;  %v8782_v52 = vsel %vm8526_vm0, 1, %v17416_v62  ;;  %v8783_v14 = vsel %vm8527_vm9, 1, %v17416_v62 }
 0x57c   : > { %v8784_v48 = vsel %vm8528_vm11, 1, %v17416_v62  ;;  %v8785_v57 = vsel %vm8529_vm14, 1, %v17416_v62  ;;  %v8786_v27 = vsel %vm8530_vm5, 1, %v17416_v62  ;;  %v8787_v10 = vsel %vm8531_vm6, 1, %v17416_v62 }
 0x57d   : > { %v16515_v23 = vadd.s32 %v8866_v21, %v8780_v36  ;;  %v16517_v33 = vadd.s32 %v8903_v60, %v8781_v5  ;;  %v16519_v32 = vadd.s32 %v8940_v26, %v8782_v52  ;;  %v16521_v30 = vadd.s32 %v8977_v53, %v8783_v14 }
 0x57e   : > { %v16523_v16 = vadd.s32 %v9014_v49, %v8784_v48  ;;  %v16525_v29 = vadd.s32 %v9051_v15, %v8785_v57  ;;  %v16527_v11 = vadd.s32 %v9088_v34, %v8786_v27  ;;  %v16529_v20 = vadd.s32 %v9125_v55, %v8787_v10  ;;  %v9191_v48 = vpop.permute.xlu1 %9190 }
 0x57f   : > { %vm9284_vm7 = vcmp.eq.s32.totalorder %v9185_v40, %v14449_v9  ;;  %vm9285_vm4 = vcmp.eq.s32.totalorder %v9185_v40, %v14452_v35  ;;  %vm9286_vm12 = vcmp.eq.s32.totalorder %v9185_v40, %v14455_v24  ;;  %vm9287_vm8 = vcmp.eq.s32.totalorder %v9185_v40, %v14458_v17 }
 0x580   : > { %vm9288_vm1 = vcmp.eq.s32.totalorder %v9185_v40, %v14462_v12  ;;  %vm9289_vm2 = vcmp.eq.s32.totalorder %v9185_v40, %v14465_v41  ;;  %vm9290_vm13 = vcmp.eq.s32.totalorder %v9185_v40, %v14468_v56  ;;  %vm9291_vm10 = vcmp.eq.s32.totalorder %v9185_v40, %v14471_v63 }
 0x581   : > { %v9540_v13 = vsel %vm9284_vm7, 1, %v17416_v62  ;;  %v9541_v25 = vsel %vm9285_vm4, 1, %v17416_v62  ;;  %v9542_v47 = vsel %vm9286_vm12, 1, %v17416_v62  ;;  %v9543_v1 = vsel %vm9287_vm8, 1, %v17416_v62 }
 0x582   : > { %v9544_v21 = vsel %vm9288_vm1, 1, %v17416_v62  ;;  %v9545_v60 = vsel %vm9289_vm2, 1, %v17416_v62  ;;  %v9546_v26 = vsel %vm9290_vm13, 1, %v17416_v62  ;;  %v9547_v53 = vsel %vm9291_vm10, 1, %v17416_v62  ;;  %v9197_v28 = vpop.permute.xlu1 %9196 }
 0x583   : > { %vm9276_vm15 = vcmp.eq.s32.totalorder %v9182_v51, %v14449_v9  ;;  %vm9277_vm3 = vcmp.eq.s32.totalorder %v9182_v51, %v14452_v35  ;;  %vm9278_vm0 = vcmp.eq.s32.totalorder %v9182_v51, %v14455_v24  ;;  %vm9279_vm9 = vcmp.eq.s32.totalorder %v9182_v51, %v14458_v17 }
 0x584   : > { %vm9280_vm11 = vcmp.eq.s32.totalorder %v9182_v51, %v14462_v12  ;;  %vm9281_vm14 = vcmp.eq.s32.totalorder %v9182_v51, %v14465_v41  ;;  %vm9282_vm5 = vcmp.eq.s32.totalorder %v9182_v51, %v14468_v56  ;;  %vm9283_vm6 = vcmp.eq.s32.totalorder %v9182_v51, %v14471_v63 }
 0x585   : > { %v9532_v49 = vsel %vm9276_vm15, 1, %v17416_v62  ;;  %v9533_v15 = vsel %vm9277_vm3, 1, %v17416_v62  ;;  %v9534_v34 = vsel %vm9278_vm0, 1, %v17416_v62  ;;  %v9535_v55 = vsel %vm9279_vm9, 1, %v17416_v62 }
 0x586   : > { %v9536_v36 = vsel %vm9280_vm11, 1, %v17416_v62  ;;  %v9537_v5 = vsel %vm9281_vm14, 1, %v17416_v62  ;;  %v9538_v52 = vsel %vm9282_vm5, 1, %v17416_v62  ;;  %v9539_v14 = vsel %vm9283_vm6, 1, %v17416_v62 }
 0x587   : > { %v9788_v57 = vadd.s32 %v9540_v13, %v9532_v49  ;;  %v9825_v27 = vadd.s32 %v9541_v25, %v9533_v15  ;;  %v9862_v10 = vadd.s32 %v9542_v47, %v9534_v34  ;;  %v9899_v40 = vadd.s32 %v9543_v1, %v9535_v55  ;;  %v9188_v13 = vpop.permute.xlu0 %9187 }
 0x588   : > { %v9936_v51 = vadd.s32 %v9544_v21, %v9536_v36  ;;  %v9973_v6 = vadd.s32 %v9545_v60, %v9537_v5  ;;  %v10010_v54 = vadd.s32 %v9546_v26, %v9538_v52  ;;  %v10047_v50 = vadd.s32 %v9547_v53, %v9539_v14 }
 0x589   : > { %vm9300_vm7 = vcmp.eq.s32.totalorder %v9191_v48, %v14449_v9  ;;  %vm9301_vm4 = vcmp.eq.s32.totalorder %v9191_v48, %v14452_v35  ;;  %vm9302_vm12 = vcmp.eq.s32.totalorder %v9191_v48, %v14455_v24  ;;  %vm9303_vm8 = vcmp.eq.s32.totalorder %v9191_v48, %v14458_v17 }
 0x58a   : > { %vm9304_vm1 = vcmp.eq.s32.totalorder %v9191_v48, %v14462_v12  ;;  %vm9305_vm2 = vcmp.eq.s32.totalorder %v9191_v48, %v14465_v41  ;;  %vm9306_vm13 = vcmp.eq.s32.totalorder %v9191_v48, %v14468_v56  ;;  %vm9307_vm10 = vcmp.eq.s32.totalorder %v9191_v48, %v14471_v63 }
 0x58b   : > { %v9556_v25 = vsel %vm9300_vm7, 1, %v17416_v62  ;;  %v9557_v47 = vsel %vm9301_vm4, 1, %v17416_v62  ;;  %v9558_v1 = vsel %vm9302_vm12, 1, %v17416_v62  ;;  %v9559_v21 = vsel %vm9303_vm8, 1, %v17416_v62 }
 0x58c   : > { %v9560_v60 = vsel %vm9304_vm1, 1, %v17416_v62  ;;  %v9561_v26 = vsel %vm9305_vm2, 1, %v17416_v62  ;;  %v9562_v53 = vsel %vm9306_vm13, 1, %v17416_v62  ;;  %v9563_v49 = vsel %vm9307_vm10, 1, %v17416_v62 }
 0x58d   : > { %vm9292_vm15 = vcmp.eq.s32.totalorder %v9188_v13, %v14449_v9  ;;  %vm9293_vm3 = vcmp.eq.s32.totalorder %v9188_v13, %v14452_v35  ;;  %vm9294_vm0 = vcmp.eq.s32.totalorder %v9188_v13, %v14455_v24  ;;  %vm9295_vm9 = vcmp.eq.s32.totalorder %v9188_v13, %v14458_v17 }
 0x58e   : > { %vm9296_vm11 = vcmp.eq.s32.totalorder %v9188_v13, %v14462_v12  ;;  %vm9297_vm14 = vcmp.eq.s32.totalorder %v9188_v13, %v14465_v41  ;;  %vm9298_vm5 = vcmp.eq.s32.totalorder %v9188_v13, %v14468_v56  ;;  %vm9299_vm6 = vcmp.eq.s32.totalorder %v9188_v13, %v14471_v63 }
 0x58f   : > { %v9548_v15 = vsel %vm9292_vm15, 1, %v17416_v62  ;;  %v9549_v34 = vsel %vm9293_vm3, 1, %v17416_v62  ;;  %v9550_v55 = vsel %vm9294_vm0, 1, %v17416_v62  ;;  %v9551_v36 = vsel %vm9295_vm9, 1, %v17416_v62 }
 0x590   : > { %v9552_v5 = vsel %vm9296_vm11, 1, %v17416_v62  ;;  %v9553_v52 = vsel %vm9297_vm14, 1, %v17416_v62  ;;  %v9554_v14 = vsel %vm9298_vm5, 1, %v17416_v62  ;;  %v9555_v48 = vsel %vm9299_vm6, 1, %v17416_v62 }
 0x591   : > { %v9789_v19 = vadd.s32 %v9788_v57, %v9548_v15  ;;  %v9826_v43 = vadd.s32 %v9825_v27, %v9549_v34  ;;  %v9863_v13 = vadd.s32 %v9862_v10, %v9550_v55  ;;  %v9900_v7 = vadd.s32 %v9899_v40, %v9551_v36  ;;  %v9194_v15 = vpop.permute.xlu0 %9193 }
 0x592   : > { %v9937_v45 = vadd.s32 %v9936_v51, %v9552_v5  ;;  %v9974_v59 = vadd.s32 %v9973_v6, %v9553_v52  ;;  %v10011_v8 = vadd.s32 %v10010_v54, %v9554_v14  ;;  %v10048_v22 = vadd.s32 %v10047_v50, %v9555_v48 }
 0x593   : > { %vm9316_vm7 = vcmp.eq.s32.totalorder %v9197_v28, %v14449_v9  ;;  %vm9317_vm4 = vcmp.eq.s32.totalorder %v9197_v28, %v14452_v35  ;;  %vm9318_vm12 = vcmp.eq.s32.totalorder %v9197_v28, %v14455_v24  ;;  %vm9319_vm8 = vcmp.eq.s32.totalorder %v9197_v28, %v14458_v17 }
 0x594   : > { %vm9320_vm1 = vcmp.eq.s32.totalorder %v9197_v28, %v14462_v12  ;;  %vm9321_vm2 = vcmp.eq.s32.totalorder %v9197_v28, %v14465_v41  ;;  %vm9322_vm13 = vcmp.eq.s32.totalorder %v9197_v28, %v14468_v56  ;;  %vm9323_vm10 = vcmp.eq.s32.totalorder %v9197_v28, %v14471_v63 }
 0x595   : > { %v9572_v6 = vsel %vm9316_vm7, 1, %v17416_v62  ;;  %v9573_v50 = vsel %vm9317_vm4, 1, %v17416_v62  ;;  %v9574_v54 = vsel %vm9318_vm12, 1, %v17416_v62  ;;  %v9575_v57 = vsel %vm9319_vm8, 1, %v17416_v62 }
 0x596   : > { %v9576_v27 = vsel %vm9320_vm1, 1, %v17416_v62  ;;  %v9577_v10 = vsel %vm9321_vm2, 1, %v17416_v62  ;;  %v9578_v40 = vsel %vm9322_vm13, 1, %v17416_v62  ;;  %v9579_v51 = vsel %vm9323_vm10, 1, %v17416_v62 }
 0x597   : > { %v9790_v34 = vadd.s32 %v9789_v19, %v9556_v25  ;;  %v9827_v55 = vadd.s32 %v9826_v43, %v9557_v47  ;;  %v9864_v28 = vadd.s32 %v9863_v13, %v9558_v1  ;;  %v9901_v36 = vadd.s32 %v9900_v7, %v9559_v21  ;;  %v9203_v47 = vpop.permute.xlu1 %9202 }
 0x598   : > { %v9938_v5 = vadd.s32 %v9937_v45, %v9560_v60  ;;  %v9975_v52 = vadd.s32 %v9974_v59, %v9561_v26  ;;  %v10012_v14 = vadd.s32 %v10011_v8, %v9562_v53  ;;  %v10049_v48 = vadd.s32 %v10048_v22, %v9563_v49 }
 0x599   : > { %vm9308_vm15 = vcmp.eq.s32.totalorder %v9194_v15, %v14449_v9  ;;  %vm9309_vm3 = vcmp.eq.s32.totalorder %v9194_v15, %v14452_v35  ;;  %vm9310_vm0 = vcmp.eq.s32.totalorder %v9194_v15, %v14455_v24  ;;  %vm9311_vm9 = vcmp.eq.s32.totalorder %v9194_v15, %v14458_v17 }
 0x59a   : > { %vm9312_vm11 = vcmp.eq.s32.totalorder %v9194_v15, %v14462_v12  ;;  %vm9313_vm14 = vcmp.eq.s32.totalorder %v9194_v15, %v14465_v41  ;;  %vm9314_vm5 = vcmp.eq.s32.totalorder %v9194_v15, %v14468_v56  ;;  %vm9315_vm6 = vcmp.eq.s32.totalorder %v9194_v15, %v14471_v63 }
 0x59b   : > { %v9564_v59 = vsel %vm9308_vm15, 1, %v17416_v62  ;;  %v9565_v22 = vsel %vm9309_vm3, 1, %v17416_v62  ;;  %v9566_v7 = vsel %vm9310_vm0, 1, %v17416_v62  ;;  %v9567_v19 = vsel %vm9311_vm9, 1, %v17416_v62 }
 0x59c   : > { %v9568_v8 = vsel %vm9312_vm11, 1, %v17416_v62  ;;  %v9569_v45 = vsel %vm9313_vm14, 1, %v17416_v62  ;;  %v9570_v43 = vsel %vm9314_vm5, 1, %v17416_v62  ;;  %v9571_v25 = vsel %vm9315_vm6, 1, %v17416_v62 }
 0x59d   : > { %v9791_v1 = vadd.s32 %v9790_v34, %v9564_v59  ;;  %v9828_v21 = vadd.s32 %v9827_v55, %v9565_v22  ;;  %v9865_v60 = vadd.s32 %v9864_v28, %v9566_v7  ;;  %v9902_v26 = vadd.s32 %v9901_v36, %v9567_v19  ;;  %v9200_v59 = vpop.permute.xlu0 %9199 }
 0x59e   : > { %v9939_v53 = vadd.s32 %v9938_v5, %v9568_v8  ;;  %v9976_v49 = vadd.s32 %v9975_v52, %v9569_v45  ;;  %v10013_v13 = vadd.s32 %v10012_v14, %v9570_v43  ;;  %v10050_v15 = vadd.s32 %v10049_v48, %v9571_v25 }
 0x59f   : > { %vm9332_vm7 = vcmp.eq.s32.totalorder %v9203_v47, %v14449_v9  ;;  %vm9333_vm4 = vcmp.eq.s32.totalorder %v9203_v47, %v14452_v35  ;;  %vm9334_vm12 = vcmp.eq.s32.totalorder %v9203_v47, %v14455_v24  ;;  %vm9335_vm8 = vcmp.eq.s32.totalorder %v9203_v47, %v14458_v17 }
 0x5a0   : > { %vm9336_vm1 = vcmp.eq.s32.totalorder %v9203_v47, %v14462_v12  ;;  %vm9337_vm2 = vcmp.eq.s32.totalorder %v9203_v47, %v14465_v41  ;;  %vm9338_vm13 = vcmp.eq.s32.totalorder %v9203_v47, %v14468_v56  ;;  %vm9339_vm10 = vcmp.eq.s32.totalorder %v9203_v47, %v14471_v63 }
 0x5a1   : > { %v9588_v34 = vsel %vm9332_vm7, 1, %v17416_v62  ;;  %v9589_v55 = vsel %vm9333_vm4, 1, %v17416_v62  ;;  %v9590_v28 = vsel %vm9334_vm12, 1, %v17416_v62  ;;  %v9591_v36 = vsel %vm9335_vm8, 1, %v17416_v62 }
 0x5a2   : > { %v9592_v5 = vsel %vm9336_vm1, 1, %v17416_v62  ;;  %v9593_v52 = vsel %vm9337_vm2, 1, %v17416_v62  ;;  %v9594_v14 = vsel %vm9338_vm13, 1, %v17416_v62  ;;  %v9595_v48 = vsel %vm9339_vm10, 1, %v17416_v62 }
 0x5a3   : > { %v9792_v22 = vadd.s32 %v9791_v1, %v9572_v6  ;;  %v9829_v7 = vadd.s32 %v9828_v21, %v9573_v50  ;;  %v9866_v19 = vadd.s32 %v9865_v60, %v9574_v54  ;;  %v9903_v8 = vadd.s32 %v9902_v26, %v9575_v57  ;;  %v9209_v1 = vpop.permute.xlu1 %9208 }
 0x5a4   : > { %v9940_v45 = vadd.s32 %v9939_v53, %v9576_v27  ;;  %v9977_v43 = vadd.s32 %v9976_v49, %v9577_v10  ;;  %v10014_v25 = vadd.s32 %v10013_v13, %v9578_v40  ;;  %v10051_v47 = vadd.s32 %v10050_v15, %v9579_v51 }
 0x5a5   : > { %vm9324_vm15 = vcmp.eq.s32.totalorder %v9200_v59, %v14449_v9  ;;  %vm9325_vm3 = vcmp.eq.s32.totalorder %v9200_v59, %v14452_v35  ;;  %vm9326_vm0 = vcmp.eq.s32.totalorder %v9200_v59, %v14455_v24  ;;  %vm9327_vm9 = vcmp.eq.s32.totalorder %v9200_v59, %v14458_v17 }
 0x5a6   : > { %vm9328_vm11 = vcmp.eq.s32.totalorder %v9200_v59, %v14462_v12  ;;  %vm9329_vm14 = vcmp.eq.s32.totalorder %v9200_v59, %v14465_v41  ;;  %vm9330_vm5 = vcmp.eq.s32.totalorder %v9200_v59, %v14468_v56  ;;  %vm9331_vm6 = vcmp.eq.s32.totalorder %v9200_v59, %v14471_v63 }
 0x5a7   : > { %v9580_v6 = vsel %vm9324_vm15, 1, %v17416_v62  ;;  %v9581_v50 = vsel %vm9325_vm3, 1, %v17416_v62  ;;  %v9582_v54 = vsel %vm9326_vm0, 1, %v17416_v62  ;;  %v9583_v57 = vsel %vm9327_vm9, 1, %v17416_v62 }
 0x5a8   : > { %v9584_v27 = vsel %vm9328_vm11, 1, %v17416_v62  ;;  %v9585_v10 = vsel %vm9329_vm14, 1, %v17416_v62  ;;  %v9586_v40 = vsel %vm9330_vm5, 1, %v17416_v62  ;;  %v9587_v51 = vsel %vm9331_vm6, 1, %v17416_v62 }
 0x5a9   : > { %v9793_v21 = vadd.s32 %v9792_v22, %v9580_v6  ;;  %v9830_v60 = vadd.s32 %v9829_v7, %v9581_v50  ;;  %v9867_v26 = vadd.s32 %v9866_v19, %v9582_v54  ;;  %v9904_v53 = vadd.s32 %v9903_v8, %v9583_v57  ;;  %v9206_v6 = vpop.permute.xlu0 %9205 }
 0x5aa   : > { %v9941_v49 = vadd.s32 %v9940_v45, %v9584_v27  ;;  %v9978_v13 = vadd.s32 %v9977_v43, %v9585_v10  ;;  %v10015_v15 = vadd.s32 %v10014_v25, %v9586_v40  ;;  %v10052_v59 = vadd.s32 %v10051_v47, %v9587_v51 }
 0x5ab   : > { %vm9348_vm7 = vcmp.eq.s32.totalorder %v9209_v1, %v14449_v9  ;;  %vm9349_vm4 = vcmp.eq.s32.totalorder %v9209_v1, %v14452_v35  ;;  %vm9350_vm12 = vcmp.eq.s32.totalorder %v9209_v1, %v14455_v24  ;;  %vm9351_vm8 = vcmp.eq.s32.totalorder %v9209_v1, %v14458_v17 }
 0x5ac   : > { %vm9352_vm1 = vcmp.eq.s32.totalorder %v9209_v1, %v14462_v12  ;;  %vm9353_vm2 = vcmp.eq.s32.totalorder %v9209_v1, %v14465_v41  ;;  %vm9354_vm13 = vcmp.eq.s32.totalorder %v9209_v1, %v14468_v56  ;;  %vm9355_vm10 = vcmp.eq.s32.totalorder %v9209_v1, %v14471_v63 }
 0x5ad   : > { %v9604_v22 = vsel %vm9348_vm7, 1, %v17416_v62  ;;  %v9605_v7 = vsel %vm9349_vm4, 1, %v17416_v62  ;;  %v9606_v19 = vsel %vm9350_vm12, 1, %v17416_v62  ;;  %v9607_v8 = vsel %vm9351_vm8, 1, %v17416_v62 }
 0x5ae   : > { %v9608_v45 = vsel %vm9352_vm1, 1, %v17416_v62  ;;  %v9609_v43 = vsel %vm9353_vm2, 1, %v17416_v62  ;;  %v9610_v25 = vsel %vm9354_vm13, 1, %v17416_v62  ;;  %v9611_v47 = vsel %vm9355_vm10, 1, %v17416_v62 }
 0x5af   : > { %v9794_v50 = vadd.s32 %v9793_v21, %v9588_v34  ;;  %v9831_v54 = vadd.s32 %v9830_v60, %v9589_v55  ;;  %v9868_v57 = vadd.s32 %v9867_v26, %v9590_v28  ;;  %v9905_v27 = vadd.s32 %v9904_v53, %v9591_v36  ;;  %v9215_v21 = vpop.permute.xlu1 %9214 }
 0x5b0   : > { %v9942_v10 = vadd.s32 %v9941_v49, %v9592_v5  ;;  %v9979_v40 = vadd.s32 %v9978_v13, %v9593_v52  ;;  %v10016_v51 = vadd.s32 %v10015_v15, %v9594_v14  ;;  %v10053_v1 = vadd.s32 %v10052_v59, %v9595_v48 }
 0x5b1   : > { %vm9340_vm15 = vcmp.eq.s32.totalorder %v9206_v6, %v14449_v9  ;;  %vm9341_vm3 = vcmp.eq.s32.totalorder %v9206_v6, %v14452_v35  ;;  %vm9342_vm0 = vcmp.eq.s32.totalorder %v9206_v6, %v14455_v24  ;;  %vm9343_vm9 = vcmp.eq.s32.totalorder %v9206_v6, %v14458_v17 }
 0x5b2   : > { %vm9344_vm11 = vcmp.eq.s32.totalorder %v9206_v6, %v14462_v12  ;;  %vm9345_vm14 = vcmp.eq.s32.totalorder %v9206_v6, %v14465_v41  ;;  %vm9346_vm5 = vcmp.eq.s32.totalorder %v9206_v6, %v14468_v56  ;;  %vm9347_vm6 = vcmp.eq.s32.totalorder %v9206_v6, %v14471_v63 }
 0x5b3   : > { %v9596_v34 = vsel %vm9340_vm15, 1, %v17416_v62  ;;  %v9597_v55 = vsel %vm9341_vm3, 1, %v17416_v62  ;;  %v9598_v28 = vsel %vm9342_vm0, 1, %v17416_v62  ;;  %v9599_v36 = vsel %vm9343_vm9, 1, %v17416_v62 }
 0x5b4   : > { %v9600_v5 = vsel %vm9344_vm11, 1, %v17416_v62  ;;  %v9601_v52 = vsel %vm9345_vm14, 1, %v17416_v62  ;;  %v9602_v14 = vsel %vm9346_vm5, 1, %v17416_v62  ;;  %v9603_v48 = vsel %vm9347_vm6, 1, %v17416_v62 }
 0x5b5   : > { %v9795_v60 = vadd.s32 %v9794_v50, %v9596_v34  ;;  %v9832_v26 = vadd.s32 %v9831_v54, %v9597_v55  ;;  %v9869_v53 = vadd.s32 %v9868_v57, %v9598_v28  ;;  %v9906_v49 = vadd.s32 %v9905_v27, %v9599_v36  ;;  %v9212_v34 = vpop.permute.xlu0 %9211 }
 0x5b6   : > { %v9943_v13 = vadd.s32 %v9942_v10, %v9600_v5  ;;  %v9980_v15 = vadd.s32 %v9979_v40, %v9601_v52  ;;  %v10017_v59 = vadd.s32 %v10016_v51, %v9602_v14  ;;  %v10054_v6 = vadd.s32 %v10053_v1, %v9603_v48 }
 0x5b7   : > { %vm9364_vm7 = vcmp.eq.s32.totalorder %v9215_v21, %v14449_v9  ;;  %vm9365_vm4 = vcmp.eq.s32.totalorder %v9215_v21, %v14452_v35  ;;  %vm9366_vm12 = vcmp.eq.s32.totalorder %v9215_v21, %v14455_v24  ;;  %vm9367_vm8 = vcmp.eq.s32.totalorder %v9215_v21, %v14458_v17 }
 0x5b8   : > { %vm9368_vm1 = vcmp.eq.s32.totalorder %v9215_v21, %v14462_v12  ;;  %vm9369_vm2 = vcmp.eq.s32.totalorder %v9215_v21, %v14465_v41  ;;  %vm9370_vm13 = vcmp.eq.s32.totalorder %v9215_v21, %v14468_v56  ;;  %vm9371_vm10 = vcmp.eq.s32.totalorder %v9215_v21, %v14471_v63 }
 0x5b9   : > { %v9620_v50 = vsel %vm9364_vm7, 1, %v17416_v62  ;;  %v9621_v54 = vsel %vm9365_vm4, 1, %v17416_v62  ;;  %v9622_v57 = vsel %vm9366_vm12, 1, %v17416_v62  ;;  %v9623_v27 = vsel %vm9367_vm8, 1, %v17416_v62 }
 0x5ba   : > { %v9624_v10 = vsel %vm9368_vm1, 1, %v17416_v62  ;;  %v9625_v40 = vsel %vm9369_vm2, 1, %v17416_v62  ;;  %v9626_v51 = vsel %vm9370_vm13, 1, %v17416_v62  ;;  %v9627_v1 = vsel %vm9371_vm10, 1, %v17416_v62 }
 0x5bb   : > { %v9796_v55 = vadd.s32 %v9795_v60, %v9604_v22  ;;  %v9833_v28 = vadd.s32 %v9832_v26, %v9605_v7  ;;  %v9870_v36 = vadd.s32 %v9869_v53, %v9606_v19  ;;  %v9907_v5 = vadd.s32 %v9906_v49, %v9607_v8  ;;  %v9221_v60 = vpop.permute.xlu1 %9220 }
 0x5bc   : > { %v9944_v52 = vadd.s32 %v9943_v13, %v9608_v45  ;;  %v9981_v14 = vadd.s32 %v9980_v15, %v9609_v43  ;;  %v10018_v48 = vadd.s32 %v10017_v59, %v9610_v25  ;;  %v10055_v21 = vadd.s32 %v10054_v6, %v9611_v47 }
 0x5bd   : > { %vm9356_vm15 = vcmp.eq.s32.totalorder %v9212_v34, %v14449_v9  ;;  %vm9357_vm3 = vcmp.eq.s32.totalorder %v9212_v34, %v14452_v35  ;;  %vm9358_vm0 = vcmp.eq.s32.totalorder %v9212_v34, %v14455_v24  ;;  %vm9359_vm9 = vcmp.eq.s32.totalorder %v9212_v34, %v14458_v17 }
 0x5be   : > { %vm9360_vm11 = vcmp.eq.s32.totalorder %v9212_v34, %v14462_v12  ;;  %vm9361_vm14 = vcmp.eq.s32.totalorder %v9212_v34, %v14465_v41  ;;  %vm9362_vm5 = vcmp.eq.s32.totalorder %v9212_v34, %v14468_v56  ;;  %vm9363_vm6 = vcmp.eq.s32.totalorder %v9212_v34, %v14471_v63 }
 0x5bf   : > { %v9612_v22 = vsel %vm9356_vm15, 1, %v17416_v62  ;;  %v9613_v7 = vsel %vm9357_vm3, 1, %v17416_v62  ;;  %v9614_v19 = vsel %vm9358_vm0, 1, %v17416_v62  ;;  %v9615_v8 = vsel %vm9359_vm9, 1, %v17416_v62 }
 0x5c0   : > { %v9616_v45 = vsel %vm9360_vm11, 1, %v17416_v62  ;;  %v9617_v43 = vsel %vm9361_vm14, 1, %v17416_v62  ;;  %v9618_v25 = vsel %vm9362_vm5, 1, %v17416_v62  ;;  %v9619_v47 = vsel %vm9363_vm6, 1, %v17416_v62 }
 0x5c1   : > { %v9797_v26 = vadd.s32 %v9796_v55, %v9612_v22  ;;  %v9834_v53 = vadd.s32 %v9833_v28, %v9613_v7  ;;  %v9871_v49 = vadd.s32 %v9870_v36, %v9614_v19  ;;  %v9908_v13 = vadd.s32 %v9907_v5, %v9615_v8  ;;  %v9218_v22 = vpop.permute.xlu0 %9217 }
 0x5c2   : > { %v9945_v15 = vadd.s32 %v9944_v52, %v9616_v45  ;;  %v9982_v59 = vadd.s32 %v9981_v14, %v9617_v43  ;;  %v10019_v6 = vadd.s32 %v10018_v48, %v9618_v25  ;;  %v10056_v34 = vadd.s32 %v10055_v21, %v9619_v47 }
 0x5c3   : > { %vm9380_vm7 = vcmp.eq.s32.totalorder %v9221_v60, %v14449_v9  ;;  %vm9381_vm4 = vcmp.eq.s32.totalorder %v9221_v60, %v14452_v35  ;;  %vm9382_vm12 = vcmp.eq.s32.totalorder %v9221_v60, %v14455_v24  ;;  %vm9383_vm8 = vcmp.eq.s32.totalorder %v9221_v60, %v14458_v17 }
 0x5c4   : > { %vm9384_vm1 = vcmp.eq.s32.totalorder %v9221_v60, %v14462_v12  ;;  %vm9385_vm2 = vcmp.eq.s32.totalorder %v9221_v60, %v14465_v41  ;;  %vm9386_vm13 = vcmp.eq.s32.totalorder %v9221_v60, %v14468_v56  ;;  %vm9387_vm10 = vcmp.eq.s32.totalorder %v9221_v60, %v14471_v63 }
 0x5c5   : > { %v9636_v55 = vsel %vm9380_vm7, 1, %v17416_v62  ;;  %v9637_v28 = vsel %vm9381_vm4, 1, %v17416_v62  ;;  %v9638_v36 = vsel %vm9382_vm12, 1, %v17416_v62  ;;  %v9639_v5 = vsel %vm9383_vm8, 1, %v17416_v62 }
 0x5c6   : > { %v9640_v52 = vsel %vm9384_vm1, 1, %v17416_v62  ;;  %v9641_v14 = vsel %vm9385_vm2, 1, %v17416_v62  ;;  %v9642_v48 = vsel %vm9386_vm13, 1, %v17416_v62  ;;  %v9643_v21 = vsel %vm9387_vm10, 1, %v17416_v62 }
 0x5c7   : > { %v9798_v7 = vadd.s32 %v9797_v26, %v9620_v50  ;;  %v9835_v19 = vadd.s32 %v9834_v53, %v9621_v54  ;;  %v9872_v8 = vadd.s32 %v9871_v49, %v9622_v57  ;;  %v9909_v45 = vadd.s32 %v9908_v13, %v9623_v27  ;;  %v9227_v26 = vpop.permute.xlu1 %9226 }
 0x5c8   : > { %v9946_v43 = vadd.s32 %v9945_v15, %v9624_v10  ;;  %v9983_v25 = vadd.s32 %v9982_v59, %v9625_v40  ;;  %v10020_v47 = vadd.s32 %v10019_v6, %v9626_v51  ;;  %v10057_v60 = vadd.s32 %v10056_v34, %v9627_v1 }
 0x5c9   : > { %vm9372_vm15 = vcmp.eq.s32.totalorder %v9218_v22, %v14449_v9  ;;  %vm9373_vm3 = vcmp.eq.s32.totalorder %v9218_v22, %v14452_v35  ;;  %vm9374_vm0 = vcmp.eq.s32.totalorder %v9218_v22, %v14455_v24  ;;  %vm9375_vm9 = vcmp.eq.s32.totalorder %v9218_v22, %v14458_v17 }
 0x5ca   : > { %vm9376_vm11 = vcmp.eq.s32.totalorder %v9218_v22, %v14462_v12  ;;  %vm9377_vm14 = vcmp.eq.s32.totalorder %v9218_v22, %v14465_v41  ;;  %vm9378_vm5 = vcmp.eq.s32.totalorder %v9218_v22, %v14468_v56  ;;  %vm9379_vm6 = vcmp.eq.s32.totalorder %v9218_v22, %v14471_v63 }
 0x5cb   : > { %v9628_v50 = vsel %vm9372_vm15, 1, %v17416_v62  ;;  %v9629_v54 = vsel %vm9373_vm3, 1, %v17416_v62  ;;  %v9630_v57 = vsel %vm9374_vm0, 1, %v17416_v62  ;;  %v9631_v27 = vsel %vm9375_vm9, 1, %v17416_v62 }
 0x5cc   : > { %v9632_v10 = vsel %vm9376_vm11, 1, %v17416_v62  ;;  %v9633_v40 = vsel %vm9377_vm14, 1, %v17416_v62  ;;  %v9634_v51 = vsel %vm9378_vm5, 1, %v17416_v62  ;;  %v9635_v1 = vsel %vm9379_vm6, 1, %v17416_v62 }
 0x5cd   : > { %v9799_v53 = vadd.s32 %v9798_v7, %v9628_v50  ;;  %v9836_v49 = vadd.s32 %v9835_v19, %v9629_v54  ;;  %v9873_v13 = vadd.s32 %v9872_v8, %v9630_v57  ;;  %v9910_v15 = vadd.s32 %v9909_v45, %v9631_v27  ;;  %v9224_v50 = vpop.permute.xlu0 %9223 }
 0x5ce   : > { %v9947_v59 = vadd.s32 %v9946_v43, %v9632_v10  ;;  %v9984_v6 = vadd.s32 %v9983_v25, %v9633_v40  ;;  %v10021_v34 = vadd.s32 %v10020_v47, %v9634_v51  ;;  %v10058_v22 = vadd.s32 %v10057_v60, %v9635_v1 }
 0x5cf   : > { %vm9396_vm7 = vcmp.eq.s32.totalorder %v9227_v26, %v14449_v9  ;;  %vm9397_vm4 = vcmp.eq.s32.totalorder %v9227_v26, %v14452_v35  ;;  %vm9398_vm12 = vcmp.eq.s32.totalorder %v9227_v26, %v14455_v24  ;;  %vm9399_vm8 = vcmp.eq.s32.totalorder %v9227_v26, %v14458_v17 }
 0x5d0   : > { %vm9400_vm1 = vcmp.eq.s32.totalorder %v9227_v26, %v14462_v12  ;;  %vm9401_vm2 = vcmp.eq.s32.totalorder %v9227_v26, %v14465_v41  ;;  %vm9402_vm13 = vcmp.eq.s32.totalorder %v9227_v26, %v14468_v56  ;;  %vm9403_vm10 = vcmp.eq.s32.totalorder %v9227_v26, %v14471_v63 }
 0x5d1   : > { %v9652_v7 = vsel %vm9396_vm7, 1, %v17416_v62  ;;  %v9653_v19 = vsel %vm9397_vm4, 1, %v17416_v62  ;;  %v9654_v8 = vsel %vm9398_vm12, 1, %v17416_v62  ;;  %v9655_v45 = vsel %vm9399_vm8, 1, %v17416_v62 }
 0x5d2   : > { %v9656_v43 = vsel %vm9400_vm1, 1, %v17416_v62  ;;  %v9657_v25 = vsel %vm9401_vm2, 1, %v17416_v62  ;;  %v9658_v47 = vsel %vm9402_vm13, 1, %v17416_v62  ;;  %v9659_v60 = vsel %vm9403_vm10, 1, %v17416_v62 }
 0x5d3   : > { %v9800_v54 = vadd.s32 %v9799_v53, %v9636_v55  ;;  %v9837_v57 = vadd.s32 %v9836_v49, %v9637_v28  ;;  %v9874_v27 = vadd.s32 %v9873_v13, %v9638_v36  ;;  %v9911_v10 = vadd.s32 %v9910_v15, %v9639_v5  ;;  %v9233_v53 = vpop.permute.xlu1 %9232 }
 0x5d4   : > { %v9948_v40 = vadd.s32 %v9947_v59, %v9640_v52  ;;  %v9985_v51 = vadd.s32 %v9984_v6, %v9641_v14  ;;  %v10022_v1 = vadd.s32 %v10021_v34, %v9642_v48  ;;  %v10059_v26 = vadd.s32 %v10058_v22, %v9643_v21 }
 0x5d5   : > { %vm9388_vm15 = vcmp.eq.s32.totalorder %v9224_v50, %v14449_v9  ;;  %vm9389_vm3 = vcmp.eq.s32.totalorder %v9224_v50, %v14452_v35  ;;  %vm9390_vm0 = vcmp.eq.s32.totalorder %v9224_v50, %v14455_v24  ;;  %vm9391_vm9 = vcmp.eq.s32.totalorder %v9224_v50, %v14458_v17 }
 0x5d6   : > { %vm9392_vm11 = vcmp.eq.s32.totalorder %v9224_v50, %v14462_v12  ;;  %vm9393_vm14 = vcmp.eq.s32.totalorder %v9224_v50, %v14465_v41  ;;  %vm9394_vm5 = vcmp.eq.s32.totalorder %v9224_v50, %v14468_v56  ;;  %vm9395_vm6 = vcmp.eq.s32.totalorder %v9224_v50, %v14471_v63 }
 0x5d7   : > { %v9644_v55 = vsel %vm9388_vm15, 1, %v17416_v62  ;;  %v9645_v28 = vsel %vm9389_vm3, 1, %v17416_v62  ;;  %v9646_v36 = vsel %vm9390_vm0, 1, %v17416_v62  ;;  %v9647_v5 = vsel %vm9391_vm9, 1, %v17416_v62 }
 0x5d8   : > { %v9648_v52 = vsel %vm9392_vm11, 1, %v17416_v62  ;;  %v9649_v14 = vsel %vm9393_vm14, 1, %v17416_v62  ;;  %v9650_v48 = vsel %vm9394_vm5, 1, %v17416_v62  ;;  %v9651_v21 = vsel %vm9395_vm6, 1, %v17416_v62 }
 0x5d9   : > { %v9801_v49 = vadd.s32 %v9800_v54, %v9644_v55  ;;  %v9838_v13 = vadd.s32 %v9837_v57, %v9645_v28  ;;  %v9875_v15 = vadd.s32 %v9874_v27, %v9646_v36  ;;  %v9912_v59 = vadd.s32 %v9911_v10, %v9647_v5  ;;  %v9230_v55 = vpop.permute.xlu0 %9229 }
 0x5da   : > { %v9949_v6 = vadd.s32 %v9948_v40, %v9648_v52  ;;  %v9986_v34 = vadd.s32 %v9985_v51, %v9649_v14  ;;  %v10023_v22 = vadd.s32 %v10022_v1, %v9650_v48  ;;  %v10060_v50 = vadd.s32 %v10059_v26, %v9651_v21 }
 0x5db   : > { %vm9412_vm7 = vcmp.eq.s32.totalorder %v9233_v53, %v14449_v9  ;;  %vm9413_vm4 = vcmp.eq.s32.totalorder %v9233_v53, %v14452_v35  ;;  %vm9414_vm12 = vcmp.eq.s32.totalorder %v9233_v53, %v14455_v24  ;;  %vm9415_vm8 = vcmp.eq.s32.totalorder %v9233_v53, %v14458_v17 }
 0x5dc   : > { %vm9416_vm1 = vcmp.eq.s32.totalorder %v9233_v53, %v14462_v12  ;;  %vm9417_vm2 = vcmp.eq.s32.totalorder %v9233_v53, %v14465_v41  ;;  %vm9418_vm13 = vcmp.eq.s32.totalorder %v9233_v53, %v14468_v56  ;;  %vm9419_vm10 = vcmp.eq.s32.totalorder %v9233_v53, %v14471_v63 }
 0x5dd   : > { %v9668_v54 = vsel %vm9412_vm7, 1, %v17416_v62  ;;  %v9669_v57 = vsel %vm9413_vm4, 1, %v17416_v62  ;;  %v9670_v27 = vsel %vm9414_vm12, 1, %v17416_v62  ;;  %v9671_v10 = vsel %vm9415_vm8, 1, %v17416_v62 }
 0x5de   : > { %v9672_v40 = vsel %vm9416_vm1, 1, %v17416_v62  ;;  %v9673_v51 = vsel %vm9417_vm2, 1, %v17416_v62  ;;  %v9674_v1 = vsel %vm9418_vm13, 1, %v17416_v62  ;;  %v9675_v26 = vsel %vm9419_vm10, 1, %v17416_v62 }
 0x5df   : > { %v9802_v28 = vadd.s32 %v9801_v49, %v9652_v7  ;;  %v9839_v36 = vadd.s32 %v9838_v13, %v9653_v19  ;;  %v9876_v5 = vadd.s32 %v9875_v15, %v9654_v8  ;;  %v9913_v52 = vadd.s32 %v9912_v59, %v9655_v45  ;;  %v9239_v49 = vpop.permute.xlu1 %9238 }
 0x5e0   : > { %v9950_v14 = vadd.s32 %v9949_v6, %v9656_v43  ;;  %v9987_v48 = vadd.s32 %v9986_v34, %v9657_v25  ;;  %v10024_v21 = vadd.s32 %v10023_v22, %v9658_v47  ;;  %v10061_v53 = vadd.s32 %v10060_v50, %v9659_v60 }
 0x5e1   : > { %vm9404_vm15 = vcmp.eq.s32.totalorder %v9230_v55, %v14449_v9  ;;  %vm9405_vm3 = vcmp.eq.s32.totalorder %v9230_v55, %v14452_v35  ;;  %vm9406_vm0 = vcmp.eq.s32.totalorder %v9230_v55, %v14455_v24  ;;  %vm9407_vm9 = vcmp.eq.s32.totalorder %v9230_v55, %v14458_v17 }
 0x5e2   : > { %vm9408_vm11 = vcmp.eq.s32.totalorder %v9230_v55, %v14462_v12  ;;  %vm9409_vm14 = vcmp.eq.s32.totalorder %v9230_v55, %v14465_v41  ;;  %vm9410_vm5 = vcmp.eq.s32.totalorder %v9230_v55, %v14468_v56  ;;  %vm9411_vm6 = vcmp.eq.s32.totalorder %v9230_v55, %v14471_v63 }
 0x5e3   : > { %v9660_v7 = vsel %vm9404_vm15, 1, %v17416_v62  ;;  %v9661_v19 = vsel %vm9405_vm3, 1, %v17416_v62  ;;  %v9662_v8 = vsel %vm9406_vm0, 1, %v17416_v62  ;;  %v9663_v45 = vsel %vm9407_vm9, 1, %v17416_v62 }
 0x5e4   : > { %v9664_v43 = vsel %vm9408_vm11, 1, %v17416_v62  ;;  %v9665_v25 = vsel %vm9409_vm14, 1, %v17416_v62  ;;  %v9666_v47 = vsel %vm9410_vm5, 1, %v17416_v62  ;;  %v9667_v60 = vsel %vm9411_vm6, 1, %v17416_v62 }
 0x5e5   : > { %v9803_v13 = vadd.s32 %v9802_v28, %v9660_v7  ;;  %v9840_v15 = vadd.s32 %v9839_v36, %v9661_v19  ;;  %v9877_v59 = vadd.s32 %v9876_v5, %v9662_v8  ;;  %v9914_v6 = vadd.s32 %v9913_v52, %v9663_v45  ;;  %v9236_v7 = vpop.permute.xlu0 %9235 }
 0x5e6   : > { %v9951_v34 = vadd.s32 %v9950_v14, %v9664_v43  ;;  %v9988_v22 = vadd.s32 %v9987_v48, %v9665_v25  ;;  %v10025_v50 = vadd.s32 %v10024_v21, %v9666_v47  ;;  %v10062_v55 = vadd.s32 %v10061_v53, %v9667_v60 }
 0x5e7   : > { %vm9428_vm7 = vcmp.eq.s32.totalorder %v9239_v49, %v14449_v9  ;;  %vm9429_vm4 = vcmp.eq.s32.totalorder %v9239_v49, %v14452_v35  ;;  %vm9430_vm12 = vcmp.eq.s32.totalorder %v9239_v49, %v14455_v24  ;;  %vm9431_vm8 = vcmp.eq.s32.totalorder %v9239_v49, %v14458_v17 }
 0x5e8   : > { %vm9432_vm1 = vcmp.eq.s32.totalorder %v9239_v49, %v14462_v12  ;;  %vm9433_vm2 = vcmp.eq.s32.totalorder %v9239_v49, %v14465_v41  ;;  %vm9434_vm13 = vcmp.eq.s32.totalorder %v9239_v49, %v14468_v56  ;;  %vm9435_vm10 = vcmp.eq.s32.totalorder %v9239_v49, %v14471_v63 }
 0x5e9   : > { %v9684_v28 = vsel %vm9428_vm7, 1, %v17416_v62  ;;  %v9685_v36 = vsel %vm9429_vm4, 1, %v17416_v62  ;;  %v9686_v5 = vsel %vm9430_vm12, 1, %v17416_v62  ;;  %v9687_v52 = vsel %vm9431_vm8, 1, %v17416_v62 }
 0x5ea   : > { %v9688_v14 = vsel %vm9432_vm1, 1, %v17416_v62  ;;  %v9689_v48 = vsel %vm9433_vm2, 1, %v17416_v62  ;;  %v9690_v21 = vsel %vm9434_vm13, 1, %v17416_v62  ;;  %v9691_v53 = vsel %vm9435_vm10, 1, %v17416_v62 }
 0x5eb   : > { %v9804_v19 = vadd.s32 %v9803_v13, %v9668_v54  ;;  %v9841_v8 = vadd.s32 %v9840_v15, %v9669_v57  ;;  %v9878_v45 = vadd.s32 %v9877_v59, %v9670_v27  ;;  %v9915_v43 = vadd.s32 %v9914_v6, %v9671_v10  ;;  %v9245_v13 = vpop.permute.xlu1 %9244 }
 0x5ec   : > { %v9952_v25 = vadd.s32 %v9951_v34, %v9672_v40  ;;  %v9989_v47 = vadd.s32 %v9988_v22, %v9673_v51  ;;  %v10026_v60 = vadd.s32 %v10025_v50, %v9674_v1  ;;  %v10063_v49 = vadd.s32 %v10062_v55, %v9675_v26 }
 0x5ed   : > { %vm9420_vm15 = vcmp.eq.s32.totalorder %v9236_v7, %v14449_v9  ;;  %vm9421_vm3 = vcmp.eq.s32.totalorder %v9236_v7, %v14452_v35  ;;  %vm9422_vm0 = vcmp.eq.s32.totalorder %v9236_v7, %v14455_v24  ;;  %vm9423_vm9 = vcmp.eq.s32.totalorder %v9236_v7, %v14458_v17 }
 0x5ee   : > { %vm9424_vm11 = vcmp.eq.s32.totalorder %v9236_v7, %v14462_v12  ;;  %vm9425_vm14 = vcmp.eq.s32.totalorder %v9236_v7, %v14465_v41  ;;  %vm9426_vm5 = vcmp.eq.s32.totalorder %v9236_v7, %v14468_v56  ;;  %vm9427_vm6 = vcmp.eq.s32.totalorder %v9236_v7, %v14471_v63 }
 0x5ef   : > { %v9676_v54 = vsel %vm9420_vm15, 1, %v17416_v62  ;;  %v9677_v57 = vsel %vm9421_vm3, 1, %v17416_v62  ;;  %v9678_v27 = vsel %vm9422_vm0, 1, %v17416_v62  ;;  %v9679_v10 = vsel %vm9423_vm9, 1, %v17416_v62 }
 0x5f0   : > { %v9680_v40 = vsel %vm9424_vm11, 1, %v17416_v62  ;;  %v9681_v51 = vsel %vm9425_vm14, 1, %v17416_v62  ;;  %v9682_v1 = vsel %vm9426_vm5, 1, %v17416_v62  ;;  %v9683_v26 = vsel %vm9427_vm6, 1, %v17416_v62 }
 0x5f1   : > { %v9805_v15 = vadd.s32 %v9804_v19, %v9676_v54  ;;  %v9842_v59 = vadd.s32 %v9841_v8, %v9677_v57  ;;  %v9879_v6 = vadd.s32 %v9878_v45, %v9678_v27  ;;  %v9916_v34 = vadd.s32 %v9915_v43, %v9679_v10  ;;  %v9242_v54 = vpop.permute.xlu0 %9241 }
 0x5f2   : > { %v9953_v22 = vadd.s32 %v9952_v25, %v9680_v40  ;;  %v9990_v50 = vadd.s32 %v9989_v47, %v9681_v51  ;;  %v10027_v55 = vadd.s32 %v10026_v60, %v9682_v1  ;;  %v10064_v7 = vadd.s32 %v10063_v49, %v9683_v26 }
 0x5f3   : > { %vm9444_vm7 = vcmp.eq.s32.totalorder %v9245_v13, %v14449_v9  ;;  %vm9445_vm4 = vcmp.eq.s32.totalorder %v9245_v13, %v14452_v35  ;;  %vm9446_vm12 = vcmp.eq.s32.totalorder %v9245_v13, %v14455_v24  ;;  %vm9447_vm8 = vcmp.eq.s32.totalorder %v9245_v13, %v14458_v17 }
 0x5f4   : > { %vm9448_vm1 = vcmp.eq.s32.totalorder %v9245_v13, %v14462_v12  ;;  %vm9449_vm2 = vcmp.eq.s32.totalorder %v9245_v13, %v14465_v41  ;;  %vm9450_vm13 = vcmp.eq.s32.totalorder %v9245_v13, %v14468_v56  ;;  %vm9451_vm10 = vcmp.eq.s32.totalorder %v9245_v13, %v14471_v63 }
 0x5f5   : > { %v9700_v19 = vsel %vm9444_vm7, 1, %v17416_v62  ;;  %v9701_v8 = vsel %vm9445_vm4, 1, %v17416_v62  ;;  %v9702_v45 = vsel %vm9446_vm12, 1, %v17416_v62  ;;  %v9703_v43 = vsel %vm9447_vm8, 1, %v17416_v62 }
 0x5f6   : > { %v9704_v25 = vsel %vm9448_vm1, 1, %v17416_v62  ;;  %v9705_v47 = vsel %vm9449_vm2, 1, %v17416_v62  ;;  %v9706_v60 = vsel %vm9450_vm13, 1, %v17416_v62  ;;  %v9707_v49 = vsel %vm9451_vm10, 1, %v17416_v62 }
 0x5f7   : > { %v9806_v57 = vadd.s32 %v9805_v15, %v9684_v28  ;;  %v9843_v27 = vadd.s32 %v9842_v59, %v9685_v36  ;;  %v9880_v10 = vadd.s32 %v9879_v6, %v9686_v5  ;;  %v9917_v40 = vadd.s32 %v9916_v34, %v9687_v52  ;;  %v9251_v15 = vpop.permute.xlu1 %9250 }
 0x5f8   : > { %v9954_v51 = vadd.s32 %v9953_v22, %v9688_v14  ;;  %v9991_v1 = vadd.s32 %v9990_v50, %v9689_v48  ;;  %v10028_v26 = vadd.s32 %v10027_v55, %v9690_v21  ;;  %v10065_v13 = vadd.s32 %v10064_v7, %v9691_v53 }
 0x5f9   : > { %vm9436_vm15 = vcmp.eq.s32.totalorder %v9242_v54, %v14449_v9  ;;  %vm9437_vm3 = vcmp.eq.s32.totalorder %v9242_v54, %v14452_v35  ;;  %vm9438_vm0 = vcmp.eq.s32.totalorder %v9242_v54, %v14455_v24  ;;  %vm9439_vm9 = vcmp.eq.s32.totalorder %v9242_v54, %v14458_v17 }
 0x5fa   : > { %vm9440_vm11 = vcmp.eq.s32.totalorder %v9242_v54, %v14462_v12  ;;  %vm9441_vm14 = vcmp.eq.s32.totalorder %v9242_v54, %v14465_v41  ;;  %vm9442_vm5 = vcmp.eq.s32.totalorder %v9242_v54, %v14468_v56  ;;  %vm9443_vm6 = vcmp.eq.s32.totalorder %v9242_v54, %v14471_v63 }
 0x5fb   : > { %v9692_v28 = vsel %vm9436_vm15, 1, %v17416_v62  ;;  %v9693_v36 = vsel %vm9437_vm3, 1, %v17416_v62  ;;  %v9694_v5 = vsel %vm9438_vm0, 1, %v17416_v62  ;;  %v9695_v52 = vsel %vm9439_vm9, 1, %v17416_v62 }
 0x5fc   : > { %v9696_v14 = vsel %vm9440_vm11, 1, %v17416_v62  ;;  %v9697_v48 = vsel %vm9441_vm14, 1, %v17416_v62  ;;  %v9698_v21 = vsel %vm9442_vm5, 1, %v17416_v62  ;;  %v9699_v53 = vsel %vm9443_vm6, 1, %v17416_v62 }
 0x5fd   : > { %v9807_v59 = vadd.s32 %v9806_v57, %v9692_v28  ;;  %v9844_v6 = vadd.s32 %v9843_v27, %v9693_v36  ;;  %v9881_v34 = vadd.s32 %v9880_v10, %v9694_v5  ;;  %v9918_v22 = vadd.s32 %v9917_v40, %v9695_v52  ;;  %v9248_v28 = vpop.permute.xlu0 %9247 }
 0x5fe   : > { %v9955_v50 = vadd.s32 %v9954_v51, %v9696_v14  ;;  %v9992_v55 = vadd.s32 %v9991_v1, %v9697_v48  ;;  %v10029_v7 = vadd.s32 %v10028_v26, %v9698_v21  ;;  %v10066_v54 = vadd.s32 %v10065_v13, %v9699_v53 }
 0x5ff   : > { %vm9460_vm7 = vcmp.eq.s32.totalorder %v9251_v15, %v14449_v9  ;;  %vm9461_vm4 = vcmp.eq.s32.totalorder %v9251_v15, %v14452_v35  ;;  %vm9462_vm12 = vcmp.eq.s32.totalorder %v9251_v15, %v14455_v24  ;;  %vm9463_vm8 = vcmp.eq.s32.totalorder %v9251_v15, %v14458_v17 }
 0x600   : > { %vm9464_vm1 = vcmp.eq.s32.totalorder %v9251_v15, %v14462_v12  ;;  %vm9465_vm2 = vcmp.eq.s32.totalorder %v9251_v15, %v14465_v41  ;;  %vm9466_vm13 = vcmp.eq.s32.totalorder %v9251_v15, %v14468_v56  ;;  %vm9467_vm10 = vcmp.eq.s32.totalorder %v9251_v15, %v14471_v63 }
 0x601   : > { %v16892_v57 = vsel %vm9460_vm7, 1, %v17416_v62  ;;  %v16895_v27 = vsel %vm9461_vm4, 1, %v17416_v62  ;;  %v16898_v10 = vsel %vm9462_vm12, 1, %v17416_v62  ;;  %v16901_v40 = vsel %vm9463_vm8, 1, %v17416_v62 }
 0x602   : > { %v16904_v51 = vsel %vm9464_vm1, 1, %v17416_v62  ;;  %v16907_v1 = vsel %vm9465_vm2, 1, %v17416_v62  ;;  %v16910_v26 = vsel %vm9466_vm13, 1, %v17416_v62  ;;  %v16913_v13 = vsel %vm9467_vm10, 1, %v17416_v62 }
 0x603   : > { %v9808_v36 = vadd.s32 %v9807_v59, %v9700_v19  ;;  %v9845_v5 = vadd.s32 %v9844_v6, %v9701_v8  ;;  %v9882_v52 = vadd.s32 %v9881_v34, %v9702_v45  ;;  %v9919_v14 = vadd.s32 %v9918_v22, %v9703_v43  ;;  %v8316_v59 = vpop.permute.xlu1 %8315 }
 0x604   : > { %v9956_v48 = vadd.s32 %v9955_v50, %v9704_v25  ;;  %v9993_v21 = vadd.s32 %v9992_v55, %v9705_v47  ;;  %v10030_v53 = vadd.s32 %v10029_v7, %v9706_v60  ;;  %v10067_v15 = vadd.s32 %v10066_v54, %v9707_v49 }
 0x605   : > { %vm9452_vm15 = vcmp.eq.s32.totalorder %v9248_v28, %v14449_v9  ;;  %vm9453_vm3 = vcmp.eq.s32.totalorder %v9248_v28, %v14452_v35  ;;  %vm9454_vm0 = vcmp.eq.s32.totalorder %v9248_v28, %v14455_v24  ;;  %vm9455_vm9 = vcmp.eq.s32.totalorder %v9248_v28, %v14458_v17 }
 0x606   : > { %vm9456_vm11 = vcmp.eq.s32.totalorder %v9248_v28, %v14462_v12  ;;  %vm9457_vm14 = vcmp.eq.s32.totalorder %v9248_v28, %v14465_v41  ;;  %vm9458_vm5 = vcmp.eq.s32.totalorder %v9248_v28, %v14468_v56  ;;  %vm9459_vm6 = vcmp.eq.s32.totalorder %v9248_v28, %v14471_v63 }
 0x607   : > { %v9708_v19 = vsel %vm9452_vm15, 1, %v17416_v62  ;;  %v9709_v8 = vsel %vm9453_vm3, 1, %v17416_v62  ;;  %v9710_v45 = vsel %vm9454_vm0, 1, %v17416_v62  ;;  %v9711_v43 = vsel %vm9455_vm9, 1, %v17416_v62 }
 0x608   : > { %v9712_v25 = vsel %vm9456_vm11, 1, %v17416_v62  ;;  %v9713_v47 = vsel %vm9457_vm14, 1, %v17416_v62  ;;  %v9714_v60 = vsel %vm9458_vm5, 1, %v17416_v62  ;;  %v9715_v49 = vsel %vm9459_vm6, 1, %v17416_v62 }
 0x609   : > { %v9809_v6 = vadd.s32 %v9808_v36, %v9708_v19  ;;  %v9846_v34 = vadd.s32 %v9845_v5, %v9709_v8  ;;  %v9883_v22 = vadd.s32 %v9882_v52, %v9710_v45  ;;  %v9920_v50 = vadd.s32 %v9919_v14, %v9711_v43 }
 0x60a   : > { %v9957_v55 = vadd.s32 %v9956_v48, %v9712_v25  ;;  %v9994_v7 = vadd.s32 %v9993_v21, %v9713_v47  ;;  %v10031_v54 = vadd.s32 %v10030_v53, %v9714_v60  ;;  %v10068_v28 = vadd.s32 %v10067_v15, %v9715_v49 }
 0x60b   : > { %vm8540_vm7 = vcmp.eq.s32.totalorder %v8316_v59, %v14449_v9  ;;  %vm8541_vm4 = vcmp.eq.s32.totalorder %v8316_v59, %v14452_v35  ;;  %vm8542_vm12 = vcmp.eq.s32.totalorder %v8316_v59, %v14455_v24  ;;  %vm8543_vm8 = vcmp.eq.s32.totalorder %v8316_v59, %v14458_v17 }
 0x60c   : > { %vm8544_vm1 = vcmp.eq.s32.totalorder %v8316_v59, %v14462_v12  ;;  %vm8545_vm2 = vcmp.eq.s32.totalorder %v8316_v59, %v14465_v41  ;;  %vm8546_vm13 = vcmp.eq.s32.totalorder %v8316_v59, %v14468_v56  ;;  %vm8547_vm10 = vcmp.eq.s32.totalorder %v8316_v59, %v14471_v63 }
 0x60d   : > { %v8796_v36 = vsel %vm8540_vm7, 1, %v17416_v62  ;;  %v8797_v5 = vsel %vm8541_vm4, 1, %v17416_v62  ;;  %v8798_v52 = vsel %vm8542_vm12, 1, %v17416_v62  ;;  %v8799_v14 = vsel %vm8543_vm8, 1, %v17416_v62 }
 0x60e   : > { %v8800_v48 = vsel %vm8544_vm1, 1, %v17416_v62  ;;  %v8801_v21 = vsel %vm8545_vm2, 1, %v17416_v62  ;;  %v8802_v53 = vsel %vm8546_vm13, 1, %v17416_v62  ;;  %v8803_v15 = vsel %vm8547_vm10, 1, %v17416_v62 }
 0x60f   : > { %v8868_v19 = vadd.s32 %v16515_v23, %v16476_v44  ;;  %v8905_v8 = vadd.s32 %v16517_v33, %v16479_v38  ;;  %v8942_v45 = vadd.s32 %v16519_v32, %v16482_v39  ;;  %v8979_v43 = vadd.s32 %v16521_v30, %v16485_v46  ;;  %v9254_v30 = vpop.permute.xlu0 %9253 }
 0x610   : > { %v9016_v25 = vadd.s32 %v16523_v16, %v16488_v37  ;;  %v9053_v47 = vadd.s32 %v16525_v29, %v16491_v18  ;;  %v9090_v60 = vadd.s32 %v16527_v11, %v16494_v2  ;;  %v9127_v44 = vadd.s32 %v16529_v20, %v16497_v31 }
 0x611   : > { %v8869_v23 = vadd.s32 %v8868_v19, %v8796_v36  ;;  %v8906_v38 = vadd.s32 %v8905_v8, %v8797_v5  ;;  %v8943_v33 = vadd.s32 %v8942_v45, %v8798_v52  ;;  %v8980_v49 = vadd.s32 %v8979_v43, %v8799_v14 }
 0x612   : > { %v9017_v39 = vadd.s32 %v9016_v25, %v8800_v48  ;;  %v9054_v32 = vadd.s32 %v9053_v47, %v8801_v21  ;;  %v9091_v59 = vadd.s32 %v9090_v60, %v8802_v53  ;;  %v9128_v46 = vadd.s32 %v9127_v44, %v8803_v15 }
 0x613   : > { %v9810_v37 = vadd.s32 %v9809_v6, %v16892_v57  ;;  %v9847_v16 = vadd.s32 %v9846_v34, %v16895_v27  ;;  %v9884_v18 = vadd.s32 %v9883_v22, %v16898_v10  ;;  %v9921_v2 = vadd.s32 %v9920_v50, %v16901_v40  ;;  %v8319_v6 = vpop.permute.xlu1 %8318  ;;  %v9257_v8 = vpop.permute.xlu0 %9256 }
 0x614   : > { %v9958_v29 = vadd.s32 %v9957_v55, %v16904_v51  ;;  %v9995_v31 = vadd.s32 %v9994_v7, %v16907_v1  ;;  %v10032_v11 = vadd.s32 %v10031_v54, %v16910_v26  ;;  %v10069_v20 = vadd.s32 %v10068_v28, %v16913_v13 }
 0x615   : > { %vm9468_vm15 = vcmp.eq.s32.totalorder %v9254_v30, %v14449_v9  ;;  %vm9469_vm3 = vcmp.eq.s32.totalorder %v9254_v30, %v14452_v35  ;;  %vm9470_vm0 = vcmp.eq.s32.totalorder %v9254_v30, %v14455_v24  ;;  %vm9471_vm9 = vcmp.eq.s32.totalorder %v9254_v30, %v14458_v17 }
 0x616   : > { %vm9472_vm11 = vcmp.eq.s32.totalorder %v9254_v30, %v14462_v12  ;;  %vm9473_vm14 = vcmp.eq.s32.totalorder %v9254_v30, %v14465_v41  ;;  %vm9474_vm5 = vcmp.eq.s32.totalorder %v9254_v30, %v14468_v56  ;;  %vm9475_vm6 = vcmp.eq.s32.totalorder %v9254_v30, %v14471_v63 }
 0x617   : > { %v9724_v57 = vsel %vm9468_vm15, 1, %v17416_v62  ;;  %v9725_v27 = vsel %vm9469_vm3, 1, %v17416_v62  ;;  %v9726_v10 = vsel %vm9470_vm0, 1, %v17416_v62  ;;  %v9727_v40 = vsel %vm9471_vm9, 1, %v17416_v62 }
 0x618   : > { %v9728_v51 = vsel %vm9472_vm11, 1, %v17416_v62  ;;  %v9729_v1 = vsel %vm9473_vm14, 1, %v17416_v62  ;;  %v9730_v26 = vsel %vm9474_vm5, 1, %v17416_v62  ;;  %v9731_v13 = vsel %vm9475_vm6, 1, %v17416_v62 }
 0x619   : > { %v9811_v34 = vadd.s32 %v9810_v37, %v9724_v57  ;;  %v9848_v22 = vadd.s32 %v9847_v16, %v9725_v27  ;;  %v9885_v50 = vadd.s32 %v9884_v18, %v9726_v10  ;;  %v9922_v55 = vadd.s32 %v9921_v2, %v9727_v40  ;;  %v8322_v16 = vpop.permute.xlu1 %8321 }
 0x61a   : > { %v9959_v7 = vadd.s32 %v9958_v29, %v9728_v51  ;;  %v9996_v54 = vadd.s32 %v9995_v31, %v9729_v1  ;;  %v10033_v28 = vadd.s32 %v10032_v11, %v9730_v26  ;;  %v10070_v36 = vadd.s32 %v10069_v20, %v9731_v13 }
 0x61b   : > { %vm8548_vm7 = vcmp.eq.s32.totalorder %v8319_v6, %v14449_v9  ;;  %vm8549_vm4 = vcmp.eq.s32.totalorder %v8319_v6, %v14452_v35  ;;  %vm8550_vm12 = vcmp.eq.s32.totalorder %v8319_v6, %v14455_v24  ;;  %vm8551_vm8 = vcmp.eq.s32.totalorder %v8319_v6, %v14458_v17 }
 0x61c   : > { %vm8552_vm1 = vcmp.eq.s32.totalorder %v8319_v6, %v14462_v12  ;;  %vm8553_vm2 = vcmp.eq.s32.totalorder %v8319_v6, %v14465_v41  ;;  %vm8554_vm13 = vcmp.eq.s32.totalorder %v8319_v6, %v14468_v56  ;;  %vm8555_vm10 = vcmp.eq.s32.totalorder %v8319_v6, %v14471_v63 }
 0x61d   : > { %v8804_v5 = vsel %vm8548_vm7, 1, %v17416_v62  ;;  %v8805_v52 = vsel %vm8549_vm4, 1, %v17416_v62  ;;  %v8806_v14 = vsel %vm8550_vm12, 1, %v17416_v62  ;;  %v8807_v48 = vsel %vm8551_vm8, 1, %v17416_v62 }
 0x61e   : > { %v8808_v21 = vsel %vm8552_vm1, 1, %v17416_v62  ;;  %v8809_v53 = vsel %vm8553_vm2, 1, %v17416_v62  ;;  %v8810_v15 = vsel %vm8554_vm13, 1, %v17416_v62  ;;  %v8811_v19 = vsel %vm8555_vm10, 1, %v17416_v62 }
 0x61f   : > { %v8870_v45 = vadd.s32 %v8869_v23, %v8804_v5  ;;  %v8907_v43 = vadd.s32 %v8906_v38, %v8805_v52  ;;  %v8944_v25 = vadd.s32 %v8943_v33, %v8806_v14  ;;  %v8981_v47 = vadd.s32 %v8980_v49, %v8807_v48 }
 0x620   : > { %v9018_v60 = vadd.s32 %v9017_v39, %v8808_v21  ;;  %v9055_v44 = vadd.s32 %v9054_v32, %v8809_v53  ;;  %v9092_v30 = vadd.s32 %v9091_v59, %v8810_v15  ;;  %v9129_v37 = vadd.s32 %v9128_v46, %v8811_v19 }
 0x621   : > { %vm9476_vm15 = vcmp.eq.s32.totalorder %v9257_v8, %v14449_v9  ;;  %vm9477_vm3 = vcmp.eq.s32.totalorder %v9257_v8, %v14452_v35  ;;  %vm9478_vm0 = vcmp.eq.s32.totalorder %v9257_v8, %v14455_v24  ;;  %vm9479_vm9 = vcmp.eq.s32.totalorder %v9257_v8, %v14458_v17 }
 0x622   : > { %vm9480_vm11 = vcmp.eq.s32.totalorder %v9257_v8, %v14462_v12  ;;  %vm9481_vm14 = vcmp.eq.s32.totalorder %v9257_v8, %v14465_v41  ;;  %vm9482_vm5 = vcmp.eq.s32.totalorder %v9257_v8, %v14468_v56  ;;  %vm9483_vm6 = vcmp.eq.s32.totalorder %v9257_v8, %v14471_v63 }
 0x623   : > { %v9732_v23 = vsel %vm9476_vm15, 1, %v17416_v62  ;;  %v9733_v38 = vsel %vm9477_vm3, 1, %v17416_v62  ;;  %v9734_v33 = vsel %vm9478_vm0, 1, %v17416_v62  ;;  %v9735_v49 = vsel %vm9479_vm9, 1, %v17416_v62 }
 0x624   : > { %v9736_v39 = vsel %vm9480_vm11, 1, %v17416_v62  ;;  %v9737_v32 = vsel %vm9481_vm14, 1, %v17416_v62  ;;  %v9738_v59 = vsel %vm9482_vm5, 1, %v17416_v62  ;;  %v9739_v46 = vsel %vm9483_vm6, 1, %v17416_v62 }
 0x625   : > { %v9812_v18 = vadd.s32 %v9811_v34, %v9732_v23  ;;  %v9849_v2 = vadd.s32 %v9848_v22, %v9733_v38  ;;  %v9886_v29 = vadd.s32 %v9885_v50, %v9734_v33  ;;  %v9923_v31 = vadd.s32 %v9922_v55, %v9735_v49  ;;  %v9260_v22 = vpop.permute.xlu0 %9259 }
 0x626   : > { %v9960_v11 = vadd.s32 %v9959_v7, %v9736_v39  ;;  %v9997_v20 = vadd.s32 %v9996_v54, %v9737_v32  ;;  %v10034_v57 = vadd.s32 %v10033_v28, %v9738_v59  ;;  %v10071_v27 = vadd.s32 %v10070_v36, %v9739_v46 }
 0x627   : > { %vm8556_vm7 = vcmp.eq.s32.totalorder %v8322_v16, %v14449_v9  ;;  %vm8557_vm4 = vcmp.eq.s32.totalorder %v8322_v16, %v14452_v35  ;;  %vm8558_vm12 = vcmp.eq.s32.totalorder %v8322_v16, %v14455_v24  ;;  %vm8559_vm8 = vcmp.eq.s32.totalorder %v8322_v16, %v14458_v17 }
 0x628   : > { %vm8560_vm1 = vcmp.eq.s32.totalorder %v8322_v16, %v14462_v12  ;;  %vm8561_vm2 = vcmp.eq.s32.totalorder %v8322_v16, %v14465_v41  ;;  %vm8562_vm13 = vcmp.eq.s32.totalorder %v8322_v16, %v14468_v56  ;;  %vm8563_vm10 = vcmp.eq.s32.totalorder %v8322_v16, %v14471_v63 }
 0x629   : > { %v8812_v10 = vsel %vm8556_vm7, 1, %v17416_v62  ;;  %v8813_v40 = vsel %vm8557_vm4, 1, %v17416_v62  ;;  %v8814_v51 = vsel %vm8558_vm12, 1, %v17416_v62  ;;  %v8815_v1 = vsel %vm8559_vm8, 1, %v17416_v62 }
 0x62a   : > { %v8816_v26 = vsel %vm8560_vm1, 1, %v17416_v62  ;;  %v8817_v13 = vsel %vm8561_vm2, 1, %v17416_v62  ;;  %v8818_v6 = vsel %vm8562_vm13, 1, %v17416_v62  ;;  %v8819_v34 = vsel %vm8563_vm10, 1, %v17416_v62 }
 0x62b   : > { %v8871_v50 = vadd.s32 %v8870_v45, %v8812_v10  ;;  %v8908_v55 = vadd.s32 %v8907_v43, %v8813_v40  ;;  %v8945_v7 = vadd.s32 %v8944_v25, %v8814_v51  ;;  %v8982_v54 = vadd.s32 %v8981_v47, %v8815_v1  ;;  %v8325_v43 = vpop.permute.xlu1 %8324 }
 0x62c   : > { %v9019_v28 = vadd.s32 %v9018_v60, %v8816_v26  ;;  %v9056_v36 = vadd.s32 %v9055_v44, %v8817_v13  ;;  %v9093_v5 = vadd.s32 %v9092_v30, %v8818_v6  ;;  %v9130_v52 = vadd.s32 %v9129_v37, %v8819_v34 }
 0x62d   : > { %vm9484_vm15 = vcmp.eq.s32.totalorder %v9260_v22, %v14449_v9  ;;  %vm9485_vm3 = vcmp.eq.s32.totalorder %v9260_v22, %v14452_v35  ;;  %vm9486_vm0 = vcmp.eq.s32.totalorder %v9260_v22, %v14455_v24  ;;  %vm9487_vm9 = vcmp.eq.s32.totalorder %v9260_v22, %v14458_v17 }
 0x62e   : > { %vm9488_vm11 = vcmp.eq.s32.totalorder %v9260_v22, %v14462_v12  ;;  %vm9489_vm14 = vcmp.eq.s32.totalorder %v9260_v22, %v14465_v41  ;;  %vm9490_vm5 = vcmp.eq.s32.totalorder %v9260_v22, %v14468_v56  ;;  %vm9491_vm6 = vcmp.eq.s32.totalorder %v9260_v22, %v14471_v63 }
 0x62f   : > { %v9740_v14 = vsel %vm9484_vm15, 1, %v17416_v62  ;;  %v9741_v48 = vsel %vm9485_vm3, 1, %v17416_v62  ;;  %v9742_v21 = vsel %vm9486_vm0, 1, %v17416_v62  ;;  %v9743_v53 = vsel %vm9487_vm9, 1, %v17416_v62 }
 0x630   : > { %v9744_v15 = vsel %vm9488_vm11, 1, %v17416_v62  ;;  %v9745_v19 = vsel %vm9489_vm14, 1, %v17416_v62  ;;  %v9746_v8 = vsel %vm9490_vm5, 1, %v17416_v62  ;;  %v9747_v45 = vsel %vm9491_vm6, 1, %v17416_v62 }
 0x631   : > { %v9813_v25 = vadd.s32 %v9812_v18, %v9740_v14  ;;  %v9850_v47 = vadd.s32 %v9849_v2, %v9741_v48  ;;  %v9887_v60 = vadd.s32 %v9886_v29, %v9742_v21  ;;  %v9924_v44 = vadd.s32 %v9923_v31, %v9743_v53  ;;  %v9263_v2 = vpop.permute.xlu0 %9262 }
 0x632   : > { %v9961_v30 = vadd.s32 %v9960_v11, %v9744_v15  ;;  %v9998_v37 = vadd.s32 %v9997_v20, %v9745_v19  ;;  %v10035_v23 = vadd.s32 %v10034_v57, %v9746_v8  ;;  %v10072_v38 = vadd.s32 %v10071_v27, %v9747_v45 }
 0x633   : > { %vm8564_vm7 = vcmp.eq.s32.totalorder %v8325_v43, %v14449_v9  ;;  %vm8565_vm4 = vcmp.eq.s32.totalorder %v8325_v43, %v14452_v35  ;;  %vm8566_vm12 = vcmp.eq.s32.totalorder %v8325_v43, %v14455_v24  ;;  %vm8567_vm8 = vcmp.eq.s32.totalorder %v8325_v43, %v14458_v17 }
 0x634   : > { %vm8568_vm1 = vcmp.eq.s32.totalorder %v8325_v43, %v14462_v12  ;;  %vm8569_vm2 = vcmp.eq.s32.totalorder %v8325_v43, %v14465_v41  ;;  %vm8570_vm13 = vcmp.eq.s32.totalorder %v8325_v43, %v14468_v56  ;;  %vm8571_vm10 = vcmp.eq.s32.totalorder %v8325_v43, %v14471_v63 }
 0x635   : > { %v8820_v33 = vsel %vm8564_vm7, 1, %v17416_v62  ;;  %v8821_v49 = vsel %vm8565_vm4, 1, %v17416_v62  ;;  %v8822_v39 = vsel %vm8566_vm12, 1, %v17416_v62  ;;  %v8823_v32 = vsel %vm8567_vm8, 1, %v17416_v62 }
 0x636   : > { %v8824_v59 = vsel %vm8568_vm1, 1, %v17416_v62  ;;  %v8825_v46 = vsel %vm8569_vm2, 1, %v17416_v62  ;;  %v8826_v16 = vsel %vm8570_vm13, 1, %v17416_v62  ;;  %v8827_v18 = vsel %vm8571_vm10, 1, %v17416_v62 }
 0x637   : > { %v8872_v29 = vadd.s32 %v8871_v50, %v8820_v33  ;;  %v8909_v31 = vadd.s32 %v8908_v55, %v8821_v49  ;;  %v8946_v11 = vadd.s32 %v8945_v7, %v8822_v39  ;;  %v8983_v20 = vadd.s32 %v8982_v54, %v8823_v32  ;;  %v8328_v55 = vpop.permute.xlu1 %8327 }
 0x638   : > { %v9020_v57 = vadd.s32 %v9019_v28, %v8824_v59  ;;  %v9057_v27 = vadd.s32 %v9056_v36, %v8825_v46  ;;  %v9094_v10 = vadd.s32 %v9093_v5, %v8826_v16  ;;  %v9131_v40 = vadd.s32 %v9130_v52, %v8827_v18 }
 0x639   : > { %vm9492_vm15 = vcmp.eq.s32.totalorder %v9263_v2, %v14449_v9  ;;  %vm9493_vm3 = vcmp.eq.s32.totalorder %v9263_v2, %v14452_v35  ;;  %vm9494_vm0 = vcmp.eq.s32.totalorder %v9263_v2, %v14455_v24  ;;  %vm9495_vm9 = vcmp.eq.s32.totalorder %v9263_v2, %v14458_v17 }
 0x63a   : > { %vm9496_vm11 = vcmp.eq.s32.totalorder %v9263_v2, %v14462_v12  ;;  %vm9497_vm14 = vcmp.eq.s32.totalorder %v9263_v2, %v14465_v41  ;;  %vm9498_vm5 = vcmp.eq.s32.totalorder %v9263_v2, %v14468_v56  ;;  %vm9499_vm6 = vcmp.eq.s32.totalorder %v9263_v2, %v14471_v63 }
 0x63b   : > { %v9748_v51 = vsel %vm9492_vm15, 1, %v17416_v62  ;;  %v9749_v1 = vsel %vm9493_vm3, 1, %v17416_v62  ;;  %v9750_v26 = vsel %vm9494_vm0, 1, %v17416_v62  ;;  %v9751_v13 = vsel %vm9495_vm9, 1, %v17416_v62  ;;  %v8331_v39 = vpop.permute.xlu1 %8330 }
 0x63c   : > { %v9752_v6 = vsel %vm9496_vm11, 1, %v17416_v62  ;;  %v9753_v34 = vsel %vm9497_vm14, 1, %v17416_v62  ;;  %v9754_v22 = vsel %vm9498_vm5, 1, %v17416_v62  ;;  %v9755_v50 = vsel %vm9499_vm6, 1, %v17416_v62 }
 0x63d   : > { %v17083_v7 = vadd.s32 %v9813_v25, %v9748_v51  ;;  %v17085_v54 = vadd.s32 %v9850_v47, %v9749_v1  ;;  %v17087_v28 = vadd.s32 %v9887_v60, %v9750_v26  ;;  %v17089_v36 = vadd.s32 %v9924_v44, %v9751_v13  ;;  %v9266_v47 = vpop.permute.xlu0 %9265 }
 0x63e   : > { %v17091_v5 = vadd.s32 %v9961_v30, %v9752_v6  ;;  %v17093_v52 = vadd.s32 %v9998_v37, %v9753_v34  ;;  %v17095_v14 = vadd.s32 %v10035_v23, %v9754_v22  ;;  %v17097_v48 = vadd.s32 %v10072_v38, %v9755_v50 }
 0x63f   : > { %vm8572_vm7 = vcmp.eq.s32.totalorder %v8328_v55, %v14449_v9  ;;  %vm8573_vm4 = vcmp.eq.s32.totalorder %v8328_v55, %v14452_v35  ;;  %vm8574_vm12 = vcmp.eq.s32.totalorder %v8328_v55, %v14455_v24  ;;  %vm8575_vm8 = vcmp.eq.s32.totalorder %v8328_v55, %v14458_v17 }
 0x640   : > { %17603 = vst [vmem:[#allocation47_spill] sm:$0xff] %v17097_v48  ;;  %vm8576_vm1 = vcmp.eq.s32.totalorder %v8328_v55, %v14462_v12  ;;  %vm8577_vm2 = vcmp.eq.s32.totalorder %v8328_v55, %v14465_v41  ;;  %vm8578_vm13 = vcmp.eq.s32.totalorder %v8328_v55, %v14468_v56  ;;  %vm8579_vm10 = vcmp.eq.s32.totalorder %v8328_v55, %v14471_v63 }
 0x641   : > { %v8828_v21 = vsel %vm8572_vm7, 1, %v17416_v62  ;;  %v8829_v53 = vsel %vm8573_vm4, 1, %v17416_v62  ;;  %v8830_v15 = vsel %vm8574_vm12, 1, %v17416_v62  ;;  %v8831_v19 = vsel %vm8575_vm8, 1, %v17416_v62 }
 0x642   : > { %v8832_v8 = vsel %vm8576_vm1, 1, %v17416_v62  ;;  %v8833_v45 = vsel %vm8577_vm2, 1, %v17416_v62  ;;  %v8834_v43 = vsel %vm8578_vm13, 1, %v17416_v62  ;;  %v8835_v25 = vsel %vm8579_vm10, 1, %v17416_v62 }
 0x643   : > { %v8873_v60 = vadd.s32 %v8872_v29, %v8828_v21  ;;  %v8910_v44 = vadd.s32 %v8909_v31, %v8829_v53  ;;  %v8947_v30 = vadd.s32 %v8946_v11, %v8830_v15  ;;  %v8984_v37 = vadd.s32 %v8983_v20, %v8831_v19 }
 0x644   : > { %v9021_v23 = vadd.s32 %v9020_v57, %v8832_v8  ;;  %v9058_v38 = vadd.s32 %v9057_v27, %v8833_v45  ;;  %v9095_v33 = vadd.s32 %v9094_v10, %v8834_v43  ;;  %v9132_v49 = vadd.s32 %v9131_v40, %v8835_v25 }
 0x645   : > { %vm9500_vm15 = vcmp.eq.s32.totalorder %v9266_v47, %v14449_v9  ;;  %vm9501_vm3 = vcmp.eq.s32.totalorder %v9266_v47, %v14452_v35  ;;  %vm9502_vm0 = vcmp.eq.s32.totalorder %v9266_v47, %v14455_v24  ;;  %vm9503_vm9 = vcmp.eq.s32.totalorder %v9266_v47, %v14458_v17 }
 0x646   : > { %vm9504_vm11 = vcmp.eq.s32.totalorder %v9266_v47, %v14462_v12  ;;  %vm9505_vm14 = vcmp.eq.s32.totalorder %v9266_v47, %v14465_v41  ;;  %vm9506_vm5 = vcmp.eq.s32.totalorder %v9266_v47, %v14468_v56  ;;  %vm9507_vm6 = vcmp.eq.s32.totalorder %v9266_v47, %v14471_v63 }
 0x647   : > { %v17124_v32 = vsel %vm9500_vm15, 1, %v17416_v62  ;;  %v17127_v59 = vsel %vm9501_vm3, 1, %v17416_v62  ;;  %v17130_v46 = vsel %vm9502_vm0, 1, %v17416_v62  ;;  %v17133_v16 = vsel %vm9503_vm9, 1, %v17416_v62 }
 0x648   : > { %v17136_v18 = vsel %vm9504_vm11, 1, %v17416_v62  ;;  %v17139_v2 = vsel %vm9505_vm14, 1, %v17416_v62  ;;  %v17142_v29 = vsel %vm9506_vm5, 1, %v17416_v62  ;;  %v17145_v31 = vsel %vm9507_vm6, 1, %v17416_v62 }
 0x649   : > { %17604 = vst [vmem:[#allocation48_spill] sm:$0xff] %v17145_v31  ;;  %vm8580_vm7 = vcmp.eq.s32.totalorder %v8331_v39, %v14449_v9  ;;  %vm8581_vm4 = vcmp.eq.s32.totalorder %v8331_v39, %v14452_v35  ;;  %vm8582_vm12 = vcmp.eq.s32.totalorder %v8331_v39, %v14455_v24  ;;  %vm8583_vm8 = vcmp.eq.s32.totalorder %v8331_v39, %v14458_v17 }
 0x64a   : > { %vm8584_vm1 = vcmp.eq.s32.totalorder %v8331_v39, %v14462_v12  ;;  %vm8585_vm2 = vcmp.eq.s32.totalorder %v8331_v39, %v14465_v41  ;;  %vm8586_vm13 = vcmp.eq.s32.totalorder %v8331_v39, %v14468_v56  ;;  %vm8587_vm10 = vcmp.eq.s32.totalorder %v8331_v39, %v14471_v63 }
 0x64b   : > { %v8836_v11 = vsel %vm8580_vm7, 1, %v17416_v62  ;;  %v8837_v20 = vsel %vm8581_vm4, 1, %v17416_v62  ;;  %v8838_v57 = vsel %vm8582_vm12, 1, %v17416_v62  ;;  %v8839_v27 = vsel %vm8583_vm8, 1, %v17416_v62 }
 0x64c   : > { %v8840_v10 = vsel %vm8584_vm1, 1, %v17416_v62  ;;  %v8841_v40 = vsel %vm8585_vm2, 1, %v17416_v62  ;;  %v8842_v51 = vsel %vm8586_vm13, 1, %v17416_v62  ;;  %v8843_v1 = vsel %vm8587_vm10, 1, %v17416_v62 }
 0x64d   : > { %v8874_v26 = vadd.s32 %v8873_v60, %v8836_v11  ;;  %v8911_v13 = vadd.s32 %v8910_v44, %v8837_v20  ;;  %v8948_v6 = vadd.s32 %v8947_v30, %v8838_v57  ;;  %v8985_v34 = vadd.s32 %v8984_v37, %v8839_v27 }
 0x64e   : > { %v9022_v22 = vadd.s32 %v9021_v23, %v8840_v10  ;;  %v9059_v50 = vadd.s32 %v9058_v38, %v8841_v40  ;;  %v9096_v55 = vadd.s32 %v9095_v33, %v8842_v51  ;;  %v9133_v21 = vadd.s32 %v9132_v49, %v8843_v1 }
 0x64f   : > { %v8875_v53 = vrot.slane %v8874_v26, 4  ;;  %v8912_v15 = vrot.slane %v8911_v13, 4  ;;  %v8949_v19 = vrot.slane %v8948_v6, 4  ;;  %v8986_v8 = vrot.slane %v8985_v34, 4 }
 0x650   : > { %v9023_v45 = vrot.slane %v9022_v22, 4  ;;  %v9060_v43 = vrot.slane %v9059_v50, 4  ;;  %v9097_v25 = vrot.slane %v9096_v55, 4  ;;  %v9134_v47 = vrot.slane %v9133_v21, 4 }
 0x651   : > { %v8876_v39 = vadd.s32 %v8875_v53, %v8874_v26  ;;  %v8913_v48 = vadd.s32 %v8912_v15, %v8911_v13  ;;  %v8950_v31 = vadd.s32 %v8949_v19, %v8948_v6  ;;  %v8987_v62 = vadd.s32 %v8986_v8, %v8985_v34 }
 0x652   : > { %v9024_v60 = vadd.s32 %v9023_v45, %v9022_v22  ;;  %v9061_v44 = vadd.s32 %v9060_v43, %v9059_v50  ;;  %v9098_v30 = vadd.s32 %v9097_v25, %v9096_v55  ;;  %v9135_v37 = vadd.s32 %v9134_v47, %v9133_v21  ;;  %v9269_v45 = vpop.permute.xlu0 %9268 }
 0x653   : > { %v8877_v23 = vrot.slane %v8876_v39, 2  ;;  %v8914_v38 = vrot.slane %v8913_v48, 2  ;;  %v8951_v33 = vrot.slane %v8950_v31, 2  ;;  %v8988_v49 = vrot.slane %v8987_v62, 2 }
 0x654   : > { %v9025_v11 = vrot.slane %v9024_v60, 2  ;;  %v9062_v20 = vrot.slane %v9061_v44, 2  ;;  %v9099_v57 = vrot.slane %v9098_v30, 2  ;;  %v9136_v27 = vrot.slane %v9135_v37, 2 }
 0x655   : > { %v8878_v10 = vadd.s32 %v8877_v23, %v8876_v39  ;;  %v8915_v40 = vadd.s32 %v8914_v38, %v8913_v48  ;;  %v8952_v51 = vadd.s32 %v8951_v33, %v8950_v31  ;;  %v8989_v1 = vadd.s32 %v8988_v49, %v8987_v62 }
 0x656   : > { %v9026_v26 = vadd.s32 %v9025_v11, %v9024_v60  ;;  %v9063_v13 = vadd.s32 %v9062_v20, %v9061_v44  ;;  %v9100_v6 = vadd.s32 %v9099_v57, %v9098_v30  ;;  %v9137_v34 = vadd.s32 %v9136_v27, %v9135_v37  ;;  %v9275_v44 = vpop.permute.xlu1 %9274 }
 0x657   : > { %v8879_v22 = vrot.slane %v8878_v10, 1  ;;  %v8916_v50 = vrot.slane %v8915_v40, 1  ;;  %v8953_v55 = vrot.slane %v8952_v51, 1  ;;  %v8990_v21 = vrot.slane %v8989_v1, 1 }
 0x658   : > { %v9027_v53 = vrot.slane %v9026_v26, 1  ;;  %v9064_v15 = vrot.slane %v9063_v13, 1  ;;  %v9101_v19 = vrot.slane %v9100_v6, 1  ;;  %v9138_v8 = vrot.slane %v9137_v34, 1 }
 0x659   : > { %v8880_v43 = vadd.s32 %v8879_v22, %v8878_v10  ;;  %v8917_v25 = vadd.s32 %v8916_v50, %v8915_v40  ;;  %v8954_v47 = vadd.s32 %v8953_v55, %v8952_v51  ;;  %v8991_v39 = vadd.s32 %v8990_v21, %v8989_v1  ;;  %v17606_v51 = vld [vmem:[#allocation37_spill] sm:$0xff]  ;;  %v17607_v1 = vld [vmem:[#allocation42_spill] sm:$0xff]  ;;  %v17610_v22 = vld [vmem:[#allocation39_spill] sm:$0xff] }
 0x65a   : > { %v9028_v48 = vadd.s32 %v9027_v53, %v9026_v26  ;;  %v9065_v31 = vadd.s32 %v9064_v15, %v9063_v13  ;;  %v9102_v62 = vadd.s32 %v9101_v19, %v9100_v6  ;;  %v9139_v60 = vadd.s32 %v9138_v8, %v9137_v34  ;;  %v17608_v13 = vld [vmem:[#allocation38_spill] sm:$0xff]  ;;  %v17609_v6 = vld [vmem:[#allocation43_spill] sm:$0xff]  ;;  %v17611_v50 = vld [vmem:[#allocation44_spill] sm:$0xff] }
 0x65b   : > { %vm9508_vm15 = vcmp.eq.s32.totalorder %v9269_v45, %v14449_v9  ;;  %vm9509_vm3 = vcmp.eq.s32.totalorder %v9269_v45, %v14452_v35  ;;  %vm9510_vm0 = vcmp.eq.s32.totalorder %v9269_v45, %v14455_v24  ;;  %vm9511_vm9 = vcmp.eq.s32.totalorder %v9269_v45, %v14458_v17  ;;  %v17612_v21 = vld [vmem:[#allocation40_spill] sm:$0xff]  ;;  %v17613_v53 = vld [vmem:[#allocation45_spill] sm:$0xff] }
 0x65c   : > { %vm9512_vm11 = vcmp.eq.s32.totalorder %v9269_v45, %v14462_v12  ;;  %vm9513_vm14 = vcmp.eq.s32.totalorder %v9269_v45, %v14465_v41  ;;  %vm9514_vm5 = vcmp.eq.s32.totalorder %v9269_v45, %v14468_v56  ;;  %vm9515_vm6 = vcmp.eq.s32.totalorder %v9269_v45, %v14471_v63  ;;  %v17614_v19 = vld [vmem:[#allocation41_spill] sm:$0xff] }
 0x65d   : > { %vm9524_vm7 = vcmp.eq.s32.totalorder %v9275_v44, %v14449_v9  ;;  %vm9525_vm4 = vcmp.eq.s32.totalorder %v9275_v44, %v14452_v35  ;;  %vm9526_vm12 = vcmp.eq.s32.totalorder %v9275_v44, %v14455_v24  ;;  %vm9527_vm8 = vcmp.eq.s32.totalorder %v9275_v44, %v14458_v17 }
 0x65e   : > { %vm9528_vm1 = vcmp.eq.s32.totalorder %v9275_v44, %v14462_v12  ;;  %vm9529_vm2 = vcmp.eq.s32.totalorder %v9275_v44, %v14465_v41  ;;  %vm9530_vm13 = vcmp.eq.s32.totalorder %v9275_v44, %v14468_v56  ;;  %vm9531_vm10 = vcmp.eq.s32.totalorder %v9275_v44, %v14471_v63 }
 0x65f   : > { %v17605_v30 = vmov 0   ;;  %v8196_v27 = vadd.s32 %v16067_v0, %v15431_v4  ;;  %v8197_v10 = vadd.s32 %v16069_v42, %v15433_v3  ;;  %v8198_v40 = vadd.s32 %v16071_v58, %v15435_v61  ;;  %v17615_v4 = vld [vmem:[#allocation46_spill] sm:$0xff] }
 0x660   : > { %v17180_v37 = vsel %vm9524_vm7, 1, %v17605_v30  ;;  %v17183_v23 = vsel %vm9525_vm4, 1, %v17605_v30  ;;  %v17186_v38 = vsel %vm9526_vm12, 1, %v17605_v30  ;;  %v17189_v33 = vsel %vm9527_vm8, 1, %v17605_v30 }
 0x661   : > { %v17192_v49 = vsel %vm9528_vm1, 1, %v17605_v30  ;;  %v17195_v11 = vsel %vm9529_vm2, 1, %v17605_v30  ;;  %v17198_v20 = vsel %vm9530_vm13, 1, %v17605_v30  ;;  %v17201_v57 = vsel %vm9531_vm10, 1, %v17605_v30 }
 0x662   : > { %v8199_v26 = vadd.s32 %v17607_v1, %v17606_v51  ;;  %v8200_v34 = vadd.s32 %v17609_v6, %v17608_v13  ;;  %v8201_v55 = vadd.s32 %v17611_v50, %v17610_v22  ;;  %v8202_v15 = vadd.s32 %v17613_v53, %v17612_v21  ;;  %v9272_v22 = vpop.permute.xlu0 %9271 }
 0x663   : > { %v8203_v0 = vadd.s32 %v17615_v4, %v17614_v19  ;;  %v17219_v8 = vadd.s32 %v8880_v43, %v8196_v27  ;;  %v17221_v3 = vadd.s32 %v8917_v25, %v8197_v10  ;;  %v17223_v61 = vadd.s32 %v8954_v47, %v8198_v40 }
 0x664   : > { %v17225_v42 = vadd.s32 %v8991_v39, %v8199_v26  ;;  %v17227_v58 = vadd.s32 %v9028_v48, %v8200_v34  ;;  %v17229_v44 = vadd.s32 %v9065_v31, %v8201_v55  ;;  %v17231_v51 = vadd.s32 %v9102_v62, %v8202_v15  ;;  %v17616_v34 = vld [vmem:[#allocation48_spill] sm:$0xff] }
 0x665   : > { %v17233_v1 = vadd.s32 %v9139_v60, %v8203_v0  ;;  %v9764_v13 = vsel %vm9508_vm15, 1, %v17605_v30  ;;  %v9765_v43 = vsel %vm9509_vm3, 1, %v17605_v30  ;;  %v9766_v25 = vsel %vm9510_vm0, 1, %v17605_v30 }
 0x666   : > { %v9767_v47 = vsel %vm9511_vm9, 1, %v17605_v30  ;;  %v9768_v39 = vsel %vm9512_vm11, 1, %v17605_v30  ;;  %v9769_v48 = vsel %vm9513_vm14, 1, %v17605_v30  ;;  %v9770_v31 = vsel %vm9514_vm5, 1, %v17605_v30 }
 0x667   : > { %v9771_v62 = vsel %vm9515_vm6, 1, %v17605_v30  ;;  %v9815_v60 = vadd.s32 %v17083_v7, %v17124_v32  ;;  %v9852_v27 = vadd.s32 %v17085_v54, %v17127_v59  ;;  %v9889_v10 = vadd.s32 %v17087_v28, %v17130_v46  ;;  %v17617_v7 = vld [vmem:[#allocation47_spill] sm:$0xff] }
 0x668   : > { %v9926_v40 = vadd.s32 %v17089_v36, %v17133_v16  ;;  %v9963_v26 = vadd.s32 %v17091_v5, %v17136_v18  ;;  %v10000_v6 = vadd.s32 %v17093_v52, %v17139_v2  ;;  %v10037_v45 = vadd.s32 %v17095_v14, %v17142_v29  ;;  %v17618_v29 = vld [vmem:[#allocation36_spill] sm:$0xff] }
 0x669   : > { %v10074_v32 = vadd.s32 %v17617_v7, %v17616_v34  ;;  %v9816_v54 = vadd.s32 %v9815_v60, %v9764_v13  ;;  %v9853_v59 = vadd.s32 %v9852_v27, %v9765_v43  ;;  %v9890_v50 = vadd.s32 %v9889_v10, %v9766_v25 }
 0x66a   : > { %v9927_v28 = vadd.s32 %v9926_v40, %v9767_v47  ;;  %v9964_v46 = vadd.s32 %v9963_v26, %v9768_v39  ;;  %v10001_v55 = vadd.s32 %v10000_v6, %v9769_v48  ;;  %v10038_v36 = vadd.s32 %v10037_v45, %v9770_v31 }
 0x66b   : > { %v10075_v16 = vadd.s32 %v10074_v32, %v9771_v62  ;;  %vm9516_vm15 = vcmp.eq.s32.totalorder %v9272_v22, %v14449_v9  ;;  %vm9517_vm3 = vcmp.eq.s32.totalorder %v9272_v22, %v14452_v35  ;;  %vm9518_vm0 = vcmp.eq.s32.totalorder %v9272_v22, %v14455_v24 }
 0x66c   : > { %v10320_v5 = vmov 1966171168   ;;  %vm9519_vm9 = vcmp.eq.s32.totalorder %v9272_v22, %v14458_v17  ;;  %vm9520_vm11 = vcmp.eq.s32.totalorder %v9272_v22, %v14462_v12  ;;  %vm9521_vm14 = vcmp.eq.s32.totalorder %v9272_v22, %v14465_v41 }
 0x66d   : > { %v10097_v52 = vunpack.c.l.s4 %v10320_v5  ;;  %vm9522_vm5 = vcmp.eq.s32.totalorder %v9272_v22, %v14468_v56  ;;  %vm9523_vm6 = vcmp.eq.s32.totalorder %v9272_v22, %v14471_v63  ;;  %v9772_v14 = vsel %vm9516_vm15, 1, %v17605_v30 }
 0x66e   : > { %v9773_v9 = vsel %vm9517_vm3, 1, %v17605_v30  ;;  %v9774_v35 = vsel %vm9518_vm0, 1, %v17605_v30  ;;  %v9775_v24 = vsel %vm9519_vm9, 1, %v17605_v30  ;;  %v9776_v2 = vsel %vm9520_vm11, 1, %v17605_v30 }
 0x66f   : > { %v10098_v18 = vunpack.c.0.s8 %v10097_v52  ;;  %v9777_v17 = vsel %vm9521_vm14, 1, %v17605_v30  ;;  %v9778_v12 = vsel %vm9522_vm5, 1, %v17605_v30  ;;  %v9779_v41 = vsel %vm9523_vm6, 1, %v17605_v30 }
 0x670   : > { %v9817_v56 = vadd.s32 %v9816_v54, %v9772_v14  ;;  %v9854_v21 = vadd.s32 %v9853_v59, %v9773_v9  ;;  %v9891_v53 = vadd.s32 %v9890_v50, %v9774_v35  ;;  %v9928_v15 = vadd.s32 %v9927_v28, %v9775_v24 }
 0x671   : > { %v17292_v63 = vsub.s32 %v10098_v18, %v17618_v29  ;;  %v9965_v4 = vadd.s32 %v9964_v46, %v9776_v2  ;;  %v10002_v0 = vadd.s32 %v10001_v55, %v9777_v17  ;;  %v10039_v13 = vadd.s32 %v10038_v36, %v9778_v12 }
 0x672   : > { %v9818_v19 = vadd.s32 %v9817_v56, %v17180_v37  ;;  %v9855_v43 = vadd.s32 %v9854_v21, %v17183_v23  ;;  %v9892_v25 = vadd.s32 %v9891_v53, %v17186_v38  ;;  %v9929_v47 = vadd.s32 %v9928_v15, %v17189_v33 }
 0x673   : > { %v10076_v39 = vadd.s32 %v10075_v16, %v9779_v41  ;;  %v9966_v48 = vadd.s32 %v9965_v4, %v17192_v49  ;;  %v10003_v31 = vadd.s32 %v10002_v0, %v17195_v11  ;;  %v10040_v62 = vadd.s32 %v10039_v13, %v17198_v20 }
 0x674   : > { %v9819_v30 = vrot.slane %v9818_v19, 4  ;;  %v9856_v60 = vrot.slane %v9855_v43, 4  ;;  %v9893_v27 = vrot.slane %v9892_v25, 4  ;;  %v9930_v37 = vrot.slane %v9929_v47, 4 }
 0x675   : > { %v10077_v10 = vadd.s32 %v10076_v39, %v17201_v57  ;;  %v9967_v26 = vrot.slane %v9966_v48, 4  ;;  %v10004_v23 = vrot.slane %v10003_v31, 4  ;;  %v10041_v6 = vrot.slane %v10040_v62, 4 }
 0x676   : > { %v9820_v40 = vadd.s32 %v9819_v30, %v9818_v19  ;;  %v9857_v38 = vadd.s32 %v9856_v60, %v9855_v43  ;;  %v9894_v45 = vadd.s32 %v9893_v27, %v9892_v25  ;;  %v9931_v33 = vadd.s32 %v9930_v37, %v9929_v47 }
 0x677   : > { %v10078_v34 = vrot.slane %v10077_v10, 4  ;;  %v9968_v32 = vadd.s32 %v9967_v26, %v9966_v48  ;;  %v10005_v49 = vadd.s32 %v10004_v23, %v10003_v31  ;;  %v10042_v22 = vadd.s32 %v10041_v6, %v10040_v62 }
 0x678   : > { %v9821_v7 = vrot.slane %v9820_v40, 2  ;;  %v9858_v11 = vrot.slane %v9857_v38, 2  ;;  %v9895_v54 = vrot.slane %v9894_v45, 2  ;;  %v9932_v20 = vrot.slane %v9931_v33, 2 }
 0x679   : > { %v10079_v59 = vadd.s32 %v10078_v34, %v10077_v10  ;;  %v9969_v28 = vrot.slane %v9968_v32, 2  ;;  %v10006_v46 = vrot.slane %v10005_v49, 2  ;;  %v10043_v57 = vrot.slane %v10042_v22, 2 }
 0x67a   : > { %v9822_v50 = vadd.s32 %v9821_v7, %v9820_v40  ;;  %v9859_v55 = vadd.s32 %v9858_v11, %v9857_v38  ;;  %v9896_v36 = vadd.s32 %v9895_v54, %v9894_v45  ;;  %v9933_v16 = vadd.s32 %v9932_v20, %v9931_v33 }
 0x67b   : > { %v10080_v5 = vrot.slane %v10079_v59, 2  ;;  %v9970_v14 = vadd.s32 %v9969_v28, %v9968_v32  ;;  %v10007_v9 = vadd.s32 %v10006_v46, %v10005_v49  ;;  %v10044_v18 = vadd.s32 %v10043_v57, %v10042_v22 }
 0x67c   : > { %v9823_v52 = vrot.slane %v9822_v50, 1  ;;  %v9860_v35 = vrot.slane %v9859_v55, 1  ;;  %v9897_v24 = vrot.slane %v9896_v36, 1  ;;  %v9934_v2 = vrot.slane %v9933_v16, 1 }
 0x67d   : > { %v10081_v17 = vadd.s32 %v10080_v5, %v10079_v59  ;;  %v9971_v41 = vrot.slane %v9970_v14, 1  ;;  %v10008_v56 = vrot.slane %v10007_v9, 1  ;;  %v10045_v29 = vrot.slane %v10044_v18, 1 }
 0x67e   : > { %v9824_v12 = vadd.s32 %v9823_v52, %v9822_v50  ;;  %v9861_v21 = vadd.s32 %v9860_v35, %v9859_v55  ;;  %v9898_v53 = vadd.s32 %v9897_v24, %v9896_v36  ;;  %v9935_v15 = vadd.s32 %v9934_v2, %v9933_v16 }
 0x67f   : > { %v10082_v19 = vrot.slane %v10081_v17, 1  ;;  %v9972_v4 = vadd.s32 %v9971_v41, %v9970_v14  ;;  %v10009_v0 = vadd.s32 %v10008_v56, %v10007_v9  ;;  %v10046_v13 = vadd.s32 %v10045_v29, %v10044_v18 }
 0x680   : > { %v10084_v43 = vadd.s32 %v9824_v12, %v17219_v8  ;;  %v10085_v47 = vadd.s32 %v9861_v21, %v17221_v3  ;;  %v10086_v39 = vadd.s32 %v9898_v53, %v17223_v61  ;;  %v10087_v30 = vadd.s32 %v9935_v15, %v17225_v42 }
 0x681   : > { %v10083_v25 = vadd.s32 %v10082_v19, %v10081_v17  ;;  %v10088_v48 = vadd.s32 %v9972_v4, %v17227_v58  ;;  %v10089_v31 = vadd.s32 %v10009_v0, %v17229_v44  ;;  %v10090_v62 = vadd.s32 %v10046_v13, %v17231_v51 }
 0x682   : > { %v10092_v27 = vcombine.low %v10084_v43, %v10085_v47  ;;  %v10093_v37 = vcombine.low %v10086_v39, %v10087_v30 }
 0x683   : > { %v10091_v60 = vadd.s32 %v10083_v25, %v17233_v1  ;;  %v10094_v8 = vcombine.low %v10088_v48, %v10089_v31  ;;  %v6291_v1 = vld [vmem:[%s10382_s9] sm:$0xff] }
 0x684   : > { %v10102_v3 = vrot.slane %v10092_v27, %v17292_v63  ;;  %v10109_v61 = vrot.slane %v10093_v37, %v17292_v63 }
 0x685   : > { %v10095_v10 = vcombine.low %v10090_v62, %v10091_v60  ;;  %v10116_v42 = vrot.slane %v10094_v8, %v17292_v63 }
 0x686   : > { %v10124_v40 = vcombine.low %v10102_v3, %v10109_v61 }
 0x687   : > { %v10123_v58 = vrot.slane %v10095_v10, %v17292_v63 }
 0x688   : > { %v10132_v44 = vrot.slane %v10124_v40, %v17292_v63 }
 0x689   : > { %v10125_v26 = vcombine.low %v10116_v42, %v10123_v58 }
 0x68b   : > { %v10139_v51 = vrot.slane %v10125_v26, %v17292_v63 }
 0x68d   : > { %v10140_v23 = vcombine.low %v10132_v44, %v10139_v51 }
 0x68f   : > { %v10141_v6 = vadd.s32 %v10140_v23, %v6291_v1 }
 0x691   : > { %10142 = vst [vmem:[%s10382_s9] sm:$0xff] %v10141_v6 }
 0x692 PF: > { %s16_s21 = sadd.s32 1, %s10314_s21   ;;  %s17619_s19 = smov %s10310_s20 }
 0x693   : > { %p13_p10 = scmp.ge.s32.totalorder %s16_s21, 4   ;;  %s17620_s20 = smov %s17622_s0 }
 0x695   :  { %15 = sbr.rel (!%p13_p10) target bundleno = 3 (0x3), region = 73 }

</bundles_post_ra>
